<compile_context>
chip_gen: v5e
topology: v5e:2x2
jax: 0.10.0
libtpu: 0.0.40
codegen_flags: <defaults>
</compile_context>

<pallas_src>
import numpy as np
import jax
import jax.numpy as jnp
from jax.experimental import pallas as pl
from jax.experimental.pallas import tpu as pltpu

EXPANSION = 4
BN_EPS = 1e-5

_COMPILER_PARAMS = pltpu.CompilerParams(
    dimension_semantics=("arbitrary",),
    vmem_limit_bytes=32 * 1024 * 1024,
)


def _full_spec(shape):
    nd = len(shape)
    return pl.BlockSpec(shape, lambda i, _nd=nd: (0,) * _nd)


# ----------------------------------------------------------------------------
# In-kernel helpers (traced inside Pallas kernel bodies)
# ----------------------------------------------------------------------------
def _mm(a, w):
    """MXU matmul: bf16 inputs, f32 accumulation (epilogue stays f32)."""
    return jnp.dot(a.astype(jnp.bfloat16), w.astype(jnp.bfloat16),
                   preferred_element_type=jnp.float32)


def _conv3x3_taps(feat, g_ref, w_ref):
    """3x3 conv (pad=1, any stride) on the VMEM-resident feature map `feat`.

    g_ref[t] is a 0/1 spatial gather matrix (M_out, M_in) encoding tap t of the
    padded/strided stencil (all-zero rows = zero padding).  The conv is nine
    (gather @ feat) @ w[t] matmuls: no im2col materialization, no HBM round trip
    for the intermediate activation.  Gathers run in f32 (exact row selection);
    the channel GEMM runs in bf16 on the MXU with f32 accumulation.
    """
    acc = None
    for t in range(9):
        tapped = jnp.dot(g_ref[t], feat, preferred_element_type=jnp.float32)
        contrib = jnp.dot(tapped.astype(jnp.bfloat16), w_ref[t],
                          preferred_element_type=jnp.float32)
        acc = contrib if acc is None else acc + contrib
    return acc


# ----------------------------------------------------------------------------
# Pallas kernels
# ----------------------------------------------------------------------------
def _stem_kernel(p_ref, w_ref, b_ref, gp_ref, o_ref):
    # conv1 (as GEMM on pre-extracted patches) + folded BN + ReLU, then 3x3/s2
    # maxpool via in-kernel tap gathers.  Zero rows in gp stand in for the
    # -inf padding; this is exact because the pooled input is post-ReLU (>= 0).
    conv = jnp.maximum(_mm(p_ref[...], w_ref[...]) + b_ref[...], 0.0)
    pooled = jnp.dot(gp_ref[0], conv, preferred_element_type=jnp.float32)
    for t in range(1, 9):
        pooled = jnp.maximum(
            pooled, jnp.dot(gp_ref[t], conv, preferred_element_type=jnp.float32))
    o_ref[...] = pooled


def _bottleneck_ds_kernel(x_ref, xs_ref, w1_ref, b1_ref, g_ref, w2_ref, b2_ref,
                          w3_ref, b3_ref, ws_ref, bs_ref, o_ref):
    # Bottleneck with a projection shortcut (1x1, possibly strided).
    x = x_ref[...]
    out1 = jnp.maximum(_mm(x, w1_ref[...]) + b1_ref[...], 0.0)
    out2 = jnp.maximum(_conv3x3_taps(out1, g_ref, w2_ref) + b2_ref[...], 0.0)
    short = _mm(xs_ref[...], ws_ref[...]) + bs_ref[...]
    o_ref[...] = jnp.maximum(_mm(out2, w3_ref[...]) + b3_ref[...] + short, 0.0)


def _bottleneck_id_kernel(x_ref, w1_ref, b1_ref, g_ref, w2_ref, b2_ref,
                          w3_ref, b3_ref, o_ref):
    # Bottleneck with an identity shortcut (added in f32, no precision loss).
    x = x_ref[...]
    out1 = jnp.maximum(_mm(x, w1_ref[...]) + b1_ref[...], 0.0)
    out2 = jnp.maximum(_conv3x3_taps(out1, g_ref, w2_ref) + b2_ref[...], 0.0)
    o_ref[...] = jnp.maximum(_mm(out2, w3_ref[...]) + b3_ref[...] + x, 0.0)


def _head_kernel(c2_ref, c3_ref, tw_ref, tb_ref, lw_ref, lb_ref,
                 u_ref, g_ref, sw_ref, sb_ref, p2_ref, p3_ref):
    # toplayer 1x1, lateral 1x1, bilinear upsample (block-diag matrix) + add,
    # smooth 3x3 — all fused, p3/lateral/upsampled never leave VMEM.
    p3 = _mm(c3_ref[...], tw_ref[...]) + tb_ref[...]
    lat = _mm(c2_ref[...], lw_ref[...]) + lb_ref[...]
    pre = jnp.dot(u_ref[...], p3, preferred_element_type=jnp.float32) + lat
    p2_ref[...] = _conv3x3_taps(pre, g_ref, sw_ref) + sb_ref[...]
    p3_ref[...] = p3


# ----------------------------------------------------------------------------
# pallas_call wrappers
# ----------------------------------------------------------------------------
def _stem_call(patches, st):
    Mi, K = patches.shape
    C = st['w'].shape[1]
    Mo = st['gp'].shape[1]
    flops = int(2 * Mi * K * C + 2 * 9 * Mo * Mi * C)
    bytes_acc = int(4 * (Mi * K + Mo * C + 9 * Mo * Mi + C) + 2 * K * C)
    args = (patches, st['w'], st['b'], st['gp'])
    return pl.pallas_call(
        _stem_kernel,
        grid=(1,),
        in_specs=[_full_spec(a.shape) for a in args],
        out_specs=_full_spec((Mo, C)),
        out_shape=jax.ShapeDtypeStruct((Mo, C), jnp.float32),
        compiler_params=_COMPILER_PARAMS,
        cost_estimate=pl.CostEstimate(flops=flops, transcendentals=0,
                                      bytes_accessed=bytes_acc),
    )(*args)


def _bottleneck_call(x_flat, N, bp):
    H, W, s = bp['H'], bp['W'], bp['stride']
    Ho, Wo = bp['Ho'], bp['Wo']
    Mi, Cin = x_flat.shape
    Mo = N * Ho * Wo
    P = bp['w1'].shape[1]
    Cout = bp['w3'].shape[1]

    flops = 2 * (Mi * Cin * P + 9 * (Mo * Mi * P + Mo * P * P) + Mo * P * Cout)
    bytes_acc = (4 * (Mi * Cin + Mo * Cout + 9 * Mo * Mi)
                 + 2 * (Cin * P + 9 * P * P + P * Cout))

    common = [bp['w1'], bp['b1'], bp['g'], bp['w2'], bp['b2'], bp['w3'], bp['b3']]
    if 'ws' in bp:
        if s == 1:
            xs = x_flat
        else:
            xs = x_flat.reshape(N, H, W, Cin)[:, ::s, ::s, :].reshape(Mo, Cin)
        args = [x_flat, xs] + common + [bp['ws'], bp['bs']]
        kernel = _bottleneck_ds_kernel
        flops += 2 * Mo * Cin * Cout
        bytes_acc += 4 * Mo * Cin + 2 * Cin * Cout
    else:
        args = [x_flat] + common
        kernel = _bottleneck_id_kernel

    return pl.pallas_call(
        kernel,
        grid=(1,),
        in_specs=[_full_spec(a.shape) for a in args],
        out_specs=_full_spec((Mo, Cout)),
        out_shape=jax.ShapeDtypeStruct((Mo, Cout), jnp.float32),
        compiler_params=_COMPILER_PARAMS,
        cost_estimate=pl.CostEstimate(flops=int(flops), transcendentals=0,
                                      bytes_accessed=int(bytes_acc)),
    )(*args)


def _head_call(c2_flat, c3_flat, hd):
    M2, C2 = c2_flat.shape
    M3, C3 = c3_flat.shape
    C = hd['top_w'].shape[1]
    args = (c2_flat, c3_flat, hd['top_w'], hd['top_b'], hd['lat_w'], hd['lat_b'],
            hd['u'], hd['g'], hd['smooth_w'], hd['smooth_b'])
    flops = int(2 * (M3 * C3 * C + M2 * C2 * C + M2 * M3 * C
                     + 9 * (M2 * M2 * C + M2 * C * C)))
    bytes_acc = int(4 * (M2 * C2 + M3 * C3 + M2 * C + M3 * C + M2 * M3 + 9 * M2 * M2)
                    + 2 * (C3 * C + C2 * C + 9 * C * C))
    return pl.pallas_call(
        _head_kernel,
        grid=(1,),
        in_specs=[_full_spec(a.shape) for a in args],
        out_specs=(_full_spec((M2, C)), _full_spec((M3, C))),
        out_shape=(jax.ShapeDtypeStruct((M2, C), jnp.float32),
                   jax.ShapeDtypeStruct((M3, C), jnp.float32)),
        compiler_params=_COMPILER_PARAMS,
        cost_estimate=pl.CostEstimate(flops=flops, transcendentals=0,
                                      bytes_accessed=bytes_acc),
    )(*args)


# ----------------------------------------------------------------------------
# Host-side (trace-time) helpers: gather matrices, interp matrix, weight prep
# ----------------------------------------------------------------------------
def _conv3x3_gather(N, H, W, stride):
    """(9, N*Ho*Wo, N*H*W) 0/1 tap-gather matrices for a 3x3, pad=1 stencil."""
    Ho = (H + 2 - 3) // stride + 1
    Wo = (W + 2 - 3) // stride + 1
    G = np.zeros((9, N * Ho * Wo, N * H * W), np.float32)
    for n in range(N):
        for ho in range(Ho):
            for wo in range(Wo):
                mo = (n * Ho + ho) * Wo + wo
                for kh in range(3):
                    for kw in range(3):
                        hi = ho * stride - 1 + kh
                        wi = wo * stride - 1 + kw
                        if 0 <= hi < H and 0 <= wi < W:
                            G[kh * 3 + kw, mo, (n * H + hi) * W + wi] = 1.0
    return G


def _interp_matrix(out_size, in_size):
    # PyTorch F.interpolate(mode='bilinear', align_corners=False) source-index rule.
    A = np.zeros((out_size, in_size), np.float32)
    scale = in_size / out_size
    for o in range(out_size):
        src = max((o + 0.5) * scale - 0.5, 0.0)
        i0 = min(int(np.floor(src)), in_size - 1)
        i1 = min(i0 + 1, in_size - 1)
        w1 = src - i0
        A[o, i0] += 1.0 - w1
        A[o, i1] += w1
    return A


def _row(v):
    return v.reshape(1, -1).astype(jnp.float32)


def _conv1x1_mat(w_oihw, scale=None):
    """(Cout, Cin, 1, 1) -> (Cin, Cout) bf16, optionally folding a per-Cout BN scale."""
    cout, cin = w_oihw.shape[0], w_oihw.shape[1]
    m = jnp.transpose(w_oihw, (2, 3, 1, 0)).reshape(cin, cout)
    if scale is not None:
        m = m * scale[None, :]
    return m.astype(jnp.bfloat16)


def _conv3x3_mats(w_oihw, scale=None):
    """(Cout, Cin, 3, 3) -> (9, Cin, Cout) bf16 (tap-major kh*3+kw), BN scale folded."""
    cout, cin = w_oihw.shape[0], w_oihw.shape[1]
    m = jnp.transpose(w_oihw, (2, 3, 1, 0)).reshape(9, cin, cout)
    if scale is not None:
        m = m * scale[None, None, :]
    return m.astype(jnp.bfloat16)


def prepare_kernel_params(params, batch, in_hw):
    """One-time conversion of the module parameters into kernel-ready operands."""
    N = batch
    H0, W0 = in_hw
    kp = {}

    # stem: conv1 (7x7 s2 p3) + BN + ReLU + maxpool (3x3 s2 p1)
    H1 = (H0 + 6 - 7) // 2 + 1
    W1 = (W0 + 6 - 7) // 2 + 1
    Hp = (H1 + 2 - 3) // 2 + 1
    Wp = (W1 + 2 - 3) // 2 + 1
    wmat = jnp.transpose(params['conv1_w'], (2, 3, 1, 0)).reshape(-1, 64)
    wmat = wmat * params['bn1_s'][None, :]
    k_raw = wmat.shape[0]
    k_pad = max(64, ((k_raw + 7) // 8) * 8)        # pad conv1 K (49 -> 64)
    wmat = jnp.pad(wmat, ((0, k_pad - k_raw), (0, 0)))
    kp['stem'] = dict(w=wmat.astype(jnp.bfloat16), b=_row(params['bn1_b']),
                      gp=jnp.asarray(_conv3x3_gather(N, H1, W1, 2)),
                      K=k_pad, H1=H1, W1=W1, Hp=Hp, Wp=Wp)

    def prep_block(bp, H, W):
        s = bp['stride']
        Ho = (H + 2 - 3) // s + 1
        Wo = (W + 2 - 3) // s + 1
        d = dict(stride=s, H=H, W=W, Ho=Ho, Wo=Wo,
                 w1=_conv1x1_mat(bp['w1'], bp['s1']), b1=_row(bp['b1']),
                 w2=_conv3x3_mats(bp['w2'], bp['s2']), b2=_row(bp['b2']),
                 g=jnp.asarray(_conv3x3_gather(N, H, W, s)),
                 w3=_conv1x1_mat(bp['w3'], bp['s3']), b3=_row(bp['b3']))
        if 'ws' in bp:
            d['ws'] = _conv1x1_mat(bp['ws'], bp['ss'])
            d['bs'] = _row(bp['bs'])
        return d, Ho, Wo

    H, W = Hp, Wp
    kp['layer1'] = []
    for bp in params['layer1']:
        d, H, W = prep_block(bp, H, W)
        kp['layer1'].append(d)
    H2, W2 = H, W
    kp['layer2'] = []
    for bp in params['layer2']:
        d, H, W = prep_block(bp, H, W)
        kp['layer2'].append(d)
    H3, W3 = H, W

    u = np.kron(np.eye(N, dtype=np.float32),
                np.kron(_interp_matrix(H2, H3), _interp_matrix(W2, W3))).astype(np.float32)
    kp['head'] = dict(
        top_w=_conv1x1_mat(params['top_w']), top_b=_row(params['top_b']),
        lat_w=_conv1x1_mat(params['lat_w']), lat_b=_row(params['lat_b']),
        smooth_w=_conv3x3_mats(params['smooth_w']), smooth_b=_row(params['smooth_b']),
        u=jnp.asarray(u), g=jnp.asarray(_conv3x3_gather(N, H2, W2, 1)),
        H2=H2, W2=W2, H3=H3, W3=W3)
    return kp


# ----------------------------------------------------------------------------
# Forward pass (plain-JAX glue: NCHW<->NHWC transposes and conv1 patch extraction)
# ----------------------------------------------------------------------------
def _im2col(x_nhwc, kh, kw, stride, padding):
    N, H, W, C = x_nhwc.shape
    Ho = (H + 2 * padding - kh) // stride + 1
    Wo = (W + 2 * padding - kw) // stride + 1
    xp = jnp.pad(x_nhwc, ((0, 0), (padding, padding), (padding, padding), (0, 0)))
    cols = [xp[:, i:i + stride * (Ho - 1) + 1:stride,
               j:j + stride * (Wo - 1) + 1:stride, :]
            for i in range(kh) for j in range(kw)]
    return jnp.concatenate(cols, axis=-1).reshape(N * Ho * Wo, kh * kw * C)


def fpn_forward(x_nchw, kp):
    N = x_nchw.shape[0]
    x = jnp.transpose(x_nchw, (0, 2, 3, 1)).astype(jnp.float32)   # -> NHWC

    st = kp['stem']
    patches = _im2col(x, 7, 7, 2, 3)                              # (N*H1*W1, 49), Cin=1
    patches = jnp.pad(patches, ((0, 0), (0, st['K'] - patches.shape[1])))
    feat = _stem_call(patches, st)                                # (N*Hp*Wp, 64)

    for bp in kp['layer1']:
        feat = _bottleneck_call(feat, N, bp)
    c2 = feat                                                     # (N*H2*W2, 256)
    for bp in kp['layer2']:
        feat = _bottleneck_call(feat, N, bp)
    c3 = feat                                                     # (N*H3*W3, 512)

    hd = kp['head']
    p2_flat, p3_flat = _head_call(c2, c3, hd)
    C = p2_flat.shape[1]
    p2 = p2_flat.reshape(N, hd['H2'], hd['W2'], C).transpose(0, 3, 1, 2)
    p3 = p3_flat.reshape(N, hd['H3'], hd['W3'], C).transpose(0, 3, 1, 2)
    return p2, p3


# ----------------------------------------------------------------------------
# Deterministic parameter construction (synthetic init, no checkpoint)
# ----------------------------------------------------------------------------
def init_params(key, num_blocks=(2, 2)):
    kit = iter(jax.random.split(key, 256))

    def conv_w(cout, cin, k):
        fan_in = cin * k * k
        return jax.random.normal(next(kit), (cout, cin, k, k), jnp.float32) / np.sqrt(fan_in)

    def bn_fold(c):
        gamma = 1.0 + 0.1 * jax.random.normal(next(kit), (c,), jnp.float32)
        beta = 0.1 * jax.random.normal(next(kit), (c,), jnp.float32)
        mean = 0.1 * jax.random.normal(next(kit), (c,), jnp.float32)
        var = 1.0 + 0.5 * jax.random.uniform(next(kit), (c,), jnp.float32)
        scale = gamma / jnp.sqrt(var + BN_EPS)
        shift = beta - mean * scale
        return scale, shift

    def bottleneck_params(in_planes, planes, stride):
        p = {'stride': stride}
        p['w1'] = conv_w(planes, in_planes, 1)
        p['s1'], p['b1'] = bn_fold(planes)
        p['w2'] = conv_w(planes, planes, 3)
        p['s2'], p['b2'] = bn_fold(planes)
        p['w3'] = conv_w(EXPANSION * planes, planes, 1)
        p['s3'], p['b3'] = bn_fold(EXPANSION * planes)
        if stride != 1 or in_planes != EXPANSION * planes:
            p['ws'] = conv_w(EXPANSION * planes, in_planes, 1)
            p['ss'], p['bs'] = bn_fold(EXPANSION * planes)
        return p

    params = {}
    params['conv1_w'] = conv_w(64, 1, 7)
    params['bn1_s'], params['bn1_b'] = bn_fold(64)

    in_planes = 64

    def make_layer(planes, nb, stride):
        nonlocal in_planes
        blocks = []
        for s in [stride] + [1] * (nb - 1):
            blocks.append(bottleneck_params(in_planes, planes, s))
            in_planes = planes * EXPANSION
        return blocks

    params['layer1'] = make_layer(64, num_blocks[0], 1)
    params['layer2'] = make_layer(128, num_blocks[1], 2)

    params['top_w'] = conv_w(256, 512, 1)
    params['top_b'] = 0.01 * jax.random.normal(next(kit), (256,), jnp.float32)
    params['lat_w'] = conv_w(256, 256, 1)
    params['lat_b'] = 0.01 * jax.random.normal(next(kit), (256,), jnp.float32)
    params['smooth_w'] = conv_w(256, 256, 3)
    params['smooth_b'] = 0.01 * jax.random.normal(next(kit), (256,), jnp.float32)
    return params


# ----------------------------------------------------------------------------
# Plain-JAX/XLA reference (NCHW, f32 HIGHEST precision), for a numeric cross-check
# ----------------------------------------------------------------------------
def _conv_ref(x, w, scale, bias, stride, padding, relu=False, residual=None):
    y = jax.lax.conv_general_dilated(
        x, w, window_strides=(stride, stride),
        padding=[(padding, padding), (padding, padding)],
        dimension_numbers=('NCHW', 'OIHW', 'NCHW'),
        precision=jax.lax.Precision.HIGHEST)
    y = y * scale[None, :, None, None] + bias[None, :, None, None]
    if residual is not None:
        y = y + residual
    if relu:
        y = jnp.maximum(y, 0.0)
    return y


def fpn_ref(x, params):
    c1 = _conv_ref(x, params['conv1_w'], params['bn1_s'], params['bn1_b'], 2, 3, relu=True)
    c1 = jax.lax.reduce_window(c1, -jnp.inf, jax.lax.max,
                               (1, 1, 3, 3), (1, 1, 2, 2),
                               [(0, 0), (0, 0), (1, 1), (1, 1)])

    def block_ref(x, p):
        s = p['stride']
        out = _conv_ref(x, p['w1'], p['s1'], p['b1'], 1, 0, relu=True)
        out = _conv_ref(out, p['w2'], p['s2'], p['b2'], s, 1, relu=True)
        short = _conv_ref(x, p['ws'], p['ss'], p['bs'], s, 0) if 'ws' in p else x
        return _conv_ref(out, p['w3'], p['s3'], p['b3'], 1, 0, relu=True, residual=short)

    c2 = c1
    for bp in params['layer1']:
        c2 = block_ref(c2, bp)
    c3 = c2
    for bp in params['layer2']:
        c3 = block_ref(c3, bp)
    ones = jnp.ones((256,), jnp.float32)
    p3 = _conv_ref(c3, params['top_w'], ones, params['top_b'], 1, 0)
    lat = _conv_ref(c2, params['lat_w'], ones, params['lat_b'], 1, 0)
    N, C, H3, W3 = p3.shape
    _, _, H2, W2 = lat.shape
    U = jnp.asarray(np.kron(_interp_matrix(H2, H3), _interp_matrix(W2, W3)))
    up = jnp.einsum('pq,ncq->ncp', U, p3.reshape(N, C, H3 * W3),
                    precision=jax.lax.Precision.HIGHEST).reshape(N, C, H2, W2)
    p2 = _conv_ref(up + lat, params['smooth_w'], ones, params['smooth_b'], 1, 1)
    return p2, p3


if __name__ == "__main__":
    key = jax.random.PRNGKey(0)
    pkey, xkey = jax.random.split(key)
    params = init_params(pkey, num_blocks=(2, 2))
    # x: NCHW, single input channel (matches nn.Conv2d(1, 64, ...))
    x = jax.random.normal(xkey, (2, 1, 16, 16), jnp.float32)

    kp = prepare_kernel_params(params, batch=x.shape[0],
                               in_hw=(x.shape[2], x.shape[3]))
    fwd = jax.jit(lambda inp: fpn_forward(inp, kp))
    p2, p3 = fwd(x)
    jax.block_until_ready((p2, p3))

    assert p2.shape == (2, 256, 4, 4), p2.shape
    assert p3.shape == (2, 256, 2, 2), p3.shape
    assert bool(jnp.isfinite(p2).all()) and bool(jnp.isfinite(p3).all())

    # bf16 MXU inputs -> compare against the f32 XLA reference at bf16-level tolerance.
    r2, r3 = fpn_ref(x, params)
    assert bool(jnp.allclose(p3, r3, rtol=5e-2, atol=5e-2)), float(jnp.abs(p3 - r3).max())
    assert bool(jnp.allclose(p2, r2, rtol=5e-2, atol=5e-2)), float(jnp.abs(p2 - r2).max())

    print("KERNEL_OK")
</pallas_src>

<mosaic_0001>
module attributes {stable_mosaic.version = 11 : i64} {
  func.func @_stem_kernel(%arg0: i32, %arg1: memref<128x64xf32, #tpu.memory_space<vmem>>, %arg2: memref<64x64xbf16, #tpu.memory_space<vmem>>, %arg3: memref<1x64xf32, #tpu.memory_space<vmem>>, %arg4: memref<9x32x128xf32, #tpu.memory_space<vmem>>, %arg5: memref<32x64xf32, #tpu.memory_space<vmem>>) attributes {dimension_semantics = [#tpu.dimension_semantics<arbitrary>], iteration_bounds = array<i64: 1>, scalar_prefetch = 0 : i64, scratch_operands = 0 : i64, tpu.core_type = #tpu.core_type<tc>, window_params = [{pipeline_mode = #tpu.pipeline_mode<synchronous>, transform_indices = @transform_0, window_bounds = array<i64: 128, 64>}, {pipeline_mode = #tpu.pipeline_mode<synchronous>, transform_indices = @transform_1, window_bounds = array<i64: 64, 64>}, {pipeline_mode = #tpu.pipeline_mode<synchronous>, transform_indices = @transform_2, window_bounds = array<i64: 1, 64>}, {pipeline_mode = #tpu.pipeline_mode<synchronous>, transform_indices = @transform_3, window_bounds = array<i64: 9, 32, 128>}, {pipeline_mode = #tpu.pipeline_mode<synchronous>, transform_indices = @transform_4, window_bounds = array<i64: 32, 64>}]} {
    %c0 = arith.constant 0 : index
    %c0_0 = arith.constant 0 : index
    %0 = vector.load %arg1[%c0, %c0_0] : memref<128x64xf32, #tpu.memory_space<vmem>>, vector<128x64xf32>
    %c0_1 = arith.constant 0 : index
    %c0_2 = arith.constant 0 : index
    %1 = vector.load %arg2[%c0_1, %c0_2] : memref<64x64xbf16, #tpu.memory_space<vmem>>, vector<64x64xbf16>
    %2 = arith.truncf %0 : vector<128x64xf32> to vector<128x64xbf16>
    %cst = arith.constant dense<0.000000e+00> : vector<128x64xf32>
    %3 = tpu.matmul %2, %1, %cst {dimension_numbers = #tpu.dot_dimension_numbers<[1], [0], [0], [1], [0, 0, 1, 1], [], []>} : vector<128x64xbf16>, vector<64x64xbf16>, vector<128x64xf32> -> vector<128x64xf32>
    %c0_3 = arith.constant 0 : index
    %c0_4 = arith.constant 0 : index
    %4 = vector.load %arg3[%c0_3, %c0_4] : memref<1x64xf32, #tpu.memory_space<vmem>>, vector<1x64xf32>
    %5 = vector.broadcast %4 : vector<1x64xf32> to vector<128x64xf32>
    %6 = arith.addf %3, %5 : vector<128x64xf32>
    %cst_5 = arith.constant 0.000000e+00 : f32
    %7 = vector.broadcast %cst_5 : f32 to vector<128x64xf32>
    %8 = arith.maximumf %6, %7 : vector<128x64xf32>
    %c0_6 = arith.constant 0 : index
    %c0_7 = arith.constant 0 : index
    %c0_8 = arith.constant 0 : index
    %9 = vector.load %arg4[%c0_6, %c0_7, %c0_8] : memref<9x32x128xf32, #tpu.memory_space<vmem>>, vector<1x32x128xf32>
    %10 = vector.shape_cast %9 : vector<1x32x128xf32> to vector<32x128xf32>
    %cst_9 = arith.constant dense<0.000000e+00> : vector<32x64xf32>
    %11 = tpu.matmul %10, %8, %cst_9 {dimension_numbers = #tpu.dot_dimension_numbers<[1], [0], [0], [1], [0, 0, 1, 1], [], []>} : vector<32x128xf32>, vector<128x64xf32>, vector<32x64xf32> -> vector<32x64xf32>
    %c1 = arith.constant 1 : index
    %c0_10 = arith.constant 0 : index
    %c0_11 = arith.constant 0 : index
    %12 = vector.load %arg4[%c1, %c0_10, %c0_11] : memref<9x32x128xf32, #tpu.memory_space<vmem>>, vector<1x32x128xf32>
    %13 = vector.shape_cast %12 : vector<1x32x128xf32> to vector<32x128xf32>
    %cst_12 = arith.constant dense<0.000000e+00> : vector<32x64xf32>
    %14 = tpu.matmul %13, %8, %cst_12 {dimension_numbers = #tpu.dot_dimension_numbers<[1], [0], [0], [1], [0, 0, 1, 1], [], []>} : vector<32x128xf32>, vector<128x64xf32>, vector<32x64xf32> -> vector<32x64xf32>
    %15 = arith.maximumf %11, %14 : vector<32x64xf32>
    %c2 = arith.constant 2 : index
    %c0_13 = arith.constant 0 : index
    %c0_14 = arith.constant 0 : index
    %16 = vector.load %arg4[%c2, %c0_13, %c0_14] : memref<9x32x128xf32, #tpu.memory_space<vmem>>, vector<1x32x128xf32>
    %17 = vector.shape_cast %16 : vector<1x32x128xf32> to vector<32x128xf32>
    %cst_15 = arith.constant dense<0.000000e+00> : vector<32x64xf32>
    %18 = tpu.matmul %17, %8, %cst_15 {dimension_numbers = #tpu.dot_dimension_numbers<[1], [0], [0], [1], [0, 0, 1, 1], [], []>} : vector<32x128xf32>, vector<128x64xf32>, vector<32x64xf32> -> vector<32x64xf32>
    %19 = arith.maximumf %15, %18 : vector<32x64xf32>
    %c3 = arith.constant 3 : index
    %c0_16 = arith.constant 0 : index
    %c0_17 = arith.constant 0 : index
    %20 = vector.load %arg4[%c3, %c0_16, %c0_17] : memref<9x32x128xf32, #tpu.memory_space<vmem>>, vector<1x32x128xf32>
    %21 = vector.shape_cast %20 : vector<1x32x128xf32> to vector<32x128xf32>
    %cst_18 = arith.constant dense<0.000000e+00> : vector<32x64xf32>
    %22 = tpu.matmul %21, %8, %cst_18 {dimension_numbers = #tpu.dot_dimension_numbers<[1], [0], [0], [1], [0, 0, 1, 1], [], []>} : vector<32x128xf32>, vector<128x64xf32>, vector<32x64xf32> -> vector<32x64xf32>
    %23 = arith.maximumf %19, %22 : vector<32x64xf32>
    %c4 = arith.constant 4 : index
    %c0_19 = arith.constant 0 : index
    %c0_20 = arith.constant 0 : index
    %24 = vector.load %arg4[%c4, %c0_19, %c0_20] : memref<9x32x128xf32, #tpu.memory_space<vmem>>, vector<1x32x128xf32>
    %25 = vector.shape_cast %24 : vector<1x32x128xf32> to vector<32x128xf32>
    %cst_21 = arith.constant dense<0.000000e+00> : vector<32x64xf32>
    %26 = tpu.matmul %25, %8, %cst_21 {dimension_numbers = #tpu.dot_dimension_numbers<[1], [0], [0], [1], [0, 0, 1, 1], [], []>} : vector<32x128xf32>, vector<128x64xf32>, vector<32x64xf32> -> vector<32x64xf32>
    %27 = arith.maximumf %23, %26 : vector<32x64xf32>
    %c5 = arith.constant 5 : index
    %c0_22 = arith.constant 0 : index
    %c0_23 = arith.constant 0 : index
    %28 = vector.load %arg4[%c5, %c0_22, %c0_23] : memref<9x32x128xf32, #tpu.memory_space<vmem>>, vector<1x32x128xf32>
    %29 = vector.shape_cast %28 : vector<1x32x128xf32> to vector<32x128xf32>
    %cst_24 = arith.constant dense<0.000000e+00> : vector<32x64xf32>
    %30 = tpu.matmul %29, %8, %cst_24 {dimension_numbers = #tpu.dot_dimension_numbers<[1], [0], [0], [1], [0, 0, 1, 1], [], []>} : vector<32x128xf32>, vector<128x64xf32>, vector<32x64xf32> -> vector<32x64xf32>
    %31 = arith.maximumf %27, %30 : vector<32x64xf32>
    %c6 = arith.constant 6 : index
    %c0_25 = arith.constant 0 : index
    %c0_26 = arith.constant 0 : index
    %32 = vector.load %arg4[%c6, %c0_25, %c0_26] : memref<9x32x128xf32, #tpu.memory_space<vmem>>, vector<1x32x128xf32>
    %33 = vector.shape_cast %32 : vector<1x32x128xf32> to vector<32x128xf32>
    %cst_27 = arith.constant dense<0.000000e+00> : vector<32x64xf32>
    %34 = tpu.matmul %33, %8, %cst_27 {dimension_numbers = #tpu.dot_dimension_numbers<[1], [0], [0], [1], [0, 0, 1, 1], [], []>} : vector<32x128xf32>, vector<128x64xf32>, vector<32x64xf32> -> vector<32x64xf32>
    %35 = arith.maximumf %31, %34 : vector<32x64xf32>
    %c7 = arith.constant 7 : index
    %c0_28 = arith.constant 0 : index
    %c0_29 = arith.constant 0 : index
    %36 = vector.load %arg4[%c7, %c0_28, %c0_29] : memref<9x32x128xf32, #tpu.memory_space<vmem>>, vector<1x32x128xf32>
    %37 = vector.shape_cast %36 : vector<1x32x128xf32> to vector<32x128xf32>
    %cst_30 = arith.constant dense<0.000000e+00> : vector<32x64xf32>
    %38 = tpu.matmul %37, %8, %cst_30 {dimension_numbers = #tpu.dot_dimension_numbers<[1], [0], [0], [1], [0, 0, 1, 1], [], []>} : vector<32x128xf32>, vector<128x64xf32>, vector<32x64xf32> -> vector<32x64xf32>
    %39 = arith.maximumf %35, %38 : vector<32x64xf32>
    %c8 = arith.constant 8 : index
    %c0_31 = arith.constant 0 : index
    %c0_32 = arith.constant 0 : index
    %40 = vector.load %arg4[%c8, %c0_31, %c0_32] : memref<9x32x128xf32, #tpu.memory_space<vmem>>, vector<1x32x128xf32>
    %41 = vector.shape_cast %40 : vector<1x32x128xf32> to vector<32x128xf32>
    %cst_33 = arith.constant dense<0.000000e+00> : vector<32x64xf32>
    %42 = tpu.matmul %41, %8, %cst_33 {dimension_numbers = #tpu.dot_dimension_numbers<[1], [0], [0], [1], [0, 0, 1, 1], [], []>} : vector<32x128xf32>, vector<128x64xf32>, vector<32x64xf32> -> vector<32x64xf32>
    %43 = arith.maximumf %39, %42 : vector<32x64xf32>
    %c0_34 = arith.constant 0 : index
    %c0_35 = arith.constant 0 : index
    %44 = vector.load %arg5[%c0_34, %c0_35] : memref<32x64xf32, #tpu.memory_space<vmem>>, vector<32x64xf32>
    tpu.vector_store %arg5[%c0_34, %c0_35], %43 {strides = array<i32>} : memref<32x64xf32, #tpu.memory_space<vmem>>, vector<32x64xf32>,
    return
  }
  func.func @transform_0(%arg0: i32) -> (i32, i32) {
    %c0_i32 = arith.constant 0 : i32
    %c0_i32_0 = arith.constant 0 : i32
    %c0_i32_1 = arith.constant 0 : i32
    return %c0_i32, %c0_i32_0 : i32, i32
  }
  func.func @transform_1(%arg0: i32) -> (i32, i32) {
    %c0_i32 = arith.constant 0 : i32
    %c0_i32_0 = arith.constant 0 : i32
    %c0_i32_1 = arith.constant 0 : i32
    return %c0_i32, %c0_i32_0 : i32, i32
  }
  func.func @transform_2(%arg0: i32) -> (i32, i32) {
    %c0_i32 = arith.constant 0 : i32
    %c0_i32_0 = arith.constant 0 : i32
    %c0_i32_1 = arith.constant 0 : i32
    return %c0_i32, %c0_i32_0 : i32, i32
  }
  func.func @transform_3(%arg0: i32) -> (i32, i32, i32) {
    %c0_i32 = arith.constant 0 : i32
    %c0_i32_0 = arith.constant 0 : i32
    %c0_i32_1 = arith.constant 0 : i32
    %c0_i32_2 = arith.constant 0 : i32
    return %c0_i32, %c0_i32_0, %c0_i32_1 : i32, i32, i32
  }
  func.func @transform_4(%arg0: i32) -> (i32, i32) {
    %c0_i32 = arith.constant 0 : i32
    %c0_i32_0 = arith.constant 0 : i32
    %c0_i32_1 = arith.constant 0 : i32
    return %c0_i32, %c0_i32_0 : i32, i32
  }
}

module attributes {stable_mosaic.version = 11 : i64} {
  func.func @_bottleneck_ds_kernel(%arg0: i32, %arg1: memref<32x64xf32, #tpu.memory_space<vmem>>, %arg2: memref<32x64xf32, #tpu.memory_space<vmem>>, %arg3: memref<64x64xbf16, #tpu.memory_space<vmem>>, %arg4: memref<1x64xf32, #tpu.memory_space<vmem>>, %arg5: memref<9x32x32xf32, #tpu.memory_space<vmem>>, %arg6: memref<9x64x64xbf16, #tpu.memory_space<vmem>>, %arg7: memref<1x64xf32, #tpu.memory_space<vmem>>, %arg8: memref<64x256xbf16, #tpu.memory_space<vmem>>, %arg9: memref<1x256xf32, #tpu.memory_space<vmem>>, %arg10: memref<64x256xbf16, #tpu.memory_space<vmem>>, %arg11: memref<1x256xf32, #tpu.memory_space<vmem>>, %arg12: memref<32x256xf32, #tpu.memory_space<vmem>>) attributes {dimension_semantics = [#tpu.dimension_semantics<arbitrary>], iteration_bounds = array<i64: 1>, scalar_prefetch = 0 : i64, scratch_operands = 0 : i64, tpu.core_type = #tpu.core_type<tc>, window_params = [{pipeline_mode = #tpu.pipeline_mode<synchronous>, transform_indices = @transform_0, window_bounds = array<i64: 32, 64>}, {pipeline_mode = #tpu.pipeline_mode<synchronous>, transform_indices = @transform_1, window_bounds = array<i64: 32, 64>}, {pipeline_mode = #tpu.pipeline_mode<synchronous>, transform_indices = @transform_2, window_bounds = array<i64: 64, 64>}, {pipeline_mode = #tpu.pipeline_mode<synchronous>, transform_indices = @transform_3, window_bounds = array<i64: 1, 64>}, {pipeline_mode = #tpu.pipeline_mode<synchronous>, transform_indices = @transform_4, window_bounds = array<i64: 9, 32, 32>}, {pipeline_mode = #tpu.pipeline_mode<synchronous>, transform_indices = @transform_5, window_bounds = array<i64: 9, 64, 64>}, {pipeline_mode = #tpu.pipeline_mode<synchronous>, transform_indices = @transform_6, window_bounds = array<i64: 1, 64>}, {pipeline_mode = #tpu.pipeline_mode<synchronous>, transform_indices = @transform_7, window_bounds = array<i64: 64, 256>}, {pipeline_mode = #tpu.pipeline_mode<synchronous>, transform_indices = @transform_8, window_bounds = array<i64: 1, 256>}, {pipeline_mode = #tpu.pipeline_mode<synchronous>, transform_indices = @transform_9, window_bounds = array<i64: 64, 256>}, {pipeline_mode = #tpu.pipeline_mode<synchronous>, transform_indices = @transform_10, window_bounds = array<i64: 1, 256>}, {pipeline_mode = #tpu.pipeline_mode<synchronous>, transform_indices = @transform_11, window_bounds = array<i64: 32, 256>}]} {
    %c0 = arith.constant 0 : index
    %c0_0 = arith.constant 0 : index
    %0 = vector.load %arg1[%c0, %c0_0] : memref<32x64xf32, #tpu.memory_space<vmem>>, vector<32x64xf32>
    %c0_1 = arith.constant 0 : index
    %c0_2 = arith.constant 0 : index
    %1 = vector.load %arg3[%c0_1, %c0_2] : memref<64x64xbf16, #tpu.memory_space<vmem>>, vector<64x64xbf16>
    %2 = arith.truncf %0 : vector<32x64xf32> to vector<32x64xbf16>
    %cst = arith.constant dense<0.000000e+00> : vector<32x64xf32>
    %3 = tpu.matmul %2, %1, %cst {dimension_numbers = #tpu.dot_dimension_numbers<[1], [0], [0], [1], [0, 0, 1, 1], [], []>} : vector<32x64xbf16>, vector<64x64xbf16>, vector<32x64xf32> -> vector<32x64xf32>
    %c0_3 = arith.constant 0 : index
    %c0_4 = arith.constant 0 : index
    %4 = vector.load %arg4[%c0_3, %c0_4] : memref<1x64xf32, #tpu.memory_space<vmem>>, vector<1x64xf32>
    %5 = vector.broadcast %4 : vector<1x64xf32> to vector<32x64xf32>
    %6 = arith.addf %3, %5 : vector<32x64xf32>
    %cst_5 = arith.constant 0.000000e+00 : f32
    %7 = vector.broadcast %cst_5 : f32 to vector<32x64xf32>
    %8 = arith.maximumf %6, %7 : vector<32x64xf32>
    %c0_6 = arith.constant 0 : index
    %c0_7 = arith.constant 0 : index
    %c0_8 = arith.constant 0 : index
    %9 = vector.load %arg5[%c0_6, %c0_7, %c0_8] : memref<9x32x32xf32, #tpu.memory_space<vmem>>, vector<1x32x32xf32>
    %10 = vector.shape_cast %9 : vector<1x32x32xf32> to vector<32x32xf32>
    %cst_9 = arith.constant dense<0.000000e+00> : vector<32x64xf32>
    %11 = tpu.matmul %10, %8, %cst_9 {dimension_numbers = #tpu.dot_dimension_numbers<[1], [0], [0], [1], [0, 0, 1, 1], [], []>} : vector<32x32xf32>, vector<32x64xf32>, vector<32x64xf32> -> vector<32x64xf32>
    %12 = arith.truncf %11 : vector<32x64xf32> to vector<32x64xbf16>
    %c0_10 = arith.constant 0 : index
    %c0_11 = arith.constant 0 : index
    %c0_12 = arith.constant 0 : index
    %13 = vector.load %arg6[%c0_10, %c0_11, %c0_12] : memref<9x64x64xbf16, #tpu.memory_space<vmem>>, vector<1x64x64xbf16>
    %14 = vector.shape_cast %13 : vector<1x64x64xbf16> to vector<64x64xbf16>
    %cst_13 = arith.constant dense<0.000000e+00> : vector<32x64xf32>
    %15 = tpu.matmul %12, %14, %cst_13 {dimension_numbers = #tpu.dot_dimension_numbers<[1], [0], [0], [1], [0, 0, 1, 1], [], []>} : vector<32x64xbf16>, vector<64x64xbf16>, vector<32x64xf32> -> vector<32x64xf32>
    %c1 = arith.constant 1 : index
    %c0_14 = arith.constant 0 : index
    %c0_15 = arith.constant 0 : index
    %16 = vector.load %arg5[%c1, %c0_14, %c0_15] : memref<9x32x32xf32, #tpu.memory_space<vmem>>, vector<1x32x32xf32>
    %17 = vector.shape_cast %16 : vector<1x32x32xf32> to vector<32x32xf32>
    %cst_16 = arith.constant dense<0.000000e+00> : vector<32x64xf32>
    %18 = tpu.matmul %17, %8, %cst_16 {dimension_numbers = #tpu.dot_dimension_numbers<[1], [0], [0], [1], [0, 0, 1, 1], [], []>} : vector<32x32xf32>, vector<32x64xf32>, vector<32x64xf32> -> vector<32x64xf32>
    %19 = arith.truncf %18 : vector<32x64xf32> to vector<32x64xbf16>
    %c1_17 = arith.constant 1 : index
    %c0_18 = arith.constant 0 : index
    %c0_19 = arith.constant 0 : index
    %20 = vector.load %arg6[%c1_17, %c0_18, %c0_19] : memref<9x64x64xbf16, #tpu.memory_space<vmem>>, vector<1x64x64xbf16>
    %21 = vector.shape_cast %20 : vector<1x64x64xbf16> to vector<64x64xbf16>
    %cst_20 = arith.constant dense<0.000000e+00> : vector<32x64xf32>
    %22 = tpu.matmul %19, %21, %cst_20 {dimension_numbers = #tpu.dot_dimension_numbers<[1], [0], [0], [1], [0, 0, 1, 1], [], []>} : vector<32x64xbf16>, vector<64x64xbf16>, vector<32x64xf32> -> vector<32x64xf32>
    %23 = arith.addf %15, %22 : vector<32x64xf32>
    %c2 = arith.constant 2 : index
    %c0_21 = arith.constant 0 : index
    %c0_22 = arith.constant 0 : index
    %24 = vector.load %arg5[%c2, %c0_21, %c0_22] : memref<9x32x32xf32, #tpu.memory_space<vmem>>, vector<1x32x32xf32>
    %25 = vector.shape_cast %24 : vector<1x32x32xf32> to vector<32x32xf32>
    %cst_23 = arith.constant dense<0.000000e+00> : vector<32x64xf32>
    %26 = tpu.matmul %25, %8, %cst_23 {dimension_numbers = #tpu.dot_dimension_numbers<[1], [0], [0], [1], [0, 0, 1, 1], [], []>} : vector<32x32xf32>, vector<32x64xf32>, vector<32x64xf32> -> vector<32x64xf32>
    %27 = arith.truncf %26 : vector<32x64xf32> to vector<32x64xbf16>
    %c2_24 = arith.constant 2 : index
    %c0_25 = arith.constant 0 : index
    %c0_26 = arith.constant 0 : index
    %28 = vector.load %arg6[%c2_24, %c0_25, %c0_26] : memref<9x64x64xbf16, #tpu.memory_space<vmem>>, vector<1x64x64xbf16>
    %29 = vector.shape_cast %28 : vector<1x64x64xbf16> to vector<64x64xbf16>
    %cst_27 = arith.constant dense<0.000000e+00> : vector<32x64xf32>
    %30 = tpu.matmul %27, %29, %cst_27 {dimension_numbers = #tpu.dot_dimension_numbers<[1], [0], [0], [1], [0, 0, 1, 1], [], []>} : vector<32x64xbf16>, vector<64x64xbf16>, vector<32x64xf32> -> vector<32x64xf32>
    %31 = arith.addf %23, %30 : vector<32x64xf32>
    %c3 = arith.constant 3 : index
    %c0_28 = arith.constant 0 : index
    %c0_29 = arith.constant 0 : index
    %32 = vector.load %arg5[%c3, %c0_28, %c0_29] : memref<9x32x32xf32, #tpu.memory_space<vmem>>, vector<1x32x32xf32>
    %33 = vector.shape_cast %32 : vector<1x32x32xf32> to vector<32x32xf32>
    %cst_30 = arith.constant dense<0.000000e+00> : vector<32x64xf32>
    %34 = tpu.matmul %33, %8, %cst_30 {dimension_numbers = #tpu.dot_dimension_numbers<[1], [0], [0], [1], [0, 0, 1, 1], [], []>} : vector<32x32xf32>, vector<32x64xf32>, vector<32x64xf32> -> vector<32x64xf32>
    %35 = arith.truncf %34 : vector<32x64xf32> to vector<32x64xbf16>
    %c3_31 = arith.constant 3 : index
    %c0_32 = arith.constant 0 : index
    %c0_33 = arith.constant 0 : index
    %36 = vector.load %arg6[%c3_31, %c0_32, %c0_33] : memref<9x64x64xbf16, #tpu.memory_space<vmem>>, vector<1x64x64xbf16>
    %37 = vector.shape_cast %36 : vector<1x64x64xbf16> to vector<64x64xbf16>
    %cst_34 = arith.constant dense<0.000000e+00> : vector<32x64xf32>
    %38 = tpu.matmul %35, %37, %cst_34 {dimension_numbers = #tpu.dot_dimension_numbers<[1], [0], [0], [1], [0, 0, 1, 1], [], []>} : vector<32x64xbf16>, vector<64x64xbf16>, vector<32x64xf32> -> vector<32x64xf32>
    %39 = arith.addf %31, %38 : vector<32x64xf32>
    %c4 = arith.constant 4 : index
    %c0_35 = arith.constant 0 : index
    %c0_36 = arith.constant 0 : index
    %40 = vector.load %arg5[%c4, %c0_35, %c0_36] : memref<9x32x32xf32, #tpu.memory_space<vmem>>, vector<1x32x32xf32>
    %41 = vector.shape_cast %40 : vector<1x32x32xf32> to vector<32x32xf32>
    %cst_37 = arith.constant dense<0.000000e+00> : vector<32x64xf32>
    %42 = tpu.matmul %41, %8, %cst_37 {dimension_numbers = #tpu.dot_dimension_numbers<[1], [0], [0], [1], [0, 0, 1, 1], [], []>} : vector<32x32xf32>, vector<32x64xf32>, vector<32x64xf32> -> vector<32x64xf32>
    %43 = arith.truncf %42 : vector<32x64xf32> to vector<32x64xbf16>
    %c4_38 = arith.constant 4 : index
    %c0_39 = arith.constant 0 : index
    %c0_40 = arith.constant 0 : index
    %44 = vector.load %arg6[%c4_38, %c0_39, %c0_40] : memref<9x64x64xbf16, #tpu.memory_space<vmem>>, vector<1x64x64xbf16>
    %45 = vector.shape_cast %44 : vector<1x64x64xbf16> to vector<64x64xbf16>
    %cst_41 = arith.constant dense<0.000000e+00> : vector<32x64xf32>
    %46 = tpu.matmul %43, %45, %cst_41 {dimension_numbers = #tpu.dot_dimension_numbers<[1], [0], [0], [1], [0, 0, 1, 1], [], []>} : vector<32x64xbf16>, vector<64x64xbf16>, vector<32x64xf32> -> vector<32x64xf32>
    %47 = arith.addf %39, %46 : vector<32x64xf32>
    %c5 = arith.constant 5 : index
    %c0_42 = arith.constant 0 : index
    %c0_43 = arith.constant 0 : index
    %48 = vector.load %arg5[%c5, %c0_42, %c0_43] : memref<9x32x32xf32, #tpu.memory_space<vmem>>, vector<1x32x32xf32>
    %49 = vector.shape_cast %48 : vector<1x32x32xf32> to vector<32x32xf32>
    %cst_44 = arith.constant dense<0.000000e+00> : vector<32x64xf32>
    %50 = tpu.matmul %49, %8, %cst_44 {dimension_numbers = #tpu.dot_dimension_numbers<[1], [0], [0], [1], [0, 0, 1, 1], [], []>} : vector<32x32xf32>, vector<32x64xf32>, vector<32x64xf32> -> vector<32x64xf32>
    %51 = arith.truncf %50 : vector<32x64xf32> to vector<32x64xbf16>
    %c5_45 = arith.constant 5 : index
    %c0_46 = arith.constant 0 : index
    %c0_47 = arith.constant 0 : index
    %52 = vector.load %arg6[%c5_45, %c0_46, %c0_47] : memref<9x64x64xbf16, #tpu.memory_space<vmem>>, vector<1x64x64xbf16>
    %53 = vector.shape_cast %52 : vector<1x64x64xbf16> to vector<64x64xbf16>
    %cst_48 = arith.constant dense<0.000000e+00> : vector<32x64xf32>
    %54 = tpu.matmul %51, %53, %cst_48 {dimension_numbers = #tpu.dot_dimension_numbers<[1], [0], [0], [1], [0, 0, 1, 1], [], []>} : vector<32x64xbf16>, vector<64x64xbf16>, vector<32x64xf32> -> vector<32x64xf32>
    %55 = arith.addf %47, %54 : vector<32x64xf32>
    %c6 = arith.constant 6 : index
    %c0_49 = arith.constant 0 : index
    %c0_50 = arith.constant 0 : index
    %56 = vector.load %arg5[%c6, %c0_49, %c0_50] : memref<9x32x32xf32, #tpu.memory_space<vmem>>, vector<1x32x32xf32>
    %57 = vector.shape_cast %56 : vector<1x32x32xf32> to vector<32x32xf32>
    %cst_51 = arith.constant dense<0.000000e+00> : vector<32x64xf32>
    %58 = tpu.matmul %57, %8, %cst_51 {dimension_numbers = #tpu.dot_dimension_numbers<[1], [0], [0], [1], [0, 0, 1, 1], [], []>} : vector<32x32xf32>, vector<32x64xf32>, vector<32x64xf32> -> vector<32x64xf32>
    %59 = arith.truncf %58 : vector<32x64xf32> to vector<32x64xbf16>
    %c6_52 = arith.constant 6 : index
    %c0_53 = arith.constant 0 : index
    %c0_54 = arith.constant 0 : index
    %60 = vector.load %arg6[%c6_52, %c0_53, %c0_54] : memref<9x64x64xbf16, #tpu.memory_space<vmem>>, vector<1x64x64xbf16>
    %61 = vector.shape_cast %60 : vector<1x64x64xbf16> to vector<64x64xbf16>
    %cst_55 = arith.constant dense<0.000000e+00> : vector<32x64xf32>
    %62 = tpu.matmul %59, %61, %cst_55 {dimension_numbers = #tpu.dot_dimension_numbers<[1], [0], [0], [1], [0, 0, 1, 1], [], []>} : vector<32x64xbf16>, vector<64x64xbf16>, vector<32x64xf32> -> vector<32x64xf32>
    %63 = arith.addf %55, %62 : vector<32x64xf32>
    %c7 = arith.constant 7 : index
    %c0_56 = arith.constant 0 : index
    %c0_57 = arith.constant 0 : index
    %64 = vector.load %arg5[%c7, %c0_56, %c0_57] : memref<9x32x32xf32, #tpu.memory_space<vmem>>, vector<1x32x32xf32>
    %65 = vector.shape_cast %64 : vector<1x32x32xf32> to vector<32x32xf32>
    %cst_58 = arith.constant dense<0.000000e+00> : vector<32x64xf32>
    %66 = tpu.matmul %65, %8, %cst_58 {dimension_numbers = #tpu.dot_dimension_numbers<[1], [0], [0], [1], [0, 0, 1, 1], [], []>} : vector<32x32xf32>, vector<32x64xf32>, vector<32x64xf32> -> vector<32x64xf32>
    %67 = arith.truncf %66 : vector<32x64xf32> to vector<32x64xbf16>
    %c7_59 = arith.constant 7 : index
    %c0_60 = arith.constant 0 : index
    %c0_61 = arith.constant 0 : index
    %68 = vector.load %arg6[%c7_59, %c0_60, %c0_61] : memref<9x64x64xbf16, #tpu.memory_space<vmem>>, vector<1x64x64xbf16>
    %69 = vector.shape_cast %68 : vector<1x64x64xbf16> to vector<64x64xbf16>
    %cst_62 = arith.constant dense<0.000000e+00> : vector<32x64xf32>
    %70 = tpu.matmul %67, %69, %cst_62 {dimension_numbers = #tpu.dot_dimension_numbers<[1], [0], [0], [1], [0, 0, 1, 1], [], []>} : vector<32x64xbf16>, vector<64x64xbf16>, vector<32x64xf32> -> vector<32x64xf32>
    %71 = arith.addf %63, %70 : vector<32x64xf32>
    %c8 = arith.constant 8 : index
    %c0_63 = arith.constant 0 : index
    %c0_64 = arith.constant 0 : index
    %72 = vector.load %arg5[%c8, %c0_63, %c0_64] : memref<9x32x32xf32, #tpu.memory_space<vmem>>, vector<1x32x32xf32>
    %73 = vector.shape_cast %72 : vector<1x32x32xf32> to vector<32x32xf32>
    %cst_65 = arith.constant dense<0.000000e+00> : vector<32x64xf32>
    %74 = tpu.matmul %73, %8, %cst_65 {dimension_numbers = #tpu.dot_dimension_numbers<[1], [0], [0], [1], [0, 0, 1, 1], [], []>} : vector<32x32xf32>, vector<32x64xf32>, vector<32x64xf32> -> vector<32x64xf32>
    %75 = arith.truncf %74 : vector<32x64xf32> to vector<32x64xbf16>
    %c8_66 = arith.constant 8 : index
    %c0_67 = arith.constant 0 : index
    %c0_68 = arith.constant 0 : index
    %76 = vector.load %arg6[%c8_66, %c0_67, %c0_68] : memref<9x64x64xbf16, #tpu.memory_space<vmem>>, vector<1x64x64xbf16>
    %77 = vector.shape_cast %76 : vector<1x64x64xbf16> to vector<64x64xbf16>
    %cst_69 = arith.constant dense<0.000000e+00> : vector<32x64xf32>
    %78 = tpu.matmul %75, %77, %cst_69 {dimension_numbers = #tpu.dot_dimension_numbers<[1], [0], [0], [1], [0, 0, 1, 1], [], []>} : vector<32x64xbf16>, vector<64x64xbf16>, vector<32x64xf32> -> vector<32x64xf32>
    %79 = arith.addf %71, %78 : vector<32x64xf32>
    %c0_70 = arith.constant 0 : index
    %c0_71 = arith.constant 0 : index
    %80 = vector.load %arg7[%c0_70, %c0_71] : memref<1x64xf32, #tpu.memory_space<vmem>>, vector<1x64xf32>
    %81 = vector.broadcast %80 : vector<1x64xf32> to vector<32x64xf32>
    %82 = arith.addf %79, %81 : vector<32x64xf32>
    %cst_72 = arith.constant 0.000000e+00 : f32
    %83 = vector.broadcast %cst_72 : f32 to vector<32x64xf32>
    %84 = arith.maximumf %82, %83 : vector<32x64xf32>
    %c0_73 = arith.constant 0 : index
    %c0_74 = arith.constant 0 : index
    %85 = vector.load %arg2[%c0_73, %c0_74] : memref<32x64xf32, #tpu.memory_space<vmem>>, vector<32x64xf32>
    %c0_75 = arith.constant 0 : index
    %c0_76 = arith.constant 0 : index
    %86 = vector.load %arg10[%c0_75, %c0_76] : memref<64x256xbf16, #tpu.memory_space<vmem>>, vector<64x256xbf16>
    %87 = arith.truncf %85 : vector<32x64xf32> to vector<32x64xbf16>
    %cst_77 = arith.constant dense<0.000000e+00> : vector<32x256xf32>
    %88 = tpu.matmul %87, %86, %cst_77 {dimension_numbers = #tpu.dot_dimension_numbers<[1], [0], [0], [1], [0, 0, 1, 1], [], []>} : vector<32x64xbf16>, vector<64x256xbf16>, vector<32x256xf32> -> vector<32x256xf32>
    %c0_78 = arith.constant 0 : index
    %c0_79 = arith.constant 0 : index
    %89 = vector.load %arg11[%c0_78, %c0_79] : memref<1x256xf32, #tpu.memory_space<vmem>>, vector<1x256xf32>
    %90 = vector.broadcast %89 : vector<1x256xf32> to vector<32x256xf32>
    %91 = arith.addf %88, %90 : vector<32x256xf32>
    %c0_80 = arith.constant 0 : index
    %c0_81 = arith.constant 0 : index
    %92 = vector.load %arg8[%c0_80, %c0_81] : memref<64x256xbf16, #tpu.memory_space<vmem>>, vector<64x256xbf16>
    %93 = arith.truncf %84 : vector<32x64xf32> to vector<32x64xbf16>
    %cst_82 = arith.constant dense<0.000000e+00> : vector<32x256xf32>
    %94 = tpu.matmul %93, %92, %cst_82 {dimension_numbers = #tpu.dot_dimension_numbers<[1], [0], [0], [1], [0, 0, 1, 1], [], []>} : vector<32x64xbf16>, vector<64x256xbf16>, vector<32x256xf32> -> vector<32x256xf32>
    %c0_83 = arith.constant 0 : index
    %c0_84 = arith.constant 0 : index
    %95 = vector.load %arg9[%c0_83, %c0_84] : memref<1x256xf32, #tpu.memory_space<vmem>>, vector<1x256xf32>
    %96 = vector.broadcast %95 : vector<1x256xf32> to vector<32x256xf32>
    %97 = arith.addf %94, %96 : vector<32x256xf32>
    %98 = arith.addf %97, %91 : vector<32x256xf32>
    %cst_85 = arith.constant 0.000000e+00 : f32
    %99 = vector.broadcast %cst_85 : f32 to vector<32x256xf32>
    %100 = arith.maximumf %98, %99 : vector<32x256xf32>
    %c0_86 = arith.constant 0 : index
    %c0_87 = arith.constant 0 : index
    %101 = vector.load %arg12[%c0_86, %c0_87] : memref<32x256xf32, #tpu.memory_space<vmem>>, vector<32x256xf32>
    tpu.vector_store %arg12[%c0_86, %c0_87], %100 {strides = array<i32>} : memref<32x256xf32, #tpu.memory_space<vmem>>, vector<32x256xf32>,
    return
  }
  func.func @transform_0(%arg0: i32) -> (i32, i32) {
    %c0_i32 = arith.constant 0 : i32
    %c0_i32_0 = arith.constant 0 : i32
    %c0_i32_1 = arith.constant 0 : i32
    return %c0_i32, %c0_i32_0 : i32, i32
  }
  func.func @transform_1(%arg0: i32) -> (i32, i32) {
    %c0_i32 = arith.constant 0 : i32
    %c0_i32_0 = arith.constant 0 : i32
    %c0_i32_1 = arith.constant 0 : i32
    return %c0_i32, %c0_i32_0 : i32, i32
  }
  func.func @transform_2(%arg0: i32) -> (i32, i32) {
    %c0_i32 = arith.constant 0 : i32
    %c0_i32_0 = arith.constant 0 : i32
    %c0_i32_1 = arith.constant 0 : i32
    return %c0_i32, %c0_i32_0 : i32, i32
  }
  func.func @transform_3(%arg0: i32) -> (i32, i32) {
    %c0_i32 = arith.constant 0 : i32
    %c0_i32_0 = arith.constant 0 : i32
    %c0_i32_1 = arith.constant 0 : i32
    return %c0_i32, %c0_i32_0 : i32, i32
  }
  func.func @transform_4(%arg0: i32) -> (i32, i32, i32) {
    %c0_i32 = arith.constant 0 : i32
    %c0_i32_0 = arith.constant 0 : i32
    %c0_i32_1 = arith.constant 0 : i32
    %c0_i32_2 = arith.constant 0 : i32
    return %c0_i32, %c0_i32_0, %c0_i32_1 : i32, i32, i32
  }
  func.func @transform_5(%arg0: i32) -> (i32, i32, i32) {
    %c0_i32 = arith.constant 0 : i32
    %c0_i32_0 = arith.constant 0 : i32
    %c0_i32_1 = arith.constant 0 : i32
    %c0_i32_2 = arith.constant 0 : i32
    return %c0_i32, %c0_i32_0, %c0_i32_1 : i32, i32, i32
  }
  func.func @transform_6(%arg0: i32) -> (i32, i32) {
    %c0_i32 = arith.constant 0 : i32
    %c0_i32_0 = arith.constant 0 : i32
    %c0_i32_1 = arith.constant 0 : i32
    return %c0_i32, %c0_i32_0 : i32, i32
  }
  func.func @transform_7(%arg0: i32) -> (i32, i32) {
    %c0_i32 = arith.constant 0 : i32
    %c0_i32_0 = arith.constant 0 : i32
    %c0_i32_1 = arith.constant 0 : i32
    return %c0_i32, %c0_i32_0 : i32, i32
  }
  func.func @transform_8(%arg0: i32) -> (i32, i32) {
    %c0_i32 = arith.constant 0 : i32
    %c0_i32_0 = arith.constant 0 : i32
    %c0_i32_1 = arith.constant 0 : i32
    return %c0_i32, %c0_i32_0 : i32, i32
  }
  func.func @transform_9(%arg0: i32) -> (i32, i32) {
    %c0_i32 = arith.constant 0 : i32
    %c0_i32_0 = arith.constant 0 : i32
    %c0_i32_1 = arith.constant 0 : i32
    return %c0_i32, %c0_i32_0 : i32, i32
  }
  func.func @transform_10(%arg0: i32) -> (i32, i32) {
    %c0_i32 = arith.constant 0 : i32
    %c0_i32_0 = arith.constant 0 : i32
    %c0_i32_1 = arith.constant 0 : i32
    return %c0_i32, %c0_i32_0 : i32, i32
  }
  func.func @transform_11(%arg0: i32) -> (i32, i32) {
    %c0_i32 = arith.constant 0 : i32
    %c0_i32_0 = arith.constant 0 : i32
    %c0_i32_1 = arith.constant 0 : i32
    return %c0_i32, %c0_i32_0 : i32, i32
  }
}

module attributes {stable_mosaic.version = 11 : i64} {
  func.func @_bottleneck_id_kernel(%arg0: i32, %arg1: memref<32x256xf32, #tpu.memory_space<vmem>>, %arg2: memref<256x64xbf16, #tpu.memory_space<vmem>>, %arg3: memref<1x64xf32, #tpu.memory_space<vmem>>, %arg4: memref<9x32x32xf32, #tpu.memory_space<vmem>>, %arg5: memref<9x64x64xbf16, #tpu.memory_space<vmem>>, %arg6: memref<1x64xf32, #tpu.memory_space<vmem>>, %arg7: memref<64x256xbf16, #tpu.memory_space<vmem>>, %arg8: memref<1x256xf32, #tpu.memory_space<vmem>>, %arg9: memref<32x256xf32, #tpu.memory_space<vmem>>) attributes {dimension_semantics = [#tpu.dimension_semantics<arbitrary>], iteration_bounds = array<i64: 1>, scalar_prefetch = 0 : i64, scratch_operands = 0 : i64, tpu.core_type = #tpu.core_type<tc>, window_params = [{pipeline_mode = #tpu.pipeline_mode<synchronous>, transform_indices = @transform_0, window_bounds = array<i64: 32, 256>}, {pipeline_mode = #tpu.pipeline_mode<synchronous>, transform_indices = @transform_1, window_bounds = array<i64: 256, 64>}, {pipeline_mode = #tpu.pipeline_mode<synchronous>, transform_indices = @transform_2, window_bounds = array<i64: 1, 64>}, {pipeline_mode = #tpu.pipeline_mode<synchronous>, transform_indices = @transform_3, window_bounds = array<i64: 9, 32, 32>}, {pipeline_mode = #tpu.pipeline_mode<synchronous>, transform_indices = @transform_4, window_bounds = array<i64: 9, 64, 64>}, {pipeline_mode = #tpu.pipeline_mode<synchronous>, transform_indices = @transform_5, window_bounds = array<i64: 1, 64>}, {pipeline_mode = #tpu.pipeline_mode<synchronous>, transform_indices = @transform_6, window_bounds = array<i64: 64, 256>}, {pipeline_mode = #tpu.pipeline_mode<synchronous>, transform_indices = @transform_7, window_bounds = array<i64: 1, 256>}, {pipeline_mode = #tpu.pipeline_mode<synchronous>, transform_indices = @transform_8, window_bounds = array<i64: 32, 256>}]} {
    %c0 = arith.constant 0 : index
    %c0_0 = arith.constant 0 : index
    %0 = vector.load %arg1[%c0, %c0_0] : memref<32x256xf32, #tpu.memory_space<vmem>>, vector<32x256xf32>
    %c0_1 = arith.constant 0 : index
    %c0_2 = arith.constant 0 : index
    %1 = vector.load %arg2[%c0_1, %c0_2] : memref<256x64xbf16, #tpu.memory_space<vmem>>, vector<256x64xbf16>
    %2 = arith.truncf %0 : vector<32x256xf32> to vector<32x256xbf16>
    %cst = arith.constant dense<0.000000e+00> : vector<32x64xf32>
    %3 = tpu.matmul %2, %1, %cst {dimension_numbers = #tpu.dot_dimension_numbers<[1], [0], [0], [1], [0, 0, 1, 1], [], []>} : vector<32x256xbf16>, vector<256x64xbf16>, vector<32x64xf32> -> vector<32x64xf32>
    %c0_3 = arith.constant 0 : index
    %c0_4 = arith.constant 0 : index
    %4 = vector.load %arg3[%c0_3, %c0_4] : memref<1x64xf32, #tpu.memory_space<vmem>>, vector<1x64xf32>
    %5 = vector.broadcast %4 : vector<1x64xf32> to vector<32x64xf32>
    %6 = arith.addf %3, %5 : vector<32x64xf32>
    %cst_5 = arith.constant 0.000000e+00 : f32
    %7 = vector.broadcast %cst_5 : f32 to vector<32x64xf32>
    %8 = arith.maximumf %6, %7 : vector<32x64xf32>
    %c0_6 = arith.constant 0 : index
    %c0_7 = arith.constant 0 : index
    %c0_8 = arith.constant 0 : index
    %9 = vector.load %arg4[%c0_6, %c0_7, %c0_8] : memref<9x32x32xf32, #tpu.memory_space<vmem>>, vector<1x32x32xf32>
    %10 = vector.shape_cast %9 : vector<1x32x32xf32> to vector<32x32xf32>
    %cst_9 = arith.constant dense<0.000000e+00> : vector<32x64xf32>
    %11 = tpu.matmul %10, %8, %cst_9 {dimension_numbers = #tpu.dot_dimension_numbers<[1], [0], [0], [1], [0, 0, 1, 1], [], []>} : vector<32x32xf32>, vector<32x64xf32>, vector<32x64xf32> -> vector<32x64xf32>
    %12 = arith.truncf %11 : vector<32x64xf32> to vector<32x64xbf16>
    %c0_10 = arith.constant 0 : index
    %c0_11 = arith.constant 0 : index
    %c0_12 = arith.constant 0 : index
    %13 = vector.load %arg5[%c0_10, %c0_11, %c0_12] : memref<9x64x64xbf16, #tpu.memory_space<vmem>>, vector<1x64x64xbf16>
    %14 = vector.shape_cast %13 : vector<1x64x64xbf16> to vector<64x64xbf16>
    %cst_13 = arith.constant dense<0.000000e+00> : vector<32x64xf32>
    %15 = tpu.matmul %12, %14, %cst_13 {dimension_numbers = #tpu.dot_dimension_numbers<[1], [0], [0], [1], [0, 0, 1, 1], [], []>} : vector<32x64xbf16>, vector<64x64xbf16>, vector<32x64xf32> -> vector<32x64xf32>
    %c1 = arith.constant 1 : index
    %c0_14 = arith.constant 0 : index
    %c0_15 = arith.constant 0 : index
    %16 = vector.load %arg4[%c1, %c0_14, %c0_15] : memref<9x32x32xf32, #tpu.memory_space<vmem>>, vector<1x32x32xf32>
    %17 = vector.shape_cast %16 : vector<1x32x32xf32> to vector<32x32xf32>
    %cst_16 = arith.constant dense<0.000000e+00> : vector<32x64xf32>
    %18 = tpu.matmul %17, %8, %cst_16 {dimension_numbers = #tpu.dot_dimension_numbers<[1], [0], [0], [1], [0, 0, 1, 1], [], []>} : vector<32x32xf32>, vector<32x64xf32>, vector<32x64xf32> -> vector<32x64xf32>
    %19 = arith.truncf %18 : vector<32x64xf32> to vector<32x64xbf16>
    %c1_17 = arith.constant 1 : index
    %c0_18 = arith.constant 0 : index
    %c0_19 = arith.constant 0 : index
    %20 = vector.load %arg5[%c1_17, %c0_18, %c0_19] : memref<9x64x64xbf16, #tpu.memory_space<vmem>>, vector<1x64x64xbf16>
    %21 = vector.shape_cast %20 : vector<1x64x64xbf16> to vector<64x64xbf16>
    %cst_20 = arith.constant dense<0.000000e+00> : vector<32x64xf32>
    %22 = tpu.matmul %19, %21, %cst_20 {dimension_numbers = #tpu.dot_dimension_numbers<[1], [0], [0], [1], [0, 0, 1, 1], [], []>} : vector<32x64xbf16>, vector<64x64xbf16>, vector<32x64xf32> -> vector<32x64xf32>
    %23 = arith.addf %15, %22 : vector<32x64xf32>
    %c2 = arith.constant 2 : index
    %c0_21 = arith.constant 0 : index
    %c0_22 = arith.constant 0 : index
    %24 = vector.load %arg4[%c2, %c0_21, %c0_22] : memref<9x32x32xf32, #tpu.memory_space<vmem>>, vector<1x32x32xf32>
    %25 = vector.shape_cast %24 : vector<1x32x32xf32> to vector<32x32xf32>
    %cst_23 = arith.constant dense<0.000000e+00> : vector<32x64xf32>
    %26 = tpu.matmul %25, %8, %cst_23 {dimension_numbers = #tpu.dot_dimension_numbers<[1], [0], [0], [1], [0, 0, 1, 1], [], []>} : vector<32x32xf32>, vector<32x64xf32>, vector<32x64xf32> -> vector<32x64xf32>
    %27 = arith.truncf %26 : vector<32x64xf32> to vector<32x64xbf16>
    %c2_24 = arith.constant 2 : index
    %c0_25 = arith.constant 0 : index
    %c0_26 = arith.constant 0 : index
    %28 = vector.load %arg5[%c2_24, %c0_25, %c0_26] : memref<9x64x64xbf16, #tpu.memory_space<vmem>>, vector<1x64x64xbf16>
    %29 = vector.shape_cast %28 : vector<1x64x64xbf16> to vector<64x64xbf16>
    %cst_27 = arith.constant dense<0.000000e+00> : vector<32x64xf32>
    %30 = tpu.matmul %27, %29, %cst_27 {dimension_numbers = #tpu.dot_dimension_numbers<[1], [0], [0], [1], [0, 0, 1, 1], [], []>} : vector<32x64xbf16>, vector<64x64xbf16>, vector<32x64xf32> -> vector<32x64xf32>
    %31 = arith.addf %23, %30 : vector<32x64xf32>
    %c3 = arith.constant 3 : index
    %c0_28 = arith.constant 0 : index
    %c0_29 = arith.constant 0 : index
    %32 = vector.load %arg4[%c3, %c0_28, %c0_29] : memref<9x32x32xf32, #tpu.memory_space<vmem>>, vector<1x32x32xf32>
    %33 = vector.shape_cast %32 : vector<1x32x32xf32> to vector<32x32xf32>
    %cst_30 = arith.constant dense<0.000000e+00> : vector<32x64xf32>
    %34 = tpu.matmul %33, %8, %cst_30 {dimension_numbers = #tpu.dot_dimension_numbers<[1], [0], [0], [1], [0, 0, 1, 1], [], []>} : vector<32x32xf32>, vector<32x64xf32>, vector<32x64xf32> -> vector<32x64xf32>
    %35 = arith.truncf %34 : vector<32x64xf32> to vector<32x64xbf16>
    %c3_31 = arith.constant 3 : index
    %c0_32 = arith.constant 0 : index
    %c0_33 = arith.constant 0 : index
    %36 = vector.load %arg5[%c3_31, %c0_32, %c0_33] : memref<9x64x64xbf16, #tpu.memory_space<vmem>>, vector<1x64x64xbf16>
    %37 = vector.shape_cast %36 : vector<1x64x64xbf16> to vector<64x64xbf16>
    %cst_34 = arith.constant dense<0.000000e+00> : vector<32x64xf32>
    %38 = tpu.matmul %35, %37, %cst_34 {dimension_numbers = #tpu.dot_dimension_numbers<[1], [0], [0], [1], [0, 0, 1, 1], [], []>} : vector<32x64xbf16>, vector<64x64xbf16>, vector<32x64xf32> -> vector<32x64xf32>
    %39 = arith.addf %31, %38 : vector<32x64xf32>
    %c4 = arith.constant 4 : index
    %c0_35 = arith.constant 0 : index
    %c0_36 = arith.constant 0 : index
    %40 = vector.load %arg4[%c4, %c0_35, %c0_36] : memref<9x32x32xf32, #tpu.memory_space<vmem>>, vector<1x32x32xf32>
    %41 = vector.shape_cast %40 : vector<1x32x32xf32> to vector<32x32xf32>
    %cst_37 = arith.constant dense<0.000000e+00> : vector<32x64xf32>
    %42 = tpu.matmul %41, %8, %cst_37 {dimension_numbers = #tpu.dot_dimension_numbers<[1], [0], [0], [1], [0, 0, 1, 1], [], []>} : vector<32x32xf32>, vector<32x64xf32>, vector<32x64xf32> -> vector<32x64xf32>
    %43 = arith.truncf %42 : vector<32x64xf32> to vector<32x64xbf16>
    %c4_38 = arith.constant 4 : index
    %c0_39 = arith.constant 0 : index
    %c0_40 = arith.constant 0 : index
    %44 = vector.load %arg5[%c4_38, %c0_39, %c0_40] : memref<9x64x64xbf16, #tpu.memory_space<vmem>>, vector<1x64x64xbf16>
    %45 = vector.shape_cast %44 : vector<1x64x64xbf16> to vector<64x64xbf16>
    %cst_41 = arith.constant dense<0.000000e+00> : vector<32x64xf32>
    %46 = tpu.matmul %43, %45, %cst_41 {dimension_numbers = #tpu.dot_dimension_numbers<[1], [0], [0], [1], [0, 0, 1, 1], [], []>} : vector<32x64xbf16>, vector<64x64xbf16>, vector<32x64xf32> -> vector<32x64xf32>
    %47 = arith.addf %39, %46 : vector<32x64xf32>
    %c5 = arith.constant 5 : index
    %c0_42 = arith.constant 0 : index
    %c0_43 = arith.constant 0 : index
    %48 = vector.load %arg4[%c5, %c0_42, %c0_43] : memref<9x32x32xf32, #tpu.memory_space<vmem>>, vector<1x32x32xf32>
    %49 = vector.shape_cast %48 : vector<1x32x32xf32> to vector<32x32xf32>
    %cst_44 = arith.constant dense<0.000000e+00> : vector<32x64xf32>
    %50 = tpu.matmul %49, %8, %cst_44 {dimension_numbers = #tpu.dot_dimension_numbers<[1], [0], [0], [1], [0, 0, 1, 1], [], []>} : vector<32x32xf32>, vector<32x64xf32>, vector<32x64xf32> -> vector<32x64xf32>
    %51 = arith.truncf %50 : vector<32x64xf32> to vector<32x64xbf16>
    %c5_45 = arith.constant 5 : index
    %c0_46 = arith.constant 0 : index
    %c0_47 = arith.constant 0 : index
    %52 = vector.load %arg5[%c5_45, %c0_46, %c0_47] : memref<9x64x64xbf16, #tpu.memory_space<vmem>>, vector<1x64x64xbf16>
    %53 = vector.shape_cast %52 : vector<1x64x64xbf16> to vector<64x64xbf16>
    %cst_48 = arith.constant dense<0.000000e+00> : vector<32x64xf32>
    %54 = tpu.matmul %51, %53, %cst_48 {dimension_numbers = #tpu.dot_dimension_numbers<[1], [0], [0], [1], [0, 0, 1, 1], [], []>} : vector<32x64xbf16>, vector<64x64xbf16>, vector<32x64xf32> -> vector<32x64xf32>
    %55 = arith.addf %47, %54 : vector<32x64xf32>
    %c6 = arith.constant 6 : index
    %c0_49 = arith.constant 0 : index
    %c0_50 = arith.constant 0 : index
    %56 = vector.load %arg4[%c6, %c0_49, %c0_50] : memref<9x32x32xf32, #tpu.memory_space<vmem>>, vector<1x32x32xf32>
    %57 = vector.shape_cast %56 : vector<1x32x32xf32> to vector<32x32xf32>
    %cst_51 = arith.constant dense<0.000000e+00> : vector<32x64xf32>
    %58 = tpu.matmul %57, %8, %cst_51 {dimension_numbers = #tpu.dot_dimension_numbers<[1], [0], [0], [1], [0, 0, 1, 1], [], []>} : vector<32x32xf32>, vector<32x64xf32>, vector<32x64xf32> -> vector<32x64xf32>
    %59 = arith.truncf %58 : vector<32x64xf32> to vector<32x64xbf16>
    %c6_52 = arith.constant 6 : index
    %c0_53 = arith.constant 0 : index
    %c0_54 = arith.constant 0 : index
    %60 = vector.load %arg5[%c6_52, %c0_53, %c0_54] : memref<9x64x64xbf16, #tpu.memory_space<vmem>>, vector<1x64x64xbf16>
    %61 = vector.shape_cast %60 : vector<1x64x64xbf16> to vector<64x64xbf16>
    %cst_55 = arith.constant dense<0.000000e+00> : vector<32x64xf32>
    %62 = tpu.matmul %59, %61, %cst_55 {dimension_numbers = #tpu.dot_dimension_numbers<[1], [0], [0], [1], [0, 0, 1, 1], [], []>} : vector<32x64xbf16>, vector<64x64xbf16>, vector<32x64xf32> -> vector<32x64xf32>
    %63 = arith.addf %55, %62 : vector<32x64xf32>
    %c7 = arith.constant 7 : index
    %c0_56 = arith.constant 0 : index
    %c0_57 = arith.constant 0 : index
    %64 = vector.load %arg4[%c7, %c0_56, %c0_57] : memref<9x32x32xf32, #tpu.memory_space<vmem>>, vector<1x32x32xf32>
    %65 = vector.shape_cast %64 : vector<1x32x32xf32> to vector<32x32xf32>
    %cst_58 = arith.constant dense<0.000000e+00> : vector<32x64xf32>
    %66 = tpu.matmul %65, %8, %cst_58 {dimension_numbers = #tpu.dot_dimension_numbers<[1], [0], [0], [1], [0, 0, 1, 1], [], []>} : vector<32x32xf32>, vector<32x64xf32>, vector<32x64xf32> -> vector<32x64xf32>
    %67 = arith.truncf %66 : vector<32x64xf32> to vector<32x64xbf16>
    %c7_59 = arith.constant 7 : index
    %c0_60 = arith.constant 0 : index
    %c0_61 = arith.constant 0 : index
    %68 = vector.load %arg5[%c7_59, %c0_60, %c0_61] : memref<9x64x64xbf16, #tpu.memory_space<vmem>>, vector<1x64x64xbf16>
    %69 = vector.shape_cast %68 : vector<1x64x64xbf16> to vector<64x64xbf16>
    %cst_62 = arith.constant dense<0.000000e+00> : vector<32x64xf32>
    %70 = tpu.matmul %67, %69, %cst_62 {dimension_numbers = #tpu.dot_dimension_numbers<[1], [0], [0], [1], [0, 0, 1, 1], [], []>} : vector<32x64xbf16>, vector<64x64xbf16>, vector<32x64xf32> -> vector<32x64xf32>
    %71 = arith.addf %63, %70 : vector<32x64xf32>
    %c8 = arith.constant 8 : index
    %c0_63 = arith.constant 0 : index
    %c0_64 = arith.constant 0 : index
    %72 = vector.load %arg4[%c8, %c0_63, %c0_64] : memref<9x32x32xf32, #tpu.memory_space<vmem>>, vector<1x32x32xf32>
    %73 = vector.shape_cast %72 : vector<1x32x32xf32> to vector<32x32xf32>
    %cst_65 = arith.constant dense<0.000000e+00> : vector<32x64xf32>
    %74 = tpu.matmul %73, %8, %cst_65 {dimension_numbers = #tpu.dot_dimension_numbers<[1], [0], [0], [1], [0, 0, 1, 1], [], []>} : vector<32x32xf32>, vector<32x64xf32>, vector<32x64xf32> -> vector<32x64xf32>
    %75 = arith.truncf %74 : vector<32x64xf32> to vector<32x64xbf16>
    %c8_66 = arith.constant 8 : index
    %c0_67 = arith.constant 0 : index
    %c0_68 = arith.constant 0 : index
    %76 = vector.load %arg5[%c8_66, %c0_67, %c0_68] : memref<9x64x64xbf16, #tpu.memory_space<vmem>>, vector<1x64x64xbf16>
    %77 = vector.shape_cast %76 : vector<1x64x64xbf16> to vector<64x64xbf16>
    %cst_69 = arith.constant dense<0.000000e+00> : vector<32x64xf32>
    %78 = tpu.matmul %75, %77, %cst_69 {dimension_numbers = #tpu.dot_dimension_numbers<[1], [0], [0], [1], [0, 0, 1, 1], [], []>} : vector<32x64xbf16>, vector<64x64xbf16>, vector<32x64xf32> -> vector<32x64xf32>
    %79 = arith.addf %71, %78 : vector<32x64xf32>
    %c0_70 = arith.constant 0 : index
    %c0_71 = arith.constant 0 : index
    %80 = vector.load %arg6[%c0_70, %c0_71] : memref<1x64xf32, #tpu.memory_space<vmem>>, vector<1x64xf32>
    %81 = vector.broadcast %80 : vector<1x64xf32> to vector<32x64xf32>
    %82 = arith.addf %79, %81 : vector<32x64xf32>
    %cst_72 = arith.constant 0.000000e+00 : f32
    %83 = vector.broadcast %cst_72 : f32 to vector<32x64xf32>
    %84 = arith.maximumf %82, %83 : vector<32x64xf32>
    %c0_73 = arith.constant 0 : index
    %c0_74 = arith.constant 0 : index
    %85 = vector.load %arg7[%c0_73, %c0_74] : memref<64x256xbf16, #tpu.memory_space<vmem>>, vector<64x256xbf16>
    %86 = arith.truncf %84 : vector<32x64xf32> to vector<32x64xbf16>
    %cst_75 = arith.constant dense<0.000000e+00> : vector<32x256xf32>
    %87 = tpu.matmul %86, %85, %cst_75 {dimension_numbers = #tpu.dot_dimension_numbers<[1], [0], [0], [1], [0, 0, 1, 1], [], []>} : vector<32x64xbf16>, vector<64x256xbf16>, vector<32x256xf32> -> vector<32x256xf32>
    %c0_76 = arith.constant 0 : index
    %c0_77 = arith.constant 0 : index
    %88 = vector.load %arg8[%c0_76, %c0_77] : memref<1x256xf32, #tpu.memory_space<vmem>>, vector<1x256xf32>
    %89 = vector.broadcast %88 : vector<1x256xf32> to vector<32x256xf32>
    %90 = arith.addf %87, %89 : vector<32x256xf32>
    %91 = arith.addf %90, %0 : vector<32x256xf32>
    %cst_78 = arith.constant 0.000000e+00 : f32
    %92 = vector.broadcast %cst_78 : f32 to vector<32x256xf32>
    %93 = arith.maximumf %91, %92 : vector<32x256xf32>
    %c0_79 = arith.constant 0 : index
    %c0_80 = arith.constant 0 : index
    %94 = vector.load %arg9[%c0_79, %c0_80] : memref<32x256xf32, #tpu.memory_space<vmem>>, vector<32x256xf32>
    tpu.vector_store %arg9[%c0_79, %c0_80], %93 {strides = array<i32>} : memref<32x256xf32, #tpu.memory_space<vmem>>, vector<32x256xf32>,
    return
  }
  func.func @transform_0(%arg0: i32) -> (i32, i32) {
    %c0_i32 = arith.constant 0 : i32
    %c0_i32_0 = arith.constant 0 : i32
    %c0_i32_1 = arith.constant 0 : i32
    return %c0_i32, %c0_i32_0 : i32, i32
  }
  func.func @transform_1(%arg0: i32) -> (i32, i32) {
    %c0_i32 = arith.constant 0 : i32
    %c0_i32_0 = arith.constant 0 : i32
    %c0_i32_1 = arith.constant 0 : i32
    return %c0_i32, %c0_i32_0 : i32, i32
  }
  func.func @transform_2(%arg0: i32) -> (i32, i32) {
    %c0_i32 = arith.constant 0 : i32
    %c0_i32_0 = arith.constant 0 : i32
    %c0_i32_1 = arith.constant 0 : i32
    return %c0_i32, %c0_i32_0 : i32, i32
  }
  func.func @transform_3(%arg0: i32) -> (i32, i32, i32) {
    %c0_i32 = arith.constant 0 : i32
    %c0_i32_0 = arith.constant 0 : i32
    %c0_i32_1 = arith.constant 0 : i32
    %c0_i32_2 = arith.constant 0 : i32
    return %c0_i32, %c0_i32_0, %c0_i32_1 : i32, i32, i32
  }
  func.func @transform_4(%arg0: i32) -> (i32, i32, i32) {
    %c0_i32 = arith.constant 0 : i32
    %c0_i32_0 = arith.constant 0 : i32
    %c0_i32_1 = arith.constant 0 : i32
    %c0_i32_2 = arith.constant 0 : i32
    return %c0_i32, %c0_i32_0, %c0_i32_1 : i32, i32, i32
  }
  func.func @transform_5(%arg0: i32) -> (i32, i32) {
    %c0_i32 = arith.constant 0 : i32
    %c0_i32_0 = arith.constant 0 : i32
    %c0_i32_1 = arith.constant 0 : i32
    return %c0_i32, %c0_i32_0 : i32, i32
  }
  func.func @transform_6(%arg0: i32) -> (i32, i32) {
    %c0_i32 = arith.constant 0 : i32
    %c0_i32_0 = arith.constant 0 : i32
    %c0_i32_1 = arith.constant 0 : i32
    return %c0_i32, %c0_i32_0 : i32, i32
  }
  func.func @transform_7(%arg0: i32) -> (i32, i32) {
    %c0_i32 = arith.constant 0 : i32
    %c0_i32_0 = arith.constant 0 : i32
    %c0_i32_1 = arith.constant 0 : i32
    return %c0_i32, %c0_i32_0 : i32, i32
  }
  func.func @transform_8(%arg0: i32) -> (i32, i32) {
    %c0_i32 = arith.constant 0 : i32
    %c0_i32_0 = arith.constant 0 : i32
    %c0_i32_1 = arith.constant 0 : i32
    return %c0_i32, %c0_i32_0 : i32, i32
  }
}

module attributes {stable_mosaic.version = 11 : i64} {
  func.func @_bottleneck_ds_kernel(%arg0: i32, %arg1: memref<32x256xf32, #tpu.memory_space<vmem>>, %arg2: memref<8x256xf32, #tpu.memory_space<vmem>>, %arg3: memref<256x128xbf16, #tpu.memory_space<vmem>>, %arg4: memref<1x128xf32, #tpu.memory_space<vmem>>, %arg5: memref<9x8x32xf32, #tpu.memory_space<vmem>>, %arg6: memref<9x128x128xbf16, #tpu.memory_space<vmem>>, %arg7: memref<1x128xf32, #tpu.memory_space<vmem>>, %arg8: memref<128x512xbf16, #tpu.memory_space<vmem>>, %arg9: memref<1x512xf32, #tpu.memory_space<vmem>>, %arg10: memref<256x512xbf16, #tpu.memory_space<vmem>>, %arg11: memref<1x512xf32, #tpu.memory_space<vmem>>, %arg12: memref<8x512xf32, #tpu.memory_space<vmem>>) attributes {dimension_semantics = [#tpu.dimension_semantics<arbitrary>], iteration_bounds = array<i64: 1>, scalar_prefetch = 0 : i64, scratch_operands = 0 : i64, tpu.core_type = #tpu.core_type<tc>, window_params = [{pipeline_mode = #tpu.pipeline_mode<synchronous>, transform_indices = @transform_0, window_bounds = array<i64: 32, 256>}, {pipeline_mode = #tpu.pipeline_mode<synchronous>, transform_indices = @transform_1, window_bounds = array<i64: 8, 256>}, {pipeline_mode = #tpu.pipeline_mode<synchronous>, transform_indices = @transform_2, window_bounds = array<i64: 256, 128>}, {pipeline_mode = #tpu.pipeline_mode<synchronous>, transform_indices = @transform_3, window_bounds = array<i64: 1, 128>}, {pipeline_mode = #tpu.pipeline_mode<synchronous>, transform_indices = @transform_4, window_bounds = array<i64: 9, 8, 32>}, {pipeline_mode = #tpu.pipeline_mode<synchronous>, transform_indices = @transform_5, window_bounds = array<i64: 9, 128, 128>}, {pipeline_mode = #tpu.pipeline_mode<synchronous>, transform_indices = @transform_6, window_bounds = array<i64: 1, 128>}, {pipeline_mode = #tpu.pipeline_mode<synchronous>, transform_indices = @transform_7, window_bounds = array<i64: 128, 512>}, {pipeline_mode = #tpu.pipeline_mode<synchronous>, transform_indices = @transform_8, window_bounds = array<i64: 1, 512>}, {pipeline_mode = #tpu.pipeline_mode<synchronous>, transform_indices = @transform_9, window_bounds = array<i64: 256, 512>}, {pipeline_mode = #tpu.pipeline_mode<synchronous>, transform_indices = @transform_10, window_bounds = array<i64: 1, 512>}, {pipeline_mode = #tpu.pipeline_mode<synchronous>, transform_indices = @transform_11, window_bounds = array<i64: 8, 512>}]} {
    %c0 = arith.constant 0 : index
    %c0_0 = arith.constant 0 : index
    %0 = vector.load %arg1[%c0, %c0_0] : memref<32x256xf32, #tpu.memory_space<vmem>>, vector<32x256xf32>
    %c0_1 = arith.constant 0 : index
    %c0_2 = arith.constant 0 : index
    %1 = vector.load %arg3[%c0_1, %c0_2] : memref<256x128xbf16, #tpu.memory_space<vmem>>, vector<256x128xbf16>
    %2 = arith.truncf %0 : vector<32x256xf32> to vector<32x256xbf16>
    %cst = arith.constant dense<0.000000e+00> : vector<32x128xf32>
    %3 = tpu.matmul %2, %1, %cst {dimension_numbers = #tpu.dot_dimension_numbers<[1], [0], [0], [1], [0, 0, 1, 1], [], []>} : vector<32x256xbf16>, vector<256x128xbf16>, vector<32x128xf32> -> vector<32x128xf32>
    %c0_3 = arith.constant 0 : index
    %c0_4 = arith.constant 0 : index
    %4 = vector.load %arg4[%c0_3, %c0_4] : memref<1x128xf32, #tpu.memory_space<vmem>>, vector<1x128xf32>
    %5 = vector.broadcast %4 : vector<1x128xf32> to vector<32x128xf32>
    %6 = arith.addf %3, %5 : vector<32x128xf32>
    %cst_5 = arith.constant 0.000000e+00 : f32
    %7 = vector.broadcast %cst_5 : f32 to vector<32x128xf32>
    %8 = arith.maximumf %6, %7 : vector<32x128xf32>
    %c0_6 = arith.constant 0 : index
    %c0_7 = arith.constant 0 : index
    %c0_8 = arith.constant 0 : index
    %9 = vector.load %arg5[%c0_6, %c0_7, %c0_8] : memref<9x8x32xf32, #tpu.memory_space<vmem>>, vector<1x8x32xf32>
    %10 = vector.shape_cast %9 : vector<1x8x32xf32> to vector<8x32xf32>
    %cst_9 = arith.constant dense<0.000000e+00> : vector<8x128xf32>
    %11 = tpu.matmul %10, %8, %cst_9 {dimension_numbers = #tpu.dot_dimension_numbers<[1], [0], [0], [1], [0, 0, 1, 1], [], []>} : vector<8x32xf32>, vector<32x128xf32>, vector<8x128xf32> -> vector<8x128xf32>
    %12 = arith.truncf %11 : vector<8x128xf32> to vector<8x128xbf16>
    %c0_10 = arith.constant 0 : index
    %c0_11 = arith.constant 0 : index
    %c0_12 = arith.constant 0 : index
    %13 = vector.load %arg6[%c0_10, %c0_11, %c0_12] : memref<9x128x128xbf16, #tpu.memory_space<vmem>>, vector<1x128x128xbf16>
    %14 = vector.shape_cast %13 : vector<1x128x128xbf16> to vector<128x128xbf16>
    %cst_13 = arith.constant dense<0.000000e+00> : vector<8x128xf32>
    %15 = tpu.matmul %12, %14, %cst_13 {dimension_numbers = #tpu.dot_dimension_numbers<[1], [0], [0], [1], [0, 0, 1, 1], [], []>} : vector<8x128xbf16>, vector<128x128xbf16>, vector<8x128xf32> -> vector<8x128xf32>
    %c1 = arith.constant 1 : index
    %c0_14 = arith.constant 0 : index
    %c0_15 = arith.constant 0 : index
    %16 = vector.load %arg5[%c1, %c0_14, %c0_15] : memref<9x8x32xf32, #tpu.memory_space<vmem>>, vector<1x8x32xf32>
    %17 = vector.shape_cast %16 : vector<1x8x32xf32> to vector<8x32xf32>
    %cst_16 = arith.constant dense<0.000000e+00> : vector<8x128xf32>
    %18 = tpu.matmul %17, %8, %cst_16 {dimension_numbers = #tpu.dot_dimension_numbers<[1], [0], [0], [1], [0, 0, 1, 1], [], []>} : vector<8x32xf32>, vector<32x128xf32>, vector<8x128xf32> -> vector<8x128xf32>
    %19 = arith.truncf %18 : vector<8x128xf32> to vector<8x128xbf16>
    %c1_17 = arith.constant 1 : index
    %c0_18 = arith.constant 0 : index
    %c0_19 = arith.constant 0 : index
    %20 = vector.load %arg6[%c1_17, %c0_18, %c0_19] : memref<9x128x128xbf16, #tpu.memory_space<vmem>>, vector<1x128x128xbf16>
    %21 = vector.shape_cast %20 : vector<1x128x128xbf16> to vector<128x128xbf16>
    %cst_20 = arith.constant dense<0.000000e+00> : vector<8x128xf32>
    %22 = tpu.matmul %19, %21, %cst_20 {dimension_numbers = #tpu.dot_dimension_numbers<[1], [0], [0], [1], [0, 0, 1, 1], [], []>} : vector<8x128xbf16>, vector<128x128xbf16>, vector<8x128xf32> -> vector<8x128xf32>
    %23 = arith.addf %15, %22 : vector<8x128xf32>
    %c2 = arith.constant 2 : index
    %c0_21 = arith.constant 0 : index
    %c0_22 = arith.constant 0 : index
    %24 = vector.load %arg5[%c2, %c0_21, %c0_22] : memref<9x8x32xf32, #tpu.memory_space<vmem>>, vector<1x8x32xf32>
    %25 = vector.shape_cast %24 : vector<1x8x32xf32> to vector<8x32xf32>
    %cst_23 = arith.constant dense<0.000000e+00> : vector<8x128xf32>
    %26 = tpu.matmul %25, %8, %cst_23 {dimension_numbers = #tpu.dot_dimension_numbers<[1], [0], [0], [1], [0, 0, 1, 1], [], []>} : vector<8x32xf32>, vector<32x128xf32>, vector<8x128xf32> -> vector<8x128xf32>
    %27 = arith.truncf %26 : vector<8x128xf32> to vector<8x128xbf16>
    %c2_24 = arith.constant 2 : index
    %c0_25 = arith.constant 0 : index
    %c0_26 = arith.constant 0 : index
    %28 = vector.load %arg6[%c2_24, %c0_25, %c0_26] : memref<9x128x128xbf16, #tpu.memory_space<vmem>>, vector<1x128x128xbf16>
    %29 = vector.shape_cast %28 : vector<1x128x128xbf16> to vector<128x128xbf16>
    %cst_27 = arith.constant dense<0.000000e+00> : vector<8x128xf32>
    %30 = tpu.matmul %27, %29, %cst_27 {dimension_numbers = #tpu.dot_dimension_numbers<[1], [0], [0], [1], [0, 0, 1, 1], [], []>} : vector<8x128xbf16>, vector<128x128xbf16>, vector<8x128xf32> -> vector<8x128xf32>
    %31 = arith.addf %23, %30 : vector<8x128xf32>
    %c3 = arith.constant 3 : index
    %c0_28 = arith.constant 0 : index
    %c0_29 = arith.constant 0 : index
    %32 = vector.load %arg5[%c3, %c0_28, %c0_29] : memref<9x8x32xf32, #tpu.memory_space<vmem>>, vector<1x8x32xf32>
    %33 = vector.shape_cast %32 : vector<1x8x32xf32> to vector<8x32xf32>
    %cst_30 = arith.constant dense<0.000000e+00> : vector<8x128xf32>
    %34 = tpu.matmul %33, %8, %cst_30 {dimension_numbers = #tpu.dot_dimension_numbers<[1], [0], [0], [1], [0, 0, 1, 1], [], []>} : vector<8x32xf32>, vector<32x128xf32>, vector<8x128xf32> -> vector<8x128xf32>
    %35 = arith.truncf %34 : vector<8x128xf32> to vector<8x128xbf16>
    %c3_31 = arith.constant 3 : index
    %c0_32 = arith.constant 0 : index
    %c0_33 = arith.constant 0 : index
    %36 = vector.load %arg6[%c3_31, %c0_32, %c0_33] : memref<9x128x128xbf16, #tpu.memory_space<vmem>>, vector<1x128x128xbf16>
    %37 = vector.shape_cast %36 : vector<1x128x128xbf16> to vector<128x128xbf16>
    %cst_34 = arith.constant dense<0.000000e+00> : vector<8x128xf32>
    %38 = tpu.matmul %35, %37, %cst_34 {dimension_numbers = #tpu.dot_dimension_numbers<[1], [0], [0], [1], [0, 0, 1, 1], [], []>} : vector<8x128xbf16>, vector<128x128xbf16>, vector<8x128xf32> -> vector<8x128xf32>
    %39 = arith.addf %31, %38 : vector<8x128xf32>
    %c4 = arith.constant 4 : index
    %c0_35 = arith.constant 0 : index
    %c0_36 = arith.constant 0 : index
    %40 = vector.load %arg5[%c4, %c0_35, %c0_36] : memref<9x8x32xf32, #tpu.memory_space<vmem>>, vector<1x8x32xf32>
    %41 = vector.shape_cast %40 : vector<1x8x32xf32> to vector<8x32xf32>
    %cst_37 = arith.constant dense<0.000000e+00> : vector<8x128xf32>
    %42 = tpu.matmul %41, %8, %cst_37 {dimension_numbers = #tpu.dot_dimension_numbers<[1], [0], [0], [1], [0, 0, 1, 1], [], []>} : vector<8x32xf32>, vector<32x128xf32>, vector<8x128xf32> -> vector<8x128xf32>
    %43 = arith.truncf %42 : vector<8x128xf32> to vector<8x128xbf16>
    %c4_38 = arith.constant 4 : index
    %c0_39 = arith.constant 0 : index
    %c0_40 = arith.constant 0 : index
    %44 = vector.load %arg6[%c4_38, %c0_39, %c0_40] : memref<9x128x128xbf16, #tpu.memory_space<vmem>>, vector<1x128x128xbf16>
    %45 = vector.shape_cast %44 : vector<1x128x128xbf16> to vector<128x128xbf16>
    %cst_41 = arith.constant dense<0.000000e+00> : vector<8x128xf32>
    %46 = tpu.matmul %43, %45, %cst_41 {dimension_numbers = #tpu.dot_dimension_numbers<[1], [0], [0], [1], [0, 0, 1, 1], [], []>} : vector<8x128xbf16>, vector<128x128xbf16>, vector<8x128xf32> -> vector<8x128xf32>
    %47 = arith.addf %39, %46 : vector<8x128xf32>
    %c5 = arith.constant 5 : index
    %c0_42 = arith.constant 0 : index
    %c0_43 = arith.constant 0 : index
    %48 = vector.load %arg5[%c5, %c0_42, %c0_43] : memref<9x8x32xf32, #tpu.memory_space<vmem>>, vector<1x8x32xf32>
    %49 = vector.shape_cast %48 : vector<1x8x32xf32> to vector<8x32xf32>
    %cst_44 = arith.constant dense<0.000000e+00> : vector<8x128xf32>
    %50 = tpu.matmul %49, %8, %cst_44 {dimension_numbers = #tpu.dot_dimension_numbers<[1], [0], [0], [1], [0, 0, 1, 1], [], []>} : vector<8x32xf32>, vector<32x128xf32>, vector<8x128xf32> -> vector<8x128xf32>
    %51 = arith.truncf %50 : vector<8x128xf32> to vector<8x128xbf16>
    %c5_45 = arith.constant 5 : index
    %c0_46 = arith.constant 0 : index
    %c0_47 = arith.constant 0 : index
    %52 = vector.load %arg6[%c5_45, %c0_46, %c0_47] : memref<9x128x128xbf16, #tpu.memory_space<vmem>>, vector<1x128x128xbf16>
    %53 = vector.shape_cast %52 : vector<1x128x128xbf16> to vector<128x128xbf16>
    %cst_48 = arith.constant dense<0.000000e+00> : vector<8x128xf32>
    %54 = tpu.matmul %51, %53, %cst_48 {dimension_numbers = #tpu.dot_dimension_numbers<[1], [0], [0], [1], [0, 0, 1, 1], [], []>} : vector<8x128xbf16>, vector<128x128xbf16>, vector<8x128xf32> -> vector<8x128xf32>
    %55 = arith.addf %47, %54 : vector<8x128xf32>
    %c6 = arith.constant 6 : index
    %c0_49 = arith.constant 0 : index
    %c0_50 = arith.constant 0 : index
    %56 = vector.load %arg5[%c6, %c0_49, %c0_50] : memref<9x8x32xf32, #tpu.memory_space<vmem>>, vector<1x8x32xf32>
    %57 = vector.shape_cast %56 : vector<1x8x32xf32> to vector<8x32xf32>
    %cst_51 = arith.constant dense<0.000000e+00> : vector<8x128xf32>
    %58 = tpu.matmul %57, %8, %cst_51 {dimension_numbers = #tpu.dot_dimension_numbers<[1], [0], [0], [1], [0, 0, 1, 1], [], []>} : vector<8x32xf32>, vector<32x128xf32>, vector<8x128xf32> -> vector<8x128xf32>
    %59 = arith.truncf %58 : vector<8x128xf32> to vector<8x128xbf16>
    %c6_52 = arith.constant 6 : index
    %c0_53 = arith.constant 0 : index
    %c0_54 = arith.constant 0 : index
    %60 = vector.load %arg6[%c6_52, %c0_53, %c0_54] : memref<9x128x128xbf16, #tpu.memory_space<vmem>>, vector<1x128x128xbf16>
    %61 = vector.shape_cast %60 : vector<1x128x128xbf16> to vector<128x128xbf16>
    %cst_55 = arith.constant dense<0.000000e+00> : vector<8x128xf32>
    %62 = tpu.matmul %59, %61, %cst_55 {dimension_numbers = #tpu.dot_dimension_numbers<[1], [0], [0], [1], [0, 0, 1, 1], [], []>} : vector<8x128xbf16>, vector<128x128xbf16>, vector<8x128xf32> -> vector<8x128xf32>
    %63 = arith.addf %55, %62 : vector<8x128xf32>
    %c7 = arith.constant 7 : index
    %c0_56 = arith.constant 0 : index
    %c0_57 = arith.constant 0 : index
    %64 = vector.load %arg5[%c7, %c0_56, %c0_57] : memref<9x8x32xf32, #tpu.memory_space<vmem>>, vector<1x8x32xf32>
    %65 = vector.shape_cast %64 : vector<1x8x32xf32> to vector<8x32xf32>
    %cst_58 = arith.constant dense<0.000000e+00> : vector<8x128xf32>
    %66 = tpu.matmul %65, %8, %cst_58 {dimension_numbers = #tpu.dot_dimension_numbers<[1], [0], [0], [1], [0, 0, 1, 1], [], []>} : vector<8x32xf32>, vector<32x128xf32>, vector<8x128xf32> -> vector<8x128xf32>
    %67 = arith.truncf %66 : vector<8x128xf32> to vector<8x128xbf16>
    %c7_59 = arith.constant 7 : index
    %c0_60 = arith.constant 0 : index
    %c0_61 = arith.constant 0 : index
    %68 = vector.load %arg6[%c7_59, %c0_60, %c0_61] : memref<9x128x128xbf16, #tpu.memory_space<vmem>>, vector<1x128x128xbf16>
    %69 = vector.shape_cast %68 : vector<1x128x128xbf16> to vector<128x128xbf16>
    %cst_62 = arith.constant dense<0.000000e+00> : vector<8x128xf32>
    %70 = tpu.matmul %67, %69, %cst_62 {dimension_numbers = #tpu.dot_dimension_numbers<[1], [0], [0], [1], [0, 0, 1, 1], [], []>} : vector<8x128xbf16>, vector<128x128xbf16>, vector<8x128xf32> -> vector<8x128xf32>
    %71 = arith.addf %63, %70 : vector<8x128xf32>
    %c8 = arith.constant 8 : index
    %c0_63 = arith.constant 0 : index
    %c0_64 = arith.constant 0 : index
    %72 = vector.load %arg5[%c8, %c0_63, %c0_64] : memref<9x8x32xf32, #tpu.memory_space<vmem>>, vector<1x8x32xf32>
    %73 = vector.shape_cast %72 : vector<1x8x32xf32> to vector<8x32xf32>
    %cst_65 = arith.constant dense<0.000000e+00> : vector<8x128xf32>
    %74 = tpu.matmul %73, %8, %cst_65 {dimension_numbers = #tpu.dot_dimension_numbers<[1], [0], [0], [1], [0, 0, 1, 1], [], []>} : vector<8x32xf32>, vector<32x128xf32>, vector<8x128xf32> -> vector<8x128xf32>
    %75 = arith.truncf %74 : vector<8x128xf32> to vector<8x128xbf16>
    %c8_66 = arith.constant 8 : index
    %c0_67 = arith.constant 0 : index
    %c0_68 = arith.constant 0 : index
    %76 = vector.load %arg6[%c8_66, %c0_67, %c0_68] : memref<9x128x128xbf16, #tpu.memory_space<vmem>>, vector<1x128x128xbf16>
    %77 = vector.shape_cast %76 : vector<1x128x128xbf16> to vector<128x128xbf16>
    %cst_69 = arith.constant dense<0.000000e+00> : vector<8x128xf32>
    %78 = tpu.matmul %75, %77, %cst_69 {dimension_numbers = #tpu.dot_dimension_numbers<[1], [0], [0], [1], [0, 0, 1, 1], [], []>} : vector<8x128xbf16>, vector<128x128xbf16>, vector<8x128xf32> -> vector<8x128xf32>
    %79 = arith.addf %71, %78 : vector<8x128xf32>
    %c0_70 = arith.constant 0 : index
    %c0_71 = arith.constant 0 : index
    %80 = vector.load %arg7[%c0_70, %c0_71] : memref<1x128xf32, #tpu.memory_space<vmem>>, vector<1x128xf32>
    %81 = vector.broadcast %80 : vector<1x128xf32> to vector<8x128xf32>
    %82 = arith.addf %79, %81 : vector<8x128xf32>
    %cst_72 = arith.constant 0.000000e+00 : f32
    %83 = vector.broadcast %cst_72 : f32 to vector<8x128xf32>
    %84 = arith.maximumf %82, %83 : vector<8x128xf32>
    %c0_73 = arith.constant 0 : index
    %c0_74 = arith.constant 0 : index
    %85 = vector.load %arg2[%c0_73, %c0_74] : memref<8x256xf32, #tpu.memory_space<vmem>>, vector<8x256xf32>
    %c0_75 = arith.constant 0 : index
    %c0_76 = arith.constant 0 : index
    %86 = vector.load %arg10[%c0_75, %c0_76] : memref<256x512xbf16, #tpu.memory_space<vmem>>, vector<256x512xbf16>
    %87 = arith.truncf %85 : vector<8x256xf32> to vector<8x256xbf16>
    %cst_77 = arith.constant dense<0.000000e+00> : vector<8x512xf32>
    %88 = tpu.matmul %87, %86, %cst_77 {dimension_numbers = #tpu.dot_dimension_numbers<[1], [0], [0], [1], [0, 0, 1, 1], [], []>} : vector<8x256xbf16>, vector<256x512xbf16>, vector<8x512xf32> -> vector<8x512xf32>
    %c0_78 = arith.constant 0 : index
    %c0_79 = arith.constant 0 : index
    %89 = vector.load %arg11[%c0_78, %c0_79] : memref<1x512xf32, #tpu.memory_space<vmem>>, vector<1x512xf32>
    %90 = vector.broadcast %89 : vector<1x512xf32> to vector<8x512xf32>
    %91 = arith.addf %88, %90 : vector<8x512xf32>
    %c0_80 = arith.constant 0 : index
    %c0_81 = arith.constant 0 : index
    %92 = vector.load %arg8[%c0_80, %c0_81] : memref<128x512xbf16, #tpu.memory_space<vmem>>, vector<128x512xbf16>
    %93 = arith.truncf %84 : vector<8x128xf32> to vector<8x128xbf16>
    %cst_82 = arith.constant dense<0.000000e+00> : vector<8x512xf32>
    %94 = tpu.matmul %93, %92, %cst_82 {dimension_numbers = #tpu.dot_dimension_numbers<[1], [0], [0], [1], [0, 0, 1, 1], [], []>} : vector<8x128xbf16>, vector<128x512xbf16>, vector<8x512xf32> -> vector<8x512xf32>
    %c0_83 = arith.constant 0 : index
    %c0_84 = arith.constant 0 : index
    %95 = vector.load %arg9[%c0_83, %c0_84] : memref<1x512xf32, #tpu.memory_space<vmem>>, vector<1x512xf32>
    %96 = vector.broadcast %95 : vector<1x512xf32> to vector<8x512xf32>
    %97 = arith.addf %94, %96 : vector<8x512xf32>
    %98 = arith.addf %97, %91 : vector<8x512xf32>
    %cst_85 = arith.constant 0.000000e+00 : f32
    %99 = vector.broadcast %cst_85 : f32 to vector<8x512xf32>
    %100 = arith.maximumf %98, %99 : vector<8x512xf32>
    %c0_86 = arith.constant 0 : index
    %c0_87 = arith.constant 0 : index
    %101 = vector.load %arg12[%c0_86, %c0_87] : memref<8x512xf32, #tpu.memory_space<vmem>>, vector<8x512xf32>
    tpu.vector_store %arg12[%c0_86, %c0_87], %100 {strides = array<i32>} : memref<8x512xf32, #tpu.memory_space<vmem>>, vector<8x512xf32>,
    return
  }
  func.func @transform_0(%arg0: i32) -> (i32, i32) {
    %c0_i32 = arith.constant 0 : i32
    %c0_i32_0 = arith.constant 0 : i32
    %c0_i32_1 = arith.constant 0 : i32
    return %c0_i32, %c0_i32_0 : i32, i32
  }
  func.func @transform_1(%arg0: i32) -> (i32, i32) {
    %c0_i32 = arith.constant 0 : i32
    %c0_i32_0 = arith.constant 0 : i32
    %c0_i32_1 = arith.constant 0 : i32
    return %c0_i32, %c0_i32_0 : i32, i32
  }
  func.func @transform_2(%arg0: i32) -> (i32, i32) {
    %c0_i32 = arith.constant 0 : i32
    %c0_i32_0 = arith.constant 0 : i32
    %c0_i32_1 = arith.constant 0 : i32
    return %c0_i32, %c0_i32_0 : i32, i32
  }
  func.func @transform_3(%arg0: i32) -> (i32, i32) {
    %c0_i32 = arith.constant 0 : i32
    %c0_i32_0 = arith.constant 0 : i32
    %c0_i32_1 = arith.constant 0 : i32
    return %c0_i32, %c0_i32_0 : i32, i32
  }
  func.func @transform_4(%arg0: i32) -> (i32, i32, i32) {
    %c0_i32 = arith.constant 0 : i32
    %c0_i32_0 = arith.constant 0 : i32
    %c0_i32_1 = arith.constant 0 : i32
    %c0_i32_2 = arith.constant 0 : i32
    return %c0_i32, %c0_i32_0, %c0_i32_1 : i32, i32, i32
  }
  func.func @transform_5(%arg0: i32) -> (i32, i32, i32) {
    %c0_i32 = arith.constant 0 : i32
    %c0_i32_0 = arith.constant 0 : i32
    %c0_i32_1 = arith.constant 0 : i32
    %c0_i32_2 = arith.constant 0 : i32
    return %c0_i32, %c0_i32_0, %c0_i32_1 : i32, i32, i32
  }
  func.func @transform_6(%arg0: i32) -> (i32, i32) {
    %c0_i32 = arith.constant 0 : i32
    %c0_i32_0 = arith.constant 0 : i32
    %c0_i32_1 = arith.constant 0 : i32
    return %c0_i32, %c0_i32_0 : i32, i32
  }
  func.func @transform_7(%arg0: i32) -> (i32, i32) {
    %c0_i32 = arith.constant 0 : i32
    %c0_i32_0 = arith.constant 0 : i32
    %c0_i32_1 = arith.constant 0 : i32
    return %c0_i32, %c0_i32_0 : i32, i32
  }
  func.func @transform_8(%arg0: i32) -> (i32, i32) {
    %c0_i32 = arith.constant 0 : i32
    %c0_i32_0 = arith.constant 0 : i32
    %c0_i32_1 = arith.constant 0 : i32
    return %c0_i32, %c0_i32_0 : i32, i32
  }
  func.func @transform_9(%arg0: i32) -> (i32, i32) {
    %c0_i32 = arith.constant 0 : i32
    %c0_i32_0 = arith.constant 0 : i32
    %c0_i32_1 = arith.constant 0 : i32
    return %c0_i32, %c0_i32_0 : i32, i32
  }
  func.func @transform_10(%arg0: i32) -> (i32, i32) {
    %c0_i32 = arith.constant 0 : i32
    %c0_i32_0 = arith.constant 0 : i32
    %c0_i32_1 = arith.constant 0 : i32
    return %c0_i32, %c0_i32_0 : i32, i32
  }
  func.func @transform_11(%arg0: i32) -> (i32, i32) {
    %c0_i32 = arith.constant 0 : i32
    %c0_i32_0 = arith.constant 0 : i32
    %c0_i32_1 = arith.constant 0 : i32
    return %c0_i32, %c0_i32_0 : i32, i32
  }
}

module attributes {stable_mosaic.version = 11 : i64} {
  func.func @_bottleneck_id_kernel(%arg0: i32, %arg1: memref<8x512xf32, #tpu.memory_space<vmem>>, %arg2: memref<512x128xbf16, #tpu.memory_space<vmem>>, %arg3: memref<1x128xf32, #tpu.memory_space<vmem>>, %arg4: memref<9x8x8xf32, #tpu.memory_space<vmem>>, %arg5: memref<9x128x128xbf16, #tpu.memory_space<vmem>>, %arg6: memref<1x128xf32, #tpu.memory_space<vmem>>, %arg7: memref<128x512xbf16, #tpu.memory_space<vmem>>, %arg8: memref<1x512xf32, #tpu.memory_space<vmem>>, %arg9: memref<8x512xf32, #tpu.memory_space<vmem>>) attributes {dimension_semantics = [#tpu.dimension_semantics<arbitrary>], iteration_bounds = array<i64: 1>, scalar_prefetch = 0 : i64, scratch_operands = 0 : i64, tpu.core_type = #tpu.core_type<tc>, window_params = [{pipeline_mode = #tpu.pipeline_mode<synchronous>, transform_indices = @transform_0, window_bounds = array<i64: 8, 512>}, {pipeline_mode = #tpu.pipeline_mode<synchronous>, transform_indices = @transform_1, window_bounds = array<i64: 512, 128>}, {pipeline_mode = #tpu.pipeline_mode<synchronous>, transform_indices = @transform_2, window_bounds = array<i64: 1, 128>}, {pipeline_mode = #tpu.pipeline_mode<synchronous>, transform_indices = @transform_3, window_bounds = array<i64: 9, 8, 8>}, {pipeline_mode = #tpu.pipeline_mode<synchronous>, transform_indices = @transform_4, window_bounds = array<i64: 9, 128, 128>}, {pipeline_mode = #tpu.pipeline_mode<synchronous>, transform_indices = @transform_5, window_bounds = array<i64: 1, 128>}, {pipeline_mode = #tpu.pipeline_mode<synchronous>, transform_indices = @transform_6, window_bounds = array<i64: 128, 512>}, {pipeline_mode = #tpu.pipeline_mode<synchronous>, transform_indices = @transform_7, window_bounds = array<i64: 1, 512>}, {pipeline_mode = #tpu.pipeline_mode<synchronous>, transform_indices = @transform_8, window_bounds = array<i64: 8, 512>}]} {
    %c0 = arith.constant 0 : index
    %c0_0 = arith.constant 0 : index
    %0 = vector.load %arg1[%c0, %c0_0] : memref<8x512xf32, #tpu.memory_space<vmem>>, vector<8x512xf32>
    %c0_1 = arith.constant 0 : index
    %c0_2 = arith.constant 0 : index
    %1 = vector.load %arg2[%c0_1, %c0_2] : memref<512x128xbf16, #tpu.memory_space<vmem>>, vector<512x128xbf16>
    %2 = arith.truncf %0 : vector<8x512xf32> to vector<8x512xbf16>
    %cst = arith.constant dense<0.000000e+00> : vector<8x128xf32>
    %3 = tpu.matmul %2, %1, %cst {dimension_numbers = #tpu.dot_dimension_numbers<[1], [0], [0], [1], [0, 0, 1, 1], [], []>} : vector<8x512xbf16>, vector<512x128xbf16>, vector<8x128xf32> -> vector<8x128xf32>
    %c0_3 = arith.constant 0 : index
    %c0_4 = arith.constant 0 : index
    %4 = vector.load %arg3[%c0_3, %c0_4] : memref<1x128xf32, #tpu.memory_space<vmem>>, vector<1x128xf32>
    %5 = vector.broadcast %4 : vector<1x128xf32> to vector<8x128xf32>
    %6 = arith.addf %3, %5 : vector<8x128xf32>
    %cst_5 = arith.constant 0.000000e+00 : f32
    %7 = vector.broadcast %cst_5 : f32 to vector<8x128xf32>
    %8 = arith.maximumf %6, %7 : vector<8x128xf32>
    %c0_6 = arith.constant 0 : index
    %c0_7 = arith.constant 0 : index
    %c0_8 = arith.constant 0 : index
    %9 = vector.load %arg4[%c0_6, %c0_7, %c0_8] : memref<9x8x8xf32, #tpu.memory_space<vmem>>, vector<1x8x8xf32>
    %10 = vector.shape_cast %9 : vector<1x8x8xf32> to vector<8x8xf32>
    %cst_9 = arith.constant dense<0.000000e+00> : vector<8x128xf32>
    %11 = tpu.matmul %10, %8, %cst_9 {dimension_numbers = #tpu.dot_dimension_numbers<[1], [0], [0], [1], [0, 0, 1, 1], [], []>} : vector<8x8xf32>, vector<8x128xf32>, vector<8x128xf32> -> vector<8x128xf32>
    %12 = arith.truncf %11 : vector<8x128xf32> to vector<8x128xbf16>
    %c0_10 = arith.constant 0 : index
    %c0_11 = arith.constant 0 : index
    %c0_12 = arith.constant 0 : index
    %13 = vector.load %arg5[%c0_10, %c0_11, %c0_12] : memref<9x128x128xbf16, #tpu.memory_space<vmem>>, vector<1x128x128xbf16>
    %14 = vector.shape_cast %13 : vector<1x128x128xbf16> to vector<128x128xbf16>
    %cst_13 = arith.constant dense<0.000000e+00> : vector<8x128xf32>
    %15 = tpu.matmul %12, %14, %cst_13 {dimension_numbers = #tpu.dot_dimension_numbers<[1], [0], [0], [1], [0, 0, 1, 1], [], []>} : vector<8x128xbf16>, vector<128x128xbf16>, vector<8x128xf32> -> vector<8x128xf32>
    %c1 = arith.constant 1 : index
    %c0_14 = arith.constant 0 : index
    %c0_15 = arith.constant 0 : index
    %16 = vector.load %arg4[%c1, %c0_14, %c0_15] : memref<9x8x8xf32, #tpu.memory_space<vmem>>, vector<1x8x8xf32>
    %17 = vector.shape_cast %16 : vector<1x8x8xf32> to vector<8x8xf32>
    %cst_16 = arith.constant dense<0.000000e+00> : vector<8x128xf32>
    %18 = tpu.matmul %17, %8, %cst_16 {dimension_numbers = #tpu.dot_dimension_numbers<[1], [0], [0], [1], [0, 0, 1, 1], [], []>} : vector<8x8xf32>, vector<8x128xf32>, vector<8x128xf32> -> vector<8x128xf32>
    %19 = arith.truncf %18 : vector<8x128xf32> to vector<8x128xbf16>
    %c1_17 = arith.constant 1 : index
    %c0_18 = arith.constant 0 : index
    %c0_19 = arith.constant 0 : index
    %20 = vector.load %arg5[%c1_17, %c0_18, %c0_19] : memref<9x128x128xbf16, #tpu.memory_space<vmem>>, vector<1x128x128xbf16>
    %21 = vector.shape_cast %20 : vector<1x128x128xbf16> to vector<128x128xbf16>
    %cst_20 = arith.constant dense<0.000000e+00> : vector<8x128xf32>
    %22 = tpu.matmul %19, %21, %cst_20 {dimension_numbers = #tpu.dot_dimension_numbers<[1], [0], [0], [1], [0, 0, 1, 1], [], []>} : vector<8x128xbf16>, vector<128x128xbf16>, vector<8x128xf32> -> vector<8x128xf32>
    %23 = arith.addf %15, %22 : vector<8x128xf32>
    %c2 = arith.constant 2 : index
    %c0_21 = arith.constant 0 : index
    %c0_22 = arith.constant 0 : index
    %24 = vector.load %arg4[%c2, %c0_21, %c0_22] : memref<9x8x8xf32, #tpu.memory_space<vmem>>, vector<1x8x8xf32>
    %25 = vector.shape_cast %24 : vector<1x8x8xf32> to vector<8x8xf32>
    %cst_23 = arith.constant dense<0.000000e+00> : vector<8x128xf32>
    %26 = tpu.matmul %25, %8, %cst_23 {dimension_numbers = #tpu.dot_dimension_numbers<[1], [0], [0], [1], [0, 0, 1, 1], [], []>} : vector<8x8xf32>, vector<8x128xf32>, vector<8x128xf32> -> vector<8x128xf32>
    %27 = arith.truncf %26 : vector<8x128xf32> to vector<8x128xbf16>
    %c2_24 = arith.constant 2 : index
    %c0_25 = arith.constant 0 : index
    %c0_26 = arith.constant 0 : index
    %28 = vector.load %arg5[%c2_24, %c0_25, %c0_26] : memref<9x128x128xbf16, #tpu.memory_space<vmem>>, vector<1x128x128xbf16>
    %29 = vector.shape_cast %28 : vector<1x128x128xbf16> to vector<128x128xbf16>
    %cst_27 = arith.constant dense<0.000000e+00> : vector<8x128xf32>
    %30 = tpu.matmul %27, %29, %cst_27 {dimension_numbers = #tpu.dot_dimension_numbers<[1], [0], [0], [1], [0, 0, 1, 1], [], []>} : vector<8x128xbf16>, vector<128x128xbf16>, vector<8x128xf32> -> vector<8x128xf32>
    %31 = arith.addf %23, %30 : vector<8x128xf32>
    %c3 = arith.constant 3 : index
    %c0_28 = arith.constant 0 : index
    %c0_29 = arith.constant 0 : index
    %32 = vector.load %arg4[%c3, %c0_28, %c0_29] : memref<9x8x8xf32, #tpu.memory_space<vmem>>, vector<1x8x8xf32>
    %33 = vector.shape_cast %32 : vector<1x8x8xf32> to vector<8x8xf32>
    %cst_30 = arith.constant dense<0.000000e+00> : vector<8x128xf32>
    %34 = tpu.matmul %33, %8, %cst_30 {dimension_numbers = #tpu.dot_dimension_numbers<[1], [0], [0], [1], [0, 0, 1, 1], [], []>} : vector<8x8xf32>, vector<8x128xf32>, vector<8x128xf32> -> vector<8x128xf32>
    %35 = arith.truncf %34 : vector<8x128xf32> to vector<8x128xbf16>
    %c3_31 = arith.constant 3 : index
    %c0_32 = arith.constant 0 : index
    %c0_33 = arith.constant 0 : index
    %36 = vector.load %arg5[%c3_31, %c0_32, %c0_33] : memref<9x128x128xbf16, #tpu.memory_space<vmem>>, vector<1x128x128xbf16>
    %37 = vector.shape_cast %36 : vector<1x128x128xbf16> to vector<128x128xbf16>
    %cst_34 = arith.constant dense<0.000000e+00> : vector<8x128xf32>
    %38 = tpu.matmul %35, %37, %cst_34 {dimension_numbers = #tpu.dot_dimension_numbers<[1], [0], [0], [1], [0, 0, 1, 1], [], []>} : vector<8x128xbf16>, vector<128x128xbf16>, vector<8x128xf32> -> vector<8x128xf32>
    %39 = arith.addf %31, %38 : vector<8x128xf32>
    %c4 = arith.constant 4 : index
    %c0_35 = arith.constant 0 : index
    %c0_36 = arith.constant 0 : index
    %40 = vector.load %arg4[%c4, %c0_35, %c0_36] : memref<9x8x8xf32, #tpu.memory_space<vmem>>, vector<1x8x8xf32>
    %41 = vector.shape_cast %40 : vector<1x8x8xf32> to vector<8x8xf32>
    %cst_37 = arith.constant dense<0.000000e+00> : vector<8x128xf32>
    %42 = tpu.matmul %41, %8, %cst_37 {dimension_numbers = #tpu.dot_dimension_numbers<[1], [0], [0], [1], [0, 0, 1, 1], [], []>} : vector<8x8xf32>, vector<8x128xf32>, vector<8x128xf32> -> vector<8x128xf32>
    %43 = arith.truncf %42 : vector<8x128xf32> to vector<8x128xbf16>
    %c4_38 = arith.constant 4 : index
    %c0_39 = arith.constant 0 : index
    %c0_40 = arith.constant 0 : index
    %44 = vector.load %arg5[%c4_38, %c0_39, %c0_40] : memref<9x128x128xbf16, #tpu.memory_space<vmem>>, vector<1x128x128xbf16>
    %45 = vector.shape_cast %44 : vector<1x128x128xbf16> to vector<128x128xbf16>
    %cst_41 = arith.constant dense<0.000000e+00> : vector<8x128xf32>
    %46 = tpu.matmul %43, %45, %cst_41 {dimension_numbers = #tpu.dot_dimension_numbers<[1], [0], [0], [1], [0, 0, 1, 1], [], []>} : vector<8x128xbf16>, vector<128x128xbf16>, vector<8x128xf32> -> vector<8x128xf32>
    %47 = arith.addf %39, %46 : vector<8x128xf32>
    %c5 = arith.constant 5 : index
    %c0_42 = arith.constant 0 : index
    %c0_43 = arith.constant 0 : index
    %48 = vector.load %arg4[%c5, %c0_42, %c0_43] : memref<9x8x8xf32, #tpu.memory_space<vmem>>, vector<1x8x8xf32>
    %49 = vector.shape_cast %48 : vector<1x8x8xf32> to vector<8x8xf32>
    %cst_44 = arith.constant dense<0.000000e+00> : vector<8x128xf32>
    %50 = tpu.matmul %49, %8, %cst_44 {dimension_numbers = #tpu.dot_dimension_numbers<[1], [0], [0], [1], [0, 0, 1, 1], [], []>} : vector<8x8xf32>, vector<8x128xf32>, vector<8x128xf32> -> vector<8x128xf32>
    %51 = arith.truncf %50 : vector<8x128xf32> to vector<8x128xbf16>
    %c5_45 = arith.constant 5 : index
    %c0_46 = arith.constant 0 : index
    %c0_47 = arith.constant 0 : index
    %52 = vector.load %arg5[%c5_45, %c0_46, %c0_47] : memref<9x128x128xbf16, #tpu.memory_space<vmem>>, vector<1x128x128xbf16>
    %53 = vector.shape_cast %52 : vector<1x128x128xbf16> to vector<128x128xbf16>
    %cst_48 = arith.constant dense<0.000000e+00> : vector<8x128xf32>
    %54 = tpu.matmul %51, %53, %cst_48 {dimension_numbers = #tpu.dot_dimension_numbers<[1], [0], [0], [1], [0, 0, 1, 1], [], []>} : vector<8x128xbf16>, vector<128x128xbf16>, vector<8x128xf32> -> vector<8x128xf32>
    %55 = arith.addf %47, %54 : vector<8x128xf32>
    %c6 = arith.constant 6 : index
    %c0_49 = arith.constant 0 : index
    %c0_50 = arith.constant 0 : index
    %56 = vector.load %arg4[%c6, %c0_49, %c0_50] : memref<9x8x8xf32, #tpu.memory_space<vmem>>, vector<1x8x8xf32>
    %57 = vector.shape_cast %56 : vector<1x8x8xf32> to vector<8x8xf32>
    %cst_51 = arith.constant dense<0.000000e+00> : vector<8x128xf32>
    %58 = tpu.matmul %57, %8, %cst_51 {dimension_numbers = #tpu.dot_dimension_numbers<[1], [0], [0], [1], [0, 0, 1, 1], [], []>} : vector<8x8xf32>, vector<8x128xf32>, vector<8x128xf32> -> vector<8x128xf32>
    %59 = arith.truncf %58 : vector<8x128xf32> to vector<8x128xbf16>
    %c6_52 = arith.constant 6 : index
    %c0_53 = arith.constant 0 : index
    %c0_54 = arith.constant 0 : index
    %60 = vector.load %arg5[%c6_52, %c0_53, %c0_54] : memref<9x128x128xbf16, #tpu.memory_space<vmem>>, vector<1x128x128xbf16>
    %61 = vector.shape_cast %60 : vector<1x128x128xbf16> to vector<128x128xbf16>
    %cst_55 = arith.constant dense<0.000000e+00> : vector<8x128xf32>
    %62 = tpu.matmul %59, %61, %cst_55 {dimension_numbers = #tpu.dot_dimension_numbers<[1], [0], [0], [1], [0, 0, 1, 1], [], []>} : vector<8x128xbf16>, vector<128x128xbf16>, vector<8x128xf32> -> vector<8x128xf32>
    %63 = arith.addf %55, %62 : vector<8x128xf32>
    %c7 = arith.constant 7 : index
    %c0_56 = arith.constant 0 : index
    %c0_57 = arith.constant 0 : index
    %64 = vector.load %arg4[%c7, %c0_56, %c0_57] : memref<9x8x8xf32, #tpu.memory_space<vmem>>, vector<1x8x8xf32>
    %65 = vector.shape_cast %64 : vector<1x8x8xf32> to vector<8x8xf32>
    %cst_58 = arith.constant dense<0.000000e+00> : vector<8x128xf32>
    %66 = tpu.matmul %65, %8, %cst_58 {dimension_numbers = #tpu.dot_dimension_numbers<[1], [0], [0], [1], [0, 0, 1, 1], [], []>} : vector<8x8xf32>, vector<8x128xf32>, vector<8x128xf32> -> vector<8x128xf32>
    %67 = arith.truncf %66 : vector<8x128xf32> to vector<8x128xbf16>
    %c7_59 = arith.constant 7 : index
    %c0_60 = arith.constant 0 : index
    %c0_61 = arith.constant 0 : index
    %68 = vector.load %arg5[%c7_59, %c0_60, %c0_61] : memref<9x128x128xbf16, #tpu.memory_space<vmem>>, vector<1x128x128xbf16>
    %69 = vector.shape_cast %68 : vector<1x128x128xbf16> to vector<128x128xbf16>
    %cst_62 = arith.constant dense<0.000000e+00> : vector<8x128xf32>
    %70 = tpu.matmul %67, %69, %cst_62 {dimension_numbers = #tpu.dot_dimension_numbers<[1], [0], [0], [1], [0, 0, 1, 1], [], []>} : vector<8x128xbf16>, vector<128x128xbf16>, vector<8x128xf32> -> vector<8x128xf32>
    %71 = arith.addf %63, %70 : vector<8x128xf32>
    %c8 = arith.constant 8 : index
    %c0_63 = arith.constant 0 : index
    %c0_64 = arith.constant 0 : index
    %72 = vector.load %arg4[%c8, %c0_63, %c0_64] : memref<9x8x8xf32, #tpu.memory_space<vmem>>, vector<1x8x8xf32>
    %73 = vector.shape_cast %72 : vector<1x8x8xf32> to vector<8x8xf32>
    %cst_65 = arith.constant dense<0.000000e+00> : vector<8x128xf32>
    %74 = tpu.matmul %73, %8, %cst_65 {dimension_numbers = #tpu.dot_dimension_numbers<[1], [0], [0], [1], [0, 0, 1, 1], [], []>} : vector<8x8xf32>, vector<8x128xf32>, vector<8x128xf32> -> vector<8x128xf32>
    %75 = arith.truncf %74 : vector<8x128xf32> to vector<8x128xbf16>
    %c8_66 = arith.constant 8 : index
    %c0_67 = arith.constant 0 : index
    %c0_68 = arith.constant 0 : index
    %76 = vector.load %arg5[%c8_66, %c0_67, %c0_68] : memref<9x128x128xbf16, #tpu.memory_space<vmem>>, vector<1x128x128xbf16>
    %77 = vector.shape_cast %76 : vector<1x128x128xbf16> to vector<128x128xbf16>
    %cst_69 = arith.constant dense<0.000000e+00> : vector<8x128xf32>
    %78 = tpu.matmul %75, %77, %cst_69 {dimension_numbers = #tpu.dot_dimension_numbers<[1], [0], [0], [1], [0, 0, 1, 1], [], []>} : vector<8x128xbf16>, vector<128x128xbf16>, vector<8x128xf32> -> vector<8x128xf32>
    %79 = arith.addf %71, %78 : vector<8x128xf32>
    %c0_70 = arith.constant 0 : index
    %c0_71 = arith.constant 0 : index
    %80 = vector.load %arg6[%c0_70, %c0_71] : memref<1x128xf32, #tpu.memory_space<vmem>>, vector<1x128xf32>
    %81 = vector.broadcast %80 : vector<1x128xf32> to vector<8x128xf32>
    %82 = arith.addf %79, %81 : vector<8x128xf32>
    %cst_72 = arith.constant 0.000000e+00 : f32
    %83 = vector.broadcast %cst_72 : f32 to vector<8x128xf32>
    %84 = arith.maximumf %82, %83 : vector<8x128xf32>
    %c0_73 = arith.constant 0 : index
    %c0_74 = arith.constant 0 : index
    %85 = vector.load %arg7[%c0_73, %c0_74] : memref<128x512xbf16, #tpu.memory_space<vmem>>, vector<128x512xbf16>
    %86 = arith.truncf %84 : vector<8x128xf32> to vector<8x128xbf16>
    %cst_75 = arith.constant dense<0.000000e+00> : vector<8x512xf32>
    %87 = tpu.matmul %86, %85, %cst_75 {dimension_numbers = #tpu.dot_dimension_numbers<[1], [0], [0], [1], [0, 0, 1, 1], [], []>} : vector<8x128xbf16>, vector<128x512xbf16>, vector<8x512xf32> -> vector<8x512xf32>
    %c0_76 = arith.constant 0 : index
    %c0_77 = arith.constant 0 : index
    %88 = vector.load %arg8[%c0_76, %c0_77] : memref<1x512xf32, #tpu.memory_space<vmem>>, vector<1x512xf32>
    %89 = vector.broadcast %88 : vector<1x512xf32> to vector<8x512xf32>
    %90 = arith.addf %87, %89 : vector<8x512xf32>
    %91 = arith.addf %90, %0 : vector<8x512xf32>
    %cst_78 = arith.constant 0.000000e+00 : f32
    %92 = vector.broadcast %cst_78 : f32 to vector<8x512xf32>
    %93 = arith.maximumf %91, %92 : vector<8x512xf32>
    %c0_79 = arith.constant 0 : index
    %c0_80 = arith.constant 0 : index
    %94 = vector.load %arg9[%c0_79, %c0_80] : memref<8x512xf32, #tpu.memory_space<vmem>>, vector<8x512xf32>
    tpu.vector_store %arg9[%c0_79, %c0_80], %93 {strides = array<i32>} : memref<8x512xf32, #tpu.memory_space<vmem>>, vector<8x512xf32>,
    return
  }
  func.func @transform_0(%arg0: i32) -> (i32, i32) {
    %c0_i32 = arith.constant 0 : i32
    %c0_i32_0 = arith.constant 0 : i32
    %c0_i32_1 = arith.constant 0 : i32
    return %c0_i32, %c0_i32_0 : i32, i32
  }
  func.func @transform_1(%arg0: i32) -> (i32, i32) {
    %c0_i32 = arith.constant 0 : i32
    %c0_i32_0 = arith.constant 0 : i32
    %c0_i32_1 = arith.constant 0 : i32
    return %c0_i32, %c0_i32_0 : i32, i32
  }
  func.func @transform_2(%arg0: i32) -> (i32, i32) {
    %c0_i32 = arith.constant 0 : i32
    %c0_i32_0 = arith.constant 0 : i32
    %c0_i32_1 = arith.constant 0 : i32
    return %c0_i32, %c0_i32_0 : i32, i32
  }
  func.func @transform_3(%arg0: i32) -> (i32, i32, i32) {
    %c0_i32 = arith.constant 0 : i32
    %c0_i32_0 = arith.constant 0 : i32
    %c0_i32_1 = arith.constant 0 : i32
    %c0_i32_2 = arith.constant 0 : i32
    return %c0_i32, %c0_i32_0, %c0_i32_1 : i32, i32, i32
  }
  func.func @transform_4(%arg0: i32) -> (i32, i32, i32) {
    %c0_i32 = arith.constant 0 : i32
    %c0_i32_0 = arith.constant 0 : i32
    %c0_i32_1 = arith.constant 0 : i32
    %c0_i32_2 = arith.constant 0 : i32
    return %c0_i32, %c0_i32_0, %c0_i32_1 : i32, i32, i32
  }
  func.func @transform_5(%arg0: i32) -> (i32, i32) {
    %c0_i32 = arith.constant 0 : i32
    %c0_i32_0 = arith.constant 0 : i32
    %c0_i32_1 = arith.constant 0 : i32
    return %c0_i32, %c0_i32_0 : i32, i32
  }
  func.func @transform_6(%arg0: i32) -> (i32, i32) {
    %c0_i32 = arith.constant 0 : i32
    %c0_i32_0 = arith.constant 0 : i32
    %c0_i32_1 = arith.constant 0 : i32
    return %c0_i32, %c0_i32_0 : i32, i32
  }
  func.func @transform_7(%arg0: i32) -> (i32, i32) {
    %c0_i32 = arith.constant 0 : i32
    %c0_i32_0 = arith.constant 0 : i32
    %c0_i32_1 = arith.constant 0 : i32
    return %c0_i32, %c0_i32_0 : i32, i32
  }
  func.func @transform_8(%arg0: i32) -> (i32, i32) {
    %c0_i32 = arith.constant 0 : i32
    %c0_i32_0 = arith.constant 0 : i32
    %c0_i32_1 = arith.constant 0 : i32
    return %c0_i32, %c0_i32_0 : i32, i32
  }
}

module attributes {stable_mosaic.version = 11 : i64} {
  func.func @_head_kernel(%arg0: i32, %arg1: memref<32x256xf32, #tpu.memory_space<vmem>>, %arg2: memref<8x512xf32, #tpu.memory_space<vmem>>, %arg3: memref<512x256xbf16, #tpu.memory_space<vmem>>, %arg4: memref<1x256xf32, #tpu.memory_space<vmem>>, %arg5: memref<256x256xbf16, #tpu.memory_space<vmem>>, %arg6: memref<1x256xf32, #tpu.memory_space<vmem>>, %arg7: memref<32x8xf32, #tpu.memory_space<vmem>>, %arg8: memref<9x32x32xf32, #tpu.memory_space<vmem>>, %arg9: memref<9x256x256xbf16, #tpu.memory_space<vmem>>, %arg10: memref<1x256xf32, #tpu.memory_space<vmem>>, %arg11: memref<32x256xf32, #tpu.memory_space<vmem>>, %arg12: memref<8x256xf32, #tpu.memory_space<vmem>>) attributes {dimension_semantics = [#tpu.dimension_semantics<arbitrary>], iteration_bounds = array<i64: 1>, scalar_prefetch = 0 : i64, scratch_operands = 0 : i64, tpu.core_type = #tpu.core_type<tc>, window_params = [{pipeline_mode = #tpu.pipeline_mode<synchronous>, transform_indices = @transform_0, window_bounds = array<i64: 32, 256>}, {pipeline_mode = #tpu.pipeline_mode<synchronous>, transform_indices = @transform_1, window_bounds = array<i64: 8, 512>}, {pipeline_mode = #tpu.pipeline_mode<synchronous>, transform_indices = @transform_2, window_bounds = array<i64: 512, 256>}, {pipeline_mode = #tpu.pipeline_mode<synchronous>, transform_indices = @transform_3, window_bounds = array<i64: 1, 256>}, {pipeline_mode = #tpu.pipeline_mode<synchronous>, transform_indices = @transform_4, window_bounds = array<i64: 256, 256>}, {pipeline_mode = #tpu.pipeline_mode<synchronous>, transform_indices = @transform_5, window_bounds = array<i64: 1, 256>}, {pipeline_mode = #tpu.pipeline_mode<synchronous>, transform_indices = @transform_6, window_bounds = array<i64: 32, 8>}, {pipeline_mode = #tpu.pipeline_mode<synchronous>, transform_indices = @transform_7, window_bounds = array<i64: 9, 32, 32>}, {pipeline_mode = #tpu.pipeline_mode<synchronous>, transform_indices = @transform_8, window_bounds = array<i64: 9, 256, 256>}, {pipeline_mode = #tpu.pipeline_mode<synchronous>, transform_indices = @transform_9, window_bounds = array<i64: 1, 256>}, {pipeline_mode = #tpu.pipeline_mode<synchronous>, transform_indices = @transform_10, window_bounds = array<i64: 32, 256>}, {pipeline_mode = #tpu.pipeline_mode<synchronous>, transform_indices = @transform_11, window_bounds = array<i64: 8, 256>}]} {
    %c0 = arith.constant 0 : index
    %c0_0 = arith.constant 0 : index
    %0 = vector.load %arg2[%c0, %c0_0] : memref<8x512xf32, #tpu.memory_space<vmem>>, vector<8x512xf32>
    %c0_1 = arith.constant 0 : index
    %c0_2 = arith.constant 0 : index
    %1 = vector.load %arg3[%c0_1, %c0_2] : memref<512x256xbf16, #tpu.memory_space<vmem>>, vector<512x256xbf16>
    %2 = arith.truncf %0 : vector<8x512xf32> to vector<8x512xbf16>
    %cst = arith.constant dense<0.000000e+00> : vector<8x256xf32>
    %3 = tpu.matmul %2, %1, %cst {dimension_numbers = #tpu.dot_dimension_numbers<[1], [0], [0], [1], [0, 0, 1, 1], [], []>} : vector<8x512xbf16>, vector<512x256xbf16>, vector<8x256xf32> -> vector<8x256xf32>
    %c0_3 = arith.constant 0 : index
    %c0_4 = arith.constant 0 : index
    %4 = vector.load %arg4[%c0_3, %c0_4] : memref<1x256xf32, #tpu.memory_space<vmem>>, vector<1x256xf32>
    %5 = vector.broadcast %4 : vector<1x256xf32> to vector<8x256xf32>
    %6 = arith.addf %3, %5 : vector<8x256xf32>
    %c0_5 = arith.constant 0 : index
    %c0_6 = arith.constant 0 : index
    %7 = vector.load %arg1[%c0_5, %c0_6] : memref<32x256xf32, #tpu.memory_space<vmem>>, vector<32x256xf32>
    %c0_7 = arith.constant 0 : index
    %c0_8 = arith.constant 0 : index
    %8 = vector.load %arg5[%c0_7, %c0_8] : memref<256x256xbf16, #tpu.memory_space<vmem>>, vector<256x256xbf16>
    %9 = arith.truncf %7 : vector<32x256xf32> to vector<32x256xbf16>
    %cst_9 = arith.constant dense<0.000000e+00> : vector<32x256xf32>
    %10 = tpu.matmul %9, %8, %cst_9 {dimension_numbers = #tpu.dot_dimension_numbers<[1], [0], [0], [1], [0, 0, 1, 1], [], []>} : vector<32x256xbf16>, vector<256x256xbf16>, vector<32x256xf32> -> vector<32x256xf32>
    %c0_10 = arith.constant 0 : index
    %c0_11 = arith.constant 0 : index
    %11 = vector.load %arg6[%c0_10, %c0_11] : memref<1x256xf32, #tpu.memory_space<vmem>>, vector<1x256xf32>
    %12 = vector.broadcast %11 : vector<1x256xf32> to vector<32x256xf32>
    %13 = arith.addf %10, %12 : vector<32x256xf32>
    %c0_12 = arith.constant 0 : index
    %c0_13 = arith.constant 0 : index
    %14 = vector.load %arg7[%c0_12, %c0_13] : memref<32x8xf32, #tpu.memory_space<vmem>>, vector<32x8xf32>
    %cst_14 = arith.constant dense<0.000000e+00> : vector<32x256xf32>
    %15 = tpu.matmul %14, %6, %cst_14 {dimension_numbers = #tpu.dot_dimension_numbers<[1], [0], [0], [1], [0, 0, 1, 1], [], []>} : vector<32x8xf32>, vector<8x256xf32>, vector<32x256xf32> -> vector<32x256xf32>
    %16 = arith.addf %15, %13 : vector<32x256xf32>
    %c0_15 = arith.constant 0 : index
    %c0_16 = arith.constant 0 : index
    %c0_17 = arith.constant 0 : index
    %17 = vector.load %arg8[%c0_15, %c0_16, %c0_17] : memref<9x32x32xf32, #tpu.memory_space<vmem>>, vector<1x32x32xf32>
    %18 = vector.shape_cast %17 : vector<1x32x32xf32> to vector<32x32xf32>
    %cst_18 = arith.constant dense<0.000000e+00> : vector<32x256xf32>
    %19 = tpu.matmul %18, %16, %cst_18 {dimension_numbers = #tpu.dot_dimension_numbers<[1], [0], [0], [1], [0, 0, 1, 1], [], []>} : vector<32x32xf32>, vector<32x256xf32>, vector<32x256xf32> -> vector<32x256xf32>
    %20 = arith.truncf %19 : vector<32x256xf32> to vector<32x256xbf16>
    %c0_19 = arith.constant 0 : index
    %c0_20 = arith.constant 0 : index
    %c0_21 = arith.constant 0 : index
    %21 = vector.load %arg9[%c0_19, %c0_20, %c0_21] : memref<9x256x256xbf16, #tpu.memory_space<vmem>>, vector<1x256x256xbf16>
    %22 = vector.shape_cast %21 : vector<1x256x256xbf16> to vector<256x256xbf16>
    %cst_22 = arith.constant dense<0.000000e+00> : vector<32x256xf32>
    %23 = tpu.matmul %20, %22, %cst_22 {dimension_numbers = #tpu.dot_dimension_numbers<[1], [0], [0], [1], [0, 0, 1, 1], [], []>} : vector<32x256xbf16>, vector<256x256xbf16>, vector<32x256xf32> -> vector<32x256xf32>
    %c1 = arith.constant 1 : index
    %c0_23 = arith.constant 0 : index
    %c0_24 = arith.constant 0 : index
    %24 = vector.load %arg8[%c1, %c0_23, %c0_24] : memref<9x32x32xf32, #tpu.memory_space<vmem>>, vector<1x32x32xf32>
    %25 = vector.shape_cast %24 : vector<1x32x32xf32> to vector<32x32xf32>
    %cst_25 = arith.constant dense<0.000000e+00> : vector<32x256xf32>
    %26 = tpu.matmul %25, %16, %cst_25 {dimension_numbers = #tpu.dot_dimension_numbers<[1], [0], [0], [1], [0, 0, 1, 1], [], []>} : vector<32x32xf32>, vector<32x256xf32>, vector<32x256xf32> -> vector<32x256xf32>
    %27 = arith.truncf %26 : vector<32x256xf32> to vector<32x256xbf16>
    %c1_26 = arith.constant 1 : index
    %c0_27 = arith.constant 0 : index
    %c0_28 = arith.constant 0 : index
    %28 = vector.load %arg9[%c1_26, %c0_27, %c0_28] : memref<9x256x256xbf16, #tpu.memory_space<vmem>>, vector<1x256x256xbf16>
    %29 = vector.shape_cast %28 : vector<1x256x256xbf16> to vector<256x256xbf16>
    %cst_29 = arith.constant dense<0.000000e+00> : vector<32x256xf32>
    %30 = tpu.matmul %27, %29, %cst_29 {dimension_numbers = #tpu.dot_dimension_numbers<[1], [0], [0], [1], [0, 0, 1, 1], [], []>} : vector<32x256xbf16>, vector<256x256xbf16>, vector<32x256xf32> -> vector<32x256xf32>
    %31 = arith.addf %23, %30 : vector<32x256xf32>
    %c2 = arith.constant 2 : index
    %c0_30 = arith.constant 0 : index
    %c0_31 = arith.constant 0 : index
    %32 = vector.load %arg8[%c2, %c0_30, %c0_31] : memref<9x32x32xf32, #tpu.memory_space<vmem>>, vector<1x32x32xf32>
    %33 = vector.shape_cast %32 : vector<1x32x32xf32> to vector<32x32xf32>
    %cst_32 = arith.constant dense<0.000000e+00> : vector<32x256xf32>
    %34 = tpu.matmul %33, %16, %cst_32 {dimension_numbers = #tpu.dot_dimension_numbers<[1], [0], [0], [1], [0, 0, 1, 1], [], []>} : vector<32x32xf32>, vector<32x256xf32>, vector<32x256xf32> -> vector<32x256xf32>
    %35 = arith.truncf %34 : vector<32x256xf32> to vector<32x256xbf16>
    %c2_33 = arith.constant 2 : index
    %c0_34 = arith.constant 0 : index
    %c0_35 = arith.constant 0 : index
    %36 = vector.load %arg9[%c2_33, %c0_34, %c0_35] : memref<9x256x256xbf16, #tpu.memory_space<vmem>>, vector<1x256x256xbf16>
    %37 = vector.shape_cast %36 : vector<1x256x256xbf16> to vector<256x256xbf16>
    %cst_36 = arith.constant dense<0.000000e+00> : vector<32x256xf32>
    %38 = tpu.matmul %35, %37, %cst_36 {dimension_numbers = #tpu.dot_dimension_numbers<[1], [0], [0], [1], [0, 0, 1, 1], [], []>} : vector<32x256xbf16>, vector<256x256xbf16>, vector<32x256xf32> -> vector<32x256xf32>
    %39 = arith.addf %31, %38 : vector<32x256xf32>
    %c3 = arith.constant 3 : index
    %c0_37 = arith.constant 0 : index
    %c0_38 = arith.constant 0 : index
    %40 = vector.load %arg8[%c3, %c0_37, %c0_38] : memref<9x32x32xf32, #tpu.memory_space<vmem>>, vector<1x32x32xf32>
    %41 = vector.shape_cast %40 : vector<1x32x32xf32> to vector<32x32xf32>
    %cst_39 = arith.constant dense<0.000000e+00> : vector<32x256xf32>
    %42 = tpu.matmul %41, %16, %cst_39 {dimension_numbers = #tpu.dot_dimension_numbers<[1], [0], [0], [1], [0, 0, 1, 1], [], []>} : vector<32x32xf32>, vector<32x256xf32>, vector<32x256xf32> -> vector<32x256xf32>
    %43 = arith.truncf %42 : vector<32x256xf32> to vector<32x256xbf16>
    %c3_40 = arith.constant 3 : index
    %c0_41 = arith.constant 0 : index
    %c0_42 = arith.constant 0 : index
    %44 = vector.load %arg9[%c3_40, %c0_41, %c0_42] : memref<9x256x256xbf16, #tpu.memory_space<vmem>>, vector<1x256x256xbf16>
    %45 = vector.shape_cast %44 : vector<1x256x256xbf16> to vector<256x256xbf16>
    %cst_43 = arith.constant dense<0.000000e+00> : vector<32x256xf32>
    %46 = tpu.matmul %43, %45, %cst_43 {dimension_numbers = #tpu.dot_dimension_numbers<[1], [0], [0], [1], [0, 0, 1, 1], [], []>} : vector<32x256xbf16>, vector<256x256xbf16>, vector<32x256xf32> -> vector<32x256xf32>
    %47 = arith.addf %39, %46 : vector<32x256xf32>
    %c4 = arith.constant 4 : index
    %c0_44 = arith.constant 0 : index
    %c0_45 = arith.constant 0 : index
    %48 = vector.load %arg8[%c4, %c0_44, %c0_45] : memref<9x32x32xf32, #tpu.memory_space<vmem>>, vector<1x32x32xf32>
    %49 = vector.shape_cast %48 : vector<1x32x32xf32> to vector<32x32xf32>
    %cst_46 = arith.constant dense<0.000000e+00> : vector<32x256xf32>
    %50 = tpu.matmul %49, %16, %cst_46 {dimension_numbers = #tpu.dot_dimension_numbers<[1], [0], [0], [1], [0, 0, 1, 1], [], []>} : vector<32x32xf32>, vector<32x256xf32>, vector<32x256xf32> -> vector<32x256xf32>
    %51 = arith.truncf %50 : vector<32x256xf32> to vector<32x256xbf16>
    %c4_47 = arith.constant 4 : index
    %c0_48 = arith.constant 0 : index
    %c0_49 = arith.constant 0 : index
    %52 = vector.load %arg9[%c4_47, %c0_48, %c0_49] : memref<9x256x256xbf16, #tpu.memory_space<vmem>>, vector<1x256x256xbf16>
    %53 = vector.shape_cast %52 : vector<1x256x256xbf16> to vector<256x256xbf16>
    %cst_50 = arith.constant dense<0.000000e+00> : vector<32x256xf32>
    %54 = tpu.matmul %51, %53, %cst_50 {dimension_numbers = #tpu.dot_dimension_numbers<[1], [0], [0], [1], [0, 0, 1, 1], [], []>} : vector<32x256xbf16>, vector<256x256xbf16>, vector<32x256xf32> -> vector<32x256xf32>
    %55 = arith.addf %47, %54 : vector<32x256xf32>
    %c5 = arith.constant 5 : index
    %c0_51 = arith.constant 0 : index
    %c0_52 = arith.constant 0 : index
    %56 = vector.load %arg8[%c5, %c0_51, %c0_52] : memref<9x32x32xf32, #tpu.memory_space<vmem>>, vector<1x32x32xf32>
    %57 = vector.shape_cast %56 : vector<1x32x32xf32> to vector<32x32xf32>
    %cst_53 = arith.constant dense<0.000000e+00> : vector<32x256xf32>
    %58 = tpu.matmul %57, %16, %cst_53 {dimension_numbers = #tpu.dot_dimension_numbers<[1], [0], [0], [1], [0, 0, 1, 1], [], []>} : vector<32x32xf32>, vector<32x256xf32>, vector<32x256xf32> -> vector<32x256xf32>
    %59 = arith.truncf %58 : vector<32x256xf32> to vector<32x256xbf16>
    %c5_54 = arith.constant 5 : index
    %c0_55 = arith.constant 0 : index
    %c0_56 = arith.constant 0 : index
    %60 = vector.load %arg9[%c5_54, %c0_55, %c0_56] : memref<9x256x256xbf16, #tpu.memory_space<vmem>>, vector<1x256x256xbf16>
    %61 = vector.shape_cast %60 : vector<1x256x256xbf16> to vector<256x256xbf16>
    %cst_57 = arith.constant dense<0.000000e+00> : vector<32x256xf32>
    %62 = tpu.matmul %59, %61, %cst_57 {dimension_numbers = #tpu.dot_dimension_numbers<[1], [0], [0], [1], [0, 0, 1, 1], [], []>} : vector<32x256xbf16>, vector<256x256xbf16>, vector<32x256xf32> -> vector<32x256xf32>
    %63 = arith.addf %55, %62 : vector<32x256xf32>
    %c6 = arith.constant 6 : index
    %c0_58 = arith.constant 0 : index
    %c0_59 = arith.constant 0 : index
    %64 = vector.load %arg8[%c6, %c0_58, %c0_59] : memref<9x32x32xf32, #tpu.memory_space<vmem>>, vector<1x32x32xf32>
    %65 = vector.shape_cast %64 : vector<1x32x32xf32> to vector<32x32xf32>
    %cst_60 = arith.constant dense<0.000000e+00> : vector<32x256xf32>
    %66 = tpu.matmul %65, %16, %cst_60 {dimension_numbers = #tpu.dot_dimension_numbers<[1], [0], [0], [1], [0, 0, 1, 1], [], []>} : vector<32x32xf32>, vector<32x256xf32>, vector<32x256xf32> -> vector<32x256xf32>
    %67 = arith.truncf %66 : vector<32x256xf32> to vector<32x256xbf16>
    %c6_61 = arith.constant 6 : index
    %c0_62 = arith.constant 0 : index
    %c0_63 = arith.constant 0 : index
    %68 = vector.load %arg9[%c6_61, %c0_62, %c0_63] : memref<9x256x256xbf16, #tpu.memory_space<vmem>>, vector<1x256x256xbf16>
    %69 = vector.shape_cast %68 : vector<1x256x256xbf16> to vector<256x256xbf16>
    %cst_64 = arith.constant dense<0.000000e+00> : vector<32x256xf32>
    %70 = tpu.matmul %67, %69, %cst_64 {dimension_numbers = #tpu.dot_dimension_numbers<[1], [0], [0], [1], [0, 0, 1, 1], [], []>} : vector<32x256xbf16>, vector<256x256xbf16>, vector<32x256xf32> -> vector<32x256xf32>
    %71 = arith.addf %63, %70 : vector<32x256xf32>
    %c7 = arith.constant 7 : index
    %c0_65 = arith.constant 0 : index
    %c0_66 = arith.constant 0 : index
    %72 = vector.load %arg8[%c7, %c0_65, %c0_66] : memref<9x32x32xf32, #tpu.memory_space<vmem>>, vector<1x32x32xf32>
    %73 = vector.shape_cast %72 : vector<1x32x32xf32> to vector<32x32xf32>
    %cst_67 = arith.constant dense<0.000000e+00> : vector<32x256xf32>
    %74 = tpu.matmul %73, %16, %cst_67 {dimension_numbers = #tpu.dot_dimension_numbers<[1], [0], [0], [1], [0, 0, 1, 1], [], []>} : vector<32x32xf32>, vector<32x256xf32>, vector<32x256xf32> -> vector<32x256xf32>
    %75 = arith.truncf %74 : vector<32x256xf32> to vector<32x256xbf16>
    %c7_68 = arith.constant 7 : index
    %c0_69 = arith.constant 0 : index
    %c0_70 = arith.constant 0 : index
    %76 = vector.load %arg9[%c7_68, %c0_69, %c0_70] : memref<9x256x256xbf16, #tpu.memory_space<vmem>>, vector<1x256x256xbf16>
    %77 = vector.shape_cast %76 : vector<1x256x256xbf16> to vector<256x256xbf16>
    %cst_71 = arith.constant dense<0.000000e+00> : vector<32x256xf32>
    %78 = tpu.matmul %75, %77, %cst_71 {dimension_numbers = #tpu.dot_dimension_numbers<[1], [0], [0], [1], [0, 0, 1, 1], [], []>} : vector<32x256xbf16>, vector<256x256xbf16>, vector<32x256xf32> -> vector<32x256xf32>
    %79 = arith.addf %71, %78 : vector<32x256xf32>
    %c8 = arith.constant 8 : index
    %c0_72 = arith.constant 0 : index
    %c0_73 = arith.constant 0 : index
    %80 = vector.load %arg8[%c8, %c0_72, %c0_73] : memref<9x32x32xf32, #tpu.memory_space<vmem>>, vector<1x32x32xf32>
    %81 = vector.shape_cast %80 : vector<1x32x32xf32> to vector<32x32xf32>
    %cst_74 = arith.constant dense<0.000000e+00> : vector<32x256xf32>
    %82 = tpu.matmul %81, %16, %cst_74 {dimension_numbers = #tpu.dot_dimension_numbers<[1], [0], [0], [1], [0, 0, 1, 1], [], []>} : vector<32x32xf32>, vector<32x256xf32>, vector<32x256xf32> -> vector<32x256xf32>
    %83 = arith.truncf %82 : vector<32x256xf32> to vector<32x256xbf16>
    %c8_75 = arith.constant 8 : index
    %c0_76 = arith.constant 0 : index
    %c0_77 = arith.constant 0 : index
    %84 = vector.load %arg9[%c8_75, %c0_76, %c0_77] : memref<9x256x256xbf16, #tpu.memory_space<vmem>>, vector<1x256x256xbf16>
    %85 = vector.shape_cast %84 : vector<1x256x256xbf16> to vector<256x256xbf16>
    %cst_78 = arith.constant dense<0.000000e+00> : vector<32x256xf32>
    %86 = tpu.matmul %83, %85, %cst_78 {dimension_numbers = #tpu.dot_dimension_numbers<[1], [0], [0], [1], [0, 0, 1, 1], [], []>} : vector<32x256xbf16>, vector<256x256xbf16>, vector<32x256xf32> -> vector<32x256xf32>
    %87 = arith.addf %79, %86 : vector<32x256xf32>
    %c0_79 = arith.constant 0 : index
    %c0_80 = arith.constant 0 : index
    %88 = vector.load %arg10[%c0_79, %c0_80] : memref<1x256xf32, #tpu.memory_space<vmem>>, vector<1x256xf32>
    %89 = vector.broadcast %88 : vector<1x256xf32> to vector<32x256xf32>
    %90 = arith.addf %87, %89 : vector<32x256xf32>
    %c0_81 = arith.constant 0 : index
    %c0_82 = arith.constant 0 : index
    %91 = vector.load %arg11[%c0_81, %c0_82] : memref<32x256xf32, #tpu.memory_space<vmem>>, vector<32x256xf32>
    tpu.vector_store %arg11[%c0_81, %c0_82], %90 {strides = array<i32>} : memref<32x256xf32, #tpu.memory_space<vmem>>, vector<32x256xf32>,
    %c0_83 = arith.constant 0 : index
    %c0_84 = arith.constant 0 : index
    %92 = vector.load %arg12[%c0_83, %c0_84] : memref<8x256xf32, #tpu.memory_space<vmem>>, vector<8x256xf32>
    tpu.vector_store %arg12[%c0_83, %c0_84], %6 {strides = array<i32>} : memref<8x256xf32, #tpu.memory_space<vmem>>, vector<8x256xf32>,
    return
  }
  func.func @transform_0(%arg0: i32) -> (i32, i32) {
    %c0_i32 = arith.constant 0 : i32
    %c0_i32_0 = arith.constant 0 : i32
    %c0_i32_1 = arith.constant 0 : i32
    return %c0_i32, %c0_i32_0 : i32, i32
  }
  func.func @transform_1(%arg0: i32) -> (i32, i32) {
    %c0_i32 = arith.constant 0 : i32
    %c0_i32_0 = arith.constant 0 : i32
    %c0_i32_1 = arith.constant 0 : i32
    return %c0_i32, %c0_i32_0 : i32, i32
  }
  func.func @transform_2(%arg0: i32) -> (i32, i32) {
    %c0_i32 = arith.constant 0 : i32
    %c0_i32_0 = arith.constant 0 : i32
    %c0_i32_1 = arith.constant 0 : i32
    return %c0_i32, %c0_i32_0 : i32, i32
  }
  func.func @transform_3(%arg0: i32) -> (i32, i32) {
    %c0_i32 = arith.constant 0 : i32
    %c0_i32_0 = arith.constant 0 : i32
    %c0_i32_1 = arith.constant 0 : i32
    return %c0_i32, %c0_i32_0 : i32, i32
  }
  func.func @transform_4(%arg0: i32) -> (i32, i32) {
    %c0_i32 = arith.constant 0 : i32
    %c0_i32_0 = arith.constant 0 : i32
    %c0_i32_1 = arith.constant 0 : i32
    return %c0_i32, %c0_i32_0 : i32, i32
  }
  func.func @transform_5(%arg0: i32) -> (i32, i32) {
    %c0_i32 = arith.constant 0 : i32
    %c0_i32_0 = arith.constant 0 : i32
    %c0_i32_1 = arith.constant 0 : i32
    return %c0_i32, %c0_i32_0 : i32, i32
  }
  func.func @transform_6(%arg0: i32) -> (i32, i32) {
    %c0_i32 = arith.constant 0 : i32
    %c0_i32_0 = arith.constant 0 : i32
    %c0_i32_1 = arith.constant 0 : i32
    return %c0_i32, %c0_i32_0 : i32, i32
  }
  func.func @transform_7(%arg0: i32) -> (i32, i32, i32) {
    %c0_i32 = arith.constant 0 : i32
    %c0_i32_0 = arith.constant 0 : i32
    %c0_i32_1 = arith.constant 0 : i32
    %c0_i32_2 = arith.constant 0 : i32
    return %c0_i32, %c0_i32_0, %c0_i32_1 : i32, i32, i32
  }
  func.func @transform_8(%arg0: i32) -> (i32, i32, i32) {
    %c0_i32 = arith.constant 0 : i32
    %c0_i32_0 = arith.constant 0 : i32
    %c0_i32_1 = arith.constant 0 : i32
    %c0_i32_2 = arith.constant 0 : i32
    return %c0_i32, %c0_i32_0, %c0_i32_1 : i32, i32, i32
  }
  func.func @transform_9(%arg0: i32) -> (i32, i32) {
    %c0_i32 = arith.constant 0 : i32
    %c0_i32_0 = arith.constant 0 : i32
    %c0_i32_1 = arith.constant 0 : i32
    return %c0_i32, %c0_i32_0 : i32, i32
  }
  func.func @transform_10(%arg0: i32) -> (i32, i32) {
    %c0_i32 = arith.constant 0 : i32
    %c0_i32_0 = arith.constant 0 : i32
    %c0_i32_1 = arith.constant 0 : i32
    return %c0_i32, %c0_i32_0 : i32, i32
  }
  func.func @transform_11(%arg0: i32) -> (i32, i32) {
    %c0_i32 = arith.constant 0 : i32
    %c0_i32_0 = arith.constant 0 : i32
    %c0_i32_1 = arith.constant 0 : i32
    return %c0_i32, %c0_i32_0 : i32, i32
  }
}

</mosaic_0001>

<bundles_post_ra>
// kernel: _lambda_.6
= control target key start
LH: loop header
LB: loop body
LE: loop exit
PB: predicated region body
PF: predicated region fallthrough
CT: control target
= control target key end

     0   :  { %vm78_vm0 = vcmask 523264   ;;  %s1000_s1 = inlined_call_operand.vmem [shape: bf16[64,64], index: 1, kind: input, shape index: {}]   ;;  %s1001_s2 = inlined_call_operand.vmem [shape: f32[1,64], index: 2, kind: input, shape index: {}]   ;;  %s1002_s0 = inlined_call_operand.vmem [shape: f32[128,64], index: 0, kind: input, shape index: {}]   ;;  %s1003_s3 = inlined_call_operand.vmem [shape: f32[9,32,128], index: 3, kind: input, shape index: {}]   ;;  %s1004_s4 = inlined_call_operand.vmem [shape: f32[32,64], index: 4, kind: output, shape index: {}]  }
   0x1   :  { %v572_v0 = vld [vmem:[%s1000_s1 + $0x18] sm:$0xff]  ;;  %v571_v1 = vld [vmem:[%s1000_s1 + $0x10] sm:$0xff]  ;;  %v570_v2 = vld [vmem:[%s1000_s1 + $0x8] sm:$0xff] }
   0x2   :  { %107 = vmatpush.bf16.msra.mxu0 %v572_v0  ;;  %v569_v3 = vld [vmem:[%s1000_s1] sm:$0xff]  ;;  %v19_v5 = vld [vmem:[%s1002_s0 + $0x8] sm:$0xff]  ;;  %v20_v7 = vld [vmem:[%s1002_s0 + $0x10] sm:$0xff] }
   0x3   :  { %v18_v4 = vld [vmem:[%s1002_s0] sm:$0xff]  ;;  %v21_v8 = vld [vmem:[%s1002_s0 + $0x18] sm:$0xff]  ;;  %v23_v11 = vld [vmem:[%s1002_s0 + $0x28] sm:$0xff] }
   0x4   :  { %v42_v6 = vpack.c.bf16 %v19_v5, %v18_v4  ;;  %v43_v9 = vpack.c.bf16 %v21_v8, %v20_v7  ;;  %v22_v10 = vld [vmem:[%s1002_s0 + $0x20] sm:$0xff]  ;;  %v24_v13 = vld [vmem:[%s1002_s0 + $0x30] sm:$0xff]  ;;  %v25_v14 = vld [vmem:[%s1002_s0 + $0x38] sm:$0xff] }
   0x5   :  { %v44_v12 = vpack.c.bf16 %v23_v11, %v22_v10  ;;  %v45_v15 = vpack.c.bf16 %v25_v14, %v24_v13  ;;  %v26_v16 = vld [vmem:[%s1002_s0 + $0x40] sm:$0xff]  ;;  %v27_v17 = vld [vmem:[%s1002_s0 + $0x48] sm:$0xff]  ;;  %v28_v19 = vld [vmem:[%s1002_s0 + $0x50] sm:$0xff] }
   0x6   :  { %108 = vmatpush.bf16.msra.mxu0 %v571_v1  ;;  %v46_v18 = vpack.c.bf16 %v27_v17, %v26_v16  ;;  %v29_v20 = vld [vmem:[%s1002_s0 + $0x58] sm:$0xff]  ;;  %v30_v22 = vld [vmem:[%s1002_s0 + $0x60] sm:$0xff]  ;;  %v31_v23 = vld [vmem:[%s1002_s0 + $0x68] sm:$0xff] }
   0x7   :  { %v47_v21 = vpack.c.bf16 %v29_v20, %v28_v19  ;;  %v48_v24 = vpack.c.bf16 %v31_v23, %v30_v22  ;;  %v32_v25 = vld [vmem:[%s1002_s0 + $0x70] sm:$0xff]  ;;  %v33_v26 = vld [vmem:[%s1002_s0 + $0x78] sm:$0xff]  ;;  %v678_v43 = vld [vmem:[%s1001_s2] ss:$0 sm:$0xff] }
   0x8   :  { %v49_v27 = vpack.c.bf16 %v33_v26, %v32_v25  ;;  %v168_v13 = vld [vmem:[%s1003_s3] sm:$0xff]  ;;  %v169_v16 = vld [vmem:[%s1003_s3 + $0x8] sm:$0xff]  ;;  %v170_v19 = vld [vmem:[%s1003_s3 + $0x10] sm:$0xff] }
   0x9   :  { %v537_v14 = vld [vmem:[%s1003_s3 + $0x20] sm:$0xff]  ;;  %v538_v17 = vld [vmem:[%s1003_s3 + $0x28] sm:$0xff]  ;;  %v539_v20 = vld [vmem:[%s1003_s3 + $0x30] sm:$0xff] }
   0xa   :  { %109 = vmatpush.bf16.msra.mxu0 %v570_v2  ;;  %v171_v22 = vld [vmem:[%s1003_s3 + $0x18] sm:$0xff]  ;;  %v545_v25 = vld [vmem:[%s1003_s3 + $0x60] sm:$0xff] }
   0xb   :  { %v540_v23 = vld [vmem:[%s1003_s3 + $0x38] sm:$0xff]  ;;  %v549_v26 = vld [vmem:[%s1003_s3 + $0x80] sm:$0xff] }
   0xe   :  { %110 = vmatpush.bf16.msra.mxu0 %v569_v3 }
  0x11   :  { %529 = vmatmul.msk.bf16.vlgmr.msra.gmra.mxu0 %vm78_vm0, %v42_v6 }
  0x21   :  { %530 = vmatmul.msk.bf16.gmra.mxu0 %vm78_vm0, %v43_v9 }
  0x31   :  { %531 = vmatmul.msk.bf16.gmra.mxu0 %vm78_vm0, %v44_v12 }
  0x41   :  { %532 = vmatmul.msk.bf16.gmra.mxu0 %vm78_vm0, %v45_v15  ;;  %v541_v15 = vld [vmem:[%s1003_s3 + $0x40] sm:$0xff] }
  0x51   :  { %533 = vmatmul.msk.bf16.gmra.mxu0 %vm78_vm0, %v46_v18  ;;  %v542_v18 = vld [vmem:[%s1003_s3 + $0x48] sm:$0xff] }
  0x61   :  { %534 = vmatmul.msk.bf16.gmra.mxu0 %vm78_vm0, %v47_v21  ;;  %v543_v21 = vld [vmem:[%s1003_s3 + $0x50] sm:$0xff] }
  0x71   :  { %535 = vmatmul.msk.bf16.gmra.mxu0 %vm78_vm0, %v48_v24  ;;  %v544_v24 = vld [vmem:[%s1003_s3 + $0x58] sm:$0xff] }
  0x81   :  { %536 = vmatmul.msk.bf16.gmra.mxu0 %vm78_vm0, %v49_v27  ;;  %v553_v27 = vld [vmem:[%s1003_s3 + $0xa0] sm:$0xff] }
  0x8e   :  { %v667_v28 = vpop.f32.mrf.mxu0 }
  0x8f   :  { %v113_v9 = vadd.f32 %v678_v43, %v667_v28  ;;  %v546_v28 = vld [vmem:[%s1003_s3 + $0x68] sm:$0xff] }
  0x91   :  { %v772_v12 = vmax.f32 %v113_v9, 0.0 }
  0x96   :  { %v669_v29 = vpop.f32.mrf.mxu0 }
  0x97   :  { %v115_v7 = vadd.f32 %v678_v43, %v669_v29  ;;  %v550_v29 = vld [vmem:[%s1003_s3 + $0x88] sm:$0xff] }
  0x99   :  { %v767_v11 = vmax.f32 %v115_v7, 0.0 }
  0x9e   :  { %v671_v30 = vpop.f32.mrf.mxu0 }
  0x9f   :  { %v118_v5 = vadd.f32 %v678_v43, %v671_v30  ;;  %v554_v30 = vld [vmem:[%s1003_s3 + $0xa8] sm:$0xff] }
  0xa1   :  { %v762_v10 = vmax.f32 %v118_v5, 0.0 }
  0xa6   :  { %v673_v31 = vpop.f32.mrf.mxu0 }
  0xa7   :  { %v120_v3 = vadd.f32 %v678_v43, %v673_v31  ;;  %v547_v31 = vld [vmem:[%s1003_s3 + $0x70] sm:$0xff] }
  0xa9   :  { %v755_v8 = vmax.f32 %v120_v3, 0.0 }
  0xae   :  { %v122_v32 = vpop.f32.mrf.mxu0 }
  0xaf   :  { %v123_v1 = vadd.f32 %v678_v43, %v122_v32  ;;  %v551_v32 = vld [vmem:[%s1003_s3 + $0x90] sm:$0xff] }
  0xb1   :  { %v748_v6 = vmax.f32 %v123_v1, 0.0 }
  0xb6   :  { %v124_v33 = vpop.f32.mrf.mxu0 }
  0xb7   :  { %v125_v63 = vadd.f32 %v678_v43, %v124_v33  ;;  %v555_v33 = vld [vmem:[%s1003_s3 + $0xb0] sm:$0xff] }
  0xb9   :  { %v741_v4 = vmax.f32 %v125_v63, 0.0 }
  0xbe   :  { %v127_v34 = vpop.f32.mrf.mxu0 }
  0xbf   :  { %v128_v61 = vadd.f32 %v678_v43, %v127_v34  ;;  %v548_v34 = vld [vmem:[%s1003_s3 + $0x78] sm:$0xff] }
  0xc1   :  { %v734_v2 = vmax.f32 %v128_v61, 0.0 }
  0xc6   :  { %v129_v35 = vpop.f32.mrf.mxu0 }
  0xc7   :  { %v130_v59 = vadd.f32 %v678_v43, %v129_v35  ;;  %v552_v35 = vld [vmem:[%s1003_s3 + $0x98] sm:$0xff] }
  0xc9   :  { %v728_v0 = vmax.f32 %v130_v59, 0.0 }
  0xce   :  { %v132_v36 = vpop.f32.mrf.mxu0 }
  0xcf   :  { %v133_v57 = vadd.f32 %v678_v43, %v132_v36  ;;  %v556_v36 = vld [vmem:[%s1003_s3 + $0xb8] sm:$0xff] }
  0xd1   :  { %v722_v62 = vmax.f32 %v133_v57, 0.0 }
  0xd6   :  { %v134_v37 = vpop.f32.mrf.mxu0 }
  0xd7   :  { %v135_v55 = vadd.f32 %v678_v43, %v134_v37  ;;  %v557_v37 = vld [vmem:[%s1003_s3 + $0xc0] sm:$0xff] }
  0xd9   :  { %v716_v60 = vmax.f32 %v135_v55, 0.0 }
  0xde   :  { %v137_v38 = vpop.f32.mrf.mxu0 }
  0xdf   :  { %v138_v53 = vadd.f32 %v678_v43, %v137_v38  ;;  %v561_v38 = vld [vmem:[%s1003_s3 + $0xe0] sm:$0xff] }
  0xe1   :  { %v710_v58 = vmax.f32 %v138_v53, 0.0 }
  0xe6   :  { %v139_v39 = vpop.f32.mrf.mxu0 }
  0xe7   :  { %v140_v51 = vadd.f32 %v678_v43, %v139_v39  ;;  %v565_v39 = vld [vmem:[%s1003_s3 + $0x100] sm:$0xff] }
  0xe9   :  { %v704_v56 = vmax.f32 %v140_v51, 0.0 }
  0xee   :  { %v142_v40 = vpop.f32.mrf.mxu0 }
  0xef   :  { %v143_v49 = vadd.f32 %v678_v43, %v142_v40  ;;  %v558_v40 = vld [vmem:[%s1003_s3 + $0xc8] sm:$0xff] }
  0xf1   :  { %v698_v54 = vmax.f32 %v143_v49, 0.0 }
  0xf6   :  { %v144_v41 = vpop.f32.mrf.mxu0 }
  0xf7   :  { %v145_v47 = vadd.f32 %v678_v43, %v144_v41  ;;  %v562_v41 = vld [vmem:[%s1003_s3 + $0xe8] sm:$0xff] }
  0xf9   :  { %v692_v52 = vmax.f32 %v145_v47, 0.0  ;;  %v564_v47 = vld [vmem:[%s1003_s3 + $0xf8] sm:$0xff] }
  0xfe   :  { %v147_v42 = vpop.f32.mrf.mxu0 }
  0xff   :  { %v148_v45 = vadd.f32 %v678_v43, %v147_v42  ;;  %v566_v42 = vld [vmem:[%s1003_s3 + $0x108] sm:$0xff] }
 0x101   :  { %v686_v50 = vmax.f32 %v148_v45, 0.0  ;;  %v567_v45 = vld [vmem:[%s1003_s3 + $0x110] sm:$0xff] }
 0x106   :  { %v149_v44 = vpop.f32.mrf.mxu0 }
 0x107   :  { %v150_v46 = vadd.f32 %v678_v43, %v149_v44  ;;  %v559_v43 = vld [vmem:[%s1003_s3 + $0xd0] sm:$0xff] }
 0x108   :  { %v563_v44 = vld [vmem:[%s1003_s3 + $0xf0] sm:$0xff] }
 0x109   :  { %v683_v48 = vmax.f32 %v150_v46, 0.0  ;;  %v560_v46 = vld [vmem:[%s1003_s3 + $0xd8] sm:$0xff] }
 0x10b   :  { %172 = vmatpush.msra.mxu1 %v683_v48  ;;  %206 = vmatpush.msra.mxu2 %v683_v48 }
 0x10c   :  { %244 = vmatpush.msra.mxu3 %v683_v48 }
 0x10d   :  { %173 = vmatpush.msra.mxu1 %v686_v50  ;;  %207 = vmatpush.msra.mxu2 %v686_v50 }
 0x10e   :  { %245 = vmatpush.msra.mxu3 %v686_v50 }
 0x10f   :  { %174 = vmatpush.msra.mxu1 %v692_v52  ;;  %208 = vmatpush.msra.mxu2 %v692_v52 }
 0x110   :  { %246 = vmatpush.msra.mxu3 %v692_v52 }
 0x111   :  { %175 = vmatpush.msra.mxu1 %v698_v54  ;;  %209 = vmatpush.msra.mxu2 %v698_v54 }
 0x112   :  { %247 = vmatpush.msra.mxu3 %v698_v54 }
 0x113   :  { %176 = vmatpush.msra.mxu1 %v704_v56  ;;  %210 = vmatpush.msra.mxu2 %v704_v56 }
 0x114   :  { %248 = vmatpush.msra.mxu3 %v704_v56 }
 0x115   :  { %177 = vmatpush.msra.mxu1 %v710_v58  ;;  %211 = vmatpush.msra.mxu2 %v710_v58 }
 0x116   :  { %249 = vmatpush.msra.mxu3 %v710_v58 }
 0x117   :  { %178 = vmatpush.msra.mxu1 %v716_v60  ;;  %212 = vmatpush.msra.mxu2 %v716_v60 }
 0x118   :  { %250 = vmatpush.msra.mxu3 %v716_v60 }
 0x119   :  { %179 = vmatpush.msra.mxu1 %v722_v62  ;;  %213 = vmatpush.msra.mxu2 %v722_v62 }
 0x11a   :  { %251 = vmatpush.msra.mxu3 %v722_v62 }
 0x11b   :  { %180 = vmatpush.msra.mxu1 %v728_v0  ;;  %214 = vmatpush.msra.mxu2 %v728_v0 }
 0x11c   :  { %252 = vmatpush.msra.mxu3 %v728_v0 }
 0x11d   :  { %181 = vmatpush.msra.mxu1 %v734_v2  ;;  %215 = vmatpush.msra.mxu2 %v734_v2 }
 0x11e   :  { %253 = vmatpush.msra.mxu3 %v734_v2 }
 0x11f   :  { %182 = vmatpush.msra.mxu1 %v741_v4  ;;  %216 = vmatpush.msra.mxu2 %v741_v4 }
 0x120   :  { %254 = vmatpush.msra.mxu3 %v741_v4 }
 0x121   :  { %183 = vmatpush.msra.mxu1 %v748_v6  ;;  %217 = vmatpush.msra.mxu2 %v748_v6 }
 0x122   :  { %255 = vmatpush.msra.mxu3 %v748_v6 }
 0x123   :  { %184 = vmatpush.msra.mxu1 %v755_v8  ;;  %218 = vmatpush.msra.mxu2 %v755_v8 }
 0x124   :  { %256 = vmatpush.msra.mxu3 %v755_v8 }
 0x125   :  { %185 = vmatpush.msra.mxu1 %v762_v10  ;;  %219 = vmatpush.msra.mxu2 %v762_v10 }
 0x126   :  { %257 = vmatpush.msra.mxu3 %v762_v10 }
 0x127   :  { %186 = vmatpush.msra.mxu1 %v767_v11  ;;  %220 = vmatpush.msra.mxu2 %v767_v11 }
 0x128   :  { %258 = vmatpush.msra.mxu3 %v767_v11 }
 0x129   :  { %187 = vmatpush.msra.mxu1 %v772_v12  ;;  %221 = vmatpush.msra.mxu2 %v772_v12 }
 0x12a   :  { %259 = vmatpush.msra.mxu3 %v772_v12  ;;  %188 = vmatmul.f32.vlgmr.msra.gmra.mxu1 %v168_v13 }
 0x12b   :  { %222 = vmatmul.f32.vlgmr.msra.gmra.mxu2 %v537_v14  ;;  %282 = vmatpush.msrb.mxu1 %v683_v48 }
 0x12c   :  { %320 = vmatpush.msrb.mxu2 %v683_v48  ;;  %358 = vmatpush.msrb.mxu3 %v683_v48 }
 0x12d   :  { %260 = vmatmul.f32.vlgmr.msra.gmra.mxu3 %v541_v15  ;;  %283 = vmatpush.msrb.mxu1 %v686_v50 }
 0x12e   :  { %321 = vmatpush.msrb.mxu2 %v686_v50  ;;  %359 = vmatpush.msrb.mxu3 %v686_v50 }
 0x12f   :  { %284 = vmatpush.msrb.mxu1 %v692_v52 }
 0x130   :  { %322 = vmatpush.msrb.mxu2 %v692_v52  ;;  %360 = vmatpush.msrb.mxu3 %v692_v52 }
 0x131   :  { %285 = vmatpush.msrb.mxu1 %v698_v54 }
 0x132   :  { %323 = vmatpush.msrb.mxu2 %v698_v54  ;;  %361 = vmatpush.msrb.mxu3 %v698_v54 }
 0x133   :  { %191 = vmatmul.f32.gmra.mxu1 %v169_v16  ;;  %225 = vmatmul.f32.gmra.mxu2 %v538_v17 }
 0x134   :  { %286 = vmatpush.msrb.mxu1 %v704_v56  ;;  %324 = vmatpush.msrb.mxu2 %v704_v56 }
 0x135   :  { %362 = vmatpush.msrb.mxu3 %v704_v56 }
 0x136   :  { %263 = vmatmul.f32.gmra.mxu3 %v542_v18  ;;  %287 = vmatpush.msrb.mxu1 %v710_v58 }
 0x137   :  { %325 = vmatpush.msrb.mxu2 %v710_v58  ;;  %363 = vmatpush.msrb.mxu3 %v710_v58 }
 0x138   :  { %288 = vmatpush.msrb.mxu1 %v716_v60 }
 0x139   :  { %326 = vmatpush.msrb.mxu2 %v716_v60  ;;  %364 = vmatpush.msrb.mxu3 %v716_v60 }
 0x13a   :  { %289 = vmatpush.msrb.mxu1 %v722_v62 }
 0x13b   :  { %327 = vmatpush.msrb.mxu2 %v722_v62  ;;  %365 = vmatpush.msrb.mxu3 %v722_v62 }
 0x13c   :  { %194 = vmatmul.f32.gmra.mxu1 %v170_v19  ;;  %228 = vmatmul.f32.gmra.mxu2 %v539_v20 }
 0x13d   :  { %290 = vmatpush.msrb.mxu1 %v728_v0  ;;  %328 = vmatpush.msrb.mxu2 %v728_v0 }
 0x13e   :  { %366 = vmatpush.msrb.mxu3 %v728_v0 }
 0x13f   :  { %266 = vmatmul.f32.gmra.mxu3 %v543_v21  ;;  %291 = vmatpush.msrb.mxu1 %v734_v2 }
 0x140   :  { %329 = vmatpush.msrb.mxu2 %v734_v2  ;;  %367 = vmatpush.msrb.mxu3 %v734_v2 }
 0x141   :  { %292 = vmatpush.msrb.mxu1 %v741_v4 }
 0x142   :  { %330 = vmatpush.msrb.mxu2 %v741_v4  ;;  %368 = vmatpush.msrb.mxu3 %v741_v4 }
 0x143   :  { %293 = vmatpush.msrb.mxu1 %v748_v6 }
 0x144   :  { %331 = vmatpush.msrb.mxu2 %v748_v6  ;;  %369 = vmatpush.msrb.mxu3 %v748_v6 }
 0x145   :  { %197 = vmatmul.f32.gmra.mxu1 %v171_v22  ;;  %231 = vmatmul.f32.gmra.mxu2 %v540_v23 }
 0x146   :  { %294 = vmatpush.msrb.mxu1 %v755_v8  ;;  %332 = vmatpush.msrb.mxu2 %v755_v8 }
 0x147   :  { %370 = vmatpush.msrb.mxu3 %v755_v8 }
 0x148   :  { %269 = vmatmul.f32.gmra.mxu3 %v544_v24  ;;  %295 = vmatpush.msrb.mxu1 %v762_v10 }
 0x149   :  { %333 = vmatpush.msrb.mxu2 %v762_v10  ;;  %371 = vmatpush.msrb.mxu3 %v762_v10 }
 0x14a   :  { %296 = vmatpush.msrb.mxu1 %v767_v11 }
 0x14b   :  { %334 = vmatpush.msrb.mxu2 %v767_v11  ;;  %372 = vmatpush.msrb.mxu3 %v767_v11 }
 0x14c   :  { %297 = vmatpush.msrb.mxu1 %v772_v12 }
 0x14d   :  { %335 = vmatpush.msrb.mxu2 %v772_v12  ;;  %373 = vmatpush.msrb.mxu3 %v772_v12 }
 0x14e   :  { %396 = vmatpush.msra.mxu1 %v683_v48  ;;  %336 = vmatmul.f32.vlgmr.msrb.gmra.mxu2 %v549_v26 }
 0x14f   :  { %434 = vmatpush.msra.mxu2 %v683_v48  ;;  %472 = vmatpush.msra.mxu3 %v683_v48  ;;  %v568_v48 = vld [vmem:[%s1003_s3 + $0x118] sm:$0xff] }
 0x150   :  { %298 = vmatmul.f32.vlgmr.msrb.gmra.mxu1 %v545_v25  ;;  %374 = vmatmul.f32.vlgmr.msrb.gmra.mxu3 %v553_v27 }
 0x151   :  { %397 = vmatpush.msra.mxu1 %v686_v50  ;;  %435 = vmatpush.msra.mxu2 %v686_v50 }
 0x152   :  { %473 = vmatpush.msra.mxu3 %v686_v50 }
 0x153   :  { %398 = vmatpush.msra.mxu1 %v692_v52  ;;  %436 = vmatpush.msra.mxu2 %v692_v52 }
 0x154   :  { %474 = vmatpush.msra.mxu3 %v692_v52 }
 0x155   :  { %399 = vmatpush.msra.mxu1 %v698_v54  ;;  %437 = vmatpush.msra.mxu2 %v698_v54 }
 0x156   :  { %475 = vmatpush.msra.mxu3 %v698_v54  ;;  %339 = vmatmul.f32.gmra.mxu2 %v550_v29 }
 0x157   :  { %400 = vmatpush.msra.mxu1 %v704_v56  ;;  %438 = vmatpush.msra.mxu2 %v704_v56 }
 0x158   :  { %476 = vmatpush.msra.mxu3 %v704_v56  ;;  %301 = vmatmul.f32.gmra.mxu1 %v546_v28 }
 0x159   :  { %401 = vmatpush.msra.mxu1 %v710_v58  ;;  %439 = vmatpush.msra.mxu2 %v710_v58 }
 0x15a   :  { %477 = vmatpush.msra.mxu3 %v710_v58 }
 0x15b   :  { %377 = vmatmul.f32.gmra.mxu3 %v554_v30  ;;  %402 = vmatpush.msra.mxu1 %v716_v60 }
 0x15c   :  { %440 = vmatpush.msra.mxu2 %v716_v60  ;;  %478 = vmatpush.msra.mxu3 %v716_v60 }
 0x15d   :  { %403 = vmatpush.msra.mxu1 %v722_v62 }
 0x15e   :  { %441 = vmatpush.msra.mxu2 %v722_v62  ;;  %479 = vmatpush.msra.mxu3 %v722_v62 }
 0x15f   :  { %404 = vmatpush.msra.mxu1 %v728_v0  ;;  %342 = vmatmul.f32.gmra.mxu2 %v551_v32 }
 0x160   :  { %442 = vmatpush.msra.mxu2 %v728_v0  ;;  %480 = vmatpush.msra.mxu3 %v728_v0 }
 0x161   :  { %304 = vmatmul.f32.gmra.mxu1 %v547_v31 }
 0x162   :  { %405 = vmatpush.msra.mxu1 %v734_v2  ;;  %443 = vmatpush.msra.mxu2 %v734_v2 }
 0x163   :  { %481 = vmatpush.msra.mxu3 %v734_v2 }
 0x164   :  { %380 = vmatmul.f32.gmra.mxu3 %v555_v33  ;;  %406 = vmatpush.msra.mxu1 %v741_v4 }
 0x165   :  { %444 = vmatpush.msra.mxu2 %v741_v4  ;;  %482 = vmatpush.msra.mxu3 %v741_v4 }
 0x166   :  { %407 = vmatpush.msra.mxu1 %v748_v6 }
 0x167   :  { %445 = vmatpush.msra.mxu2 %v748_v6  ;;  %483 = vmatpush.msra.mxu3 %v748_v6 }
 0x168   :  { %408 = vmatpush.msra.mxu1 %v755_v8  ;;  %345 = vmatmul.f32.gmra.mxu2 %v552_v35 }
 0x169   :  { %446 = vmatpush.msra.mxu2 %v755_v8  ;;  %484 = vmatpush.msra.mxu3 %v755_v8 }
 0x16a   :  { %307 = vmatmul.f32.gmra.mxu1 %v548_v34 }
 0x16b   :  { %409 = vmatpush.msra.mxu1 %v762_v10  ;;  %447 = vmatpush.msra.mxu2 %v762_v10 }
 0x16c   :  { %485 = vmatpush.msra.mxu3 %v762_v10 }
 0x16d   :  { %383 = vmatmul.f32.gmra.mxu3 %v556_v36  ;;  %410 = vmatpush.msra.mxu1 %v767_v11 }
 0x16e   :  { %448 = vmatpush.msra.mxu2 %v767_v11  ;;  %486 = vmatpush.msra.mxu3 %v767_v11 }
 0x16f   :  { %411 = vmatpush.msra.mxu1 %v772_v12 }
 0x170   :  { %449 = vmatpush.msra.mxu2 %v772_v12  ;;  %487 = vmatpush.msra.mxu3 %v772_v12 }
 0x171   :  { %450 = vmatmul.f32.vlgmr.msra.gmra.mxu2 %v561_v38 }
 0x172   :  { %412 = vmatmul.f32.vlgmr.msra.gmra.mxu1 %v557_v37 }
 0x175   :  { %488 = vmatmul.f32.vlgmr.msra.gmra.mxu3 %v565_v39 }
 0x179   :  { %453 = vmatmul.f32.gmra.mxu2 %v562_v41 }
 0x17a   :  { %415 = vmatmul.f32.gmra.mxu1 %v558_v40 }
 0x17d   :  { %491 = vmatmul.f32.gmra.mxu3 %v566_v42 }
 0x181   :  { %456 = vmatmul.f32.gmra.mxu2 %v563_v44 }
 0x182   :  { %418 = vmatmul.f32.gmra.mxu1 %v559_v43 }
 0x185   :  { %494 = vmatmul.f32.gmra.mxu3 %v567_v45 }
 0x189   :  { %459 = vmatmul.f32.gmra.mxu2 %v564_v47 }
 0x18a   :  { %421 = vmatmul.f32.gmra.mxu1 %v560_v46 }
 0x18d   :  { %497 = vmatmul.f32.gmra.mxu3 %v568_v48 }
 0x1a7   :  { %v189_v49 = vpop.f32.mrf.mxu1 }
 0x1ae   :  { %v223_v50 = vpop.f32.mrf.mxu2 }
 0x1af   :  { %v235_v5 = vmax.f32 %v189_v49, %v223_v50 }
 0x1b0   :  { %v192_v51 = vpop.f32.mrf.mxu1  ;;  %v261_v52 = vpop.f32.mrf.mxu3 }
 0x1b1   :  { %v273_v8 = vmax.f32 %v235_v5, %v261_v52 }
 0x1b6   :  { %v226_v53 = vpop.f32.mrf.mxu2 }
 0x1b7   :  { %v236_v11 = vmax.f32 %v192_v51, %v226_v53 }
 0x1b9   :  { %v195_v54 = vpop.f32.mrf.mxu1  ;;  %v264_v55 = vpop.f32.mrf.mxu3 }
 0x1ba   :  { %v274_v15 = vmax.f32 %v236_v11, %v264_v55 }
 0x1bf   :  { %v229_v56 = vpop.f32.mrf.mxu2 }
 0x1c0   :  { %v237_v20 = vmax.f32 %v195_v54, %v229_v56 }
 0x1c2   :  { %v198_v57 = vpop.f32.mrf.mxu1  ;;  %v267_v58 = vpop.f32.mrf.mxu3 }
 0x1c3   :  { %v275_v26 = vmax.f32 %v237_v20, %v267_v58 }
 0x1c8   :  { %v232_v59 = vpop.f32.mrf.mxu2 }
 0x1c9   :  { %v238_v31 = vmax.f32 %v198_v57, %v232_v59 }
 0x1cb   :  { %v270_v60 = vpop.f32.mrf.mxu3 }
 0x1cc   :  { %v276_v37 = vmax.f32 %v238_v31, %v270_v60 }
 0x1cd   :  { %v299_v61 = vpop.f32.mrf.mxu1 }
 0x1ce   :  { %v311_v9 = vmax.f32 %v273_v8, %v299_v61 }
 0x1d1   :  { %v337_v62 = vpop.f32.mrf.mxu2 }
 0x1d2   :  { %v349_v12 = vmax.f32 %v311_v9, %v337_v62 }
 0x1d3   :  { %v375_v0 = vpop.f32.mrf.mxu3 }
 0x1d4   :  { %v387_v16 = vmax.f32 %v349_v12, %v375_v0 }
 0x1d5   :  { %v302_v63 = vpop.f32.mrf.mxu1 }
 0x1d6   :  { %v312_v17 = vmax.f32 %v274_v15, %v302_v63 }
 0x1d9   :  { %v340_v1 = vpop.f32.mrf.mxu2 }
 0x1da   :  { %v350_v21 = vmax.f32 %v312_v17, %v340_v1 }
 0x1de   :  { %v305_v2 = vpop.f32.mrf.mxu1  ;;  %v378_v3 = vpop.f32.mrf.mxu3 }
 0x1df   :  { %v388_v27 = vmax.f32 %v350_v21, %v378_v3  ;;  %v313_v28 = vmax.f32 %v275_v26, %v305_v2 }
 0x1e2   :  { %v343_v4 = vpop.f32.mrf.mxu2 }
 0x1e3   :  { %v351_v32 = vmax.f32 %v313_v28, %v343_v4 }
 0x1e7   :  { %v308_v6 = vpop.f32.mrf.mxu1  ;;  %v381_v7 = vpop.f32.mrf.mxu3 }
 0x1e8   :  { %v389_v38 = vmax.f32 %v351_v32, %v381_v7  ;;  %v314_v39 = vmax.f32 %v276_v37, %v308_v6 }
 0x1eb   :  { %v346_v10 = vpop.f32.mrf.mxu2 }
 0x1ec   :  { %v352_v42 = vmax.f32 %v314_v39, %v346_v10 }
 0x1ef   :  { %v413_v13 = vpop.f32.mrf.mxu1 }
 0x1f0   :  { %v384_v14 = vpop.f32.mrf.mxu3  ;;  %v425_v18 = vmax.f32 %v387_v16, %v413_v13 }
 0x1f1   :  { %v390_v47 = vmax.f32 %v352_v42, %v384_v14 }
 0x1f4   :  { %v451_v19 = vpop.f32.mrf.mxu2 }
 0x1f5   :  { %v463_v22 = vmax.f32 %v425_v18, %v451_v19 }
 0x1f7   :  { %v416_v23 = vpop.f32.mrf.mxu1 }
 0x1f8   :  { %v489_v24 = vpop.f32.mrf.mxu3  ;;  %v426_v29 = vmax.f32 %v388_v27, %v416_v23 }
 0x1f9   :  { %v501_v25 = vmax.f32 %v463_v22, %v489_v24 }
 0x1fb   :  { %505 = vst.msk [vmem:[%s1004_s4] sm:$0xff] %vm78_vm0, %v501_v25 }
 0x1fc   :  { %v454_v30 = vpop.f32.mrf.mxu2 }
 0x1fd   :  { %v464_v33 = vmax.f32 %v426_v29, %v454_v30 }
 0x1ff   :  { %v419_v34 = vpop.f32.mrf.mxu1 }
 0x200   :  { %v492_v35 = vpop.f32.mrf.mxu3  ;;  %v427_v40 = vmax.f32 %v389_v38, %v419_v34 }
 0x201   :  { %v502_v36 = vmax.f32 %v464_v33, %v492_v35 }
 0x203   :  { %506 = vst.msk [vmem:[%s1004_s4 + $0x8] sm:$0xff] %vm78_vm0, %v502_v36 }
 0x204   :  { %v457_v41 = vpop.f32.mrf.mxu2 }
 0x205   :  { %v465_v43 = vmax.f32 %v427_v40, %v457_v41 }
 0x207   :  { %v422_v45 = vpop.f32.mrf.mxu1 }
 0x208   :  { %v495_v44 = vpop.f32.mrf.mxu3  ;;  %v428_v48 = vmax.f32 %v390_v47, %v422_v45 }
 0x209   :  { %v503_v46 = vmax.f32 %v465_v43, %v495_v44 }
 0x20b   :  { %507 = vst.msk [vmem:[%s1004_s4 + $0x10] sm:$0xff] %vm78_vm0, %v503_v46 }
 0x20c   :  { %v460_v49 = vpop.f32.mrf.mxu2 }
 0x20d   :  { %v466_v50 = vmax.f32 %v428_v48, %v460_v49 }
 0x210   :  { %v498_v51 = vpop.f32.mrf.mxu3 }
 0x211   :  { %v504_v52 = vmax.f32 %v466_v50, %v498_v51 }
 0x213   :  { %508 = vst.msk [vmem:[%s1004_s4 + $0x18] sm:$0xff] %vm78_vm0, %v504_v52 }

// kernel: _lambda_.7
= control target key start
LH: loop header
LB: loop body
LE: loop exit
PB: predicated region body
PF: predicated region fallthrough
CT: control target
= control target key end

     0   :  { %16 = vsyncpa [#allocation3], 0  ;;  %s1824_s20 = smov [#allocation2]   ;;  %s2419_s0 = inlined_call_operand.vmem [shape: f32[32,64], index: 0, kind: input, shape index: {}, may-alias: {0,1}]   ;;  %s2420_s1 = inlined_call_operand.vmem [shape: f32[32,64], index: 1, kind: input, shape index: {}, may-alias: {0,1}]   ;;  %s2421_s2 = inlined_call_operand.vmem [shape: bf16[64,64], index: 2, kind: input, shape index: {}]   ;;  %s2422_s3 = inlined_call_operand.hbm [shape: f32[1,64], index: 3, kind: input, shape index: {}]   ;;  %s2423_s4 = inlined_call_operand.vmem [shape: f32[9,32,32], index: 4, kind: input, shape index: {}]   ;;  %s2424_s5 = inlined_call_operand.vmem [shape: bf16[9,64,64], index: 5, kind: input, shape index: {}]   ;;  %s2425_s6 = inlined_call_operand.vmem [shape: f32[1,64], index: 6, kind: input, shape index: {}]   ;;  %s2426_s7 = inlined_call_operand.vmem [shape: bf16[64,256], index: 7, kind: input, shape index: {}]   ;;  %s2427_s8 = inlined_call_operand.vmem [shape: f32[1,256], index: 8, kind: input, shape index: {}]   ;;  %s2428_s9 = inlined_call_operand.vmem [shape: bf16[64,256], index: 9, kind: input, shape index: {}]   ;;  %s2429_s10 = inlined_call_operand.vmem [shape: f32[1,256], index: 10, kind: input, shape index: {}]   ;;  %s2430_s11 = inlined_call_operand.vmem [shape: f32[32,256], index: 11, kind: output, shape index: {}]  }
   0x1   :  { %s28_s19 = sshll.u32 %s2422_s3, 4  ;;  %s30_s21 = sshll.u32 %s1824_s20, 4  ;;  %s29_s19 = int_to_ptr.hbm [resolvable:$true] %s28_s19  ;;  %s31_s21 = int_to_ptr.vmem [resolvable:$true] %s30_s21 }
   0x2   :  { %33 = dma.hbm_to_vmem [thread:$0]  %s29_s19, 16, %s31_s21, [#allocation3]  }
   0x3   :  { %1822 = dma.done.wait [#allocation3], 16  }
   0x4   :  { %1823 = vsyncadd [#allocation3], 4294967280  ;;  %v1738_v0 = vld [vmem:[%s2421_s2 + $0x18] sm:$0xff]  ;;  %v1737_v1 = vld [vmem:[%s2421_s2 + $0x10] sm:$0xff]  ;;  %vm95_vm0 = vcmask 523264   ;;  %vm129_vm1 = vcmask 261120  }
   0x5   :  { %1791 = vmatpush.bf16.msra.mxu3 %v1738_v0  ;;  %106 = vmatpush.bf16.msra.mxu0 %v1738_v0  ;;  %v1736_v2 = vld [vmem:[%s2421_s2 + $0x8] sm:$0xff]  ;;  %v1735_v3 = vld [vmem:[%s2421_s2] sm:$0xff]  ;;  %v55_v4 = vld [vmem:[%s2419_s0 + $0x10] sm:$0xff] }
   0x6   :  { %v56_v5 = vld [vmem:[%s2419_s0 + $0x18] sm:$0xff]  ;;  %v53_v6 = vld [vmem:[%s2419_s0] sm:$0xff]  ;;  %v54_v7 = vld [vmem:[%s2419_s0 + $0x8] sm:$0xff] }
   0x7   :  { %v66_v8 = vpack.c.bf16 %v56_v5, %v55_v4  ;;  %v65_v9 = vpack.c.bf16 %v54_v7, %v53_v6  ;;  %v1746_v10 = vld [vmem:[%s2424_s5 + $0x38] sm:$0xff]  ;;  %v1745_v11 = vld [vmem:[%s2424_s5 + $0x30] sm:$0xff]  ;;  %v1744_v12 = vld [vmem:[%s2424_s5 + $0x28] sm:$0xff] }
   0x8   :  { %v1743_v13 = vld [vmem:[%s2424_s5 + $0x20] sm:$0xff]  ;;  %v1374_v29 = vld [vmem:[%s2423_s4 + $0x28] sm:$0xff]  ;;  %v1375_v31 = vld [vmem:[%s2423_s4 + $0x30] sm:$0xff] }
   0x9   :  { %1792 = vmatpush.bf16.msra.mxu3 %v1737_v1  ;;  %107 = vmatpush.bf16.msra.mxu0 %v1737_v1  ;;  %v1796_v16 = vld [vmem:[#allocation2] ss:$0 sm:$0xff]  ;;  %v126_v30 = vld [vmem:[%s2423_s4 + $0x8] sm:$0xff]  ;;  %v127_v32 = vld [vmem:[%s2423_s4 + $0x10] sm:$0xff] }
   0xa   :  { %v1373_v27 = vld [vmem:[%s2423_s4 + $0x20] sm:$0xff]  ;;  %v1376_v33 = vld [vmem:[%s2423_s4 + $0x38] sm:$0xff]  ;;  %v1426_v36 = vld [vmem:[%s2423_s4 + $0x48] sm:$0xff] }
   0xb   :  { %v125_v28 = vld [vmem:[%s2423_s4] sm:$0xff]  ;;  %v128_v34 = vld [vmem:[%s2423_s4 + $0x18] sm:$0xff]  ;;  %v1427_v37 = vld [vmem:[%s2423_s4 + $0x50] sm:$0xff] }
   0xc   :  { %v1425_v35 = vld [vmem:[%s2423_s4 + $0x40] sm:$0xff]  ;;  %v1428_v38 = vld [vmem:[%s2423_s4 + $0x58] sm:$0xff]  ;;  %v1741_v41 = vld [vmem:[%s2424_s5 + $0x10] sm:$0xff] }
   0xd   :  { %1793 = vmatpush.bf16.msra.mxu3 %v1736_v2  ;;  %108 = vmatpush.bf16.msra.mxu0 %v1736_v2  ;;  %v1493_v39 = vld [vmem:[%s2423_s4 + $0x80] sm:$0xff]  ;;  %v1742_v40 = vld [vmem:[%s2424_s5 + $0x18] sm:$0xff]  ;;  %v1740_v42 = vld [vmem:[%s2424_s5 + $0x8] sm:$0xff] }
   0xe   :  { %v1739_v43 = vld [vmem:[%s2424_s5] sm:$0xff]  ;;  %v1750_v45 = vld [vmem:[%s2424_s5 + $0x58] sm:$0xff]  ;;  %v1749_v47 = vld [vmem:[%s2424_s5 + $0x50] sm:$0xff] }
   0xf   :  { %v1494_v48 = vld [vmem:[%s2423_s4 + $0x88] sm:$0xff]  ;;  %v1747_v52 = vld [vmem:[%s2424_s5 + $0x40] sm:$0xff]  ;;  %v1495_v56 = vld [vmem:[%s2423_s4 + $0x90] sm:$0xff] }
  0x10   :  { %v1748_v49 = vld [vmem:[%s2424_s5 + $0x48] sm:$0xff]  ;;  %v1496_v60 = vld [vmem:[%s2423_s4 + $0x98] sm:$0xff]  ;;  %v1561_v63 = vld [vmem:[%s2423_s4 + $0xc0] sm:$0xff] }
  0x11   :  { %1794 = vmatpush.bf16.msra.mxu3 %v1735_v3  ;;  %109 = vmatpush.bf16.msra.mxu0 %v1735_v3  ;;  %v1562_v1 = vld [vmem:[%s2423_s4 + $0xc8] sm:$0xff]  ;;  %v1459_v3 = vld [vmem:[%s2423_s4 + $0x60] sm:$0xff]  ;;  %v1563_v5 = vld [vmem:[%s2423_s4 + $0xd0] sm:$0xff] }
  0x12   :  { %v1460_v7 = vld [vmem:[%s2423_s4 + $0x68] sm:$0xff] }
  0x14   :  { %1368 = vmatmul.msk.bf16.vlgmr.msra.gmra.mxu3 %vm95_vm0, %v66_v8  ;;  %1367 = vmatmul.msk.bf16.vlgmr.msra.gmra.mxu0 %vm95_vm0, %v65_v9  ;;  %v1564_v8 = vld [vmem:[%s2423_s4 + $0xd8] sm:$0xff] }
  0x15   :  { %272 = vmatpush.bf16.msrb.mxu3 %v1746_v10  ;;  %427 = vmatpush.bf16.msrb.mxu0 %v1750_v45  ;;  %v1461_v10 = vld [vmem:[%s2423_s4 + $0x70] sm:$0xff]  ;;  %v1766_v45 = vld [vmem:[%s2424_s5 + $0xd8] sm:$0xff] }
  0x19   :  { %273 = vmatpush.bf16.msrb.mxu3 %v1745_v11  ;;  %428 = vmatpush.bf16.msrb.mxu0 %v1749_v47 }
  0x1d   :  { %274 = vmatpush.bf16.msrb.mxu3 %v1744_v12  ;;  %429 = vmatpush.bf16.msrb.mxu0 %v1748_v49  ;;  %v1629_v12 = vld [vmem:[%s2423_s4 + $0x100] sm:$0xff] }
  0x21   :  { %275 = vmatpush.bf16.msrb.mxu3 %v1743_v13  ;;  %430 = vmatpush.bf16.msrb.mxu0 %v1747_v52  ;;  %v1462_v13 = vld [vmem:[%s2423_s4 + $0x78] sm:$0xff]  ;;  %v1761_v52 = vld [vmem:[%s2424_s5 + $0xb0] sm:$0xff] }
  0x91   :  { %v111_v14 = vpop.f32.mrf.mxu0 }
  0x92   :  { %v112_v23 = vadd.f32 %v1796_v16, %v111_v14  ;;  %v1630_v14 = vld [vmem:[%s2423_s4 + $0x108] sm:$0xff] }
  0x94   :  { %v1938_v26 = vmax.f32 %v112_v23, 0.0  ;;  %v1754_v23 = vld [vmem:[%s2424_s5 + $0x78] sm:$0xff] }
  0x97   :  { %v116_v15 = vpop.f32.mrf.mxu3 }
  0x98   :  { %v117_v19 = vadd.f32 %v1796_v16, %v116_v15  ;;  %v1527_v15 = vld [vmem:[%s2423_s4 + $0xa0] sm:$0xff] }
  0x99   :  { %v113_v17 = vpop.f32.mrf.mxu0 }
  0x9a   :  { %v114_v21 = vadd.f32 %v1796_v16, %v113_v17  ;;  %v1928_v24 = vmax.f32 %v117_v19, 0.0  ;;  %v1528_v17 = vld [vmem:[%s2423_s4 + $0xa8] sm:$0xff]  ;;  %v1529_v19 = vld [vmem:[%s2423_s4 + $0xb0] sm:$0xff] }
  0x9c   :  { %v1933_v25 = vmax.f32 %v114_v21, 0.0  ;;  %v1595_v21 = vld [vmem:[%s2423_s4 + $0xe0] sm:$0xff] }
  0x9f   :  { %v118_v18 = vpop.f32.mrf.mxu3 }
  0xa0   :  { %v119_v20 = vadd.f32 %v1796_v16, %v118_v18  ;;  %v1631_v16 = vld [vmem:[%s2423_s4 + $0x110] sm:$0xff]  ;;  %v1632_v18 = vld [vmem:[%s2423_s4 + $0x118] sm:$0xff] }
  0xa2   :  { %v1926_v22 = vmax.f32 %v119_v20, 0.0  ;;  %v1530_v20 = vld [vmem:[%s2423_s4 + $0xb8] sm:$0xff] }
  0xa4   :  { %154 = vmatpush.msra.mxu1 %v1926_v22  ;;  %210 = vmatpush.msra.mxu2 %v1926_v22 }
  0xa5   :  { %475 = vmatpush.msra.mxu3 %v1926_v22 }
  0xa6   :  { %155 = vmatpush.msra.mxu1 %v1928_v24  ;;  %211 = vmatpush.msra.mxu2 %v1928_v24 }
  0xa7   :  { %476 = vmatpush.msra.mxu3 %v1928_v24 }
  0xa8   :  { %156 = vmatpush.msra.mxu1 %v1933_v25  ;;  %212 = vmatpush.msra.mxu2 %v1933_v25 }
  0xa9   :  { %477 = vmatpush.msra.mxu3 %v1933_v25 }
  0xaa   :  { %157 = vmatpush.msra.mxu1 %v1938_v26  ;;  %213 = vmatpush.msra.mxu2 %v1938_v26 }
  0xab   :  { %478 = vmatpush.msra.mxu3 %v1938_v26  ;;  %1377 = vmatmul.msk.f32.vlgmr.msra.gmra.mxu2 %vm129_vm1, %v1373_v27  ;;  %v1757_v27 = vld [vmem:[%s2424_s5 + $0x90] sm:$0xff] }
  0xac   :  { %365 = vmatpush.msrb.mxu2 %v1926_v22  ;;  %1369 = vmatmul.msk.f32.vlgmr.msra.gmra.mxu1 %vm129_vm1, %v125_v28  ;;  %v1753_v28 = vld [vmem:[%s2424_s5 + $0x70] sm:$0xff] }
  0xad   :  { %321 = vmatpush.bf16.msrb.mxu1 %v1742_v40 }
  0xae   :  { %366 = vmatpush.msrb.mxu2 %v1928_v24 }
  0xb0   :  { %367 = vmatpush.msrb.mxu2 %v1933_v25 }
  0xb1   :  { %322 = vmatpush.bf16.msrb.mxu1 %v1741_v41 }
  0xb2   :  { %368 = vmatpush.msrb.mxu2 %v1938_v26 }
  0xb3   :  { %1378 = vmatmul.msk.f32.gmra.mxu2 %vm129_vm1, %v1374_v29  ;;  %v1598_v29 = vld [vmem:[%s2423_s4 + $0xf8] sm:$0xff] }
  0xb4   :  { %585 = vmatpush.msra.mxu2 %v1926_v22  ;;  %1370 = vmatmul.msk.f32.gmra.mxu1 %vm129_vm1, %v126_v30  ;;  %v1756_v30 = vld [vmem:[%s2424_s5 + $0x88] sm:$0xff] }
  0xb5   :  { %323 = vmatpush.bf16.msrb.mxu1 %v1740_v42 }
  0xb6   :  { %586 = vmatpush.msra.mxu2 %v1928_v24 }
  0xb8   :  { %587 = vmatpush.msra.mxu2 %v1933_v25 }
  0xb9   :  { %324 = vmatpush.bf16.msrb.mxu1 %v1739_v43 }
  0xba   :  { %588 = vmatpush.msra.mxu2 %v1938_v26 }
  0xbb   :  { %1379 = vmatmul.msk.f32.gmra.mxu2 %vm129_vm1, %v1375_v31  ;;  %v1755_v31 = vld [vmem:[%s2424_s5 + $0x80] sm:$0xff] }
  0xbc   :  { %1371 = vmatmul.msk.f32.gmra.mxu1 %vm129_vm1, %v127_v32 }
  0xbd   :  { %537 = vmatpush.bf16.msra.mxu1 %v1754_v23 }
  0xc1   :  { %538 = vmatpush.bf16.msra.mxu1 %v1753_v28 }
  0xc3   :  { %1380 = vmatmul.msk.f32.gmra.mxu2 %vm129_vm1, %v1376_v33 }
  0xc4   :  { %1372 = vmatmul.msk.f32.gmra.mxu1 %vm129_vm1, %v128_v34  ;;  %v1752_v34 = vld [vmem:[%s2424_s5 + $0x68] sm:$0xff] }
  0xc5   :  { %539 = vmatpush.bf16.msra.mxu1 %v1752_v34 }
  0xcb   :  { %1429 = vmatmul.msk.f32.vlgmr.msrb.gmra.mxu2 %vm129_vm1, %v1425_v35 }
  0xcc   :  { %805 = vmatpush.msrb.mxu2 %v1926_v22 }
  0xce   :  { %806 = vmatpush.msrb.mxu2 %v1928_v24 }
  0xd0   :  { %807 = vmatpush.msrb.mxu2 %v1933_v25 }
  0xd2   :  { %808 = vmatpush.msrb.mxu2 %v1938_v26 }
  0xd3   :  { %1430 = vmatmul.msk.f32.gmra.mxu2 %vm129_vm1, %v1426_v36 }
  0xdb   :  { %1431 = vmatmul.msk.f32.gmra.mxu2 %vm129_vm1, %v1427_v37 }
  0xe3   :  { %1432 = vmatmul.msk.f32.gmra.mxu2 %vm129_vm1, %v1428_v38 }
  0xeb   :  { %1497 = vmatmul.msk.f32.vlgmr.msra.gmra.mxu2 %vm129_vm1, %v1493_v39  ;;  %v1751_v39 = vld [vmem:[%s2424_s5 + $0x60] sm:$0xff] }
  0xec   :  { %1025 = vmatpush.msra.mxu2 %v1926_v22  ;;  %540 = vmatpush.bf16.msra.mxu1 %v1751_v39 }
  0xee   :  { %1026 = vmatpush.msra.mxu2 %v1928_v24 }
  0xf0   :  { %1027 = vmatpush.msra.mxu2 %v1933_v25 }
  0xf2   :  { %1028 = vmatpush.msra.mxu2 %v1938_v26 }
  0xf3   :  { %1498 = vmatmul.msk.f32.gmra.mxu2 %vm129_vm1, %v1494_v48 }
  0xfb   :  { %1499 = vmatmul.msk.f32.gmra.mxu2 %vm129_vm1, %v1495_v56 }
 0x103   :  { %1500 = vmatmul.msk.f32.gmra.mxu2 %vm129_vm1, %v1496_v60 }
 0x10b   :  { %1565 = vmatmul.msk.f32.vlgmr.msrb.gmra.mxu2 %vm129_vm1, %v1561_v63 }
 0x113   :  { %1566 = vmatmul.msk.f32.gmra.mxu2 %vm129_vm1, %v1562_v1 }
 0x11b   :  { %1567 = vmatmul.msk.f32.gmra.mxu2 %vm129_vm1, %v1563_v5 }
 0x123   :  { %1568 = vmatmul.msk.f32.gmra.mxu2 %vm129_vm1, %v1564_v8  ;;  %v1774_v8 = vld [vmem:[%s2424_s5 + $0x118] sm:$0xff] }
 0x129   :  { %v159_v44 = vpop.f32.mrf.mxu1 }
 0x12b   :  { %1633 = vmatmul.msk.f32.vlgmr.msra.gmra.mxu2 %vm129_vm1, %v1629_v12  ;;  %v1769_v12 = vld [vmem:[%s2424_s5 + $0xf0] sm:$0xff] }
 0x12e   :  { %v215_v46 = vpop.f32.mrf.mxu2 }
 0x131   :  { %v162_v50 = vpop.f32.mrf.mxu1 }
 0x132   :  { %v171_v51 = vpack.c.bf16 %v162_v50, %v159_v44  ;;  %v1762_v44 = vld [vmem:[%s2424_s5 + $0xb8] sm:$0xff]  ;;  %v1765_v50 = vld [vmem:[%s2424_s5 + $0xd0] sm:$0xff] }
 0x133   :  { %1634 = vmatmul.msk.f32.gmra.mxu2 %vm129_vm1, %v1630_v14 }
 0x134   :  { %1423 = vmatmul.msk.bf16.vlgmr.msrb.gmra.mxu1 %vm95_vm0, %v171_v51 }
 0x135   :  { %757 = vmatpush.bf16.msrb.mxu1 %v1762_v44 }
 0x136   :  { %v218_v53 = vpop.f32.mrf.mxu2 }
 0x137   :  { %v227_v54 = vpack.c.bf16 %v218_v53, %v215_v46  ;;  %v1764_v53 = vld [vmem:[%s2424_s5 + $0xc8] sm:$0xff] }
 0x139   :  { %v165_v55 = vpop.f32.mrf.mxu1  ;;  %1405 = vmatmul.msk.bf16.vlgmr.msrb.gmra.mxu3 %vm95_vm0, %v227_v54  ;;  %758 = vmatpush.bf16.msrb.mxu1 %v1761_v52 }
 0x13a   :  { %695 = vmatpush.msrb.mxu3 %v1926_v22 }
 0x13b   :  { %1635 = vmatmul.msk.f32.gmra.mxu2 %vm129_vm1, %v1631_v16 }
 0x13c   :  { %696 = vmatpush.msrb.mxu3 %v1928_v24 }
 0x13e   :  { %697 = vmatpush.msrb.mxu3 %v1933_v25  ;;  %v221_v57 = vpop.f32.mrf.mxu2 }
 0x140   :  { %698 = vmatpush.msrb.mxu3 %v1938_v26 }
 0x141   :  { %v168_v58 = vpop.f32.mrf.mxu1 }
 0x142   :  { %v172_v59 = vpack.c.bf16 %v168_v58, %v165_v55  ;;  %v1763_v55 = vld [vmem:[%s2424_s5 + $0xc0] sm:$0xff] }
 0x143   :  { %1636 = vmatmul.msk.f32.gmra.mxu2 %vm129_vm1, %v1632_v18 }
 0x144   :  { %1424 = vmatmul.msk.bf16.gmra.mxu1 %vm95_vm0, %v172_v59  ;;  %v1760_v59 = vld [vmem:[%s2424_s5 + $0xa8] sm:$0xff] }
 0x145   :  { %759 = vmatpush.bf16.msrb.mxu1 %v1760_v59  ;;  %v1781_v59 = vld [vmem:[%s2428_s9 + $0x34] sm:$0xf] }
 0x146   :  { %v224_v61 = vpop.f32.mrf.mxu2 }
 0x147   :  { %v228_v62 = vpack.c.bf16 %v224_v61, %v221_v57 }
 0x149   :  { %1406 = vmatmul.msk.bf16.gmra.mxu3 %vm95_vm0, %v228_v62  ;;  %v1759_v62 = vld [vmem:[%s2424_s5 + $0xa0] sm:$0xff] }
 0x14a   :  { %760 = vmatpush.bf16.msrb.mxu1 %v1759_v62 }
 0x14e   :  { %v370_v0 = vpop.f32.mrf.mxu2 }
 0x156   :  { %v373_v2 = vpop.f32.mrf.mxu2 }
 0x157   :  { %v382_v4 = vpack.c.bf16 %v373_v2, %v370_v0 }
 0x159   :  { %1457 = vmatmul.msk.bf16.vlgmr.msrb.gmra.mxu0 %vm95_vm0, %v382_v4  ;;  %1463 = vmatmul.msk.f32.vlgmr.msra.gmra.mxu3 %vm129_vm1, %v1459_v3 }
 0x15a   :  { %915 = vmatpush.msra.mxu3 %v1926_v22  ;;  %v1596_v22 = vld [vmem:[%s2423_s4 + $0xe8] sm:$0xff] }
 0x15c   :  { %916 = vmatpush.msra.mxu3 %v1928_v24  ;;  %v1758_v24 = vld [vmem:[%s2424_s5 + $0x98] sm:$0xff] }
 0x15d   :  { %647 = vmatpush.bf16.msra.mxu0 %v1758_v24 }
 0x15e   :  { %917 = vmatpush.msra.mxu3 %v1933_v25  ;;  %v376_v6 = vpop.f32.mrf.mxu2  ;;  %v1597_v25 = vld [vmem:[%s2423_s4 + $0xf0] sm:$0xff] }
 0x160   :  { %918 = vmatpush.msra.mxu3 %v1938_v26 }
 0x161   :  { %1464 = vmatmul.msk.f32.gmra.mxu3 %vm129_vm1, %v1460_v7  ;;  %648 = vmatpush.bf16.msra.mxu0 %v1757_v27  ;;  %v1770_v7 = vld [vmem:[%s2424_s5 + $0xf8] sm:$0xff] }
 0x165   :  { %649 = vmatpush.bf16.msra.mxu0 %v1756_v30 }
 0x166   :  { %v379_v9 = vpop.f32.mrf.mxu2 }
 0x167   :  { %v383_v11 = vpack.c.bf16 %v379_v9, %v376_v6 }
 0x169   :  { %1458 = vmatmul.msk.bf16.gmra.mxu0 %vm95_vm0, %v383_v11  ;;  %1465 = vmatmul.msk.f32.gmra.mxu3 %vm129_vm1, %v1461_v10  ;;  %v1773_v11 = vld [vmem:[%s2424_s5 + $0x110] sm:$0xff] }
 0x16a   :  { %650 = vmatpush.bf16.msra.mxu0 %v1755_v31 }
 0x16e   :  { %v590_v26 = vpop.f32.mrf.mxu2  ;;  %867 = vmatpush.bf16.msrb.mxu0 %v1766_v45 }
 0x171   :  { %1466 = vmatmul.msk.f32.gmra.mxu3 %vm129_vm1, %v1462_v13  ;;  %v1772_v13 = vld [vmem:[%s2424_s5 + $0x108] sm:$0xff] }
 0x172   :  { %868 = vmatpush.bf16.msrb.mxu0 %v1765_v50  ;;  %v1782_v50 = vld [vmem:[%s2428_s9 + $0x34] sm:$0xf0] }
 0x176   :  { %v593_v33 = vpop.f32.mrf.mxu2  ;;  %869 = vmatpush.bf16.msrb.mxu0 %v1764_v53  ;;  %v1790_v53 = vld [vmem:[%s2426_s7 + $0x34] sm:$0xf0] }
 0x177   :  { %v602_v35 = vpack.c.bf16 %v593_v33, %v590_v26 }
 0x179   :  { %1531 = vmatmul.msk.f32.vlgmr.msrb.gmra.mxu3 %vm129_vm1, %v1527_v15  ;;  %1525 = vmatmul.msk.bf16.vlgmr.msra.gmra.mxu0 %vm95_vm0, %v602_v35 }
 0x17a   :  { %870 = vmatpush.bf16.msrb.mxu0 %v1763_v55 }
 0x17e   :  { %v596_v38 = vpop.f32.mrf.mxu2  ;;  %1087 = vmatpush.bf16.msra.mxu0 %v1774_v8 }
 0x181   :  { %1532 = vmatmul.msk.f32.gmra.mxu3 %vm129_vm1, %v1528_v17  ;;  %v1771_v17 = vld [vmem:[%s2424_s5 + $0x100] sm:$0xff] }
 0x182   :  { %1088 = vmatpush.bf16.msra.mxu0 %v1773_v11  ;;  %v1778_v11 = vld [vmem:[%s2428_s9 + $0x14] sm:$0xf0] }
 0x186   :  { %v599_v43 = vpop.f32.mrf.mxu2  ;;  %1089 = vmatpush.bf16.msra.mxu0 %v1772_v13  ;;  %v1779_v13 = vld [vmem:[%s2428_s9 + $0x24] sm:$0xf] }
 0x187   :  { %v603_v46 = vpack.c.bf16 %v599_v43, %v596_v38 }
 0x189   :  { %1533 = vmatmul.msk.f32.gmra.mxu3 %vm129_vm1, %v1529_v19  ;;  %1526 = vmatmul.msk.bf16.gmra.mxu0 %vm95_vm0, %v603_v46  ;;  %v1768_v19 = vld [vmem:[%s2424_s5 + $0xe8] sm:$0xff] }
 0x18a   :  { %1090 = vmatpush.bf16.msra.mxu0 %v1771_v17  ;;  %v1719_v17 = vld [vmem:[%s2426_s7 + $0x28] sm:$0xf0] }
 0x18e   :  { %v810_v51 = vpop.f32.mrf.mxu2 }
 0x191   :  { %1534 = vmatmul.msk.f32.gmra.mxu3 %vm129_vm1, %v1530_v20 }
 0x196   :  { %v813_v58 = vpop.f32.mrf.mxu2 }
 0x197   :  { %v822_v60 = vpack.c.bf16 %v813_v58, %v810_v51  ;;  %v1725_v51 = vld [vmem:[%s2426_s7 + $0x30] sm:$0xf] }
 0x199   :  { %1599 = vmatmul.msk.f32.vlgmr.msra.gmra.mxu3 %vm129_vm1, %v1595_v21  ;;  %1593 = vmatmul.msk.bf16.vlgmr.msrb.gmra.mxu0 %vm95_vm0, %v822_v60  ;;  %v1691_v60 = vld [vmem:[%s2428_s9 + $0x38] sm:$0xf0] }
 0x19a   :  { %v1694_v62 = vor.u32 %v1781_v59, %v1691_v60  ;;  %v1121_v59 = vld [vmem:[%s2420_s1 + $0x18] sm:$0xff] }
 0x19e   :  { %v816_v1 = vpop.f32.mrf.mxu2 }
 0x1a1   :  { %1600 = vmatmul.msk.f32.gmra.mxu3 %vm129_vm1, %v1596_v22  ;;  %v1767_v22 = vld [vmem:[%s2424_s5 + $0xe0] sm:$0xff] }
 0x1a6   :  { %v819_v6 = vpop.f32.mrf.mxu2 }
 0x1a7   :  { %v823_v9 = vpack.c.bf16 %v819_v6, %v816_v1  ;;  %v1681_v1 = vld [vmem:[%s2428_s9 + $0x20] sm:$0xf]  ;;  %v1788_v6 = vld [vmem:[%s2426_s7 + $0x24] sm:$0xf0] }
 0x1a9   :  { %1601 = vmatmul.msk.f32.gmra.mxu3 %vm129_vm1, %v1597_v25  ;;  %1594 = vmatmul.msk.bf16.gmra.mxu0 %vm95_vm0, %v823_v9 }
 0x1ae   :  { %v1030_v14 = vpop.f32.mrf.mxu2 }
 0x1b1   :  { %1602 = vmatmul.msk.f32.gmra.mxu3 %vm129_vm1, %v1598_v29  ;;  %v326_v32 = vpop.f32.mrf.mxu1 }
 0x1b6   :  { %v1033_v18 = vpop.f32.mrf.mxu2 }
 0x1b7   :  { %v1042_v20 = vpack.c.bf16 %v1033_v18, %v1030_v14  ;;  %v1683_v14 = vld [vmem:[%s2428_s9 + $0x28] sm:$0xf0]  ;;  %v1665_v18 = vld [vmem:[%s2428_s9] sm:$0xf] }
 0x1b9   :  { %v328_v40 = vpop.f32.mrf.mxu1  ;;  %1661 = vmatmul.msk.bf16.vlgmr.msra.gmra.mxu0 %vm95_vm0, %v1042_v20  ;;  %v1709_v20 = vld [vmem:[%s2426_s7 + $0x10] sm:$0xf] }
 0x1bc   :  { %v277_v36 = vpop.f32.mrf.mxu3 }
 0x1bd   :  { %v327_v37 = vadd.f32 %v326_v32, %v277_v36 }
 0x1be   :  { %v1036_v23 = vpop.f32.mrf.mxu2 }
 0x1c1   :  { %v331_v47 = vpop.f32.mrf.mxu1 }
 0x1c4   :  { %v279_v41 = vpop.f32.mrf.mxu3 }
 0x1c5   :  { %v329_v42 = vadd.f32 %v328_v40, %v279_v41 }
 0x1c6   :  { %v1039_v26 = vpop.f32.mrf.mxu2 }
 0x1c7   :  { %v1043_v27 = vpack.c.bf16 %v1039_v26, %v1036_v23 }
 0x1c9   :  { %1662 = vmatmul.msk.bf16.gmra.mxu0 %vm95_vm0, %v1043_v27  ;;  %v2238_v40 = vpop.f32.mrf.mxu1  ;;  %v1777_v27 = vld [vmem:[%s2428_s9 + $0x14] sm:$0xf] }
 0x1cc   :  { %v282_v48 = vpop.f32.mrf.mxu3 }
 0x1cd   :  { %v332_v49 = vadd.f32 %v331_v47, %v282_v48 }
 0x1d4   :  { %v2185_v54 = vpop.f32.mrf.mxu3 }
 0x1d6   :  { %v432_v56 = vpop.f32.mrf.mxu0 }
 0x1d7   :  { %v2190_v57 = vadd.f32 %v432_v56, %v327_v37  ;;  %v1726_v56 = vor.u32 %v1790_v53, %v1725_v51 }
 0x1d9   :  { %1288 = vmatpush.bf16.msrb.mxu2 %v1726_v56  ;;  %v1120_v56 = vld [vmem:[%s2420_s1 + $0x10] sm:$0xff] }
 0x1da   :  { %v1131_v60 = vpack.c.bf16 %v1121_v59, %v1120_v56 }
 0x1dc   :  { %v480_v61 = vpop.f32.mrf.mxu3 }
 0x1de   :  { %v434_v63 = vpop.f32.mrf.mxu0 }
 0x1df   :  { %v2199_v0 = vadd.f32 %v434_v63, %v329_v42  ;;  %v1727_v63 = vld [vmem:[%s2426_s7 + $0x38] sm:$0xf0] }
 0x1e4   :  { %v483_v2 = vpop.f32.mrf.mxu3 }
 0x1e5   :  { %v492_v3 = vpack.c.bf16 %v483_v2, %v480_v61  ;;  %v1789_v61 = vld [vmem:[%s2426_s7 + $0x34] sm:$0xf]  ;;  %v1780_v2 = vld [vmem:[%s2428_s9 + $0x24] sm:$0xf0] }
 0x1e6   :  { %v437_v4 = vpop.f32.mrf.mxu0 }
 0x1e7   :  { %v444_v5 = vadd.f32 %v437_v4, %v332_v49  ;;  %1491 = vmatmul.msk.bf16.vlgmr.msra.gmra.mxu1 %vm95_vm0, %v492_v3  ;;  %v1689_v49 = vld [vmem:[%s2428_s9 + $0x30] sm:$0xf]  ;;  %v1730_v3 = vor.u32 %v1789_v61, %v1727_v63  ;;  %v1682_v4 = vor.u32 %v1780_v2, %v1681_v1 }
 0x1e8   :  { %977 = vmatpush.bf16.msra.mxu1 %v1770_v7  ;;  %v1690_v52 = vor.u32 %v1782_v50, %v1689_v49  ;;  %v1703_v49 = vld [vmem:[%s2426_s7 + $0x8] sm:$0xf0] }
 0x1e9   :  { %1307 = vmatpush.bf16.msrb.mxu0 %v1730_v3 }
 0x1ea   :  { %1188 = vmatpush.bf16.msrb.mxu3 %v1690_v52 }
 0x1ec   :  { %v486_v10 = vpop.f32.mrf.mxu3  ;;  %978 = vmatpush.bf16.msra.mxu1 %v1769_v12 }
 0x1ee   :  { %v2234_v37 = vpop.f32.mrf.mxu0  ;;  %1189 = vmatpush.bf16.msrb.mxu3 %v1682_v4 }
 0x1f0   :  { %979 = vmatpush.bf16.msra.mxu1 %v1768_v19 }
 0x1f4   :  { %v489_v15 = vpop.f32.mrf.mxu3  ;;  %980 = vmatpush.bf16.msra.mxu1 %v1767_v22  ;;  %v1776_v22 = vld [vmem:[%s2428_s9 + $0x4] sm:$0xf0] }
 0x1f5   :  { %v493_v16 = vpack.c.bf16 %v489_v15, %v486_v10  ;;  %v1673_v10 = vld [vmem:[%s2428_s9 + $0x10] sm:$0xf]  ;;  %v1686_v15 = vor.u32 %v1779_v13, %v1683_v14  ;;  %v1666_v26 = vor.u32 %v1776_v22, %v1665_v18 }
 0x1f6   :  { %v652_v38 = vpop.f32.mrf.mxu0  ;;  %v1674_v12 = vor.u32 %v1778_v11, %v1673_v10  ;;  %v1797_v10 = vld [vmem:[%s2425_s6] ss:$0 sm:$0xff] }
 0x1f7   :  { %1492 = vmatmul.msk.bf16.gmra.mxu1 %vm95_vm0, %v493_v16  ;;  %v1787_v16 = vld [vmem:[%s2426_s7 + $0x24] sm:$0xf] }
 0x1f8   :  { %1190 = vmatpush.bf16.msrb.mxu3 %v1674_v12  ;;  %v1722_v19 = vor.u32 %v1787_v16, %v1719_v17 }
 0x1fa   :  { %1308 = vmatpush.bf16.msrb.mxu0 %v1722_v19 }
 0x1fc   :  { %v700_v21 = vpop.f32.mrf.mxu3  ;;  %1191 = vmatpush.bf16.msrb.mxu3 %v1666_v26 }
 0x1fe   :  { %v2236_v39 = vpop.f32.mrf.mxu0 }
 0x204   :  { %v703_v24 = vpop.f32.mrf.mxu3 }
 0x205   :  { %v712_v25 = vpack.c.bf16 %v703_v24, %v700_v21  ;;  %v1786_v21 = vld [vmem:[%s2426_s7 + $0x14] sm:$0xf0] }
 0x206   :  { %v657_v42 = vpop.f32.mrf.mxu0 }
 0x207   :  { %1559 = vmatmul.msk.bf16.vlgmr.msrb.gmra.mxu1 %vm95_vm0, %v712_v25  ;;  %v1710_v25 = vor.u32 %v1786_v21, %v1709_v20 }
 0x208   :  { %1207 = vmatpush.bf16.msrb.mxu1 %v1694_v62 }
 0x20c   :  { %v706_v28 = vpop.f32.mrf.mxu3  ;;  %1208 = vmatpush.bf16.msrb.mxu1 %v1686_v15 }
 0x20e   :  { %v2245_v46 = vpop.f32.mrf.mxu0 }
 0x214   :  { %v709_v29 = vpop.f32.mrf.mxu3 }
 0x215   :  { %v713_v30 = vpack.c.bf16 %v709_v29, %v706_v28  ;;  %v1675_v28 = vld [vmem:[%s2428_s9 + $0x18] sm:$0xf0] }
 0x216   :  { %v1678_v29 = vor.u32 %v1777_v27, %v1675_v28 }
 0x217   :  { %1560 = vmatmul.msk.bf16.gmra.mxu1 %vm95_vm0, %v713_v30  ;;  %v1118_v30 = vld [vmem:[%s2420_s1] sm:$0xff] }
 0x218   :  { %1209 = vmatpush.bf16.msrb.mxu1 %v1678_v29 }
 0x21c   :  { %v920_v31 = vpop.f32.mrf.mxu3 }
 0x224   :  { %v923_v32 = vpop.f32.mrf.mxu3 }
 0x225   :  { %v932_v33 = vpack.c.bf16 %v923_v32, %v920_v31  ;;  %v1119_v31 = vld [vmem:[%s2420_s1 + $0x8] sm:$0xff]  ;;  %v1785_v32 = vld [vmem:[%s2426_s7 + $0x14] sm:$0xf] }
 0x227   :  { %1627 = vmatmul.msk.bf16.vlgmr.msra.gmra.mxu1 %vm95_vm0, %v932_v33  ;;  %v1711_v33 = vld [vmem:[%s2426_s7 + $0x18] sm:$0xf0] }
 0x22c   :  { %v926_v34 = vpop.f32.mrf.mxu3 }
 0x234   :  { %v929_v35 = vpop.f32.mrf.mxu3 }
 0x235   :  { %v933_v36 = vpack.c.bf16 %v929_v35, %v926_v34  ;;  %v1130_v34 = vpack.c.bf16 %v1119_v31, %v1118_v30  ;;  %v1714_v35 = vor.u32 %v1785_v32, %v1711_v33  ;;  %v1232_v30 = vld [vmem:[%s2427_s8] sm:$0x3] }
 0x236   :  { %v1235_v32 = vperm.slane %v1232_v30, 1 }
 0x237   :  { %1628 = vmatmul.msk.bf16.gmra.mxu1 %vm95_vm0, %v933_v36  ;;  %v1775_v36 = vld [vmem:[%s2428_s9 + $0x4] sm:$0xf]  ;;  %1309 = vmatpush.bf16.msrb.mxu0 %v1714_v35 }
 0x238   :  { %1695 = vmatmul.msk.bf16.vlgmr.msrb.gmra.mxu3 %vm95_vm0, %v1130_v34 }
 0x248   :  { %1696 = vmatmul.msk.bf16.gmra.mxu3 %vm95_vm0, %v1131_v60 }
 0x264   :  { %v542_v41 = vpop.f32.mrf.mxu1 }
 0x265   :  { %v552_v43 = vadd.f32 %v542_v41, %v2190_v57  ;;  %v2261_v57 = vpop.f32.mrf.mxu0 }
 0x267   :  { %v2241_v44 = vadd.f32 %v652_v38, %v552_v43  ;;  %v1667_v38 = vld [vmem:[%s2428_s9 + $0x8] sm:$0xf0]  ;;  %v1784_v43 = vld [vmem:[%s2426_s7 + $0x4] sm:$0xf0] }
 0x268   :  { %v1670_v41 = vor.u32 %v1775_v36, %v1667_v38 }
 0x26a   :  { %1210 = vmatpush.bf16.msrb.mxu1 %v1670_v41 }
 0x26c   :  { %v2243_v45 = vpop.f32.mrf.mxu1 }
 0x26d   :  { %v2289_v8 = vpop.f32.mrf.mxu0  ;;  %1697 = vmatmul.msk.bf16.vlgmr.msrb.gmra.mxu1 %vm95_vm0, %v1130_v34  ;;  %v553_v62 = vadd.f32 %v2243_v45, %v2199_v0  ;;  %v334_v45 = vadd.f32 %v2238_v40, %v2185_v54 }
 0x26f   :  { %v663_v2 = vadd.f32 %v2236_v39, %v553_v62  ;;  %v445_v39 = vadd.f32 %v2234_v37, %v334_v45 }
 0x274   :  { %v547_v47 = vpop.f32.mrf.mxu1 }
 0x275   :  { %v554_v48 = vadd.f32 %v547_v47, %v444_v5  ;;  %v1717_v5 = vld [vmem:[%s2426_s7 + $0x20] sm:$0xf]  ;;  %v2321_v23 = vpop.f32.mrf.mxu0  ;;  %v1783_v47 = vld [vmem:[%s2426_s7 + $0x4] sm:$0xf] }
 0x276   :  { %v1718_v7 = vor.u32 %v1788_v6, %v1717_v5  ;;  %v1706_v51 = vor.u32 %v1783_v47, %v1703_v49 }
 0x277   :  { %v2259_v55 = vadd.f32 %v657_v42, %v554_v48  ;;  %v1701_v42 = vld [vmem:[%s2426_s7] sm:$0xf] }
 0x278   :  { %1289 = vmatpush.bf16.msrb.mxu2 %v1718_v7  ;;  %v1702_v48 = vor.u32 %v1784_v43, %v1701_v42  ;;  %1310 = vmatpush.bf16.msrb.mxu0 %v1706_v51  ;;  %v1234_v43 = vperm.slane %v1232_v30, 0 }
 0x27c   :  { %v2263_v58 = vpop.f32.mrf.mxu1  ;;  %1290 = vmatpush.bf16.msrb.mxu2 %v1710_v25 }
 0x27d   :  { %v879_v52 = vpop.f32.mrf.mxu0  ;;  %1698 = vmatmul.msk.bf16.gmra.mxu1 %vm95_vm0, %v1131_v60  ;;  %v555_v12 = vadd.f32 %v2263_v58, %v445_v39 }
 0x280   :  { %1291 = vmatpush.bf16.msrb.mxu2 %v1702_v48 }
 0x284   :  { %v762_v9 = vpop.f32.mrf.mxu1 }
 0x285   :  { %v1092_v61 = vpop.f32.mrf.mxu0  ;;  %v772_v63 = vadd.f32 %v762_v9, %v2241_v44 }
 0x287   :  { %v882_v3 = vadd.f32 %v2261_v57, %v772_v63 }
 0x28c   :  { %v764_v24 = vpop.f32.mrf.mxu1 }
 0x28d   :  { %v773_v4 = vadd.f32 %v764_v24, %v663_v2  ;;  %v1094_v6 = vpop.f32.mrf.mxu0 }
 0x28f   :  { %v883_v0 = vadd.f32 %v2289_v8, %v773_v4  ;;  %v665_v8 = vadd.f32 %v2245_v46, %v555_v12 }
 0x294   :  { %v767_v50 = vpop.f32.mrf.mxu1 }
 0x295   :  { %v774_v13 = vadd.f32 %v767_v50, %v2259_v55  ;;  %v1097_v17 = vpop.f32.mrf.mxu0 }
 0x297   :  { %v884_v20 = vadd.f32 %v2321_v23, %v774_v13  ;;  %v1132_v23 = vld [vmem:[%s2429_s10] sm:$0x3] }
 0x298   :  { %v1135_v31 = vperm.slane %v1132_v23, 1  ;;  %v1134_v36 = vperm.slane %v1132_v23, 0 }
 0x29c   :  { %v769_v53 = vpop.f32.mrf.mxu1 }
 0x29d   :  { %v775_v54 = vadd.f32 %v769_v53, %v665_v8  ;;  %v1099_v22 = vpop.f32.mrf.mxu0 }
 0x29f   :  { %v885_v58 = vadd.f32 %v879_v52, %v775_v54 }
 0x2a4   :  { %v982_v1 = vpop.f32.mrf.mxu1 }
 0x2a5   :  { %v992_v5 = vadd.f32 %v982_v1, %v882_v3 }
 0x2a7   :  { %v1102_v7 = vadd.f32 %v1092_v61, %v992_v5 }
 0x2a9   :  { %v1110_v57 = vadd.f32 %v1797_v10, %v1102_v7 }
 0x2ab   :  { %v1114_v15 = vmax.f32 %v1110_v57, 0.0 }
 0x2ac   :  { %v984_v44 = vpop.f32.mrf.mxu1 }
 0x2ad   :  { %v993_v9 = vadd.f32 %v984_v44, %v883_v0 }
 0x2af   :  { %v1103_v11 = vadd.f32 %v1094_v6, %v993_v9 }
 0x2b1   :  { %v1111_v14 = vadd.f32 %v1797_v10, %v1103_v11 }
 0x2b3   :  { %v1115_v16 = vmax.f32 %v1111_v14, 0.0 }
 0x2b4   :  { %v987_v18 = vpop.f32.mrf.mxu1 }
 0x2b5   :  { %v1230_v19 = vpack.c.bf16 %v1115_v16, %v1114_v15  ;;  %v994_v40 = vadd.f32 %v987_v18, %v884_v20 }
 0x2b7   :  { %1731 = vmatmul.msk.bf16.vlgmr.msrb.gmra.mxu2 %vm95_vm0, %v1230_v19  ;;  %1733 = vmatmul.msk.bf16.vlgmr.msrb.gmra.mxu0 %vm95_vm0, %v1230_v19  ;;  %v1104_v37 = vadd.f32 %v1097_v17, %v994_v40 }
 0x2b9   :  { %v1112_v24 = vadd.f32 %v1797_v10, %v1104_v37 }
 0x2bb   :  { %v1116_v27 = vmax.f32 %v1112_v24, 0.0  ;;  %v1193_v33 = vpop.f32.mrf.mxu3 }
 0x2bc   :  { %v989_v21 = vpop.f32.mrf.mxu1  ;;  %v1194_v47 = vadd.f32 %v1193_v33, %v1134_v36 }
 0x2bd   :  { %v995_v55 = vadd.f32 %v989_v21, %v885_v58 }
 0x2bf   :  { %v1105_v25 = vadd.f32 %v1099_v22, %v995_v55 }
 0x2c1   :  { %v1113_v26 = vadd.f32 %v1797_v10, %v1105_v25 }
 0x2c3   :  { %v1117_v28 = vmax.f32 %v1113_v26, 0.0  ;;  %v1195_v51 = vpop.f32.mrf.mxu3 }
 0x2c4   :  { %v1196_v2 = vadd.f32 %v1195_v51, %v1134_v36 }
 0x2c5   :  { %v1231_v46 = vpack.c.bf16 %v1117_v28, %v1116_v27 }
 0x2c7   :  { %1732 = vmatmul.msk.bf16.gmra.mxu2 %vm95_vm0, %v1231_v46  ;;  %1734 = vmatmul.msk.bf16.gmra.mxu0 %vm95_vm0, %v1231_v46 }
 0x2cb   :  { %v1198_v10 = vpop.f32.mrf.mxu3 }
 0x2cc   :  { %v1199_v45 = vadd.f32 %v1198_v10, %v1134_v36 }
 0x2d3   :  { %v1200_v18 = vpop.f32.mrf.mxu3 }
 0x2d4   :  { %v1201_v20 = vadd.f32 %v1200_v18, %v1134_v36 }
 0x2ea   :  { %v1212_v29 = vpop.f32.mrf.mxu1 }
 0x2eb   :  { %v1213_v34 = vadd.f32 %v1212_v29, %v1135_v31 }
 0x2f2   :  { %v1214_v41 = vpop.f32.mrf.mxu1 }
 0x2f3   :  { %v1215_v53 = vadd.f32 %v1214_v41, %v1135_v31 }
 0x2fa   :  { %v1217_v62 = vpop.f32.mrf.mxu1 }
 0x2fb   :  { %v1218_v3 = vadd.f32 %v1217_v62, %v1135_v31 }
 0x302   :  { %v1219_v39 = vpop.f32.mrf.mxu1 }
 0x303   :  { %v1220_v13 = vadd.f32 %v1219_v39, %v1135_v31 }
 0x334   :  { %v1312_v35 = vpop.f32.mrf.mxu0 }
 0x335   :  { %v1313_v38 = vadd.f32 %v1312_v35, %v1235_v32 }
 0x337   :  { %v1323_v42 = vadd.f32 %v1313_v38, %v1213_v34 }
 0x339   :  { %v1331_v48 = vmax.f32 %v1323_v42, 0.0 }
 0x33a   :  { %v1293_v49 = vpop.f32.mrf.mxu2 }
 0x33b   :  { %1339 = vst [vmem:[%s2430_s11 + $0x8] sm:$0xff] %v1331_v48  ;;  %v1294_v50 = vadd.f32 %v1293_v49, %v1234_v43 }
 0x33c   :  { %v1314_v52 = vpop.f32.mrf.mxu0 }
 0x33d   :  { %v1322_v56 = vadd.f32 %v1294_v50, %v1194_v47  ;;  %v1315_v59 = vadd.f32 %v1314_v52, %v1235_v32 }
 0x33f   :  { %v1330_v60 = vmax.f32 %v1322_v56, 0.0  ;;  %v1325_v61 = vadd.f32 %v1315_v59, %v1215_v53 }
 0x341   :  { %1338 = vst [vmem:[%s2430_s11] sm:$0xff] %v1330_v60  ;;  %v1333_v63 = vmax.f32 %v1325_v61, 0.0 }
 0x342   :  { %v1295_v1 = vpop.f32.mrf.mxu2 }
 0x343   :  { %1341 = vst [vmem:[%s2430_s11 + $0x18] sm:$0xff] %v1333_v63  ;;  %v1296_v4 = vadd.f32 %v1295_v1, %v1234_v43 }
 0x344   :  { %v1317_v5 = vpop.f32.mrf.mxu0 }
 0x345   :  { %v1324_v6 = vadd.f32 %v1296_v4, %v1196_v2  ;;  %v1318_v7 = vadd.f32 %v1317_v5, %v1235_v32 }
 0x347   :  { %v1332_v0 = vmax.f32 %v1324_v6, 0.0  ;;  %v1327_v44 = vadd.f32 %v1318_v7, %v1218_v3 }
 0x349   :  { %1340 = vst [vmem:[%s2430_s11 + $0x10] sm:$0xff] %v1332_v0  ;;  %v1335_v9 = vmax.f32 %v1327_v44, 0.0 }
 0x34a   :  { %v1298_v57 = vpop.f32.mrf.mxu2 }
 0x34b   :  { %1343 = vst [vmem:[%s2430_s11 + $0x28] sm:$0xff] %v1335_v9  ;;  %v1299_v11 = vadd.f32 %v1298_v57, %v1234_v43 }
 0x34c   :  { %v1319_v12 = vpop.f32.mrf.mxu0 }
 0x34d   :  { %v1326_v14 = vadd.f32 %v1299_v11, %v1199_v45  ;;  %v1320_v15 = vadd.f32 %v1319_v12, %v1235_v32 }
 0x34f   :  { %v1334_v16 = vmax.f32 %v1326_v14, 0.0  ;;  %v1329_v17 = vadd.f32 %v1320_v15, %v1220_v13 }
 0x351   :  { %1342 = vst [vmem:[%s2430_s11 + $0x20] sm:$0xff] %v1334_v16  ;;  %v1337_v8 = vmax.f32 %v1329_v17, 0.0 }
 0x352   :  { %v1300_v19 = vpop.f32.mrf.mxu2 }
 0x353   :  { %1345 = vst [vmem:[%s2430_s11 + $0x38] sm:$0xff] %v1337_v8  ;;  %v1301_v54 = vadd.f32 %v1300_v19, %v1234_v43 }
 0x355   :  { %v1328_v40 = vadd.f32 %v1301_v54, %v1201_v20 }
 0x357   :  { %v1336_v37 = vmax.f32 %v1328_v40, 0.0 }
 0x359   :  { %1344 = vst [vmem:[%s2430_s11 + $0x30] sm:$0xff] %v1336_v37 }
 0x35a   :  { %1350 = vsyncpa [#allocation3], 1 }

// kernel: _lambda_.8
= control target key start
LH: loop header
LB: loop body
LE: loop exit
PB: predicated region body
PF: predicated region fallthrough
CT: control target
= control target key end

     0   :  { %vm220_vm0 = vcmask 261120   ;;  %vm353_vm1 = vcmask 523264   ;;  %s2360_s1 = inlined_call_operand.vmem [shape: bf16[256,64], index: 1, kind: input, shape index: {}]   ;;  %s2361_s2 = inlined_call_operand.vmem [shape: f32[1,64], index: 2, kind: input, shape index: {}]   ;;  %s2362_s0 = inlined_call_operand.vmem [shape: f32[32,256], index: 0, kind: input, shape index: {}]   ;;  %s2363_s3 = inlined_call_operand.vmem [shape: f32[9,32,32], index: 3, kind: input, shape index: {}]   ;;  %s2364_s4 = inlined_call_operand.vmem [shape: bf16[9,64,64], index: 4, kind: input, shape index: {}]   ;;  %s2365_s5 = inlined_call_operand.vmem [shape: f32[1,64], index: 5, kind: input, shape index: {}]   ;;  %s2366_s6 = inlined_call_operand.vmem [shape: bf16[64,256], index: 6, kind: input, shape index: {}]   ;;  %s2367_s7 = inlined_call_operand.vmem [shape: f32[1,256], index: 7, kind: input, shape index: {}]   ;;  %s2368_s8 = inlined_call_operand.vmem [shape: f32[32,256], index: 8, kind: output, shape index: {}]  }
   0x1   :  { %v1739_v0 = vld [vmem:[%s2360_s1 + $0x38] sm:$0xff]  ;;  %v1738_v2 = vld [vmem:[%s2360_s1 + $0x30] sm:$0xff]  ;;  %v1737_v4 = vld [vmem:[%s2360_s1 + $0x28] sm:$0xff] }
   0x2   :  { %v1747_v1 = vld [vmem:[%s2360_s1 + $0x78] sm:$0xff]  ;;  %174 = vmatpush.bf16.msra.mxu0 %v1739_v0  ;;  %v1746_v3 = vld [vmem:[%s2360_s1 + $0x70] sm:$0xff]  ;;  %v1745_v5 = vld [vmem:[%s2360_s1 + $0x68] sm:$0xff] }
   0x3   :  { %193 = vmatpush.bf16.msra.mxu1 %v1747_v1  ;;  %v1736_v6 = vld [vmem:[%s2360_s1 + $0x20] sm:$0xff]  ;;  %v1735_v8 = vld [vmem:[%s2360_s1 + $0x18] sm:$0xff]  ;;  %v1734_v10 = vld [vmem:[%s2360_s1 + $0x10] sm:$0xff] }
   0x4   :  { %v1744_v7 = vld [vmem:[%s2360_s1 + $0x60] sm:$0xff]  ;;  %v1743_v9 = vld [vmem:[%s2360_s1 + $0x58] sm:$0xff]  ;;  %v1742_v11 = vld [vmem:[%s2360_s1 + $0x50] sm:$0xff] }
   0x5   :  { %v1733_v12 = vld [vmem:[%s2360_s1 + $0x8] sm:$0xff]  ;;  %v1732_v14 = vld [vmem:[%s2360_s1] sm:$0xff]  ;;  %v1895_v17 = vld [vmem:[%s2362_s0 + $0x10] sm:$0xff] }
   0x6   :  { %175 = vmatpush.bf16.msra.mxu0 %v1738_v2  ;;  %v1741_v13 = vld [vmem:[%s2360_s1 + $0x48] sm:$0xff]  ;;  %v1740_v15 = vld [vmem:[%s2360_s1 + $0x40] sm:$0xff]  ;;  %v1905_v19 = vld [vmem:[%s2362_s0 + $0x18] sm:$0xff] }
   0x7   :  { %194 = vmatpush.bf16.msra.mxu1 %v1746_v3  ;;  %v1890_v16 = vld [vmem:[%s2362_s0] sm:$0xff]  ;;  %v1900_v18 = vld [vmem:[%s2362_s0 + $0x8] sm:$0xff]  ;;  %v1919_v23 = vld [vmem:[%s2362_s0 + $0x30] sm:$0xff] }
   0x8   :  { %v70_v20 = vpack.c.bf16 %v1895_v17, %v1890_v16  ;;  %v71_v21 = vpack.c.bf16 %v1905_v19, %v1900_v18  ;;  %v1914_v22 = vld [vmem:[%s2362_s0 + $0x20] sm:$0xff]  ;;  %v1924_v24 = vld [vmem:[%s2362_s0 + $0x28] sm:$0xff]  ;;  %v1929_v25 = vld [vmem:[%s2362_s0 + $0x38] sm:$0xff] }
   0x9   :  { %v72_v26 = vpack.c.bf16 %v1919_v23, %v1914_v22  ;;  %v73_v27 = vpack.c.bf16 %v1929_v25, %v1924_v24  ;;  %v1792_v34 = vld [vmem:[%s2361_s2] ss:$0 sm:$0xff]  ;;  %v1755_v50 = vld [vmem:[%s2364_s4 + $0x38] sm:$0xff]  ;;  %v1754_v53 = vld [vmem:[%s2364_s4 + $0x30] sm:$0xff] }
   0xa   :  { %176 = vmatpush.bf16.msra.mxu0 %v1737_v4  ;;  %v216_v49 = vld [vmem:[%s2363_s3] sm:$0xff]  ;;  %v217_v54 = vld [vmem:[%s2363_s3 + $0x8] sm:$0xff]  ;;  %v1751_v59 = vld [vmem:[%s2364_s4 + $0x18] sm:$0xff] }
   0xb   :  { %195 = vmatpush.bf16.msra.mxu1 %v1745_v5  ;;  %v1406_v51 = vld [vmem:[%s2363_s3 + $0x20] sm:$0xff]  ;;  %v1407_v55 = vld [vmem:[%s2363_s3 + $0x28] sm:$0xff]  ;;  %v218_v60 = vld [vmem:[%s2363_s3 + $0x10] sm:$0xff] }
   0xc   :  { %v1458_v52 = vld [vmem:[%s2363_s3 + $0x40] sm:$0xff]  ;;  %v1753_v56 = vld [vmem:[%s2364_s4 + $0x28] sm:$0xff]  ;;  %v1408_v61 = vld [vmem:[%s2363_s3 + $0x30] sm:$0xff] }
   0xd   :  { %v1459_v57 = vld [vmem:[%s2363_s3 + $0x48] sm:$0xff]  ;;  %v1752_v58 = vld [vmem:[%s2364_s4 + $0x20] sm:$0xff]  ;;  %v1460_v62 = vld [vmem:[%s2363_s3 + $0x50] sm:$0xff] }
   0xe   :  { %177 = vmatpush.bf16.msra.mxu0 %v1736_v6  ;;  %v219_v63 = vld [vmem:[%s2363_s3 + $0x18] sm:$0xff]  ;;  %v1526_v2 = vld [vmem:[%s2363_s3 + $0x80] sm:$0xff]  ;;  %v1750_v3 = vld [vmem:[%s2364_s4 + $0x10] sm:$0xff] }
   0xf   :  { %196 = vmatpush.bf16.msra.mxu1 %v1744_v7  ;;  %v1409_v0 = vld [vmem:[%s2363_s3 + $0x38] sm:$0xff]  ;;  %v1749_v5 = vld [vmem:[%s2364_s4 + $0x8] sm:$0xff]  ;;  %v1748_v6 = vld [vmem:[%s2364_s4] sm:$0xff] }
  0x10   :  { %v1461_v1 = vld [vmem:[%s2363_s3 + $0x58] sm:$0xff]  ;;  %v1758_v7 = vld [vmem:[%s2364_s4 + $0x50] sm:$0xff] }
  0x11   :  { %v1759_v4 = vld [vmem:[%s2364_s4 + $0x58] sm:$0xff] }
  0x12   :  { %178 = vmatpush.bf16.msra.mxu0 %v1735_v8  ;;  %v1757_v8 = vld [vmem:[%s2364_s4 + $0x48] sm:$0xff] }
  0x13   :  { %197 = vmatpush.bf16.msra.mxu1 %v1743_v9  ;;  %v1756_v9 = vld [vmem:[%s2364_s4 + $0x40] sm:$0xff] }
  0x16   :  { %179 = vmatpush.bf16.msra.mxu0 %v1734_v10 }
  0x17   :  { %198 = vmatpush.bf16.msra.mxu1 %v1742_v11 }
  0x1a   :  { %180 = vmatpush.bf16.msra.mxu0 %v1733_v12 }
  0x1b   :  { %199 = vmatpush.bf16.msra.mxu1 %v1741_v13 }
  0x1e   :  { %181 = vmatpush.bf16.msra.mxu0 %v1732_v14 }
  0x1f   :  { %200 = vmatpush.bf16.msra.mxu1 %v1740_v15 }
  0x21   :  { %182 = vmatmul.bf16.vlgmr.msra.gmra.mxu0 %v70_v20 }
  0x22   :  { %201 = vmatmul.bf16.vlgmr.msra.gmra.mxu1 %v71_v21 }
  0x23   :  { %519 = vmatpush.bf16.msrb.mxu1 %v1759_v4 }
  0x27   :  { %520 = vmatpush.bf16.msrb.mxu1 %v1758_v7 }
  0x2b   :  { %521 = vmatpush.bf16.msrb.mxu1 %v1757_v8 }
  0x2f   :  { %522 = vmatpush.bf16.msrb.mxu1 %v1756_v9 }
  0x31   :  { %187 = vmatmul.bf16.gmra.mxu0 %v72_v26 }
  0x32   :  { %206 = vmatmul.bf16.gmra.mxu1 %v73_v27 }
  0x9e   :  { %v183_v28 = vpop.f32.mrf.mxu0 }
  0x9f   :  { %v202_v29 = vpop.f32.mrf.mxu1  ;;  %v184_v40 = vadd.f32 %v1792_v34, %v183_v28 }
  0xa1   :  { %v203_v45 = vadd.f32 %v202_v29, %v184_v40  ;;  %v1492_v40 = vld [vmem:[%s2363_s3 + $0x60] sm:$0xff] }
  0xa3   :  { %v1950_v48 = vmax.f32 %v203_v45, 0.0  ;;  %v1597_v45 = vld [vmem:[%s2363_s3 + $0xd8] sm:$0xff] }
  0xa6   :  { %v185_v30 = vpop.f32.mrf.mxu0 }
  0xa7   :  { %v204_v31 = vpop.f32.mrf.mxu1  ;;  %v186_v37 = vadd.f32 %v1792_v34, %v185_v30  ;;  %v1527_v30 = vld [vmem:[%s2363_s3 + $0x88] sm:$0xff] }
  0xa9   :  { %v205_v43 = vadd.f32 %v204_v31, %v186_v37 }
  0xab   :  { %v1945_v47 = vmax.f32 %v205_v43, 0.0  ;;  %v1596_v43 = vld [vmem:[%s2363_s3 + $0xd0] sm:$0xff] }
  0xae   :  { %v188_v32 = vpop.f32.mrf.mxu0 }
  0xaf   :  { %v207_v33 = vpop.f32.mrf.mxu1  ;;  %v189_v35 = vadd.f32 %v1792_v34, %v188_v32 }
  0xb1   :  { %v208_v41 = vadd.f32 %v207_v33, %v189_v35  ;;  %v1528_v33 = vld [vmem:[%s2363_s3 + $0x90] sm:$0xff] }
  0xb3   :  { %v1940_v46 = vmax.f32 %v208_v41, 0.0  ;;  %v1595_v41 = vld [vmem:[%s2363_s3 + $0xc8] sm:$0xff] }
  0xb6   :  { %v190_v36 = vpop.f32.mrf.mxu0 }
  0xb7   :  { %v191_v38 = vadd.f32 %v1792_v34, %v190_v36  ;;  %v209_v39 = vpop.f32.mrf.mxu1 }
  0xb9   :  { %v210_v42 = vadd.f32 %v209_v39, %v191_v38  ;;  %v1529_v38 = vld [vmem:[%s2363_s3 + $0x98] sm:$0xff]  ;;  %v1594_v39 = vld [vmem:[%s2363_s3 + $0xc0] sm:$0xff] }
  0xbb   :  { %v1938_v44 = vmax.f32 %v210_v42, 0.0  ;;  %v1493_v42 = vld [vmem:[%s2363_s3 + $0x68] sm:$0xff] }
  0xbd   :  { %245 = vmatpush.msra.mxu2 %v1938_v44  ;;  %301 = vmatpush.msra.mxu3 %v1938_v44 }
  0xbe   :  { %457 = vmatpush.msrb.mxu0 %v1938_v44 }
  0xbf   :  { %246 = vmatpush.msra.mxu2 %v1940_v46  ;;  %302 = vmatpush.msra.mxu3 %v1940_v46 }
  0xc0   :  { %458 = vmatpush.msrb.mxu0 %v1940_v46 }
  0xc1   :  { %247 = vmatpush.msra.mxu2 %v1945_v47  ;;  %303 = vmatpush.msra.mxu3 %v1945_v47 }
  0xc2   :  { %459 = vmatpush.msrb.mxu0 %v1945_v47 }
  0xc3   :  { %248 = vmatpush.msra.mxu2 %v1950_v48  ;;  %304 = vmatpush.msra.mxu3 %v1950_v48 }
  0xc4   :  { %460 = vmatpush.msrb.mxu0 %v1950_v48  ;;  %1402 = vmatmul.msk.f32.vlgmr.msra.gmra.mxu2 %vm220_vm0, %v216_v49  ;;  %v1663_v49 = vld [vmem:[%s2363_s3 + $0x108] sm:$0xff] }
  0xc5   :  { %1410 = vmatmul.msk.f32.vlgmr.msra.gmra.mxu3 %vm220_vm0, %v1406_v51  ;;  %364 = vmatpush.bf16.msrb.mxu2 %v1755_v50  ;;  %v1561_v50 = vld [vmem:[%s2363_s3 + $0xa8] sm:$0xff]  ;;  %v1664_v51 = vld [vmem:[%s2363_s3 + $0x110] sm:$0xff] }
  0xc6   :  { %1462 = vmatmul.msk.f32.vlgmr.msrb.gmra.mxu0 %vm220_vm0, %v1458_v52  ;;  %413 = vmatpush.bf16.msrb.mxu3 %v1751_v59  ;;  %v1562_v52 = vld [vmem:[%s2363_s3 + $0xb0] sm:$0xff]  ;;  %v1631_v59 = vld [vmem:[%s2363_s3 + $0xf8] sm:$0xff] }
  0xc7   :  { %677 = vmatpush.msra.mxu0 %v1938_v44 }
  0xc9   :  { %678 = vmatpush.msra.mxu0 %v1940_v46  ;;  %365 = vmatpush.bf16.msrb.mxu2 %v1754_v53  ;;  %v1665_v53 = vld [vmem:[%s2363_s3 + $0x118] sm:$0xff] }
  0xca   :  { %414 = vmatpush.bf16.msrb.mxu3 %v1750_v3 }
  0xcb   :  { %679 = vmatpush.msra.mxu0 %v1945_v47 }
  0xcc   :  { %1403 = vmatmul.msk.f32.gmra.mxu2 %vm220_vm0, %v217_v54  ;;  %v1563_v54 = vld [vmem:[%s2363_s3 + $0xb8] sm:$0xff] }
  0xcd   :  { %680 = vmatpush.msra.mxu0 %v1950_v48  ;;  %1411 = vmatmul.msk.f32.gmra.mxu3 %vm220_vm0, %v1407_v55  ;;  %v1628_v55 = vld [vmem:[%s2363_s3 + $0xe0] sm:$0xff] }
  0xce   :  { %366 = vmatpush.bf16.msrb.mxu2 %v1753_v56  ;;  %1463 = vmatmul.msk.f32.gmra.mxu0 %vm220_vm0, %v1459_v57  ;;  %v1629_v56 = vld [vmem:[%s2363_s3 + $0xe8] sm:$0xff]  ;;  %v1630_v57 = vld [vmem:[%s2363_s3 + $0xf0] sm:$0xff] }
  0xcf   :  { %897 = vmatpush.msrb.mxu0 %v1938_v44  ;;  %415 = vmatpush.bf16.msrb.mxu3 %v1749_v5  ;;  %v1764_v5 = vld [vmem:[%s2364_s4 + $0x80] sm:$0xff] }
  0xd1   :  { %898 = vmatpush.msrb.mxu0 %v1940_v46 }
  0xd2   :  { %367 = vmatpush.bf16.msrb.mxu2 %v1752_v58  ;;  %v1763_v58 = vld [vmem:[%s2364_s4 + $0x78] sm:$0xff] }
  0xd3   :  { %899 = vmatpush.msrb.mxu0 %v1945_v47  ;;  %416 = vmatpush.bf16.msrb.mxu3 %v1748_v6  ;;  %v1760_v6 = vld [vmem:[%s2364_s4 + $0x60] sm:$0xff] }
  0xd4   :  { %1404 = vmatmul.msk.f32.gmra.mxu2 %vm220_vm0, %v218_v60  ;;  %v1762_v60 = vld [vmem:[%s2364_s4 + $0x70] sm:$0xff] }
  0xd5   :  { %900 = vmatpush.msrb.mxu0 %v1950_v48  ;;  %1412 = vmatmul.msk.f32.gmra.mxu3 %vm220_vm0, %v1408_v61  ;;  %v1767_v61 = vld [vmem:[%s2364_s4 + $0x98] sm:$0xff] }
  0xd6   :  { %567 = vmatpush.msra.mxu2 %v1938_v44  ;;  %1464 = vmatmul.msk.f32.gmra.mxu0 %vm220_vm0, %v1460_v62 }
  0xd7   :  { %629 = vmatpush.bf16.msra.mxu3 %v1763_v58  ;;  %739 = vmatpush.bf16.msra.mxu1 %v1767_v61  ;;  %v1777_v58 = vld [vmem:[%s2364_s4 + $0xe8] sm:$0xff]  ;;  %v1780_v61 = vld [vmem:[%s2364_s4 + $0x100] sm:$0xff] }
  0xd8   :  { %568 = vmatpush.msra.mxu2 %v1940_v46 }
  0xda   :  { %569 = vmatpush.msra.mxu2 %v1945_v47 }
  0xdb   :  { %630 = vmatpush.bf16.msra.mxu3 %v1762_v60 }
  0xdc   :  { %570 = vmatpush.msra.mxu2 %v1950_v48 }
  0xdd   :  { %1405 = vmatmul.msk.f32.gmra.mxu2 %vm220_vm0, %v219_v63  ;;  %1413 = vmatmul.msk.f32.gmra.mxu3 %vm220_vm0, %v1409_v0  ;;  %v1766_v63 = vld [vmem:[%s2364_s4 + $0x90] sm:$0xff]  ;;  %v1761_v0 = vld [vmem:[%s2364_s4 + $0x68] sm:$0xff] }
  0xde   :  { %1465 = vmatmul.msk.f32.gmra.mxu0 %vm220_vm0, %v1461_v1  ;;  %740 = vmatpush.bf16.msra.mxu1 %v1766_v63  ;;  %v1765_v1 = vld [vmem:[%s2364_s4 + $0x88] sm:$0xff] }
  0xdf   :  { %631 = vmatpush.bf16.msra.mxu3 %v1761_v0 }
  0xe2   :  { %741 = vmatpush.bf16.msra.mxu1 %v1765_v1 }
  0xe3   :  { %632 = vmatpush.bf16.msra.mxu3 %v1760_v6 }
  0xe6   :  { %1530 = vmatmul.msk.f32.vlgmr.msra.gmra.mxu0 %vm220_vm0, %v1526_v2  ;;  %742 = vmatpush.bf16.msra.mxu1 %v1764_v5 }
  0xe7   :  { %1117 = vmatpush.msra.mxu0 %v1938_v44 }
  0xe9   :  { %1118 = vmatpush.msra.mxu0 %v1940_v46 }
  0xeb   :  { %1119 = vmatpush.msra.mxu0 %v1945_v47 }
  0xed   :  { %1120 = vmatpush.msra.mxu0 %v1950_v48 }
  0xee   :  { %1531 = vmatmul.msk.f32.gmra.mxu0 %vm220_vm0, %v1527_v30  ;;  %v1775_v30 = vld [vmem:[%s2364_s4 + $0xd8] sm:$0xff] }
  0xf6   :  { %1532 = vmatmul.msk.f32.gmra.mxu0 %vm220_vm0, %v1528_v33 }
  0xfe   :  { %1533 = vmatmul.msk.f32.gmra.mxu0 %vm220_vm0, %v1529_v38  ;;  %v1769_v38 = vld [vmem:[%s2364_s4 + $0xa8] sm:$0xff] }
 0x106   :  { %1598 = vmatmul.msk.f32.vlgmr.msrb.gmra.mxu0 %vm220_vm0, %v1594_v39  ;;  %v1773_v39 = vld [vmem:[%s2364_s4 + $0xc8] sm:$0xff] }
 0x10e   :  { %1599 = vmatmul.msk.f32.gmra.mxu0 %vm220_vm0, %v1595_v41  ;;  %v1772_v41 = vld [vmem:[%s2364_s4 + $0xc0] sm:$0xff] }
 0x116   :  { %1600 = vmatmul.msk.f32.gmra.mxu0 %vm220_vm0, %v1596_v43 }
 0x11e   :  { %1601 = vmatmul.msk.f32.gmra.mxu0 %vm220_vm0, %v1597_v45 }
 0x143   :  { %v462_v10 = vpop.f32.mrf.mxu0 }
 0x147   :  { %v250_v11 = vpop.f32.mrf.mxu2 }
 0x148   :  { %v306_v12 = vpop.f32.mrf.mxu3 }
 0x14b   :  { %v465_v13 = vpop.f32.mrf.mxu0 }
 0x14c   :  { %v474_v14 = vpack.c.bf16 %v465_v13, %v462_v10 }
 0x14e   :  { %1490 = vmatmul.msk.bf16.vlgmr.msrb.gmra.mxu1 %vm353_vm1, %v474_v14 }
 0x14f   :  { %v253_v15 = vpop.f32.mrf.mxu2  ;;  %959 = vmatpush.bf16.msrb.mxu1 %v1775_v30 }
 0x150   :  { %v262_v20 = vpack.c.bf16 %v253_v15, %v250_v11  ;;  %v309_v21 = vpop.f32.mrf.mxu3 }
 0x151   :  { %v318_v26 = vpack.c.bf16 %v309_v21, %v306_v12  ;;  %v1771_v21 = vld [vmem:[%s2364_s4 + $0xb8] sm:$0xff] }
 0x152   :  { %1456 = vmatmul.msk.bf16.vlgmr.msrb.gmra.mxu3 %vm353_vm1, %v262_v20 }
 0x153   :  { %1438 = vmatmul.msk.bf16.vlgmr.msrb.gmra.mxu2 %vm353_vm1, %v318_v26  ;;  %v468_v27 = vpop.f32.mrf.mxu0  ;;  %849 = vmatpush.bf16.msrb.mxu3 %v1771_v21 }
 0x154   :  { %787 = vmatpush.msrb.mxu2 %v1938_v44 }
 0x156   :  { %788 = vmatpush.msrb.mxu2 %v1940_v46 }
 0x157   :  { %v256_v28 = vpop.f32.mrf.mxu2 }
 0x158   :  { %789 = vmatpush.msrb.mxu2 %v1945_v47  ;;  %v312_v29 = vpop.f32.mrf.mxu3 }
 0x15a   :  { %790 = vmatpush.msrb.mxu2 %v1950_v48 }
 0x15b   :  { %v471_v31 = vpop.f32.mrf.mxu0 }
 0x15c   :  { %v475_v32 = vpack.c.bf16 %v471_v31, %v468_v27 }
 0x15e   :  { %1491 = vmatmul.msk.bf16.gmra.mxu1 %vm353_vm1, %v475_v32 }
 0x160   :  { %v259_v34 = vpop.f32.mrf.mxu2  ;;  %v315_v36 = vpop.f32.mrf.mxu3 }
 0x161   :  { %v263_v35 = vpack.c.bf16 %v259_v34, %v256_v28  ;;  %v319_v37 = vpack.c.bf16 %v315_v36, %v312_v29  ;;  %v1770_v29 = vld [vmem:[%s2364_s4 + $0xb0] sm:$0xff] }
 0x162   :  { %850 = vmatpush.bf16.msrb.mxu3 %v1770_v29 }
 0x163   :  { %1457 = vmatmul.msk.bf16.gmra.mxu3 %vm353_vm1, %v263_v35  ;;  %1439 = vmatmul.msk.bf16.gmra.mxu2 %vm353_vm1, %v319_v37  ;;  %v682_v62 = vpop.f32.mrf.mxu0  ;;  %v1774_v37 = vld [vmem:[%s2364_s4 + $0xd0] sm:$0xff] }
 0x164   :  { %960 = vmatpush.bf16.msrb.mxu1 %v1774_v37 }
 0x166   :  { %851 = vmatpush.bf16.msrb.mxu3 %v1769_v38 }
 0x168   :  { %961 = vmatpush.bf16.msrb.mxu1 %v1773_v39  ;;  %v1722_v39 = vld [vmem:[%s2366_s6 + $0x30] sm:$0xf] }
 0x16b   :  { %v685_v8 = vpop.f32.mrf.mxu0 }
 0x16c   :  { %v694_v9 = vpack.c.bf16 %v685_v8, %v682_v62  ;;  %962 = vmatpush.bf16.msrb.mxu1 %v1772_v41  ;;  %v1776_v62 = vld [vmem:[%s2364_s4 + $0xe0] sm:$0xff]  ;;  %v1790_v41 = vld [vmem:[%s2366_s6 + $0x34] sm:$0xf] }
 0x16e   :  { %1558 = vmatmul.msk.bf16.vlgmr.msra.gmra.mxu1 %vm353_vm1, %v694_v9 }
 0x173   :  { %1496 = vmatmul.msk.f32.vlgmr.msra.gmra.mxu2 %vm220_vm0, %v1492_v40  ;;  %v688_v15 = vpop.f32.mrf.mxu0 }
 0x174   :  { %1007 = vmatpush.msra.mxu2 %v1938_v44  ;;  %v1494_v44 = vld [vmem:[%s2363_s3 + $0x70] sm:$0xff] }
 0x176   :  { %1008 = vmatpush.msra.mxu2 %v1940_v46  ;;  %v1495_v46 = vld [vmem:[%s2363_s3 + $0x78] sm:$0xff] }
 0x178   :  { %1009 = vmatpush.msra.mxu2 %v1945_v47  ;;  %v1662_v47 = vld [vmem:[%s2363_s3 + $0x100] sm:$0xff] }
 0x179   :  { %1666 = vmatmul.msk.f32.vlgmr.msra.gmra.mxu0 %vm220_vm0, %v1662_v47 }
 0x17a   :  { %1010 = vmatpush.msra.mxu2 %v1950_v48  ;;  %v1560_v48 = vld [vmem:[%s2363_s3 + $0xa0] sm:$0xff] }
 0x17b   :  { %1497 = vmatmul.msk.f32.gmra.mxu2 %vm220_vm0, %v1493_v42  ;;  %v691_v32 = vpop.f32.mrf.mxu0  ;;  %v1768_v42 = vld [vmem:[%s2364_s4 + $0xa0] sm:$0xff] }
 0x17c   :  { %v695_v33 = vpack.c.bf16 %v691_v32, %v688_v15  ;;  %852 = vmatpush.bf16.msrb.mxu3 %v1768_v42  ;;  %v1724_v42 = vld [vmem:[%s2366_s6 + $0x38] sm:$0xf0] }
 0x17e   :  { %1559 = vmatmul.msk.bf16.gmra.mxu1 %vm353_vm1, %v695_v33 }
 0x181   :  { %1667 = vmatmul.msk.f32.gmra.mxu0 %vm220_vm0, %v1663_v49 }
 0x183   :  { %1498 = vmatmul.msk.f32.gmra.mxu2 %vm220_vm0, %v1494_v44  ;;  %v902_v36 = vpop.f32.mrf.mxu0 }
 0x189   :  { %1668 = vmatmul.msk.f32.gmra.mxu0 %vm220_vm0, %v1664_v51  ;;  %v1783_v51 = vld [vmem:[%s2364_s4 + $0x118] sm:$0xff] }
 0x18a   :  { %1179 = vmatpush.bf16.msra.mxu1 %v1783_v51 }
 0x18b   :  { %1499 = vmatmul.msk.f32.gmra.mxu2 %vm220_vm0, %v1495_v46  ;;  %v905_v43 = vpop.f32.mrf.mxu0 }
 0x18c   :  { %v914_v44 = vpack.c.bf16 %v905_v43, %v902_v36 }
 0x18e   :  { %1626 = vmatmul.msk.bf16.vlgmr.msrb.gmra.mxu1 %vm353_vm1, %v914_v44  ;;  %v1727_v44 = vor.u32 %v1790_v41, %v1724_v42 }
 0x191   :  { %1669 = vmatmul.msk.f32.gmra.mxu0 %vm220_vm0, %v1665_v53 }
 0x193   :  { %1564 = vmatmul.msk.f32.vlgmr.msrb.gmra.mxu2 %vm220_vm0, %v1560_v48  ;;  %v908_v47 = vpop.f32.mrf.mxu0  ;;  %v1779_v48 = vld [vmem:[%s2364_s4 + $0xf8] sm:$0xff] }
 0x19b   :  { %1565 = vmatmul.msk.f32.gmra.mxu2 %vm220_vm0, %v1561_v50  ;;  %v1778_v50 = vld [vmem:[%s2364_s4 + $0xf0] sm:$0xff] }
 0x1a3   :  { %1566 = vmatmul.msk.f32.gmra.mxu2 %vm220_vm0, %v1562_v52  ;;  %v911_v52 = vpop.f32.mrf.mxu0 }
 0x1a4   :  { %v915_v53 = vpack.c.bf16 %v911_v52, %v908_v47  ;;  %v1789_v47 = vld [vmem:[%s2366_s6 + $0x24] sm:$0xf0] }
 0x1a6   :  { %1627 = vmatmul.msk.bf16.gmra.mxu1 %vm353_vm1, %v915_v53 }
 0x1ab   :  { %1567 = vmatmul.msk.f32.gmra.mxu2 %vm220_vm0, %v1563_v54 }
 0x1b3   :  { %1632 = vmatmul.msk.f32.vlgmr.msra.gmra.mxu2 %vm220_vm0, %v1628_v55 }
 0x1bb   :  { %1633 = vmatmul.msk.f32.gmra.mxu2 %vm220_vm0, %v1629_v56 }
 0x1c3   :  { %1634 = vmatmul.msk.f32.gmra.mxu2 %vm220_vm0, %v1630_v57  ;;  %v1782_v57 = vld [vmem:[%s2364_s4 + $0x110] sm:$0xff] }
 0x1c4   :  { %1180 = vmatpush.bf16.msra.mxu1 %v1782_v57 }
 0x1cb   :  { %1635 = vmatmul.msk.f32.gmra.mxu2 %vm220_vm0, %v1631_v59  ;;  %v524_v2 = vpop.f32.mrf.mxu1  ;;  %v1781_v59 = vld [vmem:[%s2364_s4 + $0x108] sm:$0xff] }
 0x1cc   :  { %1181 = vmatpush.bf16.msra.mxu1 %v1781_v59 }
 0x1d0   :  { %1182 = vmatpush.bf16.msra.mxu1 %v1780_v61 }
 0x1d3   :  { %v526_v11 = vpop.f32.mrf.mxu1 }
 0x1d5   :  { %v418_v3 = vpop.f32.mrf.mxu3 }
 0x1d6   :  { %v369_v4 = vpop.f32.mrf.mxu2 }
 0x1d7   :  { %v419_v7 = vadd.f32 %v418_v3, %v369_v4 }
 0x1d9   :  { %v2192_v10 = vadd.f32 %v524_v2, %v419_v7 }
 0x1db   :  { %v529_v28 = vpop.f32.mrf.mxu1 }
 0x1dd   :  { %v420_v12 = vpop.f32.mrf.mxu3 }
 0x1de   :  { %v371_v13 = vpop.f32.mrf.mxu2 }
 0x1df   :  { %v421_v14 = vadd.f32 %v420_v12, %v371_v13 }
 0x1e1   :  { %v2195_v20 = vadd.f32 %v526_v11, %v421_v14 }
 0x1e3   :  { %v2260_v21 = vpop.f32.mrf.mxu1 }
 0x1e6   :  { %v423_v26 = vpop.f32.mrf.mxu3  ;;  %v374_v27 = vpop.f32.mrf.mxu2 }
 0x1e7   :  { %v424_v31 = vadd.f32 %v423_v26, %v374_v27 }
 0x1e9   :  { %v2206_v34 = vadd.f32 %v529_v28, %v424_v31 }
 0x1eb   :  { %v744_v26 = vpop.f32.mrf.mxu1 }
 0x1ee   :  { %v2209_v35 = vpop.f32.mrf.mxu2  ;;  %v425_v28 = vpop.f32.mrf.mxu3 }
 0x1f3   :  { %v746_v27 = vpop.f32.mrf.mxu1 }
 0x1f6   :  { %v572_v40 = vpop.f32.mrf.mxu2  ;;  %v1122_v56 = vpop.f32.mrf.mxu0 }
 0x1fb   :  { %v749_v30 = vpop.f32.mrf.mxu1 }
 0x1fe   :  { %v575_v45 = vpop.f32.mrf.mxu2  ;;  %v1125_v63 = vpop.f32.mrf.mxu0 }
 0x1ff   :  { %v584_v46 = vpack.c.bf16 %v575_v45, %v572_v40  ;;  %v1134_v0 = vpack.c.bf16 %v1125_v63, %v1122_v56  ;;  %v1791_v40 = vld [vmem:[%s2366_s6 + $0x34] sm:$0xf0]  ;;  %v1786_v56 = vld [vmem:[%s2366_s6 + $0x14] sm:$0xf]  ;;  %v1698_v63 = vld [vmem:[%s2366_s6] sm:$0xf] }
 0x201   :  { %1524 = vmatmul.msk.bf16.vlgmr.msra.gmra.mxu3 %vm353_vm1, %v584_v46  ;;  %1694 = vmatmul.msk.bf16.vlgmr.msra.gmra.mxu1 %vm353_vm1, %v1134_v0  ;;  %v1714_v46 = vld [vmem:[%s2366_s6 + $0x20] sm:$0xf]  ;;  %v1785_v0 = vld [vmem:[%s2366_s6 + $0x4] sm:$0xf0] }
 0x202   :  { %1069 = vmatpush.bf16.msra.mxu3 %v1779_v48  ;;  %v1788_v48 = vld [vmem:[%s2366_s6 + $0x24] sm:$0xf] }
 0x203   :  { %v2263_v36 = vpop.f32.mrf.mxu1 }
 0x206   :  { %v578_v49 = vpop.f32.mrf.mxu2  ;;  %1070 = vmatpush.bf16.msra.mxu3 %v1778_v50  ;;  %v1128_v3 = vpop.f32.mrf.mxu0  ;;  %v1716_v50 = vld [vmem:[%s2366_s6 + $0x28] sm:$0xf0] }
 0x207   :  { %v1719_v51 = vor.u32 %v1788_v48, %v1716_v50 }
 0x20a   :  { %1071 = vmatpush.bf16.msra.mxu3 %v1777_v58 }
 0x20e   :  { %v581_v54 = vpop.f32.mrf.mxu2  ;;  %1072 = vmatpush.bf16.msra.mxu3 %v1776_v62  ;;  %v1131_v5 = vpop.f32.mrf.mxu0 }
 0x20f   :  { %v585_v55 = vpack.c.bf16 %v581_v54, %v578_v49  ;;  %v1135_v6 = vpack.c.bf16 %v1131_v5, %v1128_v3  ;;  %v1715_v49 = vor.u32 %v1789_v47, %v1714_v46  ;;  %v1706_v54 = vld [vmem:[%s2366_s6 + $0x10] sm:$0xf]  ;;  %v1700_v3 = vld [vmem:[%s2366_s6 + $0x8] sm:$0xf0] }
 0x211   :  { %1525 = vmatmul.msk.bf16.gmra.mxu3 %vm353_vm1, %v585_v55  ;;  %1695 = vmatmul.msk.bf16.gmra.mxu1 %vm353_vm1, %v1135_v6  ;;  %v1787_v55 = vld [vmem:[%s2366_s6 + $0x14] sm:$0xf0] }
 0x212   :  { %v1707_v59 = vor.u32 %v1787_v55, %v1706_v54 }
 0x216   :  { %v792_v60 = vpop.f32.mrf.mxu2 }
 0x21e   :  { %v795_v1 = vpop.f32.mrf.mxu2 }
 0x21f   :  { %v804_v2 = vpack.c.bf16 %v795_v1, %v792_v60  ;;  %v1708_v60 = vld [vmem:[%s2366_s6 + $0x18] sm:$0xf0]  ;;  %v1784_v1 = vld [vmem:[%s2366_s6 + $0x4] sm:$0xf] }
 0x220   :  { %v1711_v61 = vor.u32 %v1786_v56, %v1708_v60  ;;  %v1703_v5 = vor.u32 %v1784_v1, %v1700_v3 }
 0x221   :  { %1592 = vmatmul.msk.bf16.vlgmr.msrb.gmra.mxu3 %vm353_vm1, %v804_v2  ;;  %v1699_v2 = vor.u32 %v1785_v0, %v1698_v63 }
 0x222   :  { %1295 = vmatpush.bf16.msrb.mxu3 %v1727_v44 }
 0x226   :  { %v798_v4 = vpop.f32.mrf.mxu2  ;;  %1296 = vmatpush.bf16.msrb.mxu3 %v1719_v51 }
 0x22a   :  { %1297 = vmatpush.bf16.msrb.mxu3 %v1711_v61 }
 0x22e   :  { %v801_v7 = vpop.f32.mrf.mxu2  ;;  %1298 = vmatpush.bf16.msrb.mxu3 %v1703_v5 }
 0x22f   :  { %v805_v8 = vpack.c.bf16 %v801_v7, %v798_v4 }
 0x231   :  { %1593 = vmatmul.msk.bf16.gmra.mxu3 %vm353_vm1, %v805_v8 }
 0x236   :  { %v1012_v9 = vpop.f32.mrf.mxu2 }
 0x23e   :  { %v1015_v11 = vpop.f32.mrf.mxu2 }
 0x23f   :  { %v1024_v12 = vpack.c.bf16 %v1015_v11, %v1012_v9 }
 0x241   :  { %1660 = vmatmul.msk.bf16.vlgmr.msra.gmra.mxu3 %vm353_vm1, %v1024_v12 }
 0x246   :  { %v1018_v13 = vpop.f32.mrf.mxu2 }
 0x24e   :  { %v1021_v14 = vpop.f32.mrf.mxu2 }
 0x24f   :  { %v1025_v15 = vpack.c.bf16 %v1021_v14, %v1018_v13 }
 0x251   :  { %1661 = vmatmul.msk.bf16.gmra.mxu3 %vm353_vm1, %v1025_v15 }
 0x284   :  { %v634_v29 = vpop.f32.mrf.mxu3 }
 0x285   :  { %v644_v31 = vadd.f32 %v634_v29, %v2192_v10  ;;  %v1723_v10 = vor.u32 %v1791_v40, %v1722_v39  ;;  %v426_v29 = vadd.f32 %v425_v28, %v2209_v35 }
 0x287   :  { %v754_v32 = vadd.f32 %v744_v26, %v644_v31  ;;  %1276 = vmatpush.bf16.msrb.mxu2 %v1723_v10  ;;  %v1793_v31 = vld [vmem:[%s2365_s5] ss:$0 sm:$0xff]  ;;  %v537_v40 = vadd.f32 %v2260_v21, %v426_v29 }
 0x28b   :  { %1277 = vmatpush.bf16.msrb.mxu2 %v1715_v49 }
 0x28c   :  { %v636_v33 = vpop.f32.mrf.mxu3 }
 0x28d   :  { %v645_v8 = vadd.f32 %v636_v33, %v2195_v20 }
 0x28f   :  { %1278 = vmatpush.bf16.msrb.mxu2 %v1707_v59  ;;  %v755_v12 = vadd.f32 %v746_v27, %v645_v8 }
 0x293   :  { %1279 = vmatpush.bf16.msrb.mxu2 %v1699_v2 }
 0x294   :  { %v639_v37 = vpop.f32.mrf.mxu3 }
 0x295   :  { %v646_v38 = vadd.f32 %v639_v37, %v2206_v34  ;;  %v964_v34 = vpop.f32.mrf.mxu1 }
 0x297   :  { %v756_v43 = vadd.f32 %v749_v30, %v646_v38 }
 0x29c   :  { %v641_v45 = vpop.f32.mrf.mxu3 }
 0x29d   :  { %v966_v52 = vpop.f32.mrf.mxu1  ;;  %v647_v33 = vadd.f32 %v641_v45, %v537_v40 }
 0x29f   :  { %v757_v35 = vadd.f32 %v2263_v36, %v647_v33  ;;  %v1220_v36 = vld [vmem:[%s2367_s7] sm:$0x3] }
 0x2a4   :  { %v854_v53 = vpop.f32.mrf.mxu3 }
 0x2a5   :  { %v969_v57 = vpop.f32.mrf.mxu1  ;;  %v864_v9 = vadd.f32 %v854_v53, %v754_v32 }
 0x2a7   :  { %v974_v13 = vadd.f32 %v964_v34, %v864_v9 }
 0x2ac   :  { %v856_v58 = vpop.f32.mrf.mxu3 }
 0x2ad   :  { %v971_v4 = vpop.f32.mrf.mxu1  ;;  %v865_v14 = vadd.f32 %v856_v58, %v755_v12  ;;  %v1223_v58 = vperm.slane %v1220_v36, 1 }
 0x2af   :  { %v975_v37 = vadd.f32 %v966_v52, %v865_v14 }
 0x2b4   :  { %v859_v62 = vpop.f32.mrf.mxu3 }
 0x2b5   :  { %v1184_v7 = vpop.f32.mrf.mxu1  ;;  %v866_v27 = vadd.f32 %v859_v62, %v756_v43 }
 0x2b7   :  { %v976_v46 = vadd.f32 %v969_v57, %v866_v27  ;;  %v1222_v57 = vperm.slane %v1220_v36, 0 }
 0x2bc   :  { %v861_v6 = vpop.f32.mrf.mxu3 }
 0x2bd   :  { %v1186_v26 = vpop.f32.mrf.mxu1  ;;  %v867_v47 = vadd.f32 %v861_v6, %v757_v35 }
 0x2bf   :  { %v977_v49 = vadd.f32 %v971_v4, %v867_v47 }
 0x2c4   :  { %v1074_v11 = vpop.f32.mrf.mxu3 }
 0x2c5   :  { %v1084_v15 = vadd.f32 %v1074_v11, %v974_v13  ;;  %v1189_v44 = vpop.f32.mrf.mxu1 }
 0x2c7   :  { %v1194_v30 = vadd.f32 %v1184_v7, %v1084_v15 }
 0x2c9   :  { %v1202_v20 = vadd.f32 %v1793_v31, %v1194_v30 }
 0x2cb   :  { %v1206_v10 = vmax.f32 %v1202_v20, 0.0 }
 0x2cc   :  { %v1076_v38 = vpop.f32.mrf.mxu3 }
 0x2cd   :  { %v1085_v39 = vadd.f32 %v1076_v38, %v975_v37  ;;  %v1191_v43 = vpop.f32.mrf.mxu1 }
 0x2cf   :  { %v1195_v32 = vadd.f32 %v1186_v26, %v1085_v39 }
 0x2d1   :  { %v1203_v41 = vadd.f32 %v1793_v31, %v1195_v32 }
 0x2d3   :  { %v1207_v42 = vmax.f32 %v1203_v41, 0.0 }
 0x2d4   :  { %v1079_v34 = vpop.f32.mrf.mxu3 }
 0x2d5   :  { %v1218_v28 = vpack.c.bf16 %v1207_v42, %v1206_v10  ;;  %v1086_v48 = vadd.f32 %v1079_v34, %v976_v46 }
 0x2d7   :  { %1728 = vmatmul.msk.bf16.vlgmr.msrb.gmra.mxu2 %vm353_vm1, %v1218_v28  ;;  %1730 = vmatmul.msk.bf16.vlgmr.msrb.gmra.mxu3 %vm353_vm1, %v1218_v28  ;;  %v1196_v21 = vadd.f32 %v1189_v44, %v1086_v48 }
 0x2d9   :  { %v1204_v51 = vadd.f32 %v1793_v31, %v1196_v21 }
 0x2db   :  { %v1208_v54 = vmax.f32 %v1204_v51, 0.0 }
 0x2dc   :  { %v1081_v50 = vpop.f32.mrf.mxu3 }
 0x2dd   :  { %v1087_v45 = vadd.f32 %v1081_v50, %v977_v49 }
 0x2df   :  { %v1197_v52 = vadd.f32 %v1191_v43, %v1087_v45 }
 0x2e1   :  { %v1205_v53 = vadd.f32 %v1793_v31, %v1197_v52 }
 0x2e3   :  { %v1209_v55 = vmax.f32 %v1205_v53, 0.0 }
 0x2e5   :  { %v1219_v56 = vpack.c.bf16 %v1209_v55, %v1208_v54 }
 0x2e7   :  { %1729 = vmatmul.msk.bf16.gmra.mxu2 %vm353_vm1, %v1219_v56  ;;  %1731 = vmatmul.msk.bf16.gmra.mxu3 %vm353_vm1, %v1219_v56 }
 0x35a   :  { %v1281_v59 = vpop.f32.mrf.mxu2  ;;  %v1300_v60 = vpop.f32.mrf.mxu3 }
 0x35b   :  { %v1282_v61 = vadd.f32 %v1281_v59, %v1222_v57  ;;  %v1301_v62 = vadd.f32 %v1300_v60, %v1223_v58 }
 0x35d   :  { %v1310_v63 = vadd.f32 %v1282_v61, %v1890_v16  ;;  %v1311_v0 = vadd.f32 %v1301_v62, %v1900_v18 }
 0x35f   :  { %v1318_v1 = vmax.f32 %v1310_v63, 0.0  ;;  %v1319_v2 = vmax.f32 %v1311_v0, 0.0 }
 0x361   :  { %1326 = vst [vmem:[%s2368_s8] sm:$0xff] %v1318_v1 }
 0x362   :  { %1327 = vst [vmem:[%s2368_s8 + $0x8] sm:$0xff] %v1319_v2  ;;  %v1283_v3 = vpop.f32.mrf.mxu2  ;;  %v1302_v4 = vpop.f32.mrf.mxu3 }
 0x363   :  { %v1284_v5 = vadd.f32 %v1283_v3, %v1222_v57  ;;  %v1303_v6 = vadd.f32 %v1302_v4, %v1223_v58 }
 0x365   :  { %v1312_v7 = vadd.f32 %v1284_v5, %v1895_v17  ;;  %v1313_v16 = vadd.f32 %v1303_v6, %v1905_v19 }
 0x367   :  { %v1320_v8 = vmax.f32 %v1312_v7, 0.0  ;;  %v1321_v18 = vmax.f32 %v1313_v16, 0.0 }
 0x369   :  { %1328 = vst [vmem:[%s2368_s8 + $0x10] sm:$0xff] %v1320_v8 }
 0x36a   :  { %1329 = vst [vmem:[%s2368_s8 + $0x18] sm:$0xff] %v1321_v18  ;;  %v1286_v9 = vpop.f32.mrf.mxu2  ;;  %v1305_v11 = vpop.f32.mrf.mxu3 }
 0x36b   :  { %v1287_v12 = vadd.f32 %v1286_v9, %v1222_v57  ;;  %v1306_v13 = vadd.f32 %v1305_v11, %v1223_v58 }
 0x36d   :  { %v1314_v14 = vadd.f32 %v1287_v12, %v1914_v22  ;;  %v1315_v17 = vadd.f32 %v1306_v13, %v1924_v24 }
 0x36f   :  { %v1322_v15 = vmax.f32 %v1314_v14, 0.0  ;;  %v1323_v19 = vmax.f32 %v1315_v17, 0.0 }
 0x371   :  { %1330 = vst [vmem:[%s2368_s8 + $0x20] sm:$0xff] %v1322_v15 }
 0x372   :  { %1331 = vst [vmem:[%s2368_s8 + $0x28] sm:$0xff] %v1323_v19  ;;  %v1288_v26 = vpop.f32.mrf.mxu2  ;;  %v1307_v29 = vpop.f32.mrf.mxu3 }
 0x373   :  { %v1289_v30 = vadd.f32 %v1288_v26, %v1222_v57  ;;  %v1308_v31 = vadd.f32 %v1307_v29, %v1223_v58 }
 0x375   :  { %v1316_v37 = vadd.f32 %v1289_v30, %v1919_v23  ;;  %v1317_v22 = vadd.f32 %v1308_v31, %v1929_v25 }
 0x377   :  { %v1324_v38 = vmax.f32 %v1316_v37, 0.0  ;;  %v1325_v24 = vmax.f32 %v1317_v22, 0.0 }
 0x379   :  { %1332 = vst [vmem:[%s2368_s8 + $0x30] sm:$0xff] %v1324_v38 }
 0x37a   :  { %1333 = vst [vmem:[%s2368_s8 + $0x38] sm:$0xff] %v1325_v24 }

// kernel: _lambda_.9
= control target key start
LH: loop header
LB: loop body
LE: loop exit
PB: predicated region body
PF: predicated region fallthrough
CT: control target
= control target key end

     0   :  { %vm225_vm0 = vcmask 261120   ;;  %s4067_s2 = inlined_call_operand.vmem [shape: bf16[256,128], index: 2, kind: input, shape index: {}]   ;;  %s4068_s3 = inlined_call_operand.vmem [shape: f32[1,128], index: 3, kind: input, shape index: {}]   ;;  %s4069_s0 = inlined_call_operand.vmem [shape: f32[32,256], index: 0, kind: input, shape index: {}]   ;;  %s4070_s5 = inlined_call_operand.vmem [shape: bf16[9,128,128], index: 5, kind: input, shape index: {}]   ;;  %s4071_s4 = inlined_call_operand.vmem [shape: f32[9,8,32], index: 4, kind: input, shape index: {}]   ;;  %s4072_s9 = inlined_call_operand.vmem [shape: bf16[256,512], index: 9, kind: input, shape index: {}]   ;;  %s4073_s1 = inlined_call_operand.vmem [shape: f32[8,256], index: 1, kind: input, shape index: {}]   ;;  %s4074_s7 = inlined_call_operand.vmem [shape: bf16[128,512], index: 7, kind: input, shape index: {}]   ;;  %s4075_s6 = inlined_call_operand.vmem [shape: f32[1,128], index: 6, kind: input, shape index: {}]   ;;  %s4076_s10 = inlined_call_operand.vmem [shape: f32[1,512], index: 10, kind: input, shape index: {}]   ;;  %s4077_s8 = inlined_call_operand.vmem [shape: f32[1,512], index: 8, kind: input, shape index: {}]   ;;  %s4078_s11 = inlined_call_operand.vmem [shape: f32[8,512], index: 11, kind: output, shape index: {}]  }
   0x1   :  { %v2833_v0 = vld [vmem:[%s4067_s2 + $0x38] sm:$0xff]  ;;  %v2832_v2 = vld [vmem:[%s4067_s2 + $0x30] sm:$0xff]  ;;  %v2831_v4 = vld [vmem:[%s4067_s2 + $0x28] sm:$0xff] }
   0x2   :  { %v2841_v1 = vld [vmem:[%s4067_s2 + $0x78] sm:$0xff]  ;;  %182 = vmatpush.bf16.msra.mxu0 %v2833_v0  ;;  %v2840_v3 = vld [vmem:[%s4067_s2 + $0x70] sm:$0xff]  ;;  %v2839_v5 = vld [vmem:[%s4067_s2 + $0x68] sm:$0xff] }
   0x3   :  { %201 = vmatpush.bf16.msra.mxu1 %v2841_v1  ;;  %v2830_v6 = vld [vmem:[%s4067_s2 + $0x20] sm:$0xff]  ;;  %v2829_v8 = vld [vmem:[%s4067_s2 + $0x18] sm:$0xff]  ;;  %v2828_v10 = vld [vmem:[%s4067_s2 + $0x10] sm:$0xff] }
   0x4   :  { %v2838_v7 = vld [vmem:[%s4067_s2 + $0x60] sm:$0xff]  ;;  %v2837_v9 = vld [vmem:[%s4067_s2 + $0x58] sm:$0xff]  ;;  %v2836_v11 = vld [vmem:[%s4067_s2 + $0x50] sm:$0xff] }
   0x5   :  { %v2827_v12 = vld [vmem:[%s4067_s2 + $0x8] sm:$0xff]  ;;  %v2826_v14 = vld [vmem:[%s4067_s2] sm:$0xff]  ;;  %v40_v17 = vld [vmem:[%s4069_s0 + $0x10] sm:$0xff] }
   0x6   :  { %183 = vmatpush.bf16.msra.mxu0 %v2832_v2  ;;  %v2835_v13 = vld [vmem:[%s4067_s2 + $0x48] sm:$0xff]  ;;  %v2834_v15 = vld [vmem:[%s4067_s2 + $0x40] sm:$0xff]  ;;  %v41_v19 = vld [vmem:[%s4069_s0 + $0x18] sm:$0xff] }
   0x7   :  { %202 = vmatpush.bf16.msra.mxu1 %v2840_v3  ;;  %v38_v16 = vld [vmem:[%s4069_s0] sm:$0xff]  ;;  %v39_v18 = vld [vmem:[%s4069_s0 + $0x8] sm:$0xff]  ;;  %v44_v23 = vld [vmem:[%s4069_s0 + $0x30] sm:$0xff] }
   0x8   :  { %v78_v20 = vpack.c.bf16 %v40_v17, %v38_v16  ;;  %v79_v21 = vpack.c.bf16 %v41_v19, %v39_v18  ;;  %v42_v22 = vld [vmem:[%s4069_s0 + $0x20] sm:$0xff]  ;;  %v43_v24 = vld [vmem:[%s4069_s0 + $0x28] sm:$0xff]  ;;  %v45_v25 = vld [vmem:[%s4069_s0 + $0x38] sm:$0xff] }
   0x9   :  { %v80_v26 = vpack.c.bf16 %v44_v23, %v42_v22  ;;  %v81_v27 = vpack.c.bf16 %v45_v25, %v43_v24  ;;  %v2873_v28 = vld [vmem:[%s4070_s5 + $0xf8] sm:$0xff]  ;;  %v2872_v29 = vld [vmem:[%s4070_s5 + $0xf0] sm:$0xff]  ;;  %v2871_v30 = vld [vmem:[%s4070_s5 + $0xe8] sm:$0xff] }
   0xa   :  { %184 = vmatpush.bf16.msra.mxu0 %v2831_v4  ;;  %v2870_v31 = vld [vmem:[%s4070_s5 + $0xe0] sm:$0xff]  ;;  %v2869_v32 = vld [vmem:[%s4070_s5 + $0xd8] sm:$0xff]  ;;  %v2868_v33 = vld [vmem:[%s4070_s5 + $0xd0] sm:$0xff] }
   0xb   :  { %203 = vmatpush.bf16.msra.mxu1 %v2839_v5  ;;  %v2867_v34 = vld [vmem:[%s4070_s5 + $0xc8] sm:$0xff]  ;;  %v2866_v35 = vld [vmem:[%s4070_s5 + $0xc0] sm:$0xff]  ;;  %v2857_v58 = vld [vmem:[%s4070_s5 + $0x78] sm:$0xff] }
   0xc   :  { %v3010_v42 = vld [vmem:[%s4068_s3] ss:$0 sm:$0xff]  ;;  %v2010_v59 = vld [vmem:[%s4071_s4 + $0x8] sm:$0xff]  ;;  %v2849_v60 = vld [vmem:[%s4070_s5 + $0x38] sm:$0xff] }
   0xd   :  { %v224_v57 = vld [vmem:[%s4071_s4] sm:$0xff]  ;;  %v2856_v61 = vld [vmem:[%s4070_s5 + $0x70] sm:$0xff]  ;;  %v2855_v63 = vld [vmem:[%s4070_s5 + $0x68] sm:$0xff] }
   0xe   :  { %185 = vmatpush.bf16.msra.mxu0 %v2830_v6  ;;  %v2848_v62 = vld [vmem:[%s4070_s5 + $0x30] sm:$0xff]  ;;  %v2847_v0 = vld [vmem:[%s4070_s5 + $0x28] sm:$0xff]  ;;  %v2854_v1 = vld [vmem:[%s4070_s5 + $0x60] sm:$0xff] }
   0xf   :  { %204 = vmatpush.bf16.msra.mxu1 %v2838_v7  ;;  %v2846_v2 = vld [vmem:[%s4070_s5 + $0x20] sm:$0xff]  ;;  %v2853_v3 = vld [vmem:[%s4070_s5 + $0x58] sm:$0xff]  ;;  %v2852_v5 = vld [vmem:[%s4070_s5 + $0x50] sm:$0xff] }
  0x10   :  { %v2845_v4 = vld [vmem:[%s4070_s5 + $0x18] sm:$0xff]  ;;  %v2844_v6 = vld [vmem:[%s4070_s5 + $0x10] sm:$0xff]  ;;  %v2851_v7 = vld [vmem:[%s4070_s5 + $0x48] sm:$0xff] }
  0x11   :  { %v2880_v16 = vld [vmem:[%s4070_s5 + $0x130] sm:$0xff]  ;;  %v2865_v17 = vld [vmem:[%s4070_s5 + $0xb8] sm:$0xff]  ;;  %v2879_v18 = vld [vmem:[%s4070_s5 + $0x128] sm:$0xff] }
  0x12   :  { %186 = vmatpush.bf16.msra.mxu0 %v2829_v8  ;;  %v2843_v8 = vld [vmem:[%s4070_s5 + $0x8] sm:$0xff]  ;;  %v2864_v19 = vld [vmem:[%s4070_s5 + $0xb0] sm:$0xff]  ;;  %v2142_v22 = vld [vmem:[%s4071_s4 + $0x18] sm:$0xff] }
  0x13   :  { %205 = vmatpush.bf16.msra.mxu1 %v2837_v9  ;;  %v2850_v9 = vld [vmem:[%s4070_s5 + $0x40] sm:$0xff]  ;;  %v2877_v23 = vld [vmem:[%s4070_s5 + $0x118] sm:$0xff]  ;;  %v2092_v24 = vld [vmem:[%s4071_s4 + $0x10] sm:$0xff] }
  0x14   :  { %v2862_v25 = vld [vmem:[%s4070_s5 + $0xa0] sm:$0xff] }
  0x16   :  { %187 = vmatpush.bf16.msra.mxu0 %v2828_v10  ;;  %v2842_v10 = vld [vmem:[%s4070_s5] sm:$0xff] }
  0x17   :  { %206 = vmatpush.bf16.msra.mxu1 %v2836_v11 }
  0x1a   :  { %188 = vmatpush.bf16.msra.mxu0 %v2827_v12  ;;  %v2881_v12 = vld [vmem:[%s4070_s5 + $0x138] sm:$0xff] }
  0x1b   :  { %207 = vmatpush.bf16.msra.mxu1 %v2835_v13 }
  0x1e   :  { %189 = vmatpush.bf16.msra.mxu0 %v2826_v14 }
  0x1f   :  { %208 = vmatpush.bf16.msra.mxu1 %v2834_v15 }
  0x21   :  { %190 = vmatmul.bf16.vlgmr.msra.gmra.mxu0 %v78_v20  ;;  %v2878_v20 = vld [vmem:[%s4070_s5 + $0x120] sm:$0xff] }
  0x22   :  { %209 = vmatmul.bf16.vlgmr.msra.gmra.mxu1 %v79_v21  ;;  %522 = vmatpush.bf16.msrb.mxu0 %v2865_v17  ;;  %v2863_v21 = vld [vmem:[%s4070_s5 + $0xa8] sm:$0xff] }
  0x23   :  { %627 = vmatpush.bf16.msrb.mxu1 %v2873_v28  ;;  %v2875_v28 = vld [vmem:[%s4070_s5 + $0x108] sm:$0xff] }
  0x24   :  { %v2907_v17 = vld [vmem:[%s4070_s5 + $0x208] sm:$0xff] }
  0x26   :  { %523 = vmatpush.bf16.msrb.mxu0 %v2864_v19 }
  0x27   :  { %628 = vmatpush.bf16.msrb.mxu1 %v2872_v29  ;;  %v2192_v29 = vld [vmem:[%s4071_s4 + $0x20] sm:$0xff] }
  0x2a   :  { %524 = vmatpush.bf16.msrb.mxu0 %v2863_v21 }
  0x2b   :  { %629 = vmatpush.bf16.msrb.mxu1 %v2871_v30  ;;  %v2860_v30 = vld [vmem:[%s4070_s5 + $0x90] sm:$0xff] }
  0x2e   :  { %525 = vmatpush.bf16.msrb.mxu0 %v2862_v25 }
  0x2f   :  { %630 = vmatpush.bf16.msrb.mxu1 %v2870_v31  ;;  %v2874_v31 = vld [vmem:[%s4070_s5 + $0x100] sm:$0xff] }
  0x31   :  { %195 = vmatmul.bf16.gmra.mxu0 %v80_v26  ;;  %v2876_v26 = vld [vmem:[%s4070_s5 + $0x110] sm:$0xff] }
  0x32   :  { %214 = vmatmul.bf16.gmra.mxu1 %v81_v27  ;;  %v2861_v27 = vld [vmem:[%s4070_s5 + $0x98] sm:$0xff] }
  0x33   :  { %631 = vmatpush.bf16.msrb.mxu1 %v2869_v32  ;;  %526 = vmatpush.bf16.msrb.mxu0 %v2861_v27  ;;  %v2859_v32 = vld [vmem:[%s4070_s5 + $0x88] sm:$0xff]  ;;  %v2942_v27 = vld [vmem:[%s4072_s9 + $0xe4] sm:$0xf] }
  0x37   :  { %632 = vmatpush.bf16.msrb.mxu1 %v2868_v33  ;;  %527 = vmatpush.bf16.msrb.mxu0 %v2860_v30  ;;  %v2242_v33 = vld [vmem:[%s4071_s4 + $0x28] sm:$0xff] }
  0x3b   :  { %633 = vmatpush.bf16.msrb.mxu1 %v2867_v34  ;;  %528 = vmatpush.bf16.msrb.mxu0 %v2859_v32  ;;  %v2858_v34 = vld [vmem:[%s4070_s5 + $0x80] sm:$0xff] }
  0x3c   :  { %v2974_v32 = vld [vmem:[%s4072_s9 + $0x1e4] sm:$0xf] }
  0x3f   :  { %634 = vmatpush.bf16.msrb.mxu1 %v2866_v35  ;;  %v2889_v35 = vld [vmem:[%s4070_s5 + $0x178] sm:$0xff]  ;;  %529 = vmatpush.bf16.msrb.mxu0 %v2858_v34  ;;  %v2540_v34 = vld [vmem:[%s4072_s9 + $0xc0] sm:$0xf] }
  0x43   :  { %837 = vmatpush.bf16.msra.mxu0 %v2889_v35 }
  0x9e   :  { %v191_v36 = vpop.f32.mrf.mxu0 }
  0x9f   :  { %v210_v37 = vpop.f32.mrf.mxu1  ;;  %v192_v48 = vadd.f32 %v3010_v42, %v191_v36  ;;  %v2888_v36 = vld [vmem:[%s4070_s5 + $0x170] sm:$0xff] }
  0xa0   :  { %838 = vmatpush.bf16.msra.mxu0 %v2888_v36  ;;  %v2940_v36 = vld [vmem:[%s4072_s9 + $0xcc] sm:$0xf0] }
  0xa1   :  { %v211_v53 = vadd.f32 %v210_v37, %v192_v48  ;;  %v2887_v37 = vld [vmem:[%s4070_s5 + $0x168] sm:$0xff]  ;;  %v2897_v48 = vld [vmem:[%s4070_s5 + $0x1b8] sm:$0xff] }
  0xa3   :  { %v3183_v56 = vmax.f32 %v211_v53, 0.0 }
  0xa4   :  { %839 = vmatpush.bf16.msra.mxu0 %v2887_v37  ;;  %v2668_v37 = vld [vmem:[%s4072_s9 + $0x1c0] sm:$0xf] }
  0xa6   :  { %v193_v38 = vpop.f32.mrf.mxu0 }
  0xa7   :  { %v212_v39 = vpop.f32.mrf.mxu1  ;;  %v194_v45 = vadd.f32 %v3010_v42, %v193_v38  ;;  %v2886_v38 = vld [vmem:[%s4070_s5 + $0x160] sm:$0xff] }
  0xa8   :  { %840 = vmatpush.bf16.msra.mxu0 %v2886_v38  ;;  %v2972_v38 = vld [vmem:[%s4072_s9 + $0x1cc] sm:$0xf0] }
  0xa9   :  { %v213_v51 = vadd.f32 %v212_v39, %v194_v45  ;;  %v2885_v39 = vld [vmem:[%s4070_s5 + $0x158] sm:$0xff] }
  0xab   :  { %v3178_v55 = vmax.f32 %v213_v51, 0.0 }
  0xac   :  { %841 = vmatpush.bf16.msra.mxu0 %v2885_v39  ;;  %v2541_v39 = vor.u32 %v2940_v36, %v2540_v34  ;;  %v2606_v34 = vld [vmem:[%s4072_s9 + $0x150] sm:$0xf0] }
  0xae   :  { %v196_v40 = vpop.f32.mrf.mxu0 }
  0xaf   :  { %v215_v41 = vpop.f32.mrf.mxu1  ;;  %v197_v43 = vadd.f32 %v3010_v42, %v196_v40  ;;  %v2884_v40 = vld [vmem:[%s4070_s5 + $0x150] sm:$0xff] }
  0xb0   :  { %842 = vmatpush.bf16.msra.mxu0 %v2884_v40  ;;  %v2669_v40 = vor.u32 %v2972_v38, %v2668_v37  ;;  %v2460_v38 = vld [vmem:[%s4072_s9 + $0x20] sm:$0xf] }
  0xb1   :  { %v216_v49 = vadd.f32 %v215_v41, %v197_v43  ;;  %v2883_v41 = vld [vmem:[%s4070_s5 + $0x148] sm:$0xff]  ;;  %v2882_v43 = vld [vmem:[%s4070_s5 + $0x140] sm:$0xff] }
  0xb3   :  { %v3173_v54 = vmax.f32 %v216_v49, 0.0  ;;  %v2896_v49 = vld [vmem:[%s4070_s5 + $0x1b0] sm:$0xff] }
  0xb4   :  { %843 = vmatpush.bf16.msra.mxu0 %v2883_v41  ;;  %v2938_v41 = vld [vmem:[%s4072_s9 + $0xc4] sm:$0xf] }
  0xb6   :  { %v198_v44 = vpop.f32.mrf.mxu0 }
  0xb7   :  { %v199_v46 = vadd.f32 %v3010_v42, %v198_v44  ;;  %v217_v47 = vpop.f32.mrf.mxu1 }
  0xb8   :  { %844 = vmatpush.bf16.msra.mxu0 %v2882_v43  ;;  %v2970_v43 = vld [vmem:[%s4072_s9 + $0x1c4] sm:$0xf] }
  0xb9   :  { %v218_v50 = vadd.f32 %v217_v47, %v199_v46 }
  0xbb   :  { %v3171_v52 = vmax.f32 %v218_v50, 0.0 }
  0xbd   :  { %241 = vmatpush.msra.mxu2 %v3171_v52  ;;  %283 = vmatpush.msra.mxu3 %v3171_v52 }
  0xbe   :  { %868 = vmatpush.msra.mxu1 %v3171_v52 }
  0xbf   :  { %242 = vmatpush.msra.mxu2 %v3173_v54  ;;  %284 = vmatpush.msra.mxu3 %v3173_v54 }
  0xc0   :  { %869 = vmatpush.msra.mxu1 %v3173_v54 }
  0xc1   :  { %243 = vmatpush.msra.mxu2 %v3178_v55  ;;  %285 = vmatpush.msra.mxu3 %v3178_v55 }
  0xc2   :  { %870 = vmatpush.msra.mxu1 %v3178_v55 }
  0xc3   :  { %244 = vmatpush.msra.mxu2 %v3183_v56  ;;  %286 = vmatpush.msra.mxu3 %v3183_v56 }
  0xc4   :  { %871 = vmatpush.msra.mxu1 %v3183_v56  ;;  %2009 = vmatmul.msk.f32.vlgmr.msra.gmra.mxu2 %vm225_vm0, %v224_v57 }
  0xc5   :  { %2011 = vmatmul.msk.f32.vlgmr.msra.gmra.mxu3 %vm225_vm0, %v2010_v59  ;;  %357 = vmatpush.bf16.msrb.mxu2 %v2857_v58  ;;  %v2895_v58 = vld [vmem:[%s4070_s5 + $0x1a8] sm:$0xff] }
  0xc6   :  { %418 = vmatpush.bf16.msrb.mxu3 %v2849_v60 }
  0xc9   :  { %358 = vmatpush.bf16.msrb.mxu2 %v2856_v61  ;;  %v2292_v61 = vld [vmem:[%s4071_s4 + $0x30] sm:$0xff] }
  0xca   :  { %419 = vmatpush.bf16.msrb.mxu3 %v2848_v62  ;;  %v2905_v62 = vld [vmem:[%s4070_s5 + $0x1f8] sm:$0xff] }
  0xcd   :  { %359 = vmatpush.bf16.msrb.mxu2 %v2855_v63 }
  0xce   :  { %420 = vmatpush.bf16.msrb.mxu3 %v2847_v0  ;;  %v2904_v0 = vld [vmem:[%s4070_s5 + $0x1f0] sm:$0xff] }
  0xd1   :  { %360 = vmatpush.bf16.msrb.mxu2 %v2854_v1  ;;  %v2913_v1 = vld [vmem:[%s4070_s5 + $0x238] sm:$0xff] }
  0xd2   :  { %421 = vmatpush.bf16.msrb.mxu3 %v2846_v2  ;;  %v2893_v2 = vld [vmem:[%s4070_s5 + $0x198] sm:$0xff] }
  0xd5   :  { %361 = vmatpush.bf16.msrb.mxu2 %v2853_v3  ;;  %v2903_v3 = vld [vmem:[%s4070_s5 + $0x1e8] sm:$0xff] }
  0xd6   :  { %422 = vmatpush.bf16.msrb.mxu3 %v2845_v4  ;;  %v2912_v4 = vld [vmem:[%s4070_s5 + $0x230] sm:$0xff] }
  0xd9   :  { %362 = vmatpush.bf16.msrb.mxu2 %v2852_v5  ;;  %v2892_v5 = vld [vmem:[%s4070_s5 + $0x190] sm:$0xff] }
  0xda   :  { %423 = vmatpush.bf16.msrb.mxu3 %v2844_v6  ;;  %v2902_v6 = vld [vmem:[%s4070_s5 + $0x1e0] sm:$0xff] }
  0xdd   :  { %363 = vmatpush.bf16.msrb.mxu2 %v2851_v7  ;;  %v2911_v7 = vld [vmem:[%s4070_s5 + $0x228] sm:$0xff] }
  0xde   :  { %424 = vmatpush.bf16.msrb.mxu3 %v2843_v8  ;;  %v2891_v8 = vld [vmem:[%s4070_s5 + $0x188] sm:$0xff] }
  0xe1   :  { %364 = vmatpush.bf16.msrb.mxu2 %v2850_v9  ;;  %v2901_v9 = vld [vmem:[%s4070_s5 + $0x1d8] sm:$0xff] }
  0xe2   :  { %425 = vmatpush.bf16.msrb.mxu3 %v2842_v10  ;;  %v2910_v10 = vld [vmem:[%s4070_s5 + $0x220] sm:$0xff] }
  0xe5   :  { %448 = vmatpush.msra.mxu2 %v3171_v52 }
  0xe6   :  { %553 = vmatpush.msra.mxu3 %v3171_v52 }
  0xe7   :  { %449 = vmatpush.msra.mxu2 %v3173_v54 }
  0xe8   :  { %554 = vmatpush.msra.mxu3 %v3173_v54 }
  0xe9   :  { %450 = vmatpush.msra.mxu2 %v3178_v55 }
  0xea   :  { %555 = vmatpush.msra.mxu3 %v3178_v55 }
  0xeb   :  { %451 = vmatpush.msra.mxu2 %v3183_v56 }
  0xec   :  { %556 = vmatpush.msra.mxu3 %v3183_v56 }
 0x147   :  { %v246_v11 = vpop.f32.mrf.mxu2 }
 0x148   :  { %v249_v13 = vpack.c.bf16 %v246_v11, %v246_v11  ;;  %v288_v14 = vpop.f32.mrf.mxu3  ;;  %v2890_v11 = vld [vmem:[%s4070_s5 + $0x180] sm:$0xff] }
 0x149   :  { %v291_v15 = vpack.c.bf16 %v288_v14, %v288_v14  ;;  %v2899_v14 = vld [vmem:[%s4070_s5 + $0x1c8] sm:$0xff] }
 0x14a   :  { %426 = vmatmul.bf16.vlgmr.msrb.gmra.mxu3 %v249_v13  ;;  %v2909_v13 = vld [vmem:[%s4070_s5 + $0x218] sm:$0xff] }
 0x14b   :  { %365 = vmatmul.bf16.vlgmr.msrb.gmra.mxu2 %v291_v15  ;;  %732 = vmatpush.bf16.msrb.mxu3 %v2881_v12  ;;  %v2900_v12 = vld [vmem:[%s4070_s5 + $0x1d0] sm:$0xff] }
 0x14c   :  { %658 = vmatpush.msrb.mxu2 %v3171_v52  ;;  %v2908_v15 = vld [vmem:[%s4070_s5 + $0x210] sm:$0xff] }
 0x14e   :  { %659 = vmatpush.msrb.mxu2 %v3173_v54 }
 0x14f   :  { %733 = vmatpush.bf16.msrb.mxu3 %v2880_v16  ;;  %v2898_v16 = vld [vmem:[%s4070_s5 + $0x1c0] sm:$0xff] }
 0x150   :  { %660 = vmatpush.msrb.mxu2 %v3178_v55 }
 0x152   :  { %661 = vmatpush.msrb.mxu2 %v3183_v56 }
 0x153   :  { %734 = vmatpush.bf16.msrb.mxu3 %v2879_v18  ;;  %v2906_v18 = vld [vmem:[%s4070_s5 + $0x200] sm:$0xff] }
 0x157   :  { %735 = vmatpush.bf16.msrb.mxu3 %v2878_v20 }
 0x15a   :  { %2143 = vmatmul.msk.f32.vlgmr.msra.gmra.mxu3 %vm225_vm0, %v2142_v22  ;;  %v2556_v22 = vld [vmem:[%s4072_s9 + $0xe0] sm:$0xf] }
 0x15b   :  { %2093 = vmatmul.msk.f32.vlgmr.msra.gmra.mxu2 %vm225_vm0, %v2092_v24  ;;  %736 = vmatpush.bf16.msrb.mxu3 %v2877_v23  ;;  %v2944_v23 = vld [vmem:[%s4072_s9 + $0xec] sm:$0xf0]  ;;  %v2684_v24 = vld [vmem:[%s4072_s9 + $0x1e0] sm:$0xf] }
 0x15c   :  { %763 = vmatpush.msra.mxu2 %v3171_v52  ;;  %v2557_v25 = vor.u32 %v2944_v23, %v2556_v22 }
 0x15e   :  { %764 = vmatpush.msra.mxu2 %v3173_v54 }
 0x15f   :  { %737 = vmatpush.bf16.msrb.mxu3 %v2876_v26  ;;  %v2976_v26 = vld [vmem:[%s4072_s9 + $0x1ec] sm:$0xf0] }
 0x160   :  { %765 = vmatpush.msra.mxu2 %v3178_v55  ;;  %v2685_v30 = vor.u32 %v2976_v26, %v2684_v24  ;;  %v2476_v26 = vld [vmem:[%s4072_s9 + $0x40] sm:$0xf] }
 0x162   :  { %766 = vmatpush.msra.mxu2 %v3183_v56 }
 0x163   :  { %2193 = vmatmul.msk.f32.vlgmr.msrb.gmra.mxu2 %vm225_vm0, %v2192_v29  ;;  %738 = vmatpush.bf16.msrb.mxu3 %v2875_v28  ;;  %v2558_v28 = vld [vmem:[%s4072_s9 + $0xf0] sm:$0xf0] }
 0x164   :  { %942 = vmatpush.bf16.msrb.mxu2 %v2897_v48 }
 0x167   :  { %739 = vmatpush.bf16.msrb.mxu3 %v2874_v31  ;;  %v2561_v31 = vor.u32 %v2942_v27, %v2558_v28  ;;  %v2924_v27 = vld [vmem:[%s4072_s9 + $0x4c] sm:$0xf0]  ;;  %v2604_v28 = vld [vmem:[%s4072_s9 + $0x140] sm:$0xf] }
 0x168   :  { %943 = vmatpush.bf16.msrb.mxu2 %v2896_v49 }
 0x16b   :  { %1078 = vmatpush.msra.mxu3 %v3171_v52  ;;  %2243 = vmatmul.msk.f32.vlgmr.msra.gmra.mxu2 %vm225_vm0, %v2242_v33  ;;  %v2686_v33 = vld [vmem:[%s4072_s9 + $0x1f0] sm:$0xf0] }
 0x16c   :  { %944 = vmatpush.bf16.msrb.mxu2 %v2895_v58  ;;  %v2689_v35 = vor.u32 %v2974_v32, %v2686_v33  ;;  %v2478_v32 = vld [vmem:[%s4072_s9 + $0x50] sm:$0xf0]  ;;  %v2954_v33 = vld [vmem:[%s4072_s9 + $0x144] sm:$0xf] }
 0x16d   :  { %1079 = vmatpush.msra.mxu3 %v3173_v54 }
 0x16f   :  { %1080 = vmatpush.msra.mxu3 %v3178_v55 }
 0x171   :  { %1081 = vmatpush.msra.mxu3 %v3183_v56 }
 0x1cd   :  { %v427_v42 = vpop.f32.mrf.mxu3 }
 0x1ce   :  { %v366_v44 = vpop.f32.mrf.mxu2 }
 0x1cf   :  { %v3355_v45 = vadd.f32 %v427_v42, %v366_v44  ;;  %v2542_v42 = vld [vmem:[%s4072_s9 + $0xd0] sm:$0xf0] }
 0x1d0   :  { %v2545_v44 = vor.u32 %v2938_v41, %v2542_v42  ;;  %v2609_v42 = vor.u32 %v2954_v33, %v2606_v34  ;;  %v2969_v34 = vld [vmem:[%s4072_s9 + $0x1b4] sm:$0xf0] }
 0x1d5   :  { %v429_v46 = vpop.f32.mrf.mxu3 }
 0x1d6   :  { %v368_v47 = vpop.f32.mrf.mxu2  ;;  %v2524_v46 = vld [vmem:[%s4072_s9 + $0xa0] sm:$0xf] }
 0x1d7   :  { %v2936_v47 = vld [vmem:[%s4072_s9 + $0xac] sm:$0xf0] }
 0x1d8   :  { %v2525_v58 = vor.u32 %v2936_v47, %v2524_v46  ;;  %v2950_v47 = vld [vmem:[%s4072_s9 + $0x124] sm:$0xf] }
 0x1dd   :  { %v558_v50 = vpop.f32.mrf.mxu3 }
 0x1de   :  { %v453_v51 = vpop.f32.mrf.mxu2  ;;  %v561_v53 = vpack.c.bf16 %v558_v50, %v558_v50  ;;  %v2652_v50 = vld [vmem:[%s4072_s9 + $0x1a0] sm:$0xf] }
 0x1df   :  { %v456_v57 = vpack.c.bf16 %v453_v51, %v453_v51  ;;  %v2968_v51 = vld [vmem:[%s4072_s9 + $0x1ac] sm:$0xf0] }
 0x1e0   :  { %635 = vmatmul.bf16.vlgmr.msrb.gmra.mxu1 %v561_v53  ;;  %v2934_v53 = vld [vmem:[%s4072_s9 + $0xa4] sm:$0xf] }
 0x1e1   :  { %530 = vmatmul.bf16.vlgmr.msrb.gmra.mxu0 %v456_v57  ;;  %973 = vmatpush.msrb.mxu1 %v3171_v52 }
 0x1e2   :  { %1152 = vmatpush.bf16.msrb.mxu0 %v2913_v1  ;;  %v2930_v1 = vld [vmem:[%s4072_s9 + $0x84] sm:$0xf] }
 0x1e3   :  { %974 = vmatpush.msrb.mxu1 %v3173_v54  ;;  %v2342_v54 = vld [vmem:[%s4071_s4 + $0x38] sm:$0xff] }
 0x1e5   :  { %975 = vmatpush.msrb.mxu1 %v3178_v55  ;;  %v2392_v55 = vld [vmem:[%s4071_s4 + $0x40] sm:$0xff] }
 0x1e6   :  { %v663_v59 = vpop.f32.mrf.mxu2  ;;  %1153 = vmatpush.bf16.msrb.mxu0 %v2912_v4  ;;  %v2638_v4 = vld [vmem:[%s4072_s9 + $0x190] sm:$0xf0] }
 0x1e7   :  { %v666_v60 = vpack.c.bf16 %v663_v59, %v663_v59  ;;  %976 = vmatpush.msrb.mxu1 %v3183_v56  ;;  %v2894_v56 = vld [vmem:[%s4070_s5 + $0x1a0] sm:$0xff]  ;;  %v2526_v59 = vld [vmem:[%s4072_s9 + $0xb0] sm:$0xf0] }
 0x1e8   :  { %945 = vmatpush.bf16.msrb.mxu2 %v2894_v56 }
 0x1e9   :  { %740 = vmatmul.bf16.vlgmr.msrb.gmra.mxu3 %v666_v60  ;;  %v2966_v60 = vld [vmem:[%s4072_s9 + $0x1a4] sm:$0xf] }
 0x1ea   :  { %1154 = vmatpush.bf16.msrb.mxu0 %v2911_v7  ;;  %1583 = vmatpush.bf16.msrb.mxu3 %v2685_v30  ;;  %v2956_v30 = vld [vmem:[%s4072_s9 + $0x14c] sm:$0xf0] }
 0x1eb   :  { %v2605_v36 = vor.u32 %v2956_v30, %v2604_v28  ;;  %v2660_v30 = vld [vmem:[%s4072_s9 + $0x1a8] sm:$0xf] }
 0x1ec   :  { %946 = vmatpush.bf16.msrb.mxu2 %v2893_v2  ;;  %v2510_v2 = vld [vmem:[%s4072_s9 + $0x90] sm:$0xf0] }
 0x1ed   :  { %v2513_v7 = vor.u32 %v2930_v1, %v2510_v2  ;;  %v2692_v2 = vld [vmem:[%s4072_s9 + $0x1e8] sm:$0xf] }
 0x1ee   :  { %v768_v63 = vpop.f32.mrf.mxu2  ;;  %1155 = vmatpush.bf16.msrb.mxu0 %v2910_v10  ;;  %1584 = vmatpush.bf16.msrb.mxu3 %v2669_v40  ;;  %v2620_v10 = vld [vmem:[%s4072_s9 + $0x160] sm:$0xf] }
 0x1ef   :  { %v771_v52 = vpack.c.bf16 %v768_v63, %v768_v63  ;;  %v2529_v63 = vor.u32 %v2934_v53, %v2526_v59  ;;  %v2588_v40 = vld [vmem:[%s4072_s9 + $0x120] sm:$0xf]  ;;  %v2916_v59 = vld [vmem:[%s4072_s9 + $0xc] sm:$0xf0] }
 0x1f0   :  { %2293 = vmatmul.msk.f32.vlgmr.msra.gmra.mxu1 %vm225_vm0, %v2292_v61  ;;  %947 = vmatpush.bf16.msrb.mxu2 %v2892_v5  ;;  %v2654_v61 = vld [vmem:[%s4072_s9 + $0x1b0] sm:$0xf0] }
 0x1f1   :  { %845 = vmatmul.bf16.vlgmr.msra.gmra.mxu0 %v771_v52  ;;  %1047 = vmatpush.bf16.msra.mxu1 %v2905_v62  ;;  %v2653_v62 = vor.u32 %v2968_v51, %v2652_v50  ;;  %v2508_v52 = vld [vmem:[%s4072_s9 + $0x80] sm:$0xf]  ;;  %v2657_v56 = vor.u32 %v2966_v60, %v2654_v61  ;;  %v2948_v61 = vld [vmem:[%s4072_s9 + $0x10c] sm:$0xf0] }
 0x1f2   :  { %1156 = vmatpush.bf16.msrb.mxu0 %v2909_v13  ;;  %v2960_v13 = vld [vmem:[%s4072_s9 + $0x16c] sm:$0xf0]  ;;  %v2444_v51 = vld [vmem:[%s4072_s9] sm:$0xf] }
 0x1f3   :  { %1585 = vmatpush.bf16.msrb.mxu3 %v2653_v62  ;;  %v2621_v24 = vor.u32 %v2960_v13, %v2620_v10  ;;  %v2572_v60 = vld [vmem:[%s4072_s9 + $0x100] sm:$0xf]  ;;  %v2445_v1 = vor.u32 %v2916_v59, %v2444_v51  ;;  %v2518_v51 = vld [vmem:[%s4072_s9 + $0x98] sm:$0xf0] }
 0x1f4   :  { %948 = vmatpush.bf16.msrb.mxu2 %v2891_v8  ;;  %v2492_v8 = vld [vmem:[%s4072_s9 + $0x60] sm:$0xf] }
 0x1f5   :  { %1048 = vmatpush.bf16.msra.mxu1 %v2904_v0  ;;  %v2964_v0 = vld [vmem:[%s4072_s9 + $0x18c] sm:$0xf0] }
 0x1f6   :  { %1157 = vmatpush.bf16.msrb.mxu0 %v2908_v15  ;;  %v2494_v15 = vld [vmem:[%s4072_s9 + $0x70] sm:$0xf0] }
 0x1f8   :  { %2343 = vmatmul.msk.f32.vlgmr.msrb.gmra.mxu1 %vm225_vm0, %v2342_v54  ;;  %949 = vmatpush.bf16.msrb.mxu2 %v2890_v11  ;;  %v2932_v54 = vld [vmem:[%s4072_s9 + $0x8c] sm:$0xf0] }
 0x1f9   :  { %2393 = vmatmul.msk.f32.vlgmr.msra.gmra.mxu3 %vm225_vm0, %v2392_v55  ;;  %1049 = vmatpush.bf16.msra.mxu1 %v2903_v3  ;;  %v2636_v55 = vld [vmem:[%s4072_s9 + $0x180] sm:$0xf]  ;;  %v2962_v3 = vld [vmem:[%s4072_s9 + $0x184] sm:$0xf]  ;;  %v2509_v5 = vor.u32 %v2932_v54, %v2508_v52  ;;  %v2446_v52 = vld [vmem:[%s4072_s9 + $0x10] sm:$0xf0] }
 0x1fa   :  { %1158 = vmatpush.bf16.msrb.mxu0 %v2907_v17  ;;  %v2946_v54 = vld [vmem:[%s4072_s9 + $0x104] sm:$0xf] }
 0x1fc   :  { %1570 = vmatpush.bf16.msra.mxu2 %v2557_v25 }
 0x1fd   :  { %1050 = vmatpush.bf16.msra.mxu1 %v2902_v6  ;;  %v2637_v6 = vor.u32 %v2964_v0, %v2636_v55  ;;  %v2574_v55 = vld [vmem:[%s4072_s9 + $0x110] sm:$0xf0]  ;;  %v2945_v0 = vld [vmem:[%s4072_s9 + $0xf4] sm:$0xf0] }
 0x1fe   :  { %1159 = vmatpush.bf16.msrb.mxu0 %v2906_v18  ;;  %v2958_v18 = vld [vmem:[%s4072_s9 + $0x164] sm:$0xf] }
 0x1ff   :  { %1586 = vmatpush.bf16.msrb.mxu3 %v2637_v6  ;;  %v2566_v6 = vld [vmem:[%s4072_s9 + $0xf8] sm:$0xf0] }
 0x200   :  { %1571 = vmatpush.bf16.msra.mxu2 %v2541_v39  ;;  %v2920_v39 = vld [vmem:[%s4072_s9 + $0x2c] sm:$0xf0] }
 0x201   :  { %1051 = vmatpush.bf16.msra.mxu1 %v2901_v9  ;;  %v2928_v9 = vld [vmem:[%s4072_s9 + $0x6c] sm:$0xf0]  ;;  %v2461_v50 = vor.u32 %v2920_v39, %v2460_v38  ;;  %v2534_v38 = vld [vmem:[%s4072_s9 + $0xb8] sm:$0xf0]  ;;  %v2967_v39 = vld [vmem:[%s4072_s9 + $0x1ac] sm:$0xf] }
 0x202   :  { %1609 = vmatpush.bf16.msra.mxu0 %v2689_v35  ;;  %v2493_v22 = vor.u32 %v2928_v9, %v2492_v8  ;;  %v2477_v35 = vor.u32 %v2924_v27, %v2476_v26  ;;  %v2694_v8 = vld [vmem:[%s4072_s9 + $0x1f8] sm:$0xf0]  ;;  %v2532_v26 = vld [vmem:[%s4072_s9 + $0xa8] sm:$0xf] }
 0x203   :  { %1587 = vmatpush.bf16.msrb.mxu3 %v2621_v24  ;;  %v2971_v24 = vld [vmem:[%s4072_s9 + $0x1cc] sm:$0xf] }
 0x204   :  { %1572 = vmatpush.bf16.msra.mxu2 %v2525_v58 }
 0x205   :  { %1052 = vmatpush.bf16.msra.mxu1 %v2900_v12  ;;  %v2641_v12 = vor.u32 %v2962_v3, %v2638_v4  ;;  %v2977_v3 = vld [vmem:[%s4072_s9 + $0x1f4] sm:$0xf0]  ;;  %v2943_v4 = vld [vmem:[%s4072_s9 + $0xec] sm:$0xf] }
 0x207   :  { %1588 = vmatpush.bf16.msrb.mxu3 %v2605_v36 }
 0x208   :  { %1573 = vmatpush.bf16.msra.mxu2 %v2509_v5  ;;  %v2573_v5 = vor.u32 %v2948_v61, %v2572_v60  ;;  %v2500_v60 = vld [vmem:[%s4072_s9 + $0x68] sm:$0xf]  ;;  %v2929_v61 = vld [vmem:[%s4072_s9 + $0x74] sm:$0xf0] }
 0x209   :  { %1053 = vmatpush.bf16.msra.mxu1 %v2899_v14  ;;  %v2926_v14 = vld [vmem:[%s4072_s9 + $0x64] sm:$0xf] }
 0x20a   :  { %v2497_v25 = vor.u32 %v2926_v14, %v2494_v15  ;;  %v2693_v14 = vor.u32 %v2977_v3, %v2692_v2  ;;  %v2548_v15 = vld [vmem:[%s4072_s9 + $0xc8] sm:$0xf]  ;;  %v2501_v2 = vor.u32 %v2929_v61, %v2500_v60  ;;  %v3004_v60 = vld [vmem:[%s4074_s7 + $0xcc] sm:$0xf0] }
 0x20c   :  { %1574 = vmatpush.bf16.msra.mxu2 %v2493_v22  ;;  %v2550_v22 = vld [vmem:[%s4072_s9 + $0xd8] sm:$0xf0] }
 0x20d   :  { %1054 = vmatpush.bf16.msra.mxu1 %v2898_v16 }
 0x210   :  { %1575 = vmatpush.bf16.msra.mxu2 %v2477_v35  ;;  %v2935_v35 = vld [vmem:[%s4072_s9 + $0xac] sm:$0xf] }
 0x211   :  { %1596 = vmatpush.bf16.msrb.mxu1 %v2561_v31  ;;  %v2922_v31 = vld [vmem:[%s4072_s9 + $0x44] sm:$0xf] }
 0x212   :  { %v2481_v37 = vor.u32 %v2922_v31, %v2478_v32  ;;  %v1172_v31 = vld [vmem:[%s4073_s1] sm:$0xff] }
 0x213   :  { %v3709_v36 = vpack.c.bf16 %v1172_v31, %v1172_v31  ;;  %v2580_v31 = vld [vmem:[%s4072_s9 + $0x108] sm:$0xf] }
 0x214   :  { %1576 = vmatpush.bf16.msra.mxu2 %v2461_v50  ;;  %v2931_v50 = vld [vmem:[%s4072_s9 + $0x8c] sm:$0xf] }
 0x215   :  { %1597 = vmatpush.bf16.msrb.mxu1 %v2545_v44  ;;  %v2918_v44 = vld [vmem:[%s4072_s9 + $0x24] sm:$0xf] }
 0x218   :  { %1577 = vmatpush.bf16.msra.mxu2 %v2445_v1  ;;  %v2630_v1 = vld [vmem:[%s4072_s9 + $0x178] sm:$0xf0] }
 0x219   :  { %1598 = vmatpush.bf16.msrb.mxu1 %v2529_v63  ;;  %v2914_v63 = vld [vmem:[%s4072_s9 + $0x4] sm:$0xf] }
 0x21a   :  { %v2449_v10 = vor.u32 %v2914_v63, %v2446_v52  ;;  %v2628_v52 = vld [vmem:[%s4072_s9 + $0x168] sm:$0xf] }
 0x21d   :  { %1599 = vmatpush.bf16.msrb.mxu1 %v2513_v7  ;;  %v2975_v7 = vld [vmem:[%s4072_s9 + $0x1ec] sm:$0xf] }
 0x221   :  { %1600 = vmatpush.bf16.msrb.mxu1 %v2497_v25  ;;  %v2678_v25 = vld [vmem:[%s4072_s9 + $0x1d8] sm:$0xf0] }
 0x222   :  { %v2681_v33 = vor.u32 %v2971_v24, %v2678_v25  ;;  %v2470_v24 = vld [vmem:[%s4072_s9 + $0x38] sm:$0xf0]  ;;  %v2951_v25 = vld [vmem:[%s4072_s9 + $0x12c] sm:$0xf] }
 0x225   :  { %1601 = vmatpush.bf16.msrb.mxu1 %v2481_v37  ;;  %v1173_v37 = vld [vmem:[%s4073_s1 + $0x8] sm:$0xff] }
 0x25d   :  { %v636_v19 = vpop.f32.mrf.mxu1 }
 0x25e   :  { %v531_v20 = vpop.f32.mrf.mxu0 }
 0x25f   :  { %v535_v21 = vadd.f32 %v531_v20, %v3355_v45  ;;  %v2670_v45 = vld [vmem:[%s4072_s9 + $0x1d0] sm:$0xf0] }
 0x260   :  { %v2673_v49 = vor.u32 %v2970_v43, %v2670_v45  ;;  %v2952_v43 = vld [vmem:[%s4072_s9 + $0x12c] sm:$0xf0]  ;;  %v2462_v45 = vld [vmem:[%s4072_s9 + $0x30] sm:$0xf0] }
 0x261   :  { %v3464_v29 = vadd.f32 %v636_v19, %v535_v21  ;;  %v2622_v19 = vld [vmem:[%s4072_s9 + $0x170] sm:$0xf0]  ;;  %v2465_v58 = vor.u32 %v2918_v44, %v2462_v45  ;;  %v2516_v44 = vld [vmem:[%s4072_s9 + $0x88] sm:$0xf]  ;;  %v2933_v45 = vld [vmem:[%s4072_s9 + $0x94] sm:$0xf0] }
 0x262   :  { %1610 = vmatpush.bf16.msra.mxu0 %v2673_v49 }
 0x263   :  { %1602 = vmatpush.bf16.msrb.mxu1 %v2465_v58  ;;  %v2517_v58 = vor.u32 %v2933_v45, %v2516_v44  ;;  %v2814_v44 = vld [vmem:[%s4074_s7 + $0xf0] sm:$0xf0]  ;;  %v2820_v45 = vld [vmem:[%s4074_s7 + $0xe8] sm:$0xf] }
 0x265   :  { %v638_v48 = vpop.f32.mrf.mxu1 }
 0x266   :  { %v533_v57 = vpop.f32.mrf.mxu0  ;;  %1611 = vmatpush.bf16.msra.mxu0 %v2657_v56  ;;  %v2590_v48 = vld [vmem:[%s4072_s9 + $0x130] sm:$0xf0]  ;;  %v2564_v56 = vld [vmem:[%s4072_s9 + $0xe8] sm:$0xf] }
 0x267   :  { %v2589_v57 = vor.u32 %v2952_v43, %v2588_v40  ;;  %v2593_v62 = vor.u32 %v2950_v47, %v2590_v48  ;;  %v2565_v13 = vor.u32 %v2945_v0, %v2564_v56  ;;  %1603 = vmatpush.bf16.msrb.mxu1 %v2449_v10  ;;  %v2662_v40 = vld [vmem:[%s4072_s9 + $0x1b8] sm:$0xf0]  ;;  %v2661_v43 = vor.u32 %v2969_v34, %v2660_v30  ;;  %v2644_v48 = vld [vmem:[%s4072_s9 + $0x188] sm:$0xf]  ;;  %v2959_v0 = vld [vmem:[%s4072_s9 + $0x16c] sm:$0xf] }
 0x268   :  { %v2665_v47 = vor.u32 %v2967_v39, %v2662_v40  ;;  %v2502_v56 = vld [vmem:[%s4072_s9 + $0x78] sm:$0xf0]  ;;  %v2923_v10 = vld [vmem:[%s4072_s9 + $0x4c] sm:$0xf]  ;;  %v2812_v40 = vld [vmem:[%s4074_s7 + $0xe0] sm:$0xf] }
 0x269   :  { %1589 = vmatpush.bf16.msrb.mxu3 %v2589_v57  ;;  %v2646_v57 = vld [vmem:[%s4072_s9 + $0x198] sm:$0xf0] }
 0x26a   :  { %1612 = vmatpush.bf16.msra.mxu0 %v2641_v12  ;;  %v2582_v39 = vld [vmem:[%s4072_s9 + $0x118] sm:$0xf0] }
 0x26c   :  { %v741_v11 = vpop.f32.mrf.mxu3 }
 0x26d   :  { %v745_v16 = vadd.f32 %v741_v11, %v3464_v29  ;;  %v873_v17 = vpop.f32.mrf.mxu1  ;;  %v2625_v29 = vor.u32 %v2958_v18, %v2622_v19  ;;  %v2577_v11 = vor.u32 %v2946_v54, %v2574_v55  ;;  %v2697_v18 = vor.u32 %v2975_v7, %v2694_v8  ;;  %v2676_v19 = vld [vmem:[%s4072_s9 + $0x1c8] sm:$0xf]  ;;  %1590 = vmatpush.bf16.msrb.mxu3 %v2573_v5  ;;  %v2961_v54 = vld [vmem:[%s4072_s9 + $0x174] sm:$0xf0]  ;;  %v2927_v55 = vld [vmem:[%s4072_s9 + $0x6c] sm:$0xf] }
 0x26e   :  { %v846_v20 = vpop.f32.mrf.mxu0  ;;  %v876_v21 = vpack.c.bf16 %v873_v17, %v873_v17  ;;  %v2569_v17 = vor.u32 %v2943_v4, %v2566_v6  ;;  %v2629_v3 = vor.u32 %v2961_v54, %v2628_v52  ;;  %v2484_v4 = vld [vmem:[%s4072_s9 + $0x48] sm:$0xf]  ;;  %v2925_v5 = vld [vmem:[%s4072_s9 + $0x54] sm:$0xf0]  ;;  %v2505_v6 = vor.u32 %v2927_v55, %v2502_v56  ;;  %v2798_v52 = vld [vmem:[%s4074_s7 + $0xd0] sm:$0xf0] }
 0x26f   :  { %v3569_v23 = vadd.f32 %v846_v20, %v745_v16  ;;  %1613 = vmatpush.bf16.msra.mxu0 %v2625_v29  ;;  %v2941_v16 = vld [vmem:[%s4072_s9 + $0xd4] sm:$0xf0]  ;;  %v2633_v7 = vor.u32 %v2959_v0, %v2630_v1  ;;  %v2612_v8 = vld [vmem:[%s4072_s9 + $0x148] sm:$0xf]  ;;  %v3003_v56 = vld [vmem:[%s4074_s7 + $0xcc] sm:$0xf] }
 0x270   :  { %950 = vmatmul.bf16.vlgmr.msrb.gmra.mxu2 %v876_v21  ;;  %v2973_v20 = vld [vmem:[%s4072_s9 + $0x1d4] sm:$0xf0]  ;;  %v2939_v21 = vld [vmem:[%s4072_s9 + $0xcc] sm:$0xf]  ;;  %v2549_v27 = vor.u32 %v2941_v16, %v2548_v15  ;;  %v2468_v16 = vld [vmem:[%s4072_s9 + $0x28] sm:$0xf] }
 0x271   :  { %1622 = vmatpush.bf16.msrb.mxu2 %v2565_v13  ;;  %1635 = vmatpush.bf16.msra.mxu3 %v2693_v14  ;;  %v2677_v28 = vor.u32 %v2973_v20, %v2676_v19  ;;  %v2937_v29 = vld [vmem:[%s4072_s9 + $0xb4] sm:$0xf0]  ;;  %v2553_v32 = vor.u32 %v2939_v21, %v2550_v22  ;;  %v2614_v13 = vld [vmem:[%s4072_s9 + $0x158] sm:$0xf0]  ;;  %v2485_v14 = vor.u32 %v2925_v5, %v2484_v4  ;;  %v2596_v20 = vld [vmem:[%s4072_s9 + $0x128] sm:$0xf] }
 0x272   :  { %v2953_v21 = vld [vmem:[%s4072_s9 + $0x134] sm:$0xf0]  ;;  %v2919_v22 = vld [vmem:[%s4072_s9 + $0x2c] sm:$0xf]  ;;  %v2804_v54 = vld [vmem:[%s4074_s7 + $0xc8] sm:$0xf] }
 0x273   :  { %1614 = vmatpush.bf16.msra.mxu0 %v2609_v42  ;;  %v2533_v42 = vor.u32 %v2937_v29, %v2532_v26  ;;  %v2598_v26 = vld [vmem:[%s4072_s9 + $0x138] sm:$0xf0]  ;;  %v2597_v30 = vor.u32 %v2953_v21, %v2596_v20  ;;  %v3005_v55 = vld [vmem:[%s4074_s7 + $0xd4] sm:$0xf0]  ;;  %v3000_v4 = vld [vmem:[%s4074_s7 + $0xac] sm:$0xf0] }
 0x274   :  { %v743_v41 = vpop.f32.mrf.mxu3  ;;  %v2601_v34 = vor.u32 %v2951_v25, %v2598_v26  ;;  %v2806_v0 = vld [vmem:[%s4074_s7 + $0xd8] sm:$0xf0]  ;;  %v2805_v5 = vor.u32 %v3005_v55, %v2804_v54  ;;  %v2997_v20 = vld [vmem:[%s4074_s7 + $0x94] sm:$0xf0]  ;;  %v2995_v21 = vld [vmem:[%s4074_s7 + $0x8c] sm:$0xf] }
 0x275   :  { %v978_v46 = vpop.f32.mrf.mxu1  ;;  %v3723_v41 = vpack.c.bf16 %v1173_v37, %v1173_v37  ;;  %1623 = vmatpush.bf16.msrb.mxu2 %v2549_v27  ;;  %1636 = vmatpush.bf16.msra.mxu3 %v2677_v28  ;;  %v2452_v27 = vld [vmem:[%s4072_s9 + $0x8] sm:$0xf]  ;;  %v2917_v28 = vld [vmem:[%s4072_s9 + $0x14] sm:$0xf0]  ;;  %v2454_v37 = vld [vmem:[%s4072_s9 + $0x18] sm:$0xf0] }
 0x276   :  { %v981_v49 = vpack.c.bf16 %v978_v46, %v978_v46  ;;  %v848_v53 = vpop.f32.mrf.mxu0  ;;  %v2537_v46 = vor.u32 %v2935_v35, %v2534_v38  ;;  %v2915_v35 = vld [vmem:[%s4072_s9 + $0xc] sm:$0xf]  ;;  %v2985_v54 = vld [vmem:[%s4074_s7 + $0x34] sm:$0xf0] }
 0x277   :  { %1615 = vmatpush.bf16.msra.mxu0 %v2593_v62  ;;  %v2963_v53 = vld [vmem:[%s4072_s9 + $0x18c] sm:$0xf]  ;;  %1591 = vmatmul.bf16.vlgmr.msrb.gmra.mxu3 %v3723_v41  ;;  %v2521_v62 = vor.u32 %v2931_v50, %v2518_v51  ;;  %v2822_v50 = vld [vmem:[%s4074_s7 + $0xf8] sm:$0xf0]  ;;  %v2457_v51 = vor.u32 %v2915_v35, %v2454_v37 }
 0x278   :  { %1055 = vmatmul.bf16.vlgmr.msra.gmra.mxu1 %v981_v49  ;;  %v2965_v49 = vld [vmem:[%s4072_s9 + $0x194] sm:$0xf0]  ;;  %v2649_v63 = vor.u32 %v2963_v53, %v2646_v57  ;;  %v2947_v38 = vld [vmem:[%s4072_s9 + $0x10c] sm:$0xf] }
 0x279   :  { %1648 = vmatpush.bf16.msra.mxu1 %v2569_v17  ;;  %1624 = vmatpush.bf16.msrb.mxu2 %v2533_v42  ;;  %v2645_v59 = vor.u32 %v2965_v49, %v2644_v48  ;;  %v2921_v17 = vld [vmem:[%s4072_s9 + $0x34] sm:$0xf0]  ;;  %v3008_v42 = vld [vmem:[%s4074_s7 + $0xec] sm:$0xf0]  ;;  %v3007_v49 = vld [vmem:[%s4074_s7 + $0xec] sm:$0xf]  ;;  %v2585_v53 = vor.u32 %v2947_v38, %v2582_v39 }
 0x27a   :  { %1637 = vmatpush.bf16.msra.mxu3 %v2661_v43  ;;  %v2469_v29 = vor.u32 %v2921_v17, %v2468_v16  ;;  %v3006_v43 = vld [vmem:[%s4074_s7 + $0xe4] sm:$0xf]  ;;  %v3009_v48 = vld [vmem:[%s4074_s7 + $0xf4] sm:$0xf0]  ;;  %v2813_v57 = vor.u32 %v3008_v42, %v2812_v40  ;;  %v2996_v16 = vld [vmem:[%s4074_s7 + $0x8c] sm:$0xf0] }
 0x27b   :  { %1616 = vmatpush.bf16.msra.mxu0 %v2577_v11  ;;  %v2486_v11 = vld [vmem:[%s4072_s9 + $0x58] sm:$0xf0]  ;;  %v2821_v61 = vor.u32 %v3009_v48, %v2820_v45  ;;  %v2991_v38 = vld [vmem:[%s4074_s7 + $0x6c] sm:$0xf]  ;;  %v2732_v40 = vld [vmem:[%s4074_s7 + $0x40] sm:$0xf] }
 0x27c   :  { %v1083_v9 = vpop.f32.mrf.mxu3  ;;  %v2758_v39 = vld [vmem:[%s4074_s7 + $0x78] sm:$0xf0]  ;;  %v2734_v45 = vld [vmem:[%s4074_s7 + $0x50] sm:$0xf0]  ;;  %v2740_v48 = vld [vmem:[%s4074_s7 + $0x48] sm:$0xf] }
 0x27d   :  { %v1086_v12 = vpack.c.bf16 %v1083_v9, %v1083_v9  ;;  %1649 = vmatpush.bf16.msra.mxu1 %v2553_v32  ;;  %1625 = vmatpush.bf16.msrb.mxu2 %v2517_v58  ;;  %v2957_v9 = vld [vmem:[%s4072_s9 + $0x154] sm:$0xf0]  ;;  %v2817_v58 = vor.u32 %v3006_v43, %v2814_v44  ;;  %v2761_v42 = vor.u32 %v2991_v38, %v2758_v39  ;;  %v2988_v43 = vld [vmem:[%s4074_s7 + $0x4c] sm:$0xf0]  ;;  %v2986_v44 = vld [vmem:[%s4074_s7 + $0x44] sm:$0xf] }
 0x27e   :  { %1638 = vmatpush.bf16.msra.mxu3 %v2645_v59  ;;  %v2613_v15 = vor.u32 %v2957_v9, %v2612_v8  ;;  %v2949_v32 = vld [vmem:[%s4072_s9 + $0x114] sm:$0xf0]  ;;  %v2796_v59 = vld [vmem:[%s4074_s7 + $0xc0] sm:$0xf]  ;;  %v2782_v8 = vld [vmem:[%s4074_s7 + $0xb0] sm:$0xf0] }
 0x27f   :  { %1160 = vmatmul.bf16.vlgmr.msrb.gmra.mxu0 %v1086_v12  ;;  %v2955_v12 = vld [vmem:[%s4072_s9 + $0x14c] sm:$0xf]  ;;  %v2797_v1 = vor.u32 %v3004_v60, %v2796_v59  ;;  %v2788_v9 = vld [vmem:[%s4074_s7 + $0xa8] sm:$0xf]  ;;  %v2984_v59 = vld [vmem:[%s4074_s7 + $0x2c] sm:$0xf0] }
 0x280   :  { %1661 = vmatpush.bf16.msrb.mxu0 %v2697_v18  ;;  %1578 = vmatmul.bf16.vlgmr.msra.gmra.mxu2 %v3709_v36  ;;  %v2489_v18 = vor.u32 %v2923_v10, %v2486_v11  ;;  %v2617_v19 = vor.u32 %v2955_v12, %v2614_v13  ;;  %v3001_v10 = vld [vmem:[%s4074_s7 + $0xb4] sm:$0xf0]  ;;  %v2999_v11 = vld [vmem:[%s4074_s7 + $0xac] sm:$0xf]  ;;  %v2790_v12 = vld [vmem:[%s4074_s7 + $0xb8] sm:$0xf0] }
 0x281   :  { %1650 = vmatpush.bf16.msra.mxu1 %v2537_v46  ;;  %1626 = vmatpush.bf16.msrb.mxu2 %v2501_v2  ;;  %v2453_v46 = vor.u32 %v2917_v28, %v2452_v27  ;;  %v2789_v17 = vor.u32 %v3001_v10, %v2788_v9  ;;  %v2748_v28 = vld [vmem:[%s4074_s7 + $0x60] sm:$0xf]  ;;  %v2982_v60 = vld [vmem:[%s4074_s7 + $0x24] sm:$0xf]  ;;  %v2983_v55 = vld [vmem:[%s4074_s7 + $0x2c] sm:$0xf] }
 0x282   :  { %1639 = vmatpush.bf16.msra.mxu3 %v2629_v3  ;;  %v2780_v3 = vld [vmem:[%s4074_s7 + $0xa0] sm:$0xf] }
 0x283   :  { %v2781_v13 = vor.u32 %v3000_v4, %v2780_v3  ;;  %v2980_v3 = vld [vmem:[%s4074_s7 + $0xc] sm:$0xf0]  ;;  %v2978_v4 = vld [vmem:[%s4074_s7 + $0x4] sm:$0xf] }
 0x284   :  { %1662 = vmatpush.bf16.msrb.mxu0 %v2681_v33  ;;  %v2473_v33 = vor.u32 %v2919_v22, %v2470_v24  ;;  %v2774_v22 = vld [vmem:[%s4074_s7 + $0x98] sm:$0xf0] }
 0x285   :  { %1651 = vmatpush.bf16.msra.mxu1 %v2521_v62  ;;  %1627 = vmatpush.bf16.msrb.mxu2 %v2485_v14  ;;  %v2825_v62 = vor.u32 %v3007_v49, %v2822_v50  ;;  %v2777_v27 = vor.u32 %v2995_v21, %v2774_v22  ;;  %v2989_v49 = vld [vmem:[%s4074_s7 + $0x54] sm:$0xf0]  ;;  %v2987_v50 = vld [vmem:[%s4074_s7 + $0x4c] sm:$0xf] }
 0x286   :  { %1640 = vmatpush.bf16.msra.mxu3 %v2613_v15  ;;  %v2764_v15 = vld [vmem:[%s4074_s7 + $0x80] sm:$0xf] }
 0x287   :  { %v2765_v24 = vor.u32 %v2996_v16, %v2764_v15 }
 0x288   :  { %1604 = vmatmul.bf16.vlgmr.msrb.gmra.mxu1 %v3709_v36  ;;  %1663 = vmatpush.bf16.msrb.mxu0 %v2665_v47  ;;  %v2581_v47 = vor.u32 %v2949_v32, %v2580_v31  ;;  %v2750_v32 = vld [vmem:[%s4074_s7 + $0x70] sm:$0xf0] }
 0x289   :  { %1652 = vmatpush.bf16.msra.mxu1 %v2505_v6  ;;  %1628 = vmatpush.bf16.msrb.mxu2 %v2469_v29  ;;  %v2809_v6 = vor.u32 %v3003_v56, %v2806_v0  ;;  %v2992_v29 = vld [vmem:[%s4074_s7 + $0x6c] sm:$0xf0]  ;;  %v2726_v56 = vld [vmem:[%s4074_s7 + $0x38] sm:$0xf0] }
 0x28a   :  { %1641 = vmatpush.bf16.msra.mxu3 %v2597_v30  ;;  %v2990_v30 = vld [vmem:[%s4074_s7 + $0x64] sm:$0xf]  ;;  %v2749_v31 = vor.u32 %v2992_v29, %v2748_v28 }
 0x28b   :  { %v2753_v35 = vor.u32 %v2990_v30, %v2750_v32 }
 0x28c   :  { %1664 = vmatpush.bf16.msrb.mxu0 %v2649_v63  ;;  %v3002_v63 = vld [vmem:[%s4074_s7 + $0xc4] sm:$0xf] }
 0x28d   :  { %1653 = vmatpush.bf16.msra.mxu1 %v2489_v18  ;;  %1629 = vmatpush.bf16.msrb.mxu2 %v2453_v46  ;;  %v2801_v2 = vor.u32 %v3002_v63, %v2798_v52  ;;  %v2793_v18 = vor.u32 %v2999_v11, %v2790_v12  ;;  %v2733_v46 = vor.u32 %v2988_v43, %v2732_v40  ;;  %v2724_v63 = vld [vmem:[%s4074_s7 + $0x28] sm:$0xf]  ;;  %v2979_v11 = vld [vmem:[%s4074_s7 + $0xc] sm:$0xf]  ;;  %v2710_v12 = vld [vmem:[%s4074_s7 + $0x18] sm:$0xf0] }
 0x28e   :  { %1642 = vmatpush.bf16.msra.mxu3 %v2581_v47  ;;  %v2737_v47 = vor.u32 %v2986_v44, %v2734_v45  ;;  %v2725_v0 = vor.u32 %v2985_v54, %v2724_v63 }
 0x28f   :  { %1617 = vmatmul.bf16.vlgmr.msra.gmra.mxu0 %v3723_v41 }
 0x290   :  { %1665 = vmatpush.bf16.msrb.mxu0 %v2633_v7  ;;  %v2998_v7 = vld [vmem:[%s4074_s7 + $0xa4] sm:$0xf]  ;;  %1630 = vmatmul.bf16.vlgmr.msrb.gmra.mxu2 %v3709_v36 }
 0x291   :  { %1654 = vmatpush.bf16.msra.mxu1 %v2473_v33  ;;  %1877 = vmatpush.bf16.msra.mxu2 %v2813_v57  ;;  %v2785_v14 = vor.u32 %v2998_v7, %v2782_v8  ;;  %v2756_v33 = vld [vmem:[%s4074_s7 + $0x68] sm:$0xf]  ;;  %v2981_v8 = vld [vmem:[%s4074_s7 + $0x14] sm:$0xf0] }
 0x292   :  { %1890 = vmatpush.bf16.msrb.mxu3 %v2817_v58  ;;  %v2716_v58 = vld [vmem:[%s4074_s7 + $0x20] sm:$0xf]  ;;  %v2708_v7 = vld [vmem:[%s4074_s7 + $0x8] sm:$0xf] }
 0x293   :  { %1643 = vmatmul.bf16.vlgmr.msra.gmra.mxu3 %v3723_v41  ;;  %v2709_v10 = vor.u32 %v2981_v8, %v2708_v7 }
 0x294   :  { %1666 = vmatpush.bf16.msrb.mxu0 %v2617_v19  ;;  %v2772_v19 = vld [vmem:[%s4074_s7 + $0x88] sm:$0xf] }
 0x295   :  { %1655 = vmatpush.bf16.msra.mxu1 %v2457_v51  ;;  %1878 = vmatpush.bf16.msra.mxu2 %v2797_v1  ;;  %v2773_v26 = vor.u32 %v2997_v20, %v2772_v19  ;;  %v2741_v51 = vor.u32 %v2989_v49, %v2740_v48  ;;  %v2729_v1 = vor.u32 %v2983_v55, %v2726_v56 }
 0x296   :  { %1891 = vmatpush.bf16.msrb.mxu3 %v2801_v2  ;;  %v2700_v2 = vld [vmem:[%s4074_s7] sm:$0xf] }
 0x298   :  { %1667 = vmatpush.bf16.msrb.mxu0 %v2601_v34  ;;  %1656 = vmatmul.bf16.vlgmr.msra.gmra.mxu1 %v3709_v36  ;;  %v2994_v36 = vld [vmem:[%s4074_s7 + $0x84] sm:$0xf]  ;;  %v2993_v34 = vld [vmem:[%s4074_s7 + $0x74] sm:$0xf0] }
 0x299   :  { %1903 = vmatpush.bf16.msrb.mxu1 %v2821_v61  ;;  %1879 = vmatpush.bf16.msra.mxu2 %v2781_v13  ;;  %v2757_v37 = vor.u32 %v2993_v34, %v2756_v33  ;;  %v2717_v61 = vor.u32 %v2984_v59, %v2716_v58  ;;  %v2713_v13 = vor.u32 %v2979_v11, %v2710_v12 }
 0x29a   :  { %1892 = vmatpush.bf16.msrb.mxu3 %v2785_v14 }
 0x29c   :  { %1668 = vmatpush.bf16.msrb.mxu0 %v2585_v53  ;;  %v2742_v53 = vld [vmem:[%s4074_s7 + $0x58] sm:$0xf0] }
 0x29d   :  { %1904 = vmatpush.bf16.msrb.mxu1 %v2805_v5  ;;  %1880 = vmatpush.bf16.msra.mxu2 %v2765_v24  ;;  %v2745_v57 = vor.u32 %v2987_v50, %v2742_v53  ;;  %v2701_v5 = vor.u32 %v2980_v3, %v2700_v2  ;;  %v1240_v24 = vld [vmem:[%s4076_s10] sm:$0xf] }
 0x29f   :  { %1669 = vmatmul.bf16.vlgmr.msrb.gmra.mxu0 %v3723_v41  ;;  %v2766_v41 = vld [vmem:[%s4074_s7 + $0x90] sm:$0xf0] }
 0x2a0   :  { %1916 = vmatpush.bf16.msra.mxu0 %v2825_v62  ;;  %v2769_v25 = vor.u32 %v2994_v36, %v2766_v41  ;;  %v2718_v62 = vld [vmem:[%s4074_s7 + $0x30] sm:$0xf0]  ;;  %v3011_v36 = vld [vmem:[%s4075_s6] ss:$0 sm:$0xff] }
 0x2a1   :  { %1905 = vmatpush.bf16.msrb.mxu1 %v2789_v17  ;;  %1881 = vmatpush.bf16.msra.mxu2 %v2749_v31  ;;  %v2721_v52 = vor.u32 %v2982_v60, %v2718_v62  ;;  %v1707_v60 = vld [vmem:[%s4077_s8] sm:$0xf] }
 0x2a2   :  { %1893 = vmatpush.bf16.msrb.mxu3 %v2769_v25  ;;  %v1712_v62 = vperm.slane %v1707_v60, 3  ;;  %v1709_v56 = vperm.slane %v1707_v60, 0 }
 0x2a4   :  { %1917 = vmatpush.bf16.msra.mxu0 %v2809_v6  ;;  %v2702_v6 = vld [vmem:[%s4074_s7 + $0x10] sm:$0xf0] }
 0x2a5   :  { %1906 = vmatpush.bf16.msrb.mxu1 %v2773_v26  ;;  %1882 = vmatpush.bf16.msra.mxu2 %v2733_v46  ;;  %v2705_v9 = vor.u32 %v2978_v4, %v2702_v6  ;;  %v1244_v46 = vperm.slane %v1240_v24, 2 }
 0x2a6   :  { %1894 = vmatpush.bf16.msrb.mxu3 %v2753_v35 }
 0x2a8   :  { %1918 = vmatpush.bf16.msra.mxu0 %v2793_v18 }
 0x2a9   :  { %1907 = vmatpush.bf16.msrb.mxu1 %v2757_v37  ;;  %1883 = vmatpush.bf16.msra.mxu2 %v2717_v61  ;;  %v1711_v61 = vperm.slane %v1707_v60, 2 }
 0x2aa   :  { %1895 = vmatpush.bf16.msrb.mxu3 %v2737_v47 }
 0x2ac   :  { %1919 = vmatpush.bf16.msra.mxu0 %v2777_v27  ;;  %v1242_v27 = vperm.slane %v1240_v24, 0 }
 0x2ad   :  { %1908 = vmatpush.bf16.msrb.mxu1 %v2741_v51  ;;  %1884 = vmatpush.bf16.msra.mxu2 %v2701_v5 }
 0x2ae   :  { %1896 = vmatpush.bf16.msrb.mxu3 %v2721_v52 }
 0x2b0   :  { %1920 = vmatpush.bf16.msra.mxu0 %v2761_v42  ;;  %v1245_v42 = vperm.slane %v1240_v24, 3 }
 0x2b1   :  { %1909 = vmatpush.bf16.msrb.mxu1 %v2725_v0  ;;  %v1710_v0 = vperm.slane %v1707_v60, 1 }
 0x2b2   :  { %1897 = vmatpush.bf16.msrb.mxu3 %v2705_v9 }
 0x2b4   :  { %1921 = vmatpush.bf16.msra.mxu0 %v2745_v57 }
 0x2b5   :  { %1910 = vmatpush.bf16.msrb.mxu1 %v2709_v10 }
 0x2b8   :  { %1922 = vmatpush.bf16.msra.mxu0 %v2729_v1 }
 0x2bc   :  { %1923 = vmatpush.bf16.msra.mxu0 %v2713_v13 }
 0x2f3   :  { %v951_v14 = vpop.f32.mrf.mxu2 }
 0x2f4   :  { %v955_v16 = vadd.f32 %v951_v14, %v3569_v23  ;;  %v1243_v23 = vperm.slane %v1240_v24, 1 }
 0x2f5   :  { %v1056_v15 = vpop.f32.mrf.mxu1 }
 0x2f6   :  { %v1060_v17 = vadd.f32 %v1056_v15, %v955_v16 }
 0x2fa   :  { %v1592_v32 = vpop.f32.mrf.mxu3 }
 0x2fb   :  { %v953_v18 = vpop.f32.mrf.mxu2 }
 0x2fc   :  { %v1161_v41 = vpop.f32.mrf.mxu0 }
 0x2fd   :  { %v1165_v19 = vadd.f32 %v1161_v41, %v1060_v17  ;;  %v1058_v20 = vpop.f32.mrf.mxu1 }
 0x2ff   :  { %v1170_v21 = vadd.f32 %v3011_v36, %v1165_v19 }
 0x301   :  { %v1171_v22 = vmax.f32 %v1170_v21, 0.0 }
 0x302   :  { %v1594_v39 = vpop.f32.mrf.mxu3 }
 0x303   :  { %v1706_v25 = vpack.c.bf16 %v1171_v22, %v1171_v22  ;;  %v1579_v29 = vpop.f32.mrf.mxu2 }
 0x304   :  { %v1163_v26 = vpop.f32.mrf.mxu0  ;;  %v1580_v30 = vadd.f32 %v1579_v29, %v1242_v27 }
 0x305   :  { %1885 = vmatmul.bf16.vlgmr.msra.gmra.mxu2 %v1706_v25  ;;  %1898 = vmatmul.bf16.vlgmr.msrb.gmra.mxu3 %v1706_v25  ;;  %v1605_v28 = vpop.f32.mrf.mxu1 }
 0x306   :  { %1911 = vmatmul.bf16.vlgmr.msrb.gmra.mxu1 %v1706_v25  ;;  %1924 = vmatmul.bf16.vlgmr.msra.gmra.mxu0 %v1706_v25  ;;  %v1606_v31 = vadd.f32 %v1605_v28, %v1243_v23  ;;  %v1593_v33 = vadd.f32 %v1592_v32, %v1580_v30 }
 0x30b   :  { %v1581_v38 = vpop.f32.mrf.mxu2 }
 0x30c   :  { %v1618_v34 = vpop.f32.mrf.mxu0 }
 0x30d   :  { %v1619_v35 = vadd.f32 %v1618_v34, %v1606_v31  ;;  %v1607_v37 = vpop.f32.mrf.mxu1 }
 0x313   :  { %v1631_v48 = vpop.f32.mrf.mxu2 }
 0x314   :  { %v1620_v40 = vpop.f32.mrf.mxu0  ;;  %v1632_v50 = vadd.f32 %v1631_v48, %v1244_v46 }
 0x315   :  { %v1657_v43 = vpop.f32.mrf.mxu1 }
 0x316   :  { %v1658_v45 = vadd.f32 %v1657_v43, %v1245_v42  ;;  %v1644_v49 = vpop.f32.mrf.mxu3 }
 0x317   :  { %v1645_v51 = vadd.f32 %v1644_v49, %v1632_v50 }
 0x31b   :  { %v1633_v58 = vpop.f32.mrf.mxu2 }
 0x31c   :  { %v1670_v44 = vpop.f32.mrf.mxu0 }
 0x31d   :  { %v1671_v47 = vadd.f32 %v1670_v44, %v1658_v45  ;;  %v1659_v53 = vpop.f32.mrf.mxu1 }
 0x31e   :  { %v1646_v59 = vpop.f32.mrf.mxu3 }
 0x324   :  { %v1672_v57 = vpop.f32.mrf.mxu0 }
 0x383   :  { %v1912_v63 = vpop.f32.mrf.mxu1  ;;  %v1925_v52 = vpop.f32.mrf.mxu0 }
 0x384   :  { %v1913_v54 = vadd.f32 %v1912_v63, %v1711_v61  ;;  %v1926_v55 = vadd.f32 %v1925_v52, %v1712_v62 }
 0x386   :  { %v1931_v1 = vadd.f32 %v1913_v54, %v1645_v51  ;;  %v1932_v2 = vadd.f32 %v1926_v55, %v1671_v47 }
 0x388   :  { %v1935_v3 = vmax.f32 %v1931_v1, 0.0  ;;  %v1936_v4 = vmax.f32 %v1932_v2, 0.0  ;;  %v1886_v5 = vpop.f32.mrf.mxu2  ;;  %v1899_v6 = vpop.f32.mrf.mxu3 }
 0x389   :  { %v1887_v7 = vadd.f32 %v1886_v5, %v1709_v56  ;;  %v1900_v8 = vadd.f32 %v1899_v6, %v1710_v0 }
 0x38a   :  { %1939 = vst [vmem:[%s4078_s11 + $0x10] sm:$0xff] %v1935_v3 }
 0x38b   :  { %1940 = vst [vmem:[%s4078_s11 + $0x18] sm:$0xff] %v1936_v4  ;;  %v1929_v9 = vadd.f32 %v1887_v7, %v1593_v33  ;;  %v1930_v10 = vadd.f32 %v1900_v8, %v1619_v35  ;;  %v1914_v11 = vpop.f32.mrf.mxu1  ;;  %v1927_v12 = vpop.f32.mrf.mxu0 }
 0x38d   :  { %v1933_v13 = vmax.f32 %v1929_v9, 0.0  ;;  %v1934_v14 = vmax.f32 %v1930_v10, 0.0 }
 0x38f   :  { %1937 = vst [vmem:[%s4078_s11] sm:$0xff] %v1933_v13 }
 0x390   :  { %1938 = vst [vmem:[%s4078_s11 + $0x8] sm:$0xff] %v1934_v14  ;;  %v1888_v15 = vpop.f32.mrf.mxu2  ;;  %v1901_v16 = vpop.f32.mrf.mxu3 }

// kernel: _lambda_.10
= control target key start
LH: loop header
LB: loop body
LE: loop exit
PB: predicated region body
PF: predicated region fallthrough
CT: control target
= control target key end

     0   :  { %vm351_vm0 = vcmask 64512   ;;  %s3048_s1 = inlined_call_operand.vmem [shape: bf16[512,128], index: 1, kind: input, shape index: {}]   ;;  %s3049_s2 = inlined_call_operand.vmem [shape: f32[1,128], index: 2, kind: input, shape index: {}]   ;;  %s3050_s0 = inlined_call_operand.vmem [shape: f32[8,512], index: 0, kind: input, shape index: {}]   ;;  %s3051_s3 = inlined_call_operand.vmem [shape: f32[9,8,8], index: 3, kind: input, shape index: {}]   ;;  %s3052_s4 = inlined_call_operand.vmem [shape: bf16[9,128,128], index: 4, kind: input, shape index: {}]   ;;  %s3053_s5 = inlined_call_operand.vmem [shape: f32[1,128], index: 5, kind: input, shape index: {}]   ;;  %s3054_s6 = inlined_call_operand.vmem [shape: bf16[128,512], index: 6, kind: input, shape index: {}]   ;;  %s3055_s7 = inlined_call_operand.vmem [shape: f32[1,512], index: 7, kind: input, shape index: {}]   ;;  %s3056_s8 = inlined_call_operand.vmem [shape: f32[8,512], index: 8, kind: output, shape index: {}]  }
   0x1   :  { %v2265_v0 = vld [vmem:[%s3048_s1 + $0x38] sm:$0xff]  ;;  %v2264_v4 = vld [vmem:[%s3048_s1 + $0x30] sm:$0xff]  ;;  %v2263_v8 = vld [vmem:[%s3048_s1 + $0x28] sm:$0xff] }
   0x2   :  { %v2273_v1 = vld [vmem:[%s3048_s1 + $0x78] sm:$0xff]  ;;  %297 = vmatpush.bf16.msra.mxu0 %v2265_v0  ;;  %v2272_v5 = vld [vmem:[%s3048_s1 + $0x70] sm:$0xff]  ;;  %v2271_v9 = vld [vmem:[%s3048_s1 + $0x68] sm:$0xff] }
   0x3   :  { %v2281_v2 = vld [vmem:[%s3048_s1 + $0xb8] sm:$0xff]  ;;  %310 = vmatpush.bf16.msra.mxu1 %v2273_v1  ;;  %v2280_v6 = vld [vmem:[%s3048_s1 + $0xb0] sm:$0xff]  ;;  %v2279_v10 = vld [vmem:[%s3048_s1 + $0xa8] sm:$0xff] }
   0x4   :  { %v2289_v3 = vld [vmem:[%s3048_s1 + $0xf8] sm:$0xff]  ;;  %323 = vmatpush.bf16.msra.mxu2 %v2281_v2  ;;  %v2288_v7 = vld [vmem:[%s3048_s1 + $0xf0] sm:$0xff]  ;;  %v2287_v11 = vld [vmem:[%s3048_s1 + $0xe8] sm:$0xff] }
   0x5   :  { %336 = vmatpush.bf16.msra.mxu3 %v2289_v3  ;;  %v2262_v12 = vld [vmem:[%s3048_s1 + $0x20] sm:$0xff]  ;;  %v2261_v16 = vld [vmem:[%s3048_s1 + $0x18] sm:$0xff]  ;;  %v2260_v20 = vld [vmem:[%s3048_s1 + $0x10] sm:$0xff] }
   0x6   :  { %298 = vmatpush.bf16.msra.mxu0 %v2264_v4  ;;  %v2270_v13 = vld [vmem:[%s3048_s1 + $0x60] sm:$0xff]  ;;  %v2269_v17 = vld [vmem:[%s3048_s1 + $0x58] sm:$0xff]  ;;  %v2268_v21 = vld [vmem:[%s3048_s1 + $0x50] sm:$0xff] }
   0x7   :  { %311 = vmatpush.bf16.msra.mxu1 %v2272_v5  ;;  %v2278_v14 = vld [vmem:[%s3048_s1 + $0xa0] sm:$0xff]  ;;  %v2277_v18 = vld [vmem:[%s3048_s1 + $0x98] sm:$0xff]  ;;  %v2276_v22 = vld [vmem:[%s3048_s1 + $0x90] sm:$0xff] }
   0x8   :  { %324 = vmatpush.bf16.msra.mxu2 %v2280_v6  ;;  %v2286_v15 = vld [vmem:[%s3048_s1 + $0xe0] sm:$0xff]  ;;  %v2285_v19 = vld [vmem:[%s3048_s1 + $0xd8] sm:$0xff]  ;;  %v2284_v23 = vld [vmem:[%s3048_s1 + $0xd0] sm:$0xff] }
   0x9   :  { %337 = vmatpush.bf16.msra.mxu3 %v2288_v7  ;;  %v2259_v24 = vld [vmem:[%s3048_s1 + $0x8] sm:$0xff]  ;;  %v2258_v28 = vld [vmem:[%s3048_s1] sm:$0xff]  ;;  %v2550_v34 = vld [vmem:[%s3050_s0 + $0x10] sm:$0xff] }
   0xa   :  { %299 = vmatpush.bf16.msra.mxu0 %v2263_v8  ;;  %v2267_v25 = vld [vmem:[%s3048_s1 + $0x48] sm:$0xff]  ;;  %v2266_v29 = vld [vmem:[%s3048_s1 + $0x40] sm:$0xff]  ;;  %v2555_v35 = vld [vmem:[%s3050_s0 + $0x18] sm:$0xff]  ;;  %v99_v38 = vpack.c.bf16 %v2550_v34, %v2550_v34 }
   0xb   :  { %312 = vmatpush.bf16.msra.mxu1 %v2271_v9  ;;  %v2275_v26 = vld [vmem:[%s3048_s1 + $0x88] sm:$0xff]  ;;  %v2274_v30 = vld [vmem:[%s3048_s1 + $0x80] sm:$0xff]  ;;  %v100_v39 = vpack.c.bf16 %v2555_v35, %v2555_v35  ;;  %v2305_v53 = vld [vmem:[%s3052_s4 + $0x78] sm:$0xff] }
   0xc   :  { %325 = vmatpush.bf16.msra.mxu2 %v2279_v10  ;;  %v2283_v27 = vld [vmem:[%s3048_s1 + $0xc8] sm:$0xff]  ;;  %v2537_v31 = vld [vmem:[%s3050_s0] sm:$0xff]  ;;  %v2297_v55 = vld [vmem:[%s3052_s4 + $0x38] sm:$0xff] }
   0xd   :  { %338 = vmatpush.bf16.msra.mxu3 %v2287_v11  ;;  %v2542_v32 = vld [vmem:[%s3050_s0 + $0x8] sm:$0xff]  ;;  %v2282_v33 = vld [vmem:[%s3048_s1 + $0xc0] sm:$0xff]  ;;  %v97_v36 = vpack.c.bf16 %v2537_v31, %v2537_v31  ;;  %v2313_v56 = vld [vmem:[%s3052_s4 + $0xb8] sm:$0xff] }
   0xe   :  { %300 = vmatpush.bf16.msra.mxu0 %v2262_v12  ;;  %v98_v37 = vpack.c.bf16 %v2542_v32, %v2542_v32  ;;  %v2394_v40 = vld [vmem:[%s3049_s2] ss:$0 sm:$0xff]  ;;  %v1698_v52 = vld [vmem:[%s3051_s3 + $0x8] sm:$0xff]  ;;  %v2304_v59 = vld [vmem:[%s3052_s4 + $0x70] sm:$0xff] }
   0xf   :  { %313 = vmatpush.bf16.msra.mxu1 %v2270_v13  ;;  %v350_v54 = vld [vmem:[%s3051_s3] sm:$0xff]  ;;  %v2296_v60 = vld [vmem:[%s3052_s4 + $0x30] sm:$0xff]  ;;  %v2303_v62 = vld [vmem:[%s3052_s4 + $0x68] sm:$0xff] }
  0x10   :  { %326 = vmatpush.bf16.msra.mxu2 %v2278_v14  ;;  %v2312_v61 = vld [vmem:[%s3052_s4 + $0xb0] sm:$0xff]  ;;  %v2295_v0 = vld [vmem:[%s3052_s4 + $0x28] sm:$0xff]  ;;  %v2321_v1 = vld [vmem:[%s3052_s4 + $0xf8] sm:$0xff] }
  0x11   :  { %339 = vmatpush.bf16.msra.mxu3 %v2286_v15  ;;  %v1780_v63 = vld [vmem:[%s3051_s3 + $0x10] sm:$0xff]  ;;  %v2302_v2 = vld [vmem:[%s3052_s4 + $0x60] sm:$0xff]  ;;  %v2301_v4 = vld [vmem:[%s3052_s4 + $0x58] sm:$0xff] }
  0x12   :  { %301 = vmatpush.bf16.msra.mxu0 %v2261_v16  ;;  %v2294_v3 = vld [vmem:[%s3052_s4 + $0x20] sm:$0xff]  ;;  %v1830_v5 = vld [vmem:[%s3051_s3 + $0x18] sm:$0xff]  ;;  %v2300_v6 = vld [vmem:[%s3052_s4 + $0x50] sm:$0xff] }
  0x13   :  { %314 = vmatpush.bf16.msra.mxu1 %v2269_v17  ;;  %v2299_v7 = vld [vmem:[%s3052_s4 + $0x48] sm:$0xff]  ;;  %v2298_v8 = vld [vmem:[%s3052_s4 + $0x40] sm:$0xff]  ;;  %v2320_v9 = vld [vmem:[%s3052_s4 + $0xf0] sm:$0xff] }
  0x14   :  { %327 = vmatpush.bf16.msra.mxu2 %v2277_v18  ;;  %v2293_v10 = vld [vmem:[%s3052_s4 + $0x18] sm:$0xff]  ;;  %v2311_v11 = vld [vmem:[%s3052_s4 + $0xa8] sm:$0xff]  ;;  %v2292_v13 = vld [vmem:[%s3052_s4 + $0x10] sm:$0xff] }
  0x15   :  { %340 = vmatpush.bf16.msra.mxu3 %v2285_v19  ;;  %v2319_v12 = vld [vmem:[%s3052_s4 + $0xe8] sm:$0xff]  ;;  %v2310_v14 = vld [vmem:[%s3052_s4 + $0xa0] sm:$0xff]  ;;  %v2309_v17 = vld [vmem:[%s3052_s4 + $0x98] sm:$0xff] }
  0x16   :  { %302 = vmatpush.bf16.msra.mxu0 %v2260_v20  ;;  %v2318_v15 = vld [vmem:[%s3052_s4 + $0xe0] sm:$0xff]  ;;  %v2291_v16 = vld [vmem:[%s3052_s4 + $0x8] sm:$0xff]  ;;  %v2317_v18 = vld [vmem:[%s3052_s4 + $0xd8] sm:$0xff] }
  0x17   :  { %315 = vmatpush.bf16.msra.mxu1 %v2268_v21  ;;  %v2290_v19 = vld [vmem:[%s3052_s4] sm:$0xff]  ;;  %v2308_v20 = vld [vmem:[%s3052_s4 + $0x90] sm:$0xff] }
  0x18   :  { %328 = vmatpush.bf16.msra.mxu2 %v2276_v22  ;;  %v2316_v21 = vld [vmem:[%s3052_s4 + $0xd0] sm:$0xff]  ;;  %v2307_v22 = vld [vmem:[%s3052_s4 + $0x88] sm:$0xff] }
  0x19   :  { %341 = vmatpush.bf16.msra.mxu3 %v2284_v23  ;;  %v2315_v23 = vld [vmem:[%s3052_s4 + $0xc8] sm:$0xff] }
  0x1a   :  { %303 = vmatpush.bf16.msra.mxu0 %v2259_v24  ;;  %v2306_v24 = vld [vmem:[%s3052_s4 + $0x80] sm:$0xff] }
  0x1b   :  { %316 = vmatpush.bf16.msra.mxu1 %v2267_v25  ;;  %v2314_v25 = vld [vmem:[%s3052_s4 + $0xc0] sm:$0xff] }
  0x1c   :  { %329 = vmatpush.bf16.msra.mxu2 %v2275_v26 }
  0x1d   :  { %342 = vmatpush.bf16.msra.mxu3 %v2283_v27 }
  0x1e   :  { %304 = vmatpush.bf16.msra.mxu0 %v2258_v28 }
  0x1f   :  { %317 = vmatpush.bf16.msra.mxu1 %v2266_v29 }
  0x20   :  { %330 = vmatpush.bf16.msra.mxu2 %v2274_v30 }
  0x21   :  { %343 = vmatpush.bf16.msra.mxu3 %v2282_v33  ;;  %305 = vmatmul.bf16.vlgmr.msra.gmra.mxu0 %v97_v36 }
  0x22   :  { %318 = vmatmul.bf16.vlgmr.msra.gmra.mxu1 %v98_v37 }
  0x23   :  { %331 = vmatmul.bf16.vlgmr.msra.gmra.mxu2 %v99_v38  ;;  %648 = vmatpush.bf16.msrb.mxu1 %v2313_v56  ;;  %v1880_v38 = vld [vmem:[%s3051_s3 + $0x20] sm:$0xff]  ;;  %v2344_v56 = vld [vmem:[%s3052_s4 + $0x1b0] sm:$0xff] }
  0x24   :  { %344 = vmatmul.bf16.vlgmr.msra.gmra.mxu3 %v100_v39  ;;  %v2329_v39 = vld [vmem:[%s3052_s4 + $0x138] sm:$0xff] }
  0x25   :  { %544 = vmatpush.bf16.msrb.mxu3 %v2297_v55  ;;  %v2333_v55 = vld [vmem:[%s3052_s4 + $0x158] sm:$0xff] }
  0x27   :  { %649 = vmatpush.bf16.msrb.mxu1 %v2312_v61  ;;  %v2331_v61 = vld [vmem:[%s3052_s4 + $0x148] sm:$0xff] }
  0x29   :  { %545 = vmatpush.bf16.msrb.mxu3 %v2296_v60  ;;  %v2353_v60 = vld [vmem:[%s3052_s4 + $0x1f8] sm:$0xff] }
  0x2b   :  { %650 = vmatpush.bf16.msrb.mxu1 %v2311_v11 }
  0x2d   :  { %546 = vmatpush.bf16.msrb.mxu3 %v2295_v0  ;;  %v2330_v0 = vld [vmem:[%s3052_s4 + $0x140] sm:$0xff] }
  0x2f   :  { %651 = vmatpush.bf16.msrb.mxu1 %v2310_v14  ;;  %v2358_v14 = vld [vmem:[%s3052_s4 + $0x220] sm:$0xff] }
  0x31   :  { %547 = vmatpush.bf16.msrb.mxu3 %v2294_v3  ;;  %v2361_v3 = vld [vmem:[%s3052_s4 + $0x238] sm:$0xff] }
  0x33   :  { %652 = vmatpush.bf16.msrb.mxu1 %v2309_v17 }
  0x35   :  { %548 = vmatpush.bf16.msrb.mxu3 %v2293_v10  ;;  %v2359_v10 = vld [vmem:[%s3052_s4 + $0x228] sm:$0xff] }
  0x37   :  { %653 = vmatpush.bf16.msrb.mxu1 %v2308_v20 }
  0x39   :  { %549 = vmatpush.bf16.msrb.mxu3 %v2292_v13  ;;  %v2348_v13 = vld [vmem:[%s3052_s4 + $0x1d0] sm:$0xff] }
  0x3b   :  { %654 = vmatpush.bf16.msrb.mxu1 %v2307_v22 }
  0x3d   :  { %550 = vmatpush.bf16.msrb.mxu3 %v2291_v16 }
  0x3f   :  { %655 = vmatpush.bf16.msrb.mxu1 %v2306_v24  ;;  %v2346_v24 = vld [vmem:[%s3052_s4 + $0x1c0] sm:$0xff] }
  0x41   :  { %551 = vmatpush.bf16.msrb.mxu3 %v2290_v19  ;;  %v2357_v19 = vld [vmem:[%s3052_s4 + $0x218] sm:$0xff] }
  0x45   :  { %858 = vmatpush.bf16.msra.mxu3 %v2329_v39 }
  0x9e   :  { %v306_v41 = vpop.f32.mrf.mxu0 }
  0x9f   :  { %v319_v42 = vpop.f32.mrf.mxu1  ;;  %v307_v43 = vadd.f32 %v2394_v40, %v306_v41  ;;  %v2337_v40 = vld [vmem:[%s3052_s4 + $0x178] sm:$0xff]  ;;  %v2328_v41 = vld [vmem:[%s3052_s4 + $0x130] sm:$0xff] }
  0xa0   :  { %963 = vmatpush.bf16.msra.mxu1 %v2337_v40  ;;  %859 = vmatpush.bf16.msra.mxu3 %v2328_v41 }
  0xa1   :  { %v320_v44 = vadd.f32 %v319_v42, %v307_v43  ;;  %v2336_v42 = vld [vmem:[%s3052_s4 + $0x170] sm:$0xff]  ;;  %v1930_v43 = vld [vmem:[%s3051_s3 + $0x28] sm:$0xff] }
  0xa4   :  { %964 = vmatpush.bf16.msra.mxu1 %v2336_v42 }
  0xa6   :  { %v332_v45 = vpop.f32.mrf.mxu2  ;;  %v308_v48 = vpop.f32.mrf.mxu0 }
  0xa7   :  { %v345_v46 = vpop.f32.mrf.mxu3  ;;  %v333_v47 = vadd.f32 %v332_v45, %v320_v44  ;;  %v321_v49 = vpop.f32.mrf.mxu1  ;;  %v2327_v44 = vld [vmem:[%s3052_s4 + $0x128] sm:$0xff]  ;;  %v2325_v48 = vld [vmem:[%s3052_s4 + $0x118] sm:$0xff] }
  0xa8   :  { %v2335_v45 = vld [vmem:[%s3052_s4 + $0x168] sm:$0xff]  ;;  %860 = vmatpush.bf16.msra.mxu3 %v2327_v44  ;;  %v2030_v49 = vld [vmem:[%s3051_s3 + $0x38] sm:$0xff]  ;;  %v2244_v44 = vld [vmem:[%s3054_s6 + $0xe0] sm:$0xf] }
  0xa9   :  { %v346_v50 = vadd.f32 %v345_v46, %v333_v47  ;;  %v2326_v46 = vld [vmem:[%s3052_s4 + $0x120] sm:$0xff]  ;;  %965 = vmatpush.bf16.msra.mxu1 %v2335_v45  ;;  %v1980_v47 = vld [vmem:[%s3051_s3 + $0x30] sm:$0xff] }
  0xaa   :  { %v2392_v45 = vld [vmem:[%s3054_s6 + $0xec] sm:$0xf0] }
  0xab   :  { %v2568_v51 = vmax.f32 %v346_v50, 0.0  ;;  %v2080_v50 = vld [vmem:[%s3051_s3 + $0x40] sm:$0xff] }
  0xac   :  { %861 = vmatpush.bf16.msra.mxu3 %v2326_v46  ;;  %v2390_v46 = vld [vmem:[%s3054_s6 + $0xe4] sm:$0xf] }
  0xad   :  { %370 = vmatpush.msrb.mxu0 %v2568_v51  ;;  %412 = vmatpush.msrb.mxu2 %v2568_v51 }
  0xae   :  { %v334_v57 = vpop.f32.mrf.mxu2  ;;  %1699 = vmatmul.msk.f32.vlgmr.msrb.gmra.mxu2 %vm351_vm0, %v1698_v52  ;;  %1697 = vmatmul.msk.f32.vlgmr.msrb.gmra.mxu0 %vm351_vm0, %v350_v54  ;;  %v2324_v52 = vld [vmem:[%s3052_s4 + $0x110] sm:$0xff]  ;;  %v2323_v54 = vld [vmem:[%s3052_s4 + $0x108] sm:$0xff] }
  0xaf   :  { %v347_v58 = vpop.f32.mrf.mxu3  ;;  %577 = vmatpush.msra.mxu0 %v2568_v51  ;;  %483 = vmatpush.bf16.msra.mxu2 %v2305_v53  ;;  %v2345_v53 = vld [vmem:[%s3052_s4 + $0x1b8] sm:$0xff]  ;;  %v2322_v57 = vld [vmem:[%s3052_s4 + $0x100] sm:$0xff] }
  0xb0   :  { %862 = vmatpush.bf16.msra.mxu3 %v2325_v48  ;;  %v2332_v58 = vld [vmem:[%s3052_s4 + $0x150] sm:$0xff] }
  0xb1   :  { %682 = vmatpush.msrb.mxu0 %v2568_v51  ;;  %v2246_v48 = vld [vmem:[%s3054_s6 + $0xf0] sm:$0xf0] }
  0xb3   :  { %484 = vmatpush.bf16.msra.mxu2 %v2304_v59  ;;  %v2343_v59 = vld [vmem:[%s3052_s4 + $0x1a8] sm:$0xff] }
  0xb4   :  { %863 = vmatpush.bf16.msra.mxu3 %v2324_v52  ;;  %v2249_v52 = vor.u32 %v2390_v46, %v2246_v48  ;;  %v2372_v46 = vld [vmem:[%s3054_s6 + $0x4c] sm:$0xf0] }
  0xb6   :  { %1781 = vmatmul.msk.f32.vlgmr.msra.gmra.mxu0 %vm351_vm0, %v1780_v63  ;;  %v2352_v63 = vld [vmem:[%s3052_s4 + $0x1f0] sm:$0xff] }
  0xb7   :  { %485 = vmatpush.bf16.msra.mxu2 %v2303_v62  ;;  %753 = vmatpush.bf16.msra.mxu0 %v2321_v1  ;;  %v2342_v62 = vld [vmem:[%s3052_s4 + $0x1a0] sm:$0xff]  ;;  %v2341_v1 = vld [vmem:[%s3052_s4 + $0x198] sm:$0xff] }
  0xb8   :  { %864 = vmatpush.bf16.msra.mxu3 %v2323_v54  ;;  %v2254_v54 = vld [vmem:[%s3054_s6 + $0xf8] sm:$0xf0] }
  0xbb   :  { %486 = vmatpush.bf16.msra.mxu2 %v2302_v2  ;;  %754 = vmatpush.bf16.msra.mxu0 %v2320_v9  ;;  %v2351_v2 = vld [vmem:[%s3052_s4 + $0x1e8] sm:$0xff]  ;;  %v2349_v9 = vld [vmem:[%s3052_s4 + $0x1d8] sm:$0xff] }
  0xbc   :  { %865 = vmatpush.bf16.msra.mxu3 %v2322_v57  ;;  %v2388_v57 = vld [vmem:[%s3054_s6 + $0xcc] sm:$0xf0] }
  0xbe   :  { %1831 = vmatmul.msk.f32.vlgmr.msrb.gmra.mxu0 %vm351_vm0, %v1830_v5  ;;  %v2350_v5 = vld [vmem:[%s3052_s4 + $0x1e0] sm:$0xff] }
  0xbf   :  { %487 = vmatpush.bf16.msra.mxu2 %v2301_v4  ;;  %755 = vmatpush.bf16.msra.mxu0 %v2319_v12  ;;  %v2340_v4 = vld [vmem:[%s3052_s4 + $0x190] sm:$0xff]  ;;  %v2338_v12 = vld [vmem:[%s3052_s4 + $0x180] sm:$0xff] }
  0xc3   :  { %488 = vmatpush.bf16.msra.mxu2 %v2300_v6  ;;  %756 = vmatpush.bf16.msra.mxu0 %v2318_v15  ;;  %v2360_v6 = vld [vmem:[%s3052_s4 + $0x230] sm:$0xff] }
  0xc7   :  { %489 = vmatpush.bf16.msra.mxu2 %v2299_v7  ;;  %757 = vmatpush.bf16.msra.mxu0 %v2317_v18  ;;  %v2347_v18 = vld [vmem:[%s3052_s4 + $0x1c8] sm:$0xff] }
  0xcb   :  { %490 = vmatpush.bf16.msra.mxu2 %v2298_v8  ;;  %758 = vmatpush.bf16.msra.mxu0 %v2316_v21  ;;  %v2339_v8 = vld [vmem:[%s3052_s4 + $0x188] sm:$0xff] }
  0xcf   :  { %787 = vmatpush.msrb.mxu2 %v2568_v51  ;;  %759 = vmatpush.bf16.msra.mxu0 %v2315_v23 }
  0xd3   :  { %760 = vmatpush.bf16.msra.mxu0 %v2314_v25  ;;  %v2356_v25 = vld [vmem:[%s3052_s4 + $0x210] sm:$0xff] }
  0xd7   :  { %1068 = vmatpush.bf16.msrb.mxu0 %v2345_v53  ;;  %v2391_v53 = vld [vmem:[%s3054_s6 + $0xec] sm:$0xf] }
  0xdb   :  { %1069 = vmatpush.bf16.msrb.mxu0 %v2344_v56  ;;  %v2257_v56 = vor.u32 %v2391_v53, %v2254_v54  ;;  %v2371_v54 = vld [vmem:[%s3054_s6 + $0x4c] sm:$0xf] }
  0xdf   :  { %1070 = vmatpush.bf16.msrb.mxu0 %v2343_v59  ;;  %v2230_v59 = vld [vmem:[%s3054_s6 + $0xd0] sm:$0xf0] }
  0xe3   :  { %1071 = vmatpush.bf16.msrb.mxu0 %v2342_v62  ;;  %v2236_v62 = vld [vmem:[%s3054_s6 + $0xc8] sm:$0xf] }
  0xe7   :  { %1072 = vmatpush.bf16.msrb.mxu0 %v2341_v1 }
  0xeb   :  { %1073 = vmatpush.bf16.msrb.mxu0 %v2340_v4  ;;  %v2212_v4 = vld [vmem:[%s3054_s6 + $0xa0] sm:$0xf] }
  0xef   :  { %1074 = vmatpush.bf16.msrb.mxu0 %v2339_v8  ;;  %v2214_v8 = vld [vmem:[%s3054_s6 + $0xb0] sm:$0xf0] }
  0xf3   :  { %1075 = vmatpush.bf16.msrb.mxu0 %v2338_v12 }
 0x12b   :  { %v372_v26 = vpop.f32.mrf.mxu0 }
 0x12c   :  { %v375_v27 = vpack.c.bf16 %v372_v26, %v372_v26 }
 0x12e   :  { %552 = vmatmul.bf16.vlgmr.msrb.gmra.mxu3 %v375_v27  ;;  %v2355_v27 = vld [vmem:[%s3052_s4 + $0x208] sm:$0xff] }
 0x12f   :  { %1173 = vmatpush.bf16.msrb.mxu3 %v2353_v60 }
 0x131   :  { %v414_v28 = vpop.f32.mrf.mxu2 }
 0x132   :  { %v417_v29 = vpack.c.bf16 %v414_v28, %v414_v28 }
 0x133   :  { %v579_v30 = vpop.f32.mrf.mxu0  ;;  %1174 = vmatpush.bf16.msrb.mxu3 %v2352_v63  ;;  %v2389_v63 = vld [vmem:[%s3054_s6 + $0xd4] sm:$0xf0] }
 0x134   :  { %491 = vmatmul.bf16.vlgmr.msra.gmra.mxu2 %v417_v29  ;;  %v582_v33 = vpack.c.bf16 %v579_v30, %v579_v30  ;;  %v2354_v29 = vld [vmem:[%s3052_s4 + $0x200] sm:$0xff]  ;;  %v2237_v1 = vor.u32 %v2389_v63, %v2236_v62  ;;  %v2156_v62 = vld [vmem:[%s3054_s6 + $0x28] sm:$0xf] }
 0x135   :  { %892 = vmatpush.msra.mxu2 %v2568_v51 }
 0x136   :  { %656 = vmatmul.bf16.vlgmr.msrb.gmra.mxu1 %v582_v33 }
 0x137   :  { %1175 = vmatpush.bf16.msrb.mxu3 %v2351_v2  ;;  %v2238_v2 = vld [vmem:[%s3054_s6 + $0xd8] sm:$0xf0] }
 0x13b   :  { %v684_v36 = vpop.f32.mrf.mxu0  ;;  %1176 = vmatpush.bf16.msrb.mxu3 %v2350_v5  ;;  %v2384_v5 = vld [vmem:[%s3054_s6 + $0xac] sm:$0xf0] }
 0x13c   :  { %v687_v37 = vpack.c.bf16 %v684_v36, %v684_v36 }
 0x13e   :  { %761 = vmatmul.bf16.vlgmr.msra.gmra.mxu0 %v687_v37 }
 0x13f   :  { %1177 = vmatpush.bf16.msrb.mxu3 %v2349_v9  ;;  %1514 = vmatpush.bf16.msra.mxu0 %v2249_v52  ;;  %v2220_v9 = vld [vmem:[%s3054_s6 + $0xa8] sm:$0xf]  ;;  %v2373_v52 = vld [vmem:[%s3054_s6 + $0x54] sm:$0xf0] }
 0x143   :  { %1178 = vmatpush.bf16.msrb.mxu3 %v2348_v13  ;;  %v2383_v13 = vld [vmem:[%s3054_s6 + $0xac] sm:$0xf] }
 0x144   :  { %1881 = vmatmul.msk.f32.vlgmr.msrb.gmra.mxu2 %vm351_vm0, %v1880_v38 }
 0x145   :  { %997 = vmatpush.msrb.mxu2 %v2568_v51 }
 0x147   :  { %1179 = vmatpush.bf16.msrb.mxu3 %v2347_v18  ;;  %v2378_v18 = vld [vmem:[%s3054_s6 + $0x84] sm:$0xf] }
 0x14b   :  { %1180 = vmatpush.bf16.msrb.mxu3 %v2346_v24  ;;  %v2381_v24 = vld [vmem:[%s3054_s6 + $0x94] sm:$0xf0] }
 0x14c   :  { %1931 = vmatmul.msk.f32.vlgmr.msra.gmra.mxu2 %vm351_vm0, %v1930_v43 }
 0x14d   :  { %1102 = vmatpush.msra.mxu2 %v2568_v51 }
 0x154   :  { %1981 = vmatmul.msk.f32.vlgmr.msrb.gmra.mxu2 %vm351_vm0, %v1980_v47  ;;  %v2245_v47 = vor.u32 %v2392_v45, %v2244_v44  ;;  %v2164_v45 = vld [vmem:[%s3054_s6 + $0x40] sm:$0xf] }
 0x155   :  { %1207 = vmatpush.msrb.mxu2 %v2568_v51  ;;  %v2334_v51 = vld [vmem:[%s3052_s4 + $0x160] sm:$0xff]  ;;  %v2165_v48 = vor.u32 %v2372_v46, %v2164_v45 }
 0x156   :  { %966 = vmatpush.bf16.msra.mxu1 %v2334_v51 }
 0x15a   :  { %967 = vmatpush.bf16.msra.mxu1 %v2333_v55  ;;  %v2228_v55 = vld [vmem:[%s3054_s6 + $0xc0] sm:$0xf] }
 0x15b   :  { %v2229_v60 = vor.u32 %v2388_v57, %v2228_v55  ;;  %v2174_v55 = vld [vmem:[%s3054_s6 + $0x58] sm:$0xf0]  ;;  %v2148_v57 = vld [vmem:[%s3054_s6 + $0x20] sm:$0xf] }
 0x15c   :  { %2031 = vmatmul.msk.f32.vlgmr.msra.gmra.mxu2 %vm351_vm0, %v2030_v49  ;;  %v2252_v49 = vld [vmem:[%s3054_s6 + $0xe8] sm:$0xf] }
 0x15d   :  { %1501 = vmatpush.bf16.msra.mxu2 %v2245_v47  ;;  %v2370_v47 = vld [vmem:[%s3054_s6 + $0x44] sm:$0xf] }
 0x15e   :  { %968 = vmatpush.bf16.msra.mxu1 %v2332_v58  ;;  %v2386_v58 = vld [vmem:[%s3054_s6 + $0xc4] sm:$0xf] }
 0x161   :  { %1502 = vmatpush.bf16.msra.mxu2 %v2229_v60 }
 0x162   :  { %969 = vmatpush.bf16.msra.mxu1 %v2331_v61  ;;  %v2233_v61 = vor.u32 %v2386_v58, %v2230_v59  ;;  %v2368_v58 = vld [vmem:[%s3054_s6 + $0x2c] sm:$0xf0]  ;;  %v2366_v59 = vld [vmem:[%s3054_s6 + $0x24] sm:$0xf] }
 0x163   :  { %v2149_v60 = vor.u32 %v2368_v58, %v2148_v57 }
 0x164   :  { %2081 = vmatmul.msk.f32.vlgmr.msrb.gmra.mxu2 %vm351_vm0, %v2080_v50  ;;  %v2393_v50 = vld [vmem:[%s3054_s6 + $0xf4] sm:$0xf0]  ;;  %1515 = vmatpush.bf16.msra.mxu0 %v2233_v61  ;;  %v2150_v61 = vld [vmem:[%s3054_s6 + $0x30] sm:$0xf0] }
 0x165   :  { %v2253_v51 = vor.u32 %v2393_v50, %v2252_v49  ;;  %v2166_v49 = vld [vmem:[%s3054_s6 + $0x50] sm:$0xf0]  ;;  %v2172_v50 = vld [vmem:[%s3054_s6 + $0x48] sm:$0xf]  ;;  %v2153_v63 = vor.u32 %v2366_v59, %v2150_v61 }
 0x166   :  { %970 = vmatpush.bf16.msra.mxu1 %v2330_v0  ;;  %v2387_v0 = vld [vmem:[%s3054_s6 + $0xcc] sm:$0xf]  ;;  %v2173_v53 = vor.u32 %v2373_v52, %v2172_v50 }
 0x16a   :  { %1278 = vmatpush.bf16.msrb.mxu1 %v2361_v3  ;;  %v2241_v3 = vor.u32 %v2387_v0, %v2238_v2  ;;  %v2369_v0 = vld [vmem:[%s3054_s6 + $0x34] sm:$0xf0]  ;;  %v2158_v2 = vld [vmem:[%s3054_s6 + $0x38] sm:$0xf0] }
 0x16e   :  { %1279 = vmatpush.bf16.msrb.mxu1 %v2360_v6  ;;  %v2382_v6 = vld [vmem:[%s3054_s6 + $0xa4] sm:$0xf] }
 0x172   :  { %1280 = vmatpush.bf16.msrb.mxu1 %v2359_v10  ;;  %v2385_v10 = vld [vmem:[%s3054_s6 + $0xb4] sm:$0xf0] }
 0x173   :  { %v2221_v12 = vor.u32 %v2385_v10, %v2220_v9  ;;  %v2134_v9 = vld [vmem:[%s3054_s6 + $0x10] sm:$0xf0]  ;;  %v2140_v10 = vld [vmem:[%s3054_s6 + $0x8] sm:$0xf] }
 0x176   :  { %1281 = vmatpush.bf16.msrb.mxu1 %v2358_v14  ;;  %v2222_v14 = vld [vmem:[%s3054_s6 + $0xb8] sm:$0xf0] }
 0x17a   :  { %1282 = vmatpush.bf16.msrb.mxu1 %v2357_v19  ;;  %v2198_v19 = vld [vmem:[%s3054_s6 + $0x90] sm:$0xf0] }
 0x17e   :  { %1283 = vmatpush.bf16.msrb.mxu1 %v2356_v25  ;;  %v2379_v25 = vld [vmem:[%s3054_s6 + $0x8c] sm:$0xf] }
 0x182   :  { %1284 = vmatpush.bf16.msrb.mxu1 %v2355_v27  ;;  %v2206_v27 = vld [vmem:[%s3054_s6 + $0x98] sm:$0xf0] }
 0x186   :  { %1285 = vmatpush.bf16.msrb.mxu1 %v2354_v29  ;;  %v2376_v29 = vld [vmem:[%s3054_s6 + $0x6c] sm:$0xf0] }
 0x1b1   :  { %v553_v7 = vpop.f32.mrf.mxu3 }
 0x1b3   :  { %v657_v11 = vpop.f32.mrf.mxu1 }
 0x1b7   :  { %v492_v15 = vpop.f32.mrf.mxu2 }
 0x1b8   :  { %v554_v16 = vadd.f32 %v553_v7, %v492_v15  ;;  %v2213_v7 = vor.u32 %v2384_v5, %v2212_v4  ;;  %v2196_v15 = vld [vmem:[%s3054_s6 + $0x80] sm:$0xf] }
 0x1b9   :  { %v555_v20 = vpop.f32.mrf.mxu3  ;;  %v2132_v5 = vld [vmem:[%s3054_s6] sm:$0xf] }
 0x1ba   :  { %v661_v17 = vadd.f32 %v657_v11, %v554_v16  ;;  %v2217_v11 = vor.u32 %v2382_v6, %v2214_v8  ;;  %1503 = vmatpush.bf16.msra.mxu2 %v2213_v7  ;;  %v2225_v16 = vor.u32 %v2383_v13, %v2222_v14  ;;  %v2364_v6 = vld [vmem:[%s3054_s6 + $0xc] sm:$0xf0]  ;;  %v2362_v7 = vld [vmem:[%s3054_s6 + $0x4] sm:$0xf] }
 0x1bb   :  { %v762_v21 = vpop.f32.mrf.mxu0  ;;  %v659_v22 = vpop.f32.mrf.mxu1  ;;  %v2133_v8 = vor.u32 %v2364_v6, %v2132_v5  ;;  %v2137_v13 = vor.u32 %v2362_v7, %v2134_v9 }
 0x1bc   :  { %v2819_v23 = vadd.f32 %v762_v21, %v661_v17  ;;  %v2380_v17 = vld [vmem:[%s3054_s6 + $0x8c] sm:$0xf0]  ;;  %1516 = vmatpush.bf16.msra.mxu0 %v2217_v11  ;;  %v2201_v21 = vor.u32 %v2378_v18, %v2198_v19  ;;  %v2204_v22 = vld [vmem:[%s3054_s6 + $0x88] sm:$0xf]  ;;  %v2365_v11 = vld [vmem:[%s3054_s6 + $0x14] sm:$0xf0] }
 0x1bd   :  { %v2197_v20 = vor.u32 %v2380_v17, %v2196_v15  ;;  %v2141_v14 = vor.u32 %v2365_v11, %v2140_v10  ;;  %v2363_v15 = vld [vmem:[%s3054_s6 + $0xc] sm:$0xf] }
 0x1bf   :  { %v494_v26 = vpop.f32.mrf.mxu2  ;;  %1504 = vmatpush.bf16.msra.mxu2 %v2197_v20 }
 0x1c0   :  { %v2205_v26 = vor.u32 %v2381_v24, %v2204_v22  ;;  %1517 = vmatpush.bf16.msra.mxu0 %v2201_v21 }
 0x1c3   :  { %v764_v28 = vpop.f32.mrf.mxu0 }
 0x1c4   :  { %v2180_v28 = vld [vmem:[%s3054_s6 + $0x60] sm:$0xf] }
 0x1c7   :  { %v789_v30 = vpop.f32.mrf.mxu2 }
 0x1c8   :  { %v792_v33 = vpack.c.bf16 %v789_v30, %v789_v30  ;;  %v2209_v30 = vor.u32 %v2379_v25, %v2206_v27 }
 0x1ca   :  { %866 = vmatmul.bf16.vlgmr.msra.gmra.mxu3 %v792_v33  ;;  %v2374_v33 = vld [vmem:[%s3054_s6 + $0x64] sm:$0xf] }
 0x1cb   :  { %1527 = vmatpush.bf16.msra.mxu3 %v2253_v51  ;;  %v2169_v51 = vor.u32 %v2370_v47, %v2166_v49 }
 0x1cf   :  { %v894_v36 = vpop.f32.mrf.mxu2  ;;  %1528 = vmatpush.bf16.msra.mxu3 %v2237_v1  ;;  %v2367_v1 = vld [vmem:[%s3054_s6 + $0x2c] sm:$0xf] }
 0x1d0   :  { %v897_v37 = vpack.c.bf16 %v894_v36, %v894_v36  ;;  %v2182_v36 = vld [vmem:[%s3054_s6 + $0x70] sm:$0xf0]  ;;  %v2161_v4 = vor.u32 %v2367_v1, %v2158_v2 }
 0x1d2   :  { %971 = vmatmul.bf16.vlgmr.msra.gmra.mxu1 %v897_v37  ;;  %v2188_v37 = vld [vmem:[%s3054_s6 + $0x68] sm:$0xf] }
 0x1d3   :  { %1540 = vmatpush.bf16.msra.mxu1 %v2257_v56  ;;  %1529 = vmatpush.bf16.msra.mxu3 %v2221_v12  ;;  %v2177_v56 = vor.u32 %v2371_v54, %v2174_v55 }
 0x1d7   :  { %v999_v38 = vpop.f32.mrf.mxu2  ;;  %1541 = vmatpush.bf16.msra.mxu1 %v2241_v3  ;;  %1530 = vmatpush.bf16.msra.mxu3 %v2205_v26  ;;  %v2157_v3 = vor.u32 %v2369_v0, %v2156_v62 }
 0x1d8   :  { %v1002_v39 = vpack.c.bf16 %v999_v38, %v999_v38  ;;  %v2181_v38 = vor.u32 %v2376_v29, %v2180_v28  ;;  %v2395_v29 = vld [vmem:[%s3053_s5] ss:$0 sm:$0xff] }
 0x1da   :  { %1076 = vmatmul.bf16.vlgmr.msrb.gmra.mxu0 %v1002_v39  ;;  %v2377_v39 = vld [vmem:[%s3054_s6 + $0x74] sm:$0xf0]  ;;  %1505 = vmatpush.bf16.msra.mxu2 %v2181_v38 }
 0x1db   :  { %1542 = vmatpush.bf16.msra.mxu1 %v2225_v16  ;;  %v2142_v16 = vld [vmem:[%s3054_s6 + $0x18] sm:$0xf0] }
 0x1dc   :  { %v2145_v17 = vor.u32 %v2363_v15, %v2142_v16 }
 0x1de   :  { %1506 = vmatpush.bf16.msra.mxu2 %v2165_v48 }
 0x1df   :  { %v1104_v40 = vpop.f32.mrf.mxu2  ;;  %1543 = vmatpush.bf16.msra.mxu1 %v2209_v30 }
 0x1e0   :  { %v1107_v41 = vpack.c.bf16 %v1104_v40, %v1104_v40  ;;  %v2375_v40 = vld [vmem:[%s3054_s6 + $0x6c] sm:$0xf] }
 0x1e2   :  { %1181 = vmatmul.bf16.vlgmr.msrb.gmra.mxu3 %v1107_v41  ;;  %v2190_v41 = vld [vmem:[%s3054_s6 + $0x78] sm:$0xf0]  ;;  %1507 = vmatpush.bf16.msra.mxu2 %v2149_v60 }
 0x1e3   :  { %v2193_v44 = vor.u32 %v2375_v40, %v2190_v41 }
 0x1e5   :  { %1544 = vmatpush.bf16.msra.mxu1 %v2193_v44 }
 0x1e6   :  { %1508 = vmatpush.bf16.msra.mxu2 %v2133_v8 }
 0x1e7   :  { %v1209_v42 = vpop.f32.mrf.mxu2 }
 0x1e8   :  { %v1212_v43 = vpack.c.bf16 %v1209_v42, %v1209_v42  ;;  %v2185_v42 = vor.u32 %v2374_v33, %v2182_v36 }
 0x1e9   :  { %1545 = vmatpush.bf16.msra.mxu1 %v2177_v56 }
 0x1ea   :  { %1286 = vmatmul.bf16.vlgmr.msrb.gmra.mxu1 %v1212_v43  ;;  %v2189_v43 = vor.u32 %v2377_v39, %v2188_v37  ;;  %1518 = vmatpush.bf16.msra.mxu0 %v2185_v42 }
 0x1ec   :  { %1531 = vmatpush.bf16.msra.mxu3 %v2189_v43 }
 0x1ed   :  { %1546 = vmatpush.bf16.msra.mxu1 %v2161_v4 }
 0x1ee   :  { %1519 = vmatpush.bf16.msra.mxu0 %v2169_v51 }
 0x1f0   :  { %1532 = vmatpush.bf16.msra.mxu3 %v2173_v53 }
 0x1f1   :  { %1547 = vmatpush.bf16.msra.mxu1 %v2145_v17 }
 0x1f2   :  { %1520 = vmatpush.bf16.msra.mxu0 %v2153_v63 }
 0x1f4   :  { %1533 = vmatpush.bf16.msra.mxu3 %v2157_v3 }
 0x1f6   :  { %1521 = vmatpush.bf16.msra.mxu0 %v2137_v13 }
 0x1f8   :  { %1534 = vmatpush.bf16.msra.mxu3 %v2141_v14 }
 0x24d   :  { %v867_v12 = vpop.f32.mrf.mxu3 }
 0x24e   :  { %v871_v22 = vadd.f32 %v867_v12, %v2819_v23  ;;  %v1331_v23 = vld [vmem:[%s3055_s7] sm:$0xf] }
 0x24f   :  { %v972_v18 = vpop.f32.mrf.mxu1  ;;  %v1334_v41 = vperm.slane %v1331_v23, 1  ;;  %v1336_v42 = vperm.slane %v1331_v23, 3  ;;  %v1333_v48 = vperm.slane %v1331_v23, 0  ;;  %v1335_v50 = vperm.slane %v1331_v23, 2 }
 0x250   :  { %v976_v25 = vadd.f32 %v972_v18, %v871_v22 }
 0x255   :  { %v869_v19 = vpop.f32.mrf.mxu3 }
 0x257   :  { %v1077_v20 = vpop.f32.mrf.mxu0  ;;  %v974_v21 = vpop.f32.mrf.mxu1 }
 0x258   :  { %v1081_v26 = vadd.f32 %v1077_v20, %v976_v25 }
 0x25f   :  { %v1079_v24 = vpop.f32.mrf.mxu0 }
 0x265   :  { %v1182_v27 = vpop.f32.mrf.mxu3 }
 0x266   :  { %v1186_v28 = vadd.f32 %v1182_v27, %v1081_v26 }
 0x267   :  { %v1287_v30 = vpop.f32.mrf.mxu1 }
 0x268   :  { %v1291_v33 = vadd.f32 %v1287_v30, %v1186_v28 }
 0x26a   :  { %v1296_v36 = vadd.f32 %v2395_v29, %v1291_v33 }
 0x26c   :  { %v1297_v37 = vmax.f32 %v1296_v36, 0.0 }
 0x26d   :  { %v1184_v38 = vpop.f32.mrf.mxu3 }
 0x26e   :  { %v1330_v39 = vpack.c.bf16 %v1297_v37, %v1297_v37 }
 0x26f   :  { %v1289_v40 = vpop.f32.mrf.mxu1 }
 0x270   :  { %1509 = vmatmul.bf16.vlgmr.msra.gmra.mxu2 %v1330_v39  ;;  %1522 = vmatmul.bf16.vlgmr.msra.gmra.mxu0 %v1330_v39 }
 0x271   :  { %1535 = vmatmul.bf16.vlgmr.msra.gmra.mxu3 %v1330_v39  ;;  %1548 = vmatmul.bf16.vlgmr.msra.gmra.mxu1 %v1330_v39 }
 0x2ed   :  { %v1523_v43 = vpop.f32.mrf.mxu0 }
 0x2ee   :  { %v1524_v44 = vadd.f32 %v1523_v43, %v1334_v41  ;;  %v1549_v45 = vpop.f32.mrf.mxu1 }
 0x2ef   :  { %v1550_v46 = vadd.f32 %v1549_v45, %v1336_v42 }
 0x2f0   :  { %v1554_v47 = vadd.f32 %v1524_v44, %v2542_v32 }
 0x2f1   :  { %v1556_v49 = vadd.f32 %v1550_v46, %v2555_v35 }
 0x2f2   :  { %v1558_v52 = vmax.f32 %v1554_v47, 0.0 }
 0x2f3   :  { %v1560_v51 = vmax.f32 %v1556_v49, 0.0  ;;  %v1510_v53 = vpop.f32.mrf.mxu2 }
 0x2f4   :  { %1562 = vst [vmem:[%s3056_s8 + $0x8] sm:$0xff] %v1558_v52  ;;  %v1511_v54 = vadd.f32 %v1510_v53, %v1333_v48  ;;  %v1536_v55 = vpop.f32.mrf.mxu3 }
 0x2f5   :  { %1564 = vst [vmem:[%s3056_s8 + $0x18] sm:$0xff] %v1560_v51  ;;  %v1537_v56 = vadd.f32 %v1536_v55, %v1335_v50  ;;  %v1525_v57 = vpop.f32.mrf.mxu0 }
 0x2f6   :  { %v1553_v32 = vadd.f32 %v1511_v54, %v2537_v31  ;;  %v1551_v58 = vpop.f32.mrf.mxu1 }
 0x2f7   :  { %v1555_v35 = vadd.f32 %v1537_v56, %v2550_v34 }
 0x2f8   :  { %v1557_v59 = vmax.f32 %v1553_v32, 0.0 }
 0x2f9   :  { %v1559_v60 = vmax.f32 %v1555_v35, 0.0 }
 0x2fa   :  { %1561 = vst [vmem:[%s3056_s8] sm:$0xff] %v1557_v59 }
 0x2fb   :  { %1563 = vst [vmem:[%s3056_s8 + $0x10] sm:$0xff] %v1559_v60  ;;  %v1512_v61 = vpop.f32.mrf.mxu2 }
 0x2fc   :  { %v1538_v62 = vpop.f32.mrf.mxu3 }

// kernel: _lambda_.11
= control target key start
LH: loop header
LB: loop body
LE: loop exit
PB: predicated region body
PF: predicated region fallthrough
CT: control target
= control target key end

     0   :  { %vm829_vm0 = vcmask 64512   ;;  %vm904_vm1 = vcmask 261120   ;;  %s9451_s2 = inlined_call_operand.vmem [shape: bf16[512,256], index: 2, kind: input, shape index: {}]   ;;  %s9452_s1 = inlined_call_operand.vmem [shape: f32[8,512], index: 1, kind: input, shape index: {}]   ;;  %s9453_s4 = inlined_call_operand.vmem [shape: bf16[256,256], index: 4, kind: input, shape index: {}]   ;;  %s9454_s0 = inlined_call_operand.vmem [shape: f32[32,256], index: 0, kind: input, shape index: {}]   ;;  %s9455_s3 = inlined_call_operand.vmem [shape: f32[1,256], index: 3, kind: input, shape index: {}]   ;;  %s9456_s6 = inlined_call_operand.vmem [shape: f32[32,8], index: 6, kind: input, shape index: {}]   ;;  %s9457_s11 = inlined_call_operand.vmem [shape: f32[8,256], index: 11, kind: output, shape index: {1}]   ;;  %s9458_s5 = inlined_call_operand.vmem [shape: f32[1,256], index: 5, kind: input, shape index: {}]   ;;  %s9459_s7 = inlined_call_operand.vmem [shape: f32[9,32,32], index: 7, kind: input, shape index: {}]   ;;  %s9460_s8 = inlined_call_operand.vmem [shape: bf16[9,256,256], index: 8, kind: input, shape index: {}]   ;;  %s9461_s9 = inlined_call_operand.vmem [shape: f32[1,256], index: 9, kind: input, shape index: {}]   ;;  %s9462_s10 = inlined_call_operand.vmem [shape: f32[32,256], index: 10, kind: output, shape index: {0}]  }
   0x1   :  { %v4177_v0 = vld [vmem:[%s9451_s2 + $0x70] sm:$0xf]  ;;  %v6038_v1 = vld [vmem:[%s9451_s2 + $0x74] sm:$0xf0]  ;;  %v4169_v11 = vld [vmem:[%s9451_s2 + $0x60] sm:$0xf] }
   0x2   :  { %v4241_v2 = vld [vmem:[%s9451_s2 + $0xf0] sm:$0xf]  ;;  %v4178_v3 = vor.u32 %v6038_v1, %v4177_v0  ;;  %v6054_v4 = vld [vmem:[%s9451_s2 + $0xf4] sm:$0xf0]  ;;  %v6036_v13 = vld [vmem:[%s9451_s2 + $0x64] sm:$0xf0] }
   0x3   :  { %v4305_v5 = vld [vmem:[%s9451_s2 + $0x170] sm:$0xf]  ;;  %v6070_v6 = vld [vmem:[%s9451_s2 + $0x174] sm:$0xf0]  ;;  %v4242_v7 = vor.u32 %v6054_v4, %v4241_v2  ;;  %v4233_v14 = vld [vmem:[%s9451_s2 + $0xe0] sm:$0xf]  ;;  %v4170_v16 = vor.u32 %v6036_v13, %v4169_v11 }
   0x4   :  { %v4306_v8 = vor.u32 %v6070_v6, %v4305_v5  ;;  %v4369_v9 = vld [vmem:[%s9451_s2 + $0x1f0] sm:$0xf]  ;;  %v6086_v10 = vld [vmem:[%s9451_s2 + $0x1f4] sm:$0xf0]  ;;  %435 = vmatpush.bf16.msra.mxu0 %v4178_v3  ;;  %v6052_v15 = vld [vmem:[%s9451_s2 + $0xe4] sm:$0xf0] }
   0x5   :  { %v4370_v12 = vor.u32 %v6086_v10, %v4369_v9  ;;  %448 = vmatpush.bf16.msra.mxu1 %v4242_v7  ;;  %v4234_v17 = vor.u32 %v6052_v15, %v4233_v14  ;;  %v4297_v18 = vld [vmem:[%s9451_s2 + $0x160] sm:$0xf]  ;;  %v6068_v19 = vld [vmem:[%s9451_s2 + $0x164] sm:$0xf0]  ;;  %v4161_v23 = vld [vmem:[%s9451_s2 + $0x50] sm:$0xf] }
   0x6   :  { %461 = vmatpush.bf16.msra.mxu2 %v4306_v8  ;;  %v4361_v20 = vld [vmem:[%s9451_s2 + $0x1e0] sm:$0xf]  ;;  %v4298_v21 = vor.u32 %v6068_v19, %v4297_v18  ;;  %v6084_v22 = vld [vmem:[%s9451_s2 + $0x1e4] sm:$0xf0]  ;;  %v6034_v24 = vld [vmem:[%s9451_s2 + $0x54] sm:$0xf0] }
   0x7   :  { %474 = vmatpush.bf16.msra.mxu3 %v4370_v12  ;;  %v4362_v25 = vor.u32 %v6084_v22, %v4361_v20  ;;  %v4225_v26 = vld [vmem:[%s9451_s2 + $0xd0] sm:$0xf]  ;;  %v6050_v27 = vld [vmem:[%s9451_s2 + $0xd4] sm:$0xf0]  ;;  %v4162_v29 = vor.u32 %v6034_v24, %v4161_v23  ;;  %v4153_v35 = vld [vmem:[%s9451_s2 + $0x40] sm:$0xf] }
   0x8   :  { %v4289_v28 = vld [vmem:[%s9451_s2 + $0x150] sm:$0xf]  ;;  %436 = vmatpush.bf16.msra.mxu0 %v4170_v16  ;;  %v6066_v30 = vld [vmem:[%s9451_s2 + $0x154] sm:$0xf0]  ;;  %v4226_v33 = vor.u32 %v6050_v27, %v4225_v26  ;;  %v6032_v36 = vld [vmem:[%s9451_s2 + $0x44] sm:$0xf0] }
   0x9   :  { %v4353_v31 = vld [vmem:[%s9451_s2 + $0x1d0] sm:$0xf]  ;;  %v6082_v32 = vld [vmem:[%s9451_s2 + $0x1d4] sm:$0xf0]  ;;  %449 = vmatpush.bf16.msra.mxu1 %v4234_v17  ;;  %v4290_v34 = vor.u32 %v6066_v30, %v4289_v28  ;;  %v4217_v37 = vld [vmem:[%s9451_s2 + $0xc0] sm:$0xf]  ;;  %v4154_v44 = vor.u32 %v6032_v36, %v4153_v35 }
   0xa   :  { %462 = vmatpush.bf16.msra.mxu2 %v4298_v21  ;;  %v4354_v38 = vor.u32 %v6082_v32, %v4353_v31  ;;  %v6048_v39 = vld [vmem:[%s9451_s2 + $0xc4] sm:$0xf0]  ;;  %v4281_v40 = vld [vmem:[%s9451_s2 + $0x140] sm:$0xf]  ;;  %v4145_v47 = vld [vmem:[%s9451_s2 + $0x30] sm:$0xf] }
   0xb   :  { %475 = vmatpush.bf16.msra.mxu3 %v4362_v25  ;;  %v6064_v41 = vld [vmem:[%s9451_s2 + $0x144] sm:$0xf0]  ;;  %v4345_v42 = vld [vmem:[%s9451_s2 + $0x1c0] sm:$0xf]  ;;  %v4218_v45 = vor.u32 %v6048_v39, %v4217_v37  ;;  %v6030_v48 = vld [vmem:[%s9451_s2 + $0x34] sm:$0xf0] }
   0xc   :  { %v6080_v43 = vld [vmem:[%s9451_s2 + $0x1c4] sm:$0xf0]  ;;  %437 = vmatpush.bf16.msra.mxu0 %v4162_v29  ;;  %v4282_v46 = vor.u32 %v6064_v41, %v4281_v40  ;;  %v4209_v49 = vld [vmem:[%s9451_s2 + $0xb0] sm:$0xf]  ;;  %v6046_v51 = vld [vmem:[%s9451_s2 + $0xb4] sm:$0xf0]  ;;  %v4146_v56 = vor.u32 %v6030_v48, %v4145_v47 }
   0xd   :  { %450 = vmatpush.bf16.msra.mxu1 %v4226_v33  ;;  %v4346_v50 = vor.u32 %v6080_v43, %v4345_v42  ;;  %v4273_v52 = vld [vmem:[%s9451_s2 + $0x130] sm:$0xf]  ;;  %v6062_v53 = vld [vmem:[%s9451_s2 + $0x134] sm:$0xf0]  ;;  %v4210_v57 = vor.u32 %v6046_v51, %v4209_v49  ;;  %v4137_v59 = vld [vmem:[%s9451_s2 + $0x20] sm:$0xf] }
   0xe   :  { %463 = vmatpush.bf16.msra.mxu2 %v4290_v34  ;;  %v4337_v54 = vld [vmem:[%s9451_s2 + $0x1b0] sm:$0xf]  ;;  %v6078_v55 = vld [vmem:[%s9451_s2 + $0x1b4] sm:$0xf0]  ;;  %v4274_v58 = vor.u32 %v6062_v53, %v4273_v52  ;;  %v6028_v60 = vld [vmem:[%s9451_s2 + $0x24] sm:$0xf0] }
   0xf   :  { %476 = vmatpush.bf16.msra.mxu3 %v4354_v38  ;;  %v4201_v61 = vld [vmem:[%s9451_s2 + $0xa0] sm:$0xf]  ;;  %v4338_v62 = vor.u32 %v6078_v55, %v4337_v54  ;;  %v6044_v63 = vld [vmem:[%s9451_s2 + $0xa4] sm:$0xf0]  ;;  %v4138_v4 = vor.u32 %v6028_v60, %v4137_v59  ;;  %v4129_v7 = vld [vmem:[%s9451_s2 + $0x10] sm:$0xf] }
  0x10   :  { %438 = vmatpush.bf16.msra.mxu0 %v4154_v44  ;;  %v4265_v0 = vld [vmem:[%s9451_s2 + $0x120] sm:$0xf]  ;;  %v6060_v1 = vld [vmem:[%s9451_s2 + $0x124] sm:$0xf0]  ;;  %v4202_v5 = vor.u32 %v6044_v63, %v4201_v61  ;;  %v6026_v8 = vld [vmem:[%s9451_s2 + $0x14] sm:$0xf0] }
  0x11   :  { %451 = vmatpush.bf16.msra.mxu1 %v4218_v45  ;;  %v4329_v2 = vld [vmem:[%s9451_s2 + $0x1a0] sm:$0xf]  ;;  %v6076_v3 = vld [vmem:[%s9451_s2 + $0x1a4] sm:$0xf0]  ;;  %v4266_v6 = vor.u32 %v6060_v1, %v4265_v0  ;;  %v4193_v9 = vld [vmem:[%s9451_s2 + $0x90] sm:$0xf]  ;;  %v4130_v16 = vor.u32 %v6026_v8, %v4129_v7 }
  0x12   :  { %464 = vmatpush.bf16.msra.mxu2 %v4282_v46  ;;  %v4330_v10 = vor.u32 %v6076_v3, %v4329_v2  ;;  %v6042_v11 = vld [vmem:[%s9451_s2 + $0x94] sm:$0xf0]  ;;  %v4257_v12 = vld [vmem:[%s9451_s2 + $0x110] sm:$0xf]  ;;  %v4121_v17 = vld [vmem:[%s9451_s2] sm:$0xf] }
  0x13   :  { %477 = vmatpush.bf16.msra.mxu3 %v4346_v50  ;;  %v6058_v13 = vld [vmem:[%s9451_s2 + $0x114] sm:$0xf0]  ;;  %v4321_v14 = vld [vmem:[%s9451_s2 + $0x190] sm:$0xf]  ;;  %v6024_v18 = vld [vmem:[%s9451_s2 + $0x4] sm:$0xf0]  ;;  %v4194_v19 = vor.u32 %v6042_v11, %v4193_v9 }
  0x14   :  { %439 = vmatpush.bf16.msra.mxu0 %v4146_v56  ;;  %v6074_v15 = vld [vmem:[%s9451_s2 + $0x194] sm:$0xf0]  ;;  %v4258_v20 = vor.u32 %v6058_v13, %v4257_v12  ;;  %v4185_v21 = vld [vmem:[%s9451_s2 + $0x80] sm:$0xf]  ;;  %v6040_v22 = vld [vmem:[%s9451_s2 + $0x84] sm:$0xf0]  ;;  %v4122_v31 = vor.u32 %v6024_v18, %v4121_v17 }
  0x15   :  { %452 = vmatpush.bf16.msra.mxu1 %v4210_v57  ;;  %v4249_v23 = vld [vmem:[%s9451_s2 + $0x100] sm:$0xf]  ;;  %v4322_v24 = vor.u32 %v6074_v15, %v4321_v14  ;;  %v6056_v25 = vld [vmem:[%s9451_s2 + $0x104] sm:$0xf0]  ;;  %v6037_v28 = vld [vmem:[%s9451_s2 + $0x74] sm:$0xf]  ;;  %v4186_v35 = vor.u32 %v6040_v22, %v4185_v21 }
  0x16   :  { %465 = vmatpush.bf16.msra.mxu2 %v4274_v58  ;;  %v4313_v26 = vld [vmem:[%s9451_s2 + $0x180] sm:$0xf]  ;;  %v6072_v27 = vld [vmem:[%s9451_s2 + $0x184] sm:$0xf0]  ;;  %v4179_v29 = vld [vmem:[%s9451_s2 + $0x78] sm:$0xf0]  ;;  %v4250_v36 = vor.u32 %v6056_v25, %v4249_v23 }
  0x17   :  { %478 = vmatpush.bf16.msra.mxu3 %v4338_v62  ;;  %v6053_v30 = vld [vmem:[%s9451_s2 + $0xf4] sm:$0xf]  ;;  %v4243_v32 = vld [vmem:[%s9451_s2 + $0xf8] sm:$0xf0]  ;;  %v4314_v40 = vor.u32 %v6072_v27, %v4313_v26  ;;  %v4182_v41 = vor.u32 %v6037_v28, %v4179_v29  ;;  %v37_v42 = vld [vmem:[%s9452_s1] sm:$0xff] }
  0x18   :  { %440 = vmatpush.bf16.msra.mxu0 %v4138_v4  ;;  %v6069_v33 = vld [vmem:[%s9451_s2 + $0x174] sm:$0xf]  ;;  %v4307_v34 = vld [vmem:[%s9451_s2 + $0x178] sm:$0xf0]  ;;  %v6035_v44 = vld [vmem:[%s9451_s2 + $0x64] sm:$0xf]  ;;  %v4246_v45 = vor.u32 %v6053_v30, %v4243_v32  ;;  %v6715_v55 = vpack.c.bf16 %v37_v42, %v37_v42 }
  0x19   :  { %453 = vmatpush.bf16.msra.mxu1 %v4202_v5  ;;  %v6085_v37 = vld [vmem:[%s9451_s2 + $0x1f4] sm:$0xf]  ;;  %v4371_v38 = vld [vmem:[%s9451_s2 + $0x1f8] sm:$0xf0]  ;;  %v4310_v46 = vor.u32 %v6069_v33, %v4307_v34  ;;  %v4171_v47 = vld [vmem:[%s9451_s2 + $0x68] sm:$0xf0] }
  0x1a   :  { %466 = vmatpush.bf16.msra.mxu2 %v4266_v6  ;;  %v39_v39 = vld [vmem:[%s9452_s1 + $0x10] sm:$0xff]  ;;  %v40_v43 = vld [vmem:[%s9452_s1 + $0x18] sm:$0xff]  ;;  %v6051_v48 = vld [vmem:[%s9451_s2 + $0xe4] sm:$0xf]  ;;  %v4374_v50 = vor.u32 %v6085_v37, %v4371_v38  ;;  %v4174_v59 = vor.u32 %v6035_v44, %v4171_v47 }
  0x1b   :  { %479 = vmatpush.bf16.msra.mxu3 %v4330_v10  ;;  %v38_v49 = vld [vmem:[%s9452_s1 + $0x8] sm:$0xff]  ;;  %v6704_v51 = vpack.c.bf16 %v39_v39, %v39_v39  ;;  %v6067_v53 = vld [vmem:[%s9451_s2 + $0x164] sm:$0xf]  ;;  %v6717_v56 = vpack.c.bf16 %v40_v43, %v40_v43  ;;  %v6033_v63 = vld [vmem:[%s9451_s2 + $0x54] sm:$0xf] }
  0x1c   :  { %441 = vmatpush.bf16.msra.mxu0 %v4130_v16  ;;  %v4235_v52 = vld [vmem:[%s9451_s2 + $0xe8] sm:$0xf0]  ;;  %v6083_v57 = vld [vmem:[%s9451_s2 + $0x1e4] sm:$0xf]  ;;  %v6725_v60 = vpack.c.bf16 %v38_v49, %v38_v49  ;;  %v4163_v0 = vld [vmem:[%s9451_s2 + $0x58] sm:$0xf0] }
  0x1d   :  { %454 = vmatpush.bf16.msra.mxu1 %v4194_v19  ;;  %v4299_v54 = vld [vmem:[%s9451_s2 + $0x168] sm:$0xf0]  ;;  %v4238_v61 = vor.u32 %v6051_v48, %v4235_v52  ;;  %v6049_v1 = vld [vmem:[%s9451_s2 + $0xd4] sm:$0xf]  ;;  %v4227_v3 = vld [vmem:[%s9451_s2 + $0xd8] sm:$0xf0]  ;;  %v4166_v8 = vor.u32 %v6033_v63, %v4163_v0 }
  0x1e   :  { %467 = vmatpush.bf16.msra.mxu2 %v4258_v20  ;;  %v4363_v58 = vld [vmem:[%s9451_s2 + $0x1e8] sm:$0xf0]  ;;  %v4302_v62 = vor.u32 %v6067_v53, %v4299_v54  ;;  %v6065_v4 = vld [vmem:[%s9451_s2 + $0x154] sm:$0xf]  ;;  %v4291_v5 = vld [vmem:[%s9451_s2 + $0x158] sm:$0xf0]  ;;  %v4230_v9 = vor.u32 %v6049_v1, %v4227_v3 }
  0x1f   :  { %480 = vmatpush.bf16.msra.mxu3 %v4322_v24  ;;  %v4366_v2 = vor.u32 %v6083_v57, %v4363_v58  ;;  %v6081_v6 = vld [vmem:[%s9451_s2 + $0x1d4] sm:$0xf]  ;;  %v4355_v7 = vld [vmem:[%s9451_s2 + $0x1d8] sm:$0xf0]  ;;  %v4294_v10 = vor.u32 %v6065_v4, %v4291_v5  ;;  %v6031_v11 = vld [vmem:[%s9451_s2 + $0x44] sm:$0xf] }
  0x20   :  { %442 = vmatpush.bf16.msra.mxu0 %v4122_v31  ;;  %v4155_v12 = vld [vmem:[%s9451_s2 + $0x48] sm:$0xf0]  ;;  %v6047_v13 = vld [vmem:[%s9451_s2 + $0xc4] sm:$0xf]  ;;  %v4358_v14 = vor.u32 %v6081_v6, %v4355_v7  ;;  %v6029_v23 = vld [vmem:[%s9451_s2 + $0x34] sm:$0xf] }
  0x21   :  { %455 = vmatpush.bf16.msra.mxu1 %v4186_v35  ;;  %v4219_v15 = vld [vmem:[%s9451_s2 + $0xc8] sm:$0xf0]  ;;  %v6063_v16 = vld [vmem:[%s9451_s2 + $0x144] sm:$0xf]  ;;  %v4158_v20 = vor.u32 %v6031_v11, %v4155_v12  ;;  %v4147_v24 = vld [vmem:[%s9451_s2 + $0x38] sm:$0xf0] }
  0x22   :  { %468 = vmatpush.bf16.msra.mxu2 %v4250_v36  ;;  %v4283_v17 = vld [vmem:[%s9451_s2 + $0x148] sm:$0xf0]  ;;  %v6079_v18 = vld [vmem:[%s9451_s2 + $0x1c4] sm:$0xf]  ;;  %v4222_v21 = vor.u32 %v6047_v13, %v4219_v15  ;;  %v6045_v25 = vld [vmem:[%s9451_s2 + $0xb4] sm:$0xf]  ;;  %v4150_v32 = vor.u32 %v6029_v23, %v4147_v24 }
  0x23   :  { %481 = vmatpush.bf16.msra.mxu3 %v4314_v40  ;;  %443 = vmatmul.bf16.vlgmr.msra.gmra.mxu0 %v6715_v55  ;;  %v4347_v19 = vld [vmem:[%s9451_s2 + $0x1c8] sm:$0xf0]  ;;  %v4286_v22 = vor.u32 %v6063_v16, %v4283_v17  ;;  %v4211_v27 = vld [vmem:[%s9451_s2 + $0xb8] sm:$0xf0]  ;;  %v6061_v28 = vld [vmem:[%s9451_s2 + $0x134] sm:$0xf] }
  0x24   :  { %487 = vmatpush.bf16.msrb.mxu0 %v4182_v41  ;;  %456 = vmatmul.bf16.vlgmr.msra.gmra.mxu1 %v6725_v60  ;;  %v4350_v26 = vor.u32 %v6079_v18, %v4347_v19  ;;  %v4275_v29 = vld [vmem:[%s9451_s2 + $0x138] sm:$0xf0]  ;;  %v6077_v30 = vld [vmem:[%s9451_s2 + $0x1b4] sm:$0xf]  ;;  %v4214_v33 = vor.u32 %v6045_v25, %v4211_v27  ;;  %v6027_v35 = vld [vmem:[%s9451_s2 + $0x24] sm:$0xf] }
  0x25   :  { %500 = vmatpush.bf16.msrb.mxu1 %v4246_v45  ;;  %469 = vmatmul.bf16.vlgmr.msra.gmra.mxu2 %v6704_v51  ;;  %v4339_v31 = vld [vmem:[%s9451_s2 + $0x1b8] sm:$0xf0]  ;;  %v4278_v34 = vor.u32 %v6061_v28, %v4275_v29  ;;  %v4139_v36 = vld [vmem:[%s9451_s2 + $0x28] sm:$0xf0]  ;;  %v6043_v37 = vld [vmem:[%s9451_s2 + $0xa4] sm:$0xf] }
  0x26   :  { %513 = vmatpush.bf16.msrb.mxu2 %v4310_v46  ;;  %482 = vmatmul.bf16.vlgmr.msra.gmra.mxu3 %v6717_v56  ;;  %v4342_v38 = vor.u32 %v6077_v30, %v4339_v31  ;;  %v4203_v39 = vld [vmem:[%s9451_s2 + $0xa8] sm:$0xf0]  ;;  %v6059_v40 = vld [vmem:[%s9451_s2 + $0x124] sm:$0xf]  ;;  %v4142_v44 = vor.u32 %v6027_v35, %v4139_v36  ;;  %v6025_v47 = vld [vmem:[%s9451_s2 + $0x14] sm:$0xf] }
  0x27   :  { %526 = vmatpush.bf16.msrb.mxu3 %v4374_v50  ;;  %v4267_v41 = vld [vmem:[%s9451_s2 + $0x128] sm:$0xf0]  ;;  %v6075_v42 = vld [vmem:[%s9451_s2 + $0x1a4] sm:$0xf]  ;;  %v4206_v45 = vor.u32 %v6043_v37, %v4203_v39  ;;  %v4131_v48 = vld [vmem:[%s9451_s2 + $0x18] sm:$0xf0] }
  0x28   :  { %488 = vmatpush.bf16.msrb.mxu0 %v4174_v59  ;;  %v4331_v43 = vld [vmem:[%s9451_s2 + $0x1a8] sm:$0xf0]  ;;  %v4270_v46 = vor.u32 %v6059_v40, %v4267_v41  ;;  %v6041_v49 = vld [vmem:[%s9451_s2 + $0x94] sm:$0xf]  ;;  %v4195_v52 = vld [vmem:[%s9451_s2 + $0x98] sm:$0xf0]  ;;  %v4134_v59 = vor.u32 %v6025_v47, %v4131_v48 }
  0x29   :  { %501 = vmatpush.bf16.msrb.mxu1 %v4238_v61  ;;  %v4334_v50 = vor.u32 %v6075_v42, %v4331_v43  ;;  %v6057_v53 = vld [vmem:[%s9451_s2 + $0x114] sm:$0xf]  ;;  %v4259_v54 = vld [vmem:[%s9451_s2 + $0x118] sm:$0xf0]  ;;  %v6023_v61 = vld [vmem:[%s9451_s2 + $0x4] sm:$0xf] }
  0x2a   :  { %514 = vmatpush.bf16.msrb.mxu2 %v4302_v62  ;;  %v6073_v57 = vld [vmem:[%s9451_s2 + $0x194] sm:$0xf]  ;;  %v4323_v58 = vld [vmem:[%s9451_s2 + $0x198] sm:$0xf0]  ;;  %v4198_v62 = vor.u32 %v6041_v49, %v4195_v52  ;;  %v4262_v63 = vor.u32 %v6057_v53, %v4259_v54  ;;  %v4123_v0 = vld [vmem:[%s9451_s2 + $0x8] sm:$0xf0] }
  0x2b   :  { %527 = vmatpush.bf16.msrb.mxu3 %v4366_v2  ;;  %v6039_v1 = vld [vmem:[%s9451_s2 + $0x84] sm:$0xf]  ;;  %v4187_v2 = vld [vmem:[%s9451_s2 + $0x88] sm:$0xf0]  ;;  %v4326_v3 = vor.u32 %v6073_v57, %v4323_v58  ;;  %v4497_v11 = vld [vmem:[%s9453_s4 + $0xf0] sm:$0xf] }
  0x2c   :  { %489 = vmatpush.bf16.msrb.mxu0 %v4166_v8  ;;  %v6055_v4 = vld [vmem:[%s9451_s2 + $0x104] sm:$0xf]  ;;  %v4251_v5 = vld [vmem:[%s9451_s2 + $0x108] sm:$0xf0]  ;;  %v4433_v8 = vld [vmem:[%s9453_s4 + $0x70] sm:$0xf]  ;;  %v4190_v13 = vor.u32 %v6039_v1, %v4187_v2 }
  0x2d   :  { %502 = vmatpush.bf16.msrb.mxu1 %v4230_v9  ;;  %v6071_v6 = vld [vmem:[%s9451_s2 + $0x184] sm:$0xf]  ;;  %v4315_v7 = vld [vmem:[%s9451_s2 + $0x188] sm:$0xf0]  ;;  %v6102_v9 = vld [vmem:[%s9453_s4 + $0x74] sm:$0xf0] }
  0x2e   :  { %515 = vmatpush.bf16.msrb.mxu2 %v4294_v10  ;;  %v4126_v10 = vor.u32 %v6023_v61, %v4123_v0  ;;  %v6118_v12 = vld [vmem:[%s9453_s4 + $0xf4] sm:$0xf0]  ;;  %v4318_v15 = vor.u32 %v6071_v6, %v4315_v7  ;;  %v4434_v16 = vor.u32 %v6102_v9, %v4433_v8  ;;  %v4425_v17 = vld [vmem:[%s9453_s4 + $0x60] sm:$0xf]  ;;  %v6100_v18 = vld [vmem:[%s9453_s4 + $0x64] sm:$0xf0] }
  0x2f   :  { %528 = vmatpush.bf16.msrb.mxu3 %v4358_v14  ;;  %v4254_v14 = vor.u32 %v6055_v4, %v4251_v5  ;;  %v4498_v19 = vor.u32 %v6118_v12, %v4497_v11  ;;  %v4417_v23 = vld [vmem:[%s9453_s4 + $0x50] sm:$0xf]  ;;  %v6098_v24 = vld [vmem:[%s9453_s4 + $0x54] sm:$0xf0]  ;;  %v4409_v28 = vld [vmem:[%s9453_s4 + $0x40] sm:$0xf] }
  0x30   :  { %490 = vmatpush.bf16.msrb.mxu0 %v4158_v20  ;;  %v4489_v20 = vld [vmem:[%s9453_s4 + $0xe0] sm:$0xf]  ;;  %v4418_v27 = vor.u32 %v6098_v24, %v4417_v23  ;;  %v4401_v31 = vld [vmem:[%s9453_s4 + $0x30] sm:$0xf]  ;;  %v6110_v35 = vld [vmem:[%s9453_s4 + $0xb4] sm:$0xf0] }
  0x31   :  { %503 = vmatpush.bf16.msrb.mxu1 %v4222_v21  ;;  %v6116_v21 = vld [vmem:[%s9453_s4 + $0xe4] sm:$0xf0]  ;;  %v4473_v29 = vld [vmem:[%s9453_s4 + $0xc0] sm:$0xf]  ;;  %v6101_v42 = vld [vmem:[%s9453_s4 + $0x74] sm:$0xf] }
  0x32   :  { %516 = vmatpush.bf16.msrb.mxu2 %v4286_v22  ;;  %v4426_v22 = vor.u32 %v6100_v18, %v4425_v17  ;;  %v4490_v25 = vor.u32 %v6116_v21, %v4489_v20  ;;  %v4393_v37 = vld [vmem:[%s9453_s4 + $0x20] sm:$0xf]  ;;  %v6108_v41 = vld [vmem:[%s9453_s4 + $0xa4] sm:$0xf0]  ;;  %v6117_v49 = vld [vmem:[%s9453_s4 + $0xf4] sm:$0xf] }
  0x33   :  { %529 = vmatpush.bf16.msrb.mxu3 %v4350_v26  ;;  %v4481_v26 = vld [vmem:[%s9453_s4 + $0xd0] sm:$0xf]  ;;  %v4457_v40 = vld [vmem:[%s9453_s4 + $0xa0] sm:$0xf]  ;;  %v6106_v53 = vld [vmem:[%s9453_s4 + $0x94] sm:$0xf0] }
  0x34   :  { %491 = vmatpush.bf16.msrb.mxu0 %v4150_v32  ;;  %v6094_v32 = vld [vmem:[%s9453_s4 + $0x34] sm:$0xf0]  ;;  %v4458_v47 = vor.u32 %v6108_v41, %v4457_v40  ;;  %v4449_v52 = vld [vmem:[%s9453_s4 + $0x90] sm:$0xf]  ;;  %v4377_v58 = vld [vmem:[%s9453_s4] sm:$0xf] }
  0x35   :  { %504 = vmatpush.bf16.msrb.mxu1 %v4214_v33  ;;  %v4402_v36 = vor.u32 %v6094_v32, %v4401_v31  ;;  %v4450_v61 = vor.u32 %v6106_v53, %v4449_v52  ;;  %v541_v0 = vld [vmem:[%s9454_s0 + $0x10] sm:$0xff]  ;;  %v543_v2 = vld [vmem:[%s9454_s0 + $0x20] sm:$0xff]  ;;  %v4427_v6 = vld [vmem:[%s9453_s4 + $0x68] sm:$0xf0] }
  0x36   :  { %517 = vmatpush.bf16.msrb.mxu2 %v4278_v34  ;;  %v4465_v34 = vld [vmem:[%s9453_s4 + $0xb0] sm:$0xf]  ;;  %v6099_v5 = vld [vmem:[%s9453_s4 + $0x64] sm:$0xf]  ;;  %v4441_v8 = vld [vmem:[%s9453_s4 + $0x80] sm:$0xf] }
  0x37   :  { %530 = vmatpush.bf16.msrb.mxu3 %v4342_v38  ;;  %v6092_v38 = vld [vmem:[%s9453_s4 + $0x24] sm:$0xf0]  ;;  %v4466_v39 = vor.u32 %v6110_v35, %v4465_v34  ;;  %v4430_v7 = vor.u32 %v6099_v5, %v4427_v6  ;;  %v4491_v12 = vld [vmem:[%s9453_s4 + $0xe8] sm:$0xf0]  ;;  %v542_v18 = vld [vmem:[%s9454_s0 + $0x18] sm:$0xff] }
  0x38   :  { %492 = vmatpush.bf16.msrb.mxu0 %v4142_v44  ;;  %v4394_v43 = vor.u32 %v6092_v38, %v4393_v37  ;;  %v4385_v44 = vld [vmem:[%s9453_s4 + $0x10] sm:$0xf]  ;;  %v6104_v9 = vld [vmem:[%s9453_s4 + $0x84] sm:$0xf0]  ;;  %v6113_v20 = vld [vmem:[%s9453_s4 + $0xd4] sm:$0xf] }
  0x39   :  { %505 = vmatpush.bf16.msrb.mxu1 %v4206_v45  ;;  %v4435_v45 = vld [vmem:[%s9453_s4 + $0x78] sm:$0xf0]  ;;  %v4442_v11 = vor.u32 %v6104_v9, %v4441_v8  ;;  %v540_v17 = vld [vmem:[%s9454_s0 + $0x8] sm:$0xff]  ;;  %v6095_v23 = vld [vmem:[%s9453_s4 + $0x44] sm:$0xf] }
  0x3a   :  { %518 = vmatpush.bf16.msrb.mxu2 %v4270_v46  ;;  %v6090_v46 = vld [vmem:[%s9453_s4 + $0x14] sm:$0xf0]  ;;  %v4438_v48 = vor.u32 %v6101_v42, %v4435_v45  ;;  %v4483_v21 = vld [vmem:[%s9453_s4 + $0xd8] sm:$0xf0]  ;;  %v4411_v24 = vld [vmem:[%s9453_s4 + $0x48] sm:$0xf0] }
  0x3b   :  { %531 = vmatpush.bf16.msrb.mxu3 %v4334_v50  ;;  %v4499_v50 = vld [vmem:[%s9453_s4 + $0xf8] sm:$0xf0]  ;;  %v4386_v57 = vor.u32 %v6090_v46, %v4385_v44  ;;  %v6091_v31 = vld [vmem:[%s9453_s4 + $0x24] sm:$0xf]  ;;  %v4395_v32 = vld [vmem:[%s9453_s4 + $0x28] sm:$0xf0] }
  0x3c   :  { %493 = vmatpush.bf16.msrb.mxu0 %v4134_v59  ;;  %v4502_v54 = vor.u32 %v6117_v49, %v4499_v50  ;;  %v6088_v59 = vld [vmem:[%s9453_s4 + $0x4] sm:$0xf0]  ;;  %v6107_v34 = vld [vmem:[%s9453_s4 + $0xa4] sm:$0xf]  ;;  %v4459_v35 = vld [vmem:[%s9453_s4 + $0xa8] sm:$0xf0] }
  0x3d   :  { %506 = vmatpush.bf16.msrb.mxu1 %v4198_v62  ;;  %v4378_v62 = vor.u32 %v6088_v59, %v4377_v58  ;;  %v6089_v37 = vld [vmem:[%s9453_s4 + $0x14] sm:$0xf]  ;;  %v4387_v38 = vld [vmem:[%s9453_s4 + $0x18] sm:$0xf0]  ;;  %v544_v40 = vld [vmem:[%s9454_s0 + $0x28] sm:$0xff] }
  0x3e   :  { %519 = vmatpush.bf16.msrb.mxu2 %v4262_v63  ;;  %v539_v63 = vld [vmem:[%s9454_s0] sm:$0xff]  ;;  %v546_v41 = vld [vmem:[%s9454_s0 + $0x38] sm:$0xff]  ;;  %v4443_v50 = vld [vmem:[%s9453_s4 + $0x88] sm:$0xf0] }
  0x3f   :  { %532 = vmatpush.bf16.msrb.mxu3 %v4326_v3  ;;  %v6987_v1 = vpack.c.bf16 %v541_v0, %v539_v63  ;;  %v545_v3 = vld [vmem:[%s9454_s0 + $0x30] sm:$0xff]  ;;  %v582_v42 = vpack.c.bf16 %v546_v41, %v544_v40  ;;  %v4451_v44 = vld [vmem:[%s9453_s4 + $0x98] sm:$0xf0]  ;;  %v6087_v46 = vld [vmem:[%s9453_s4 + $0x4] sm:$0xf] }
  0x40   :  { %494 = vmatpush.bf16.msrb.mxu0 %v4126_v10  ;;  %v6996_v4 = vpack.c.bf16 %v545_v3, %v543_v2  ;;  %v6115_v10 = vld [vmem:[%s9453_s4 + $0xe4] sm:$0xf]  ;;  %v109_v53 = vld [vmem:[%s9455_s3] sm:$0x3]  ;;  %v826_v8 = vld [vmem:[%s9456_s6 + $0x8] sm:$0xff] }
  0x41   :  { %507 = vmatpush.bf16.msrb.mxu1 %v4190_v13  ;;  %v4494_v13 = vor.u32 %v6115_v10, %v4491_v12  ;;  %v6103_v49 = vld [vmem:[%s9453_s4 + $0x84] sm:$0xf]  ;;  %v112_v9 = vperm.slane %v109_v53, 1 }
  0x42   :  { %520 = vmatpush.bf16.msrb.mxu2 %v4254_v14  ;;  %v6097_v14 = vld [vmem:[%s9453_s4 + $0x54] sm:$0xf]  ;;  %v4446_v52 = vor.u32 %v6103_v49, %v4443_v50  ;;  %v825_v3 = vld [vmem:[%s9456_s6] sm:$0xff] }
  0x43   :  { %533 = vmatpush.bf16.msrb.mxu3 %v4318_v15  ;;  %495 = vmatmul.bf16.vlgmr.msrb.gmra.mxu0 %v6715_v55  ;;  %v6114_v55 = vld [vmem:[%s9453_s4 + $0xd4] sm:$0xf0]  ;;  %v4419_v15 = vld [vmem:[%s9453_s4 + $0x58] sm:$0xf0]  ;;  %v7152_v50 = vld [vmem:[%s9459_s7 + $0x20] sm:$0xff] }
  0x44   :  { %749 = vmatpush.bf16.msra.mxu0 %v4434_v16  ;;  %508 = vmatmul.bf16.vlgmr.msrb.gmra.mxu1 %v6725_v60  ;;  %v4482_v60 = vor.u32 %v6114_v55, %v4481_v26  ;;  %v4422_v16 = vor.u32 %v6097_v14, %v4419_v15  ;;  %v6111_v26 = vld [vmem:[%s9453_s4 + $0xc4] sm:$0xf]  ;;  %v4475_v55 = vld [vmem:[%s9453_s4 + $0xc8] sm:$0xf0]  ;;  %v828_v14 = vld [vmem:[%s9456_s6 + $0x18] sm:$0xff] }
  0x45   :  { %768 = vmatpush.bf16.msra.mxu1 %v4498_v19  ;;  %521 = vmatmul.bf16.vlgmr.msrb.gmra.mxu2 %v6704_v51  ;;  %v6096_v51 = vld [vmem:[%s9453_s4 + $0x44] sm:$0xf0]  ;;  %v580_v19 = vpack.c.bf16 %v542_v18, %v540_v17 }
  0x46   :  { %534 = vmatmul.bf16.vlgmr.msrb.gmra.mxu3 %v6717_v56  ;;  %v6112_v56 = vld [vmem:[%s9453_s4 + $0xc4] sm:$0xf0]  ;;  %v4410_v30 = vor.u32 %v6096_v51, %v4409_v28  ;;  %787 = vmatpush.bf16.msra.mxu2 %v4438_v48  ;;  %v6093_v28 = vld [vmem:[%s9453_s4 + $0x34] sm:$0xf]  ;;  %v4403_v51 = vld [vmem:[%s9453_s4 + $0x38] sm:$0xf0] }
  0x47   :  { %v4474_v33 = vor.u32 %v6112_v56, %v4473_v29  ;;  %806 = vmatpush.bf16.msra.mxu3 %v4502_v54  ;;  %v6109_v29 = vld [vmem:[%s9453_s4 + $0xb4] sm:$0xf]  ;;  %v4467_v56 = vld [vmem:[%s9453_s4 + $0xb8] sm:$0xf0]  ;;  %v111_v54 = vperm.slane %v109_v53, 0 }
  0x48   :  { %750 = vmatpush.bf16.msra.mxu0 %v4426_v22  ;;  %v4486_v22 = vor.u32 %v6113_v20, %v4483_v21 }
  0x49   :  { %769 = vmatpush.bf16.msra.mxu1 %v4490_v25  ;;  %v4414_v25 = vor.u32 %v6095_v23, %v4411_v24 }
  0x4a   :  { %788 = vmatpush.bf16.msra.mxu2 %v4430_v7 }
  0x4b   :  { %807 = vmatpush.bf16.msra.mxu3 %v4494_v13 }
  0x4c   :  { %751 = vmatpush.bf16.msra.mxu0 %v4418_v27  ;;  %v4478_v27 = vor.u32 %v6111_v26, %v4475_v55 }
  0x4d   :  { %770 = vmatpush.bf16.msra.mxu1 %v4482_v60  ;;  %v4406_v60 = vor.u32 %v6093_v28, %v4403_v51 }
  0x4e   :  { %789 = vmatpush.bf16.msra.mxu2 %v4422_v16 }
  0x4f   :  { %808 = vmatpush.bf16.msra.mxu3 %v4486_v22 }
  0x50   :  { %752 = vmatpush.bf16.msra.mxu0 %v4410_v30  ;;  %v4470_v30 = vor.u32 %v6109_v29, %v4467_v56  ;;  %v583_v29 = vld [vmem:[%s9458_s5] sm:$0x3] }
  0x51   :  { %771 = vmatpush.bf16.msra.mxu1 %v4474_v33  ;;  %v4398_v33 = vor.u32 %v6091_v31, %v4395_v32  ;;  %v585_v31 = vperm.slane %v583_v29, 0 }
  0x52   :  { %790 = vmatpush.bf16.msra.mxu2 %v4414_v25 }
  0x53   :  { %809 = vmatpush.bf16.msra.mxu3 %v4478_v27 }
  0x54   :  { %753 = vmatpush.bf16.msra.mxu0 %v4402_v36  ;;  %v4462_v36 = vor.u32 %v6107_v34, %v4459_v35 }
  0x55   :  { %772 = vmatpush.bf16.msra.mxu1 %v4466_v39  ;;  %v4390_v39 = vor.u32 %v6089_v37, %v4387_v38 }
  0x56   :  { %791 = vmatpush.bf16.msra.mxu2 %v4406_v60 }
  0x57   :  { %810 = vmatpush.bf16.msra.mxu3 %v4470_v30 }
  0x58   :  { %754 = vmatpush.bf16.msra.mxu0 %v4394_v43  ;;  %v6105_v43 = vld [vmem:[%s9453_s4 + $0x94] sm:$0xf] }
  0x59   :  { %773 = vmatpush.bf16.msra.mxu1 %v4458_v47  ;;  %v4454_v45 = vor.u32 %v6105_v43, %v4451_v44  ;;  %v4379_v47 = vld [vmem:[%s9453_s4 + $0x8] sm:$0xf0] }
  0x5a   :  { %792 = vmatpush.bf16.msra.mxu2 %v4398_v33  ;;  %v4382_v48 = vor.u32 %v6087_v46, %v4379_v47 }
  0x5b   :  { %811 = vmatpush.bf16.msra.mxu3 %v4462_v36 }
  0x5c   :  { %755 = vmatpush.bf16.msra.mxu0 %v4386_v57 }
  0x5d   :  { %774 = vmatpush.bf16.msra.mxu1 %v4450_v61 }
  0x5e   :  { %793 = vmatpush.bf16.msra.mxu2 %v4390_v39 }
  0x5f   :  { %812 = vmatpush.bf16.msra.mxu3 %v4454_v45 }
  0x60   :  { %756 = vmatpush.bf16.msra.mxu0 %v4378_v62 }
  0x61   :  { %775 = vmatpush.bf16.msra.mxu1 %v4442_v11 }
  0x62   :  { %794 = vmatpush.bf16.msra.mxu2 %v4382_v48 }
  0x63   :  { %757 = vmatmul.bf16.vlgmr.msra.gmra.mxu0 %v6987_v1  ;;  %813 = vmatpush.bf16.msra.mxu3 %v4446_v52  ;;  %v7157_v52 = vld [vmem:[%s9459_s7] sm:$0xff] }
  0x64   :  { %776 = vmatmul.bf16.vlgmr.msra.gmra.mxu1 %v580_v19 }
  0x65   :  { %795 = vmatmul.bf16.vlgmr.msra.gmra.mxu2 %v6987_v1 }
  0x66   :  { %814 = vmatmul.bf16.vlgmr.msra.gmra.mxu3 %v580_v19 }
  0x73   :  { %762 = vmatmul.bf16.gmra.mxu0 %v6996_v4 }
  0x74   :  { %781 = vmatmul.bf16.gmra.mxu1 %v582_v42 }
  0x75   :  { %800 = vmatmul.bf16.gmra.mxu2 %v6996_v4  ;;  %v827_v4 = vld [vmem:[%s9456_s6 + $0x10] sm:$0xff] }
  0x76   :  { %819 = vmatmul.bf16.gmra.mxu3 %v582_v42 }
  0xa0   :  { %v444_v57 = vpop.f32.mrf.mxu0 }
  0xa1   :  { %v445_v58 = vadd.f32 %v444_v57, %v111_v54  ;;  %v457_v59 = vpop.f32.mrf.mxu1  ;;  %v7168_v57 = vld [vmem:[%s9459_s7 + $0x28] sm:$0xff] }
  0xa3   :  { %v458_v61 = vadd.f32 %v457_v59, %v445_v58  ;;  %v7173_v58 = vld [vmem:[%s9459_s7 + $0x8] sm:$0xff] }
  0xa8   :  { %v470_v62 = vpop.f32.mrf.mxu2  ;;  %v446_v1 = vpop.f32.mrf.mxu0 }
  0xa9   :  { %v471_v63 = vadd.f32 %v470_v62, %v458_v61  ;;  %v483_v0 = vpop.f32.mrf.mxu3  ;;  %v459_v5 = vpop.f32.mrf.mxu1 }
  0xab   :  { %v484_v2 = vadd.f32 %v483_v0, %v471_v63  ;;  %v586_v63 = vperm.slane %v583_v29, 1  ;;  %v7182_v0 = vld [vmem:[%s9459_s7 + $0x30] sm:$0xff] }
  0xac   :  { %v6161_v29 = vld [vmem:[%s9460_s8 + $0x154] sm:$0xf] }
  0xad   :  { %4109 = vst [vmem:[%s9457_s11] sm:$0xff] %v484_v2  ;;  %857 = vmatpush.msrb.mxu0 %v484_v2  ;;  %v7187_v2 = vld [vmem:[%s9459_s7 + $0x10] sm:$0xff] }
  0xae   :  { %4503 = vmatmul.msk.f32.vlgmr.msrb.gmra.mxu0 %vm829_vm0, %v825_v3 }
  0xb0   :  { %v472_v6 = vpop.f32.mrf.mxu2 }
  0xb1   :  { %v485_v7 = vpop.f32.mrf.mxu3 }
  0xb6   :  { %4504 = vmatmul.msk.f32.gmra.mxu0 %vm829_vm0, %v826_v8 }
  0xbe   :  { %4505 = vmatmul.msk.f32.gmra.mxu0 %vm829_vm0, %v827_v4 }
  0xc0   :  { %v496_v10 = vpop.f32.mrf.mxu0 }
  0xc1   :  { %v497_v11 = vadd.f32 %v496_v10, %v112_v9  ;;  %v509_v12 = vpop.f32.mrf.mxu1 }
  0xc3   :  { %v510_v13 = vadd.f32 %v509_v12, %v497_v11  ;;  %v7198_v11 = vld [vmem:[%s9459_s7 + $0x38] sm:$0xff] }
  0xc4   :  { %v7203_v12 = vld [vmem:[%s9459_s7 + $0x18] sm:$0xff] }
  0xc6   :  { %4506 = vmatmul.msk.f32.gmra.mxu0 %vm829_vm0, %v828_v14 }
  0xc8   :  { %v522_v15 = vpop.f32.mrf.mxu2  ;;  %v498_v18 = vpop.f32.mrf.mxu0 }
  0xc9   :  { %v523_v16 = vadd.f32 %v522_v15, %v510_v13  ;;  %v535_v17 = vpop.f32.mrf.mxu3  ;;  %v511_v19 = vpop.f32.mrf.mxu1  ;;  %v6166_v15 = vld [vmem:[%s9460_s8 + $0x174] sm:$0xf0] }
  0xcb   :  { %v536_v20 = vadd.f32 %v535_v17, %v523_v16  ;;  %v6165_v16 = vld [vmem:[%s9460_s8 + $0x174] sm:$0xf] }
  0xcd   :  { %4110 = vst [vmem:[%s9457_s11 + $0x8] sm:$0xff] %v536_v20  ;;  %886 = vmatpush.msrb.mxu1 %v536_v20  ;;  %v4623_v20 = vld [vmem:[%s9460_s8 + $0x178] sm:$0xf0] }
  0xce   :  { %4507 = vmatmul.msk.f32.vlgmr.msrb.gmra.mxu1 %vm829_vm0, %v825_v3 }
  0xd0   :  { %v524_v21 = vpop.f32.mrf.mxu2 }
  0xd1   :  { %v537_v22 = vpop.f32.mrf.mxu3  ;;  %v4613_v21 = vld [vmem:[%s9460_s8 + $0x160] sm:$0xf] }
  0xd2   :  { %v4626_v22 = vor.u32 %v6165_v16, %v4623_v20  ;;  %v6176_v16 = vld [vmem:[%s9460_s8 + $0x1c4] sm:$0xf0] }
  0xd6   :  { %4508 = vmatmul.msk.f32.gmra.mxu1 %vm829_vm0, %v826_v8 }
  0xde   :  { %4509 = vmatmul.msk.f32.gmra.mxu1 %vm829_vm0, %v827_v4 }
  0xe0   :  { %v758_v23 = vpop.f32.mrf.mxu0 }
  0xe1   :  { %v777_v55 = vpop.f32.mrf.mxu1  ;;  %v759_v36 = vadd.f32 %v758_v23, %v585_v31  ;;  %v6164_v23 = vld [vmem:[%s9460_s8 + $0x164] sm:$0xf0] }
  0xe3   :  { %v778_v43 = vadd.f32 %v777_v55, %v759_v36  ;;  %v4685_v36 = vld [vmem:[%s9460_s8 + $0x1f0] sm:$0xf] }
  0xe6   :  { %4510 = vmatmul.msk.f32.gmra.mxu1 %vm829_vm0, %v828_v14  ;;  %v4621_v14 = vld [vmem:[%s9460_s8 + $0x170] sm:$0xf] }
  0xe7   :  { %v4622_v19 = vor.u32 %v6166_v15, %v4621_v14  ;;  %v4661_v15 = vld [vmem:[%s9460_s8 + $0x1c0] sm:$0xf] }
  0xe8   :  { %v760_v24 = vpop.f32.mrf.mxu0  ;;  %v796_v30 = vpop.f32.mrf.mxu2 }
  0xe9   :  { %v779_v28 = vpop.f32.mrf.mxu1  ;;  %v815_v35 = vpop.f32.mrf.mxu3  ;;  %v761_v37 = vadd.f32 %v760_v24, %v585_v31  ;;  %v797_v6 = vadd.f32 %v796_v30, %v586_v63  ;;  %v6163_v24 = vld [vmem:[%s9460_s8 + $0x164] sm:$0xf] }
  0xeb   :  { %v780_v44 = vadd.f32 %v779_v28, %v761_v37  ;;  %v816_v13 = vadd.f32 %v815_v35, %v797_v6  ;;  %v4599_v35 = vld [vmem:[%s9460_s8 + $0x148] sm:$0xf0]  ;;  %v6182_v37 = vld [vmem:[%s9460_s8 + $0x1f4] sm:$0xf0] }
  0xf0   :  { %v763_v25 = vpop.f32.mrf.mxu0  ;;  %v798_v42 = vpop.f32.mrf.mxu2 }
  0xf1   :  { %v782_v60 = vpop.f32.mrf.mxu1  ;;  %v764_v32 = vadd.f32 %v763_v25, %v585_v31  ;;  %v817_v48 = vpop.f32.mrf.mxu3  ;;  %v799_v7 = vadd.f32 %v798_v42, %v586_v63  ;;  %v4615_v25 = vld [vmem:[%s9460_s8 + $0x168] sm:$0xf0]  ;;  %v4687_v42 = vld [vmem:[%s9460_s8 + $0x1f8] sm:$0xf0] }
  0xf2   :  { %v4618_v28 = vor.u32 %v6163_v24, %v4615_v25  ;;  %v6153_v24 = vld [vmem:[%s9460_s8 + $0x114] sm:$0xf]  ;;  %v4575_v25 = vld [vmem:[%s9460_s8 + $0x118] sm:$0xf0] }
  0xf3   :  { %v783_v38 = vadd.f32 %v782_v60, %v764_v32  ;;  %v818_v17 = vadd.f32 %v817_v48, %v799_v7  ;;  %v6162_v60 = vld [vmem:[%s9460_s8 + $0x154] sm:$0xf0]  ;;  %v4597_v32 = vld [vmem:[%s9460_s8 + $0x140] sm:$0xf]  ;;  %v4671_v7 = vld [vmem:[%s9460_s8 + $0x1d8] sm:$0xf0] }
  0xf8   :  { %v765_v26 = vpop.f32.mrf.mxu0  ;;  %v801_v53 = vpop.f32.mrf.mxu2 }
  0xf9   :  { %v766_v33 = vadd.f32 %v765_v26, %v585_v31  ;;  %v784_v34 = vpop.f32.mrf.mxu1  ;;  %v820_v59 = vpop.f32.mrf.mxu3  ;;  %v802_v3 = vadd.f32 %v801_v53, %v586_v63  ;;  %v6157_v53 = vld [vmem:[%s9460_s8 + $0x134] sm:$0xf] }
  0xfb   :  { %v785_v39 = vadd.f32 %v784_v34, %v766_v33  ;;  %v821_v8 = vadd.f32 %v820_v59, %v802_v3  ;;  %v6160_v33 = vld [vmem:[%s9460_s8 + $0x144] sm:$0xf0]  ;;  %v6159_v34 = vld [vmem:[%s9460_s8 + $0x144] sm:$0xf]  ;;  %v4669_v3 = vld [vmem:[%s9460_s8 + $0x1d0] sm:$0xf] }
 0x100   :  { %v803_v62 = vpop.f32.mrf.mxu2 }
 0x101   :  { %v804_v1 = vadd.f32 %v803_v62, %v586_v63  ;;  %v822_v5 = vpop.f32.mrf.mxu3  ;;  %v4679_v62 = vld [vmem:[%s9460_s8 + $0x1e8] sm:$0xf0] }
 0x103   :  { %v823_v4 = vadd.f32 %v822_v5, %v804_v1  ;;  %v6178_v1 = vld [vmem:[%s9460_s8 + $0x1d4] sm:$0xf0] }
 0x12b   :  { %v859_v27 = vpop.f32.mrf.mxu0 }
 0x12c   :  { %v7145_v49 = vadd.f32 %v859_v27, %v778_v43  ;;  %v4614_v27 = vor.u32 %v6164_v23, %v4613_v21  ;;  %v4598_v43 = vor.u32 %v6160_v33, %v4597_v32  ;;  %v6154_v23 = vld [vmem:[%s9460_s8 + $0x114] sm:$0xf0]  ;;  %v4749_v32 = vld [vmem:[%s9460_s8 + $0x70] sm:$0xf] }
 0x133   :  { %v862_v51 = vpop.f32.mrf.mxu0 }
 0x134   :  { %v7141_v46 = vadd.f32 %v862_v51, %v780_v44  ;;  %v4605_v51 = vld [vmem:[%s9460_s8 + $0x150] sm:$0xf]  ;;  %v4602_v44 = vor.u32 %v6159_v34, %v4599_v35  ;;  %v6134_v34 = vld [vmem:[%s9460_s8 + $0x74] sm:$0xf0]  ;;  %v6133_v35 = vld [vmem:[%s9460_s8 + $0x74] sm:$0xf] }
 0x135   :  { %v4606_v30 = vor.u32 %v6162_v60, %v4605_v51  ;;  %v4653_v51 = vld [vmem:[%s9460_s8 + $0x1b0] sm:$0xf]  ;;  %v6174_v60 = vld [vmem:[%s9460_s8 + $0x1b4] sm:$0xf0] }
 0x136   :  { %v4654_v33 = vor.u32 %v6174_v60, %v4653_v51  ;;  %v4637_v51 = vld [vmem:[%s9460_s8 + $0x190] sm:$0xf]  ;;  %v6170_v60 = vld [vmem:[%s9460_s8 + $0x194] sm:$0xf0] }
 0x13b   :  { %v865_v56 = vpop.f32.mrf.mxu0 }
 0x13c   :  { %v7137_v45 = vadd.f32 %v865_v56, %v783_v38  ;;  %v4607_v56 = vld [vmem:[%s9460_s8 + $0x158] sm:$0xf0]  ;;  %v4686_v38 = vor.u32 %v6182_v37, %v4685_v36 }
 0x13d   :  { %v4610_v31 = vor.u32 %v6161_v29, %v4607_v56  ;;  %v4578_v56 = vor.u32 %v6153_v24, %v4575_v25  ;;  %v4751_v36 = vld [vmem:[%s9460_s8 + $0x78] sm:$0xf0]  ;;  %v6123_v24 = vld [vmem:[%s9460_s8 + $0x24] sm:$0xf]  ;;  %v4711_v25 = vld [vmem:[%s9460_s8 + $0x28] sm:$0xf0] }
 0x143   :  { %v868_v40 = vpop.f32.mrf.mxu0 }
 0x144   :  { %v7135_v41 = vadd.f32 %v868_v40, %v785_v39  ;;  %v4589_v39 = vld [vmem:[%s9460_s8 + $0x130] sm:$0xf]  ;;  %v6181_v40 = vld [vmem:[%s9460_s8 + $0x1f4] sm:$0xf] }
 0x145   :  { %v4690_v48 = vor.u32 %v6181_v40, %v4687_v42  ;;  %v4754_v40 = vor.u32 %v6133_v35, %v4751_v36  ;;  %v4741_v42 = vld [vmem:[%s9460_s8 + $0x60] sm:$0xf]  ;;  %v6168_v36 = vld [vmem:[%s9460_s8 + $0x184] sm:$0xf0] }
 0x146   :  { %929 = vmatpush.msrb.mxu2 %v7135_v41  ;;  %1040 = vmatpush.msra.mxu0 %v7135_v41  ;;  %v4629_v35 = vld [vmem:[%s9460_s8 + $0x180] sm:$0xf] }
 0x148   :  { %930 = vmatpush.msrb.mxu2 %v7137_v45  ;;  %1041 = vmatpush.msra.mxu0 %v7137_v45 }
 0x14a   :  { %931 = vmatpush.msrb.mxu2 %v7141_v46  ;;  %1042 = vmatpush.msra.mxu0 %v7141_v46 }
 0x14b   :  { %v888_v47 = vpop.f32.mrf.mxu1 }
 0x14c   :  { %932 = vmatpush.msrb.mxu2 %v7145_v49  ;;  %1043 = vmatpush.msra.mxu0 %v7145_v49  ;;  %v7241_v55 = vadd.f32 %v888_v47, %v816_v13  ;;  %v6158_v47 = vld [vmem:[%s9460_s8 + $0x134] sm:$0xf0]  ;;  %v4670_v13 = vor.u32 %v6178_v1, %v4669_v3  ;;  %v4727_v3 = vld [vmem:[%s9460_s8 + $0x48] sm:$0xf0] }
 0x14d   :  { %4523 = vmatmul.msk.f32.vlgmr.msra.gmra.mxu0 %vm904_vm1, %v7152_v50  ;;  %4511 = vmatmul.msk.f32.vlgmr.msrb.gmra.mxu2 %vm904_vm1, %v7157_v52  ;;  %v4590_v5 = vor.u32 %v6158_v47, %v4589_v39  ;;  %v4750_v39 = vor.u32 %v6134_v34, %v4749_v32  ;;  %v4743_v47 = vld [vmem:[%s9460_s8 + $0x68] sm:$0xf0]  ;;  %v6169_v32 = vld [vmem:[%s9460_s8 + $0x194] sm:$0xf]  ;;  %v4703_v34 = vld [vmem:[%s9460_s8 + $0x18] sm:$0xf0] }
 0x14e   :  { %1283 = vmatpush.bf16.msra.mxu2 %v4622_v19  ;;  %1321 = vmatpush.bf16.msrb.mxu0 %v4626_v22  ;;  %v4663_v19 = vld [vmem:[%s9460_s8 + $0x1c8] sm:$0xf0]  ;;  %v4573_v22 = vld [vmem:[%s9460_s8 + $0x110] sm:$0xf] }
 0x14f   :  { %v4574_v29 = vor.u32 %v6154_v23, %v4573_v22  ;;  %v4647_v23 = vld [vmem:[%s9460_s8 + $0x1a8] sm:$0xf0] }
 0x152   :  { %1284 = vmatpush.bf16.msra.mxu2 %v4614_v27  ;;  %1322 = vmatpush.bf16.msrb.mxu0 %v4618_v28  ;;  %v4662_v27 = vor.u32 %v6176_v16, %v4661_v15  ;;  %v6172_v15 = vld [vmem:[%s9460_s8 + $0x1a4] sm:$0xf0] }
 0x153   :  { %v891_v54 = vpop.f32.mrf.mxu1 }
 0x154   :  { %v7237_v26 = vadd.f32 %v891_v54, %v818_v17  ;;  %v4591_v54 = vld [vmem:[%s9460_s8 + $0x138] sm:$0xf0]  ;;  %v6175_v17 = vld [vmem:[%s9460_s8 + $0x1c4] sm:$0xf] }
 0x155   :  { %4524 = vmatmul.msk.f32.gmra.mxu0 %vm904_vm1, %v7168_v57  ;;  %4512 = vmatmul.msk.f32.gmra.mxu2 %vm904_vm1, %v7173_v58  ;;  %v4594_v6 = vor.u32 %v6157_v53, %v4591_v54  ;;  %v4666_v28 = vor.u32 %v6175_v17, %v4663_v19  ;;  %v6130_v53 = vld [vmem:[%s9460_s8 + $0x54] sm:$0xf0]  ;;  %v4709_v19 = vld [vmem:[%s9460_s8 + $0x20] sm:$0xf] }
 0x156   :  { %1285 = vmatpush.bf16.msra.mxu2 %v4606_v30  ;;  %1323 = vmatpush.bf16.msrb.mxu0 %v4610_v31  ;;  %v4565_v30 = vld [vmem:[%s9460_s8 + $0x100] sm:$0xf]  ;;  %v6152_v31 = vld [vmem:[%s9460_s8 + $0x104] sm:$0xf0] }
 0x157   :  { %v4566_v37 = vor.u32 %v6152_v31, %v4565_v30  ;;  %v6122_v30 = vld [vmem:[%s9460_s8 + $0x14] sm:$0xf0] }
 0x15a   :  { %1286 = vmatpush.bf16.msra.mxu2 %v4598_v43  ;;  %1324 = vmatpush.bf16.msrb.mxu0 %v4602_v44  ;;  %v6132_v43 = vld [vmem:[%s9460_s8 + $0x64] sm:$0xf0]  ;;  %v6131_v44 = vld [vmem:[%s9460_s8 + $0x64] sm:$0xf] }
 0x15b   :  { %v894_v61 = vpop.f32.mrf.mxu1 }
 0x15c   :  { %v7214_v18 = vadd.f32 %v894_v61, %v821_v8  ;;  %v6179_v61 = vld [vmem:[%s9460_s8 + $0x1e4] sm:$0xf]  ;;  %v6156_v8 = vld [vmem:[%s9460_s8 + $0x124] sm:$0xf0] }
 0x15d   :  { %4525 = vmatmul.msk.f32.gmra.mxu0 %vm904_vm1, %v7182_v0  ;;  %4513 = vmatmul.msk.f32.gmra.mxu2 %vm904_vm1, %v7187_v2  ;;  %v4682_v63 = vor.u32 %v6179_v61, %v4679_v62  ;;  %v4725_v61 = vld [vmem:[%s9460_s8 + $0x40] sm:$0xf]  ;;  %v6128_v62 = vld [vmem:[%s9460_s8 + $0x44] sm:$0xf0] }
 0x15e   :  { %1287 = vmatpush.bf16.msra.mxu2 %v4590_v5  ;;  %1325 = vmatpush.bf16.msrb.mxu0 %v4594_v6  ;;  %v4726_v1 = vor.u32 %v6128_v62, %v4725_v61  ;;  %v4717_v6 = vld [vmem:[%s9460_s8 + $0x30] sm:$0xf]  ;;  %v4805_v62 = vld [vmem:[%s9460_s8 + $0xe0] sm:$0xf] }
 0x163   :  { %v897_v9 = vpop.f32.mrf.mxu1 }
 0x164   :  { %v7193_v10 = vadd.f32 %v897_v9, %v823_v4  ;;  %v6155_v4 = vld [vmem:[%s9460_s8 + $0x124] sm:$0xf]  ;;  %v4583_v9 = vld [vmem:[%s9460_s8 + $0x128] sm:$0xf0] }
 0x165   :  { %4526 = vmatmul.msk.f32.gmra.mxu0 %vm904_vm1, %v7198_v11  ;;  %4514 = vmatmul.msk.f32.gmra.mxu2 %vm904_vm1, %v7203_v12  ;;  %v4586_v21 = vor.u32 %v6155_v4, %v4583_v9  ;;  %v6125_v4 = vld [vmem:[%s9460_s8 + $0x34] sm:$0xf] }
 0x166   :  { %958 = vmatpush.msrb.mxu3 %v7193_v10  ;;  %1069 = vmatpush.msra.mxu1 %v7193_v10 }
 0x167   :  { %1326 = vmatpush.bf16.msrb.mxu0 %v4586_v21  ;;  %v6171_v21 = vld [vmem:[%s9460_s8 + $0x1a4] sm:$0xf] }
 0x168   :  { %959 = vmatpush.msrb.mxu3 %v7214_v18  ;;  %1070 = vmatpush.msra.mxu1 %v7214_v18 }
 0x16a   :  { %960 = vmatpush.msrb.mxu3 %v7237_v26  ;;  %1071 = vmatpush.msra.mxu1 %v7237_v26 }
 0x16b   :  { %1327 = vmatpush.bf16.msrb.mxu0 %v4578_v56  ;;  %v4638_v56 = vor.u32 %v6170_v60, %v4637_v51  ;;  %v6139_v60 = vld [vmem:[%s9460_s8 + $0xa4] sm:$0xf] }
 0x16c   :  { %961 = vmatpush.msrb.mxu3 %v7241_v55  ;;  %1072 = vmatpush.msra.mxu1 %v7241_v55 }
 0x16d   :  { %4527 = vmatmul.msk.f32.vlgmr.msra.gmra.mxu1 %vm904_vm1, %v7152_v50  ;;  %4515 = vmatmul.msk.f32.vlgmr.msrb.gmra.mxu3 %vm904_vm1, %v7157_v52  ;;  %v4677_v50 = vld [vmem:[%s9460_s8 + $0x1e0] sm:$0xf]  ;;  %v6180_v52 = vld [vmem:[%s9460_s8 + $0x1e4] sm:$0xf0] }
 0x16e   :  { %1302 = vmatpush.bf16.msra.mxu3 %v4686_v38  ;;  %v4678_v59 = vor.u32 %v6180_v52, %v4677_v50  ;;  %1340 = vmatpush.bf16.msrb.mxu1 %v4690_v48  ;;  %v4742_v48 = vor.u32 %v6132_v43, %v4741_v42  ;;  %v4746_v50 = vor.u32 %v6131_v44, %v4743_v47  ;;  %v4733_v52 = vld [vmem:[%s9460_s8 + $0x50] sm:$0xf]  ;;  %v6150_v44 = vld [vmem:[%s9460_s8 + $0xf4] sm:$0xf0] }
 0x16f   :  { %v4734_v54 = vor.u32 %v6130_v53, %v4733_v52  ;;  %v4813_v42 = vld [vmem:[%s9460_s8 + $0xf0] sm:$0xf]  ;;  %v6119_v52 = vld [vmem:[%s9460_s8 + $0x4] sm:$0xf] }
 0x170   :  { %v4814_v47 = vor.u32 %v6150_v44, %v4813_v42 }
 0x172   :  { %1303 = vmatpush.bf16.msra.mxu3 %v4678_v59  ;;  %1341 = vmatpush.bf16.msrb.mxu1 %v4682_v63  ;;  %v6127_v63 = vld [vmem:[%s9460_s8 + $0x44] sm:$0xf] }
 0x173   :  { %v4730_v5 = vor.u32 %v6127_v63, %v4727_v3  ;;  %v6148_v63 = vld [vmem:[%s9460_s8 + $0xe4] sm:$0xf0] }
 0x174   :  { %v4806_v3 = vor.u32 %v6148_v63, %v4805_v62  ;;  %v6192_v62 = vld [vmem:[%s9460_s8 + $0x244] sm:$0xf0] }
 0x175   :  { %4528 = vmatmul.msk.f32.gmra.mxu1 %vm904_vm1, %v7168_v57  ;;  %4516 = vmatmul.msk.f32.gmra.mxu3 %vm904_vm1, %v7173_v58  ;;  %v4581_v57 = vld [vmem:[%s9460_s8 + $0x120] sm:$0xf]  ;;  %v6177_v58 = vld [vmem:[%s9460_s8 + $0x1d4] sm:$0xf] }
 0x176   :  { %v4674_v14 = vor.u32 %v6177_v58, %v4671_v7  ;;  %v4582_v20 = vor.u32 %v6156_v8, %v4581_v57  ;;  %1304 = vmatpush.bf16.msra.mxu3 %v4670_v13  ;;  %v6126_v57 = vld [vmem:[%s9460_s8 + $0x34] sm:$0xf0]  ;;  %v6173_v7 = vld [vmem:[%s9460_s8 + $0x1b4] sm:$0xf]  ;;  %v4655_v8 = vld [vmem:[%s9460_s8 + $0x1b8] sm:$0xf0] }
 0x177   :  { %v4718_v58 = vor.u32 %v6126_v57, %v4717_v6  ;;  %v4658_v9 = vor.u32 %v6173_v7, %v4655_v8  ;;  %v4719_v13 = vld [vmem:[%s9460_s8 + $0x38] sm:$0xf0]  ;;  %v4797_v57 = vld [vmem:[%s9460_s8 + $0xd0] sm:$0xf]  ;;  %v6145_v8 = vld [vmem:[%s9460_s8 + $0xd4] sm:$0xf] }
 0x178   :  { %1342 = vmatpush.bf16.msrb.mxu1 %v4674_v14  ;;  %1288 = vmatpush.bf16.msra.mxu2 %v4582_v20  ;;  %v4645_v14 = vld [vmem:[%s9460_s8 + $0x1a0] sm:$0xf]  ;;  %v4722_v16 = vor.u32 %v6125_v4, %v4719_v13  ;;  %v6124_v20 = vld [vmem:[%s9460_s8 + $0x24] sm:$0xf0]  ;;  %v4799_v4 = vld [vmem:[%s9460_s8 + $0xd8] sm:$0xf0] }
 0x179   :  { %v4646_v17 = vor.u32 %v6172_v15, %v4645_v14  ;;  %v4710_v22 = vor.u32 %v6124_v20, %v4709_v19  ;;  %v4789_v13 = vld [vmem:[%s9460_s8 + $0xc0] sm:$0xf]  ;;  %v6144_v14 = vld [vmem:[%s9460_s8 + $0xc4] sm:$0xf0]  ;;  %v4781_v20 = vld [vmem:[%s9460_s8 + $0xb0] sm:$0xf] }
 0x17a   :  { %1305 = vmatpush.bf16.msra.mxu3 %v4662_v27  ;;  %v4650_v27 = vor.u32 %v6171_v21, %v4647_v23  ;;  %v4790_v15 = vor.u32 %v6144_v14, %v4789_v13  ;;  %v6142_v21 = vld [vmem:[%s9460_s8 + $0xb4] sm:$0xf0]  ;;  %v6141_v23 = vld [vmem:[%s9460_s8 + $0xb4] sm:$0xf] }
 0x17b   :  { %v6186_v13 = vld [vmem:[%s9460_s8 + $0x214] sm:$0xf0] }
 0x17c   :  { %1343 = vmatpush.bf16.msrb.mxu1 %v4666_v28  ;;  %1289 = vmatpush.bf16.msra.mxu2 %v4574_v29  ;;  %v4714_v28 = vor.u32 %v6123_v24, %v4711_v25  ;;  %v4701_v29 = vld [vmem:[%s9460_s8 + $0x10] sm:$0xf]  ;;  %v4783_v24 = vld [vmem:[%s9460_s8 + $0xb8] sm:$0xf0] }
 0x17d   :  { %4529 = vmatmul.msk.f32.gmra.mxu1 %vm904_vm1, %v7182_v0  ;;  %4517 = vmatmul.msk.f32.gmra.mxu3 %vm904_vm1, %v7187_v2  ;;  %v6151_v0 = vld [vmem:[%s9460_s8 + $0x104] sm:$0xf]  ;;  %v4567_v2 = vld [vmem:[%s9460_s8 + $0x108] sm:$0xf0]  ;;  %v4702_v31 = vor.u32 %v6122_v30, %v4701_v29  ;;  %v4786_v25 = vor.u32 %v6141_v23, %v4783_v24 }
 0x17e   :  { %v4570_v38 = vor.u32 %v6151_v0, %v4567_v2  ;;  %1306 = vmatpush.bf16.msra.mxu3 %v4654_v33  ;;  %v4639_v0 = vld [vmem:[%s9460_s8 + $0x198] sm:$0xf0]  ;;  %v6121_v2 = vld [vmem:[%s9460_s8 + $0x14] sm:$0xf]  ;;  %v4775_v29 = vld [vmem:[%s9460_s8 + $0xa8] sm:$0xf0] }
 0x17f   :  { %v4642_v33 = vor.u32 %v6169_v32, %v4639_v0  ;;  %v4778_v30 = vor.u32 %v6139_v60, %v4775_v29  ;;  %v6138_v32 = vld [vmem:[%s9460_s8 + $0x94] sm:$0xf0] }
 0x180   :  { %1290 = vmatpush.bf16.msra.mxu2 %v4566_v37  ;;  %1328 = vmatpush.bf16.msrb.mxu0 %v4570_v38  ;;  %v4706_v37 = vor.u32 %v6121_v2, %v4703_v34  ;;  %v4630_v38 = vor.u32 %v6168_v36, %v4629_v35  ;;  %v4921_v2 = vld [vmem:[%s9460_s8 + $0x270] sm:$0xf]  ;;  %v6137_v34 = vld [vmem:[%s9460_s8 + $0x94] sm:$0xf]  ;;  %v4767_v35 = vld [vmem:[%s9460_s8 + $0x98] sm:$0xf0] }
 0x181   :  { %1344 = vmatpush.bf16.msrb.mxu1 %v4658_v9  ;;  %v4802_v9 = vor.u32 %v6145_v8, %v4799_v4  ;;  %v4770_v36 = vor.u32 %v6137_v34, %v4767_v35  ;;  %v6188_v8 = vld [vmem:[%s9460_s8 + $0x224] sm:$0xf0]  ;;  %v4953_v35 = vld [vmem:[%s9460_s8 + $0x2b0] sm:$0xf] }
 0x182   :  { %1307 = vmatpush.bf16.msra.mxu3 %v4646_v17  ;;  %v4791_v17 = vld [vmem:[%s9460_s8 + $0xc8] sm:$0xf0] }
 0x184   :  { %1519 = vmatpush.bf16.msrb.mxu2 %v4750_v39  ;;  %1557 = vmatpush.bf16.msra.mxu0 %v4754_v40  ;;  %v4693_v39 = vld [vmem:[%s9460_s8] sm:$0xf]  ;;  %v6120_v40 = vld [vmem:[%s9460_s8 + $0x4] sm:$0xf0] }
 0x185   :  { %4530 = vmatmul.msk.f32.gmra.mxu1 %vm904_vm1, %v7198_v11  ;;  %4518 = vmatmul.msk.f32.gmra.mxu3 %vm904_vm1, %v7203_v12  ;;  %v6129_v11 = vld [vmem:[%s9460_s8 + $0x54] sm:$0xf]  ;;  %v4735_v12 = vld [vmem:[%s9460_s8 + $0x58] sm:$0xf0]  ;;  %v4694_v43 = vor.u32 %v6120_v40, %v4693_v39 }
 0x186   :  { %v4738_v59 = vor.u32 %v6129_v11, %v4735_v12  ;;  %1345 = vmatpush.bf16.msrb.mxu1 %v4650_v27  ;;  %1308 = vmatpush.bf16.msra.mxu3 %v4638_v56  ;;  %v4695_v11 = vld [vmem:[%s9460_s8 + $0x8] sm:$0xf0]  ;;  %v6149_v12 = vld [vmem:[%s9460_s8 + $0xf4] sm:$0xf]  ;;  %v4773_v27 = vld [vmem:[%s9460_s8 + $0xa0] sm:$0xf] }
 0x188   :  { %1520 = vmatpush.bf16.msrb.mxu2 %v4742_v48  ;;  %1558 = vmatpush.bf16.msra.mxu0 %v4746_v50  ;;  %v6167_v48 = vld [vmem:[%s9460_s8 + $0x184] sm:$0xf]  ;;  %v4631_v50 = vld [vmem:[%s9460_s8 + $0x188] sm:$0xf0] }
 0x189   :  { %v4634_v53 = vor.u32 %v6167_v48, %v4631_v50  ;;  %v6135_v48 = vld [vmem:[%s9460_s8 + $0x84] sm:$0xf]  ;;  %v4759_v50 = vld [vmem:[%s9460_s8 + $0x88] sm:$0xf0] }
 0x18a   :  { %1346 = vmatpush.bf16.msrb.mxu1 %v4642_v33  ;;  %1309 = vmatpush.bf16.msra.mxu3 %v4630_v38  ;;  %v6198_v33 = vld [vmem:[%s9460_s8 + $0x274] sm:$0xf0]  ;;  %v6136_v38 = vld [vmem:[%s9460_s8 + $0x84] sm:$0xf0] }
 0x18b   :  { %v4922_v42 = vor.u32 %v6198_v33, %v4921_v2  ;;  %v6208_v2 = vld [vmem:[%s9460_s8 + $0x2c4] sm:$0xf0] }
 0x18c   :  { %1521 = vmatpush.bf16.msrb.mxu2 %v4734_v54  ;;  %1559 = vmatpush.bf16.msra.mxu0 %v4738_v59  ;;  %v4815_v54 = vld [vmem:[%s9460_s8 + $0xf8] sm:$0xf0]  ;;  %v4698_v59 = vor.u32 %v6119_v52, %v4695_v11  ;;  %v4762_v52 = vor.u32 %v6135_v48, %v4759_v50  ;;  %v4905_v11 = vld [vmem:[%s9460_s8 + $0x250] sm:$0xf]  ;;  %v6202_v50 = vld [vmem:[%s9460_s8 + $0x294] sm:$0xf0] }
 0x18d   :  { %v4818_v61 = vor.u32 %v6149_v12, %v4815_v54  ;;  %v6194_v12 = vld [vmem:[%s9460_s8 + $0x254] sm:$0xf0]  ;;  %v4937_v48 = vld [vmem:[%s9460_s8 + $0x290] sm:$0xf] }
 0x18e   :  { %1538 = vmatpush.bf16.msrb.mxu3 %v4814_v47  ;;  %1347 = vmatpush.bf16.msrb.mxu1 %v4634_v53  ;;  %v6196_v47 = vld [vmem:[%s9460_s8 + $0x264] sm:$0xf0] }
 0x190   :  { %1522 = vmatpush.bf16.msrb.mxu2 %v4726_v1  ;;  %1560 = vmatpush.bf16.msra.mxu0 %v4730_v5  ;;  %v6147_v1 = vld [vmem:[%s9460_s8 + $0xe4] sm:$0xf]  ;;  %v4807_v5 = vld [vmem:[%s9460_s8 + $0xe8] sm:$0xf0] }
 0x191   :  { %v4810_v6 = vor.u32 %v6147_v1, %v4807_v5  ;;  %v6190_v1 = vld [vmem:[%s9460_s8 + $0x234] sm:$0xf0] }
 0x192   :  { %1576 = vmatpush.bf16.msra.mxu1 %v4818_v61  ;;  %1539 = vmatpush.bf16.msrb.mxu3 %v4806_v3  ;;  %v4897_v61 = vld [vmem:[%s9460_s8 + $0x240] sm:$0xf]  ;;  %v4889_v3 = vld [vmem:[%s9460_s8 + $0x230] sm:$0xf] }
 0x193   :  { %v4898_v63 = vor.u32 %v6192_v62, %v4897_v61  ;;  %v4819_v61 = vld [vmem:[%s9459_s7 + $0x40] sm:$0xff] }
 0x194   :  { %1523 = vmatpush.bf16.msrb.mxu2 %v4718_v58  ;;  %1561 = vmatpush.bf16.msra.mxu0 %v4722_v16  ;;  %v6146_v58 = vld [vmem:[%s9460_s8 + $0xd4] sm:$0xf0]  ;;  %v6143_v16 = vld [vmem:[%s9460_s8 + $0xc4] sm:$0xf] }
 0x195   :  { %v4798_v7 = vor.u32 %v6146_v58, %v4797_v57  ;;  %v4794_v19 = vor.u32 %v6143_v16, %v4791_v17  ;;  %v4890_v57 = vor.u32 %v6190_v1, %v4889_v3  ;;  %v4865_v17 = vld [vmem:[%s9460_s8 + $0x200] sm:$0xf] }
 0x196   :  { %1577 = vmatpush.bf16.msra.mxu1 %v4810_v6 }
 0x197   :  { %1540 = vmatpush.bf16.msrb.mxu3 %v4798_v7  ;;  %v4881_v7 = vld [vmem:[%s9460_s8 + $0x220] sm:$0xf] }
 0x198   :  { %1524 = vmatpush.bf16.msrb.mxu2 %v4710_v22  ;;  %1562 = vmatpush.bf16.msra.mxu0 %v4714_v28  ;;  %v4782_v22 = vor.u32 %v6142_v21, %v4781_v20  ;;  %v6140_v28 = vld [vmem:[%s9460_s8 + $0xa4] sm:$0xf0]  ;;  %v4882_v4 = vor.u32 %v6188_v8, %v4881_v7  ;;  %v4985_v20 = vld [vmem:[%s9460_s8 + $0x2f0] sm:$0xf]  ;;  %v6214_v21 = vld [vmem:[%s9460_s8 + $0x2f4] sm:$0xf0] }
 0x199   :  { %v4774_v51 = vor.u32 %v6140_v28, %v4773_v27  ;;  %v4986_v24 = vor.u32 %v6214_v21, %v4985_v20  ;;  %v4977_v28 = vld [vmem:[%s9460_s8 + $0x2e0] sm:$0xf]  ;;  %v6195_v7 = vld [vmem:[%s9460_s8 + $0x264] sm:$0xf]  ;;  %v6189_v21 = vld [vmem:[%s9460_s8 + $0x234] sm:$0xf] }
 0x19a   :  { %1578 = vmatpush.bf16.msra.mxu1 %v4802_v9  ;;  %v4873_v9 = vld [vmem:[%s9460_s8 + $0x210] sm:$0xf] }
 0x19b   :  { %1541 = vmatpush.bf16.msrb.mxu3 %v4790_v15  ;;  %v4874_v15 = vor.u32 %v6186_v13, %v4873_v9  ;;  %v6193_v13 = vld [vmem:[%s9460_s8 + $0x254] sm:$0xf] }
 0x19c   :  { %1525 = vmatpush.bf16.msrb.mxu2 %v4702_v31  ;;  %1563 = vmatpush.bf16.msra.mxu0 %v4706_v37  ;;  %v4765_v31 = vld [vmem:[%s9460_s8 + $0x90] sm:$0xf]  ;;  %v4757_v37 = vld [vmem:[%s9460_s8 + $0x80] sm:$0xf] }
 0x19d   :  { %v4766_v0 = vor.u32 %v6138_v32, %v4765_v31  ;;  %v4758_v39 = vor.u32 %v6136_v38, %v4757_v37 }
 0x19e   :  { %1579 = vmatpush.bf16.msra.mxu1 %v4794_v19  ;;  %v6184_v19 = vld [vmem:[%s9460_s8 + $0x204] sm:$0xf0] }
 0x19f   :  { %1542 = vmatpush.bf16.msrb.mxu3 %v4782_v22  ;;  %v4866_v22 = vor.u32 %v6184_v19, %v4865_v17  ;;  %v4899_v17 = vld [vmem:[%s9460_s8 + $0x248] sm:$0xf0] }
 0x1a0   :  { %1526 = vmatpush.bf16.msrb.mxu2 %v4694_v43  ;;  %1564 = vmatpush.bf16.msra.mxu0 %v4698_v59  ;;  %v4913_v43 = vld [vmem:[%s9460_s8 + $0x260] sm:$0xf]  ;;  %v4906_v59 = vor.u32 %v6194_v12, %v4905_v11  ;;  %v6200_v12 = vld [vmem:[%s9460_s8 + $0x284] sm:$0xf0] }
 0x1a1   :  { %v4914_v53 = vor.u32 %v6196_v47, %v4913_v43  ;;  %v4945_v43 = vld [vmem:[%s9460_s8 + $0x2a0] sm:$0xf] }
 0x1a2   :  { %1580 = vmatpush.bf16.msra.mxu1 %v4786_v25  ;;  %v4929_v11 = vld [vmem:[%s9460_s8 + $0x280] sm:$0xf] }
 0x1a3   :  { %1543 = vmatpush.bf16.msrb.mxu3 %v4774_v51  ;;  %v6212_v51 = vld [vmem:[%s9460_s8 + $0x2e4] sm:$0xf0] }
 0x1a4   :  { %v4978_v29 = vor.u32 %v6212_v51, %v4977_v28 }
 0x1a6   :  { %1581 = vmatpush.bf16.msra.mxu1 %v4778_v30  ;;  %v6210_v30 = vld [vmem:[%s9460_s8 + $0x2d4] sm:$0xf0] }
 0x1a7   :  { %1544 = vmatpush.bf16.msrb.mxu3 %v4766_v0  ;;  %v4961_v0 = vld [vmem:[%s9460_s8 + $0x2c0] sm:$0xf] }
 0x1a8   :  { %v4962_v33 = vor.u32 %v6208_v2, %v4961_v0  ;;  %v6213_v0 = vld [vmem:[%s9460_s8 + $0x2f4] sm:$0xf]  ;;  %v4987_v2 = vld [vmem:[%s9460_s8 + $0x2f8] sm:$0xf0] }
 0x1aa   :  { %1582 = vmatpush.bf16.msra.mxu1 %v4770_v36  ;;  %v6206_v36 = vld [vmem:[%s9460_s8 + $0x2b4] sm:$0xf0] }
 0x1ab   :  { %1545 = vmatpush.bf16.msrb.mxu3 %v4758_v39 }
 0x1ae   :  { %1583 = vmatpush.bf16.msra.mxu1 %v4762_v52  ;;  %v4938_v52 = vor.u32 %v6202_v50, %v4937_v48  ;;  %v6209_v48 = vld [vmem:[%s9460_s8 + $0x2d4] sm:$0xf]  ;;  %v4971_v50 = vld [vmem:[%s9460_s8 + $0x2d8] sm:$0xf0] }
 0x1ca   :  { %v1045_v56 = vpop.f32.mrf.mxu0 }
 0x1d0   :  { %v934_v5 = vpop.f32.mrf.mxu2 }
 0x1d2   :  { %v1048_v40 = vpop.f32.mrf.mxu0 }
 0x1d3   :  { %v1086_v44 = vpack.c.bf16 %v1048_v40, %v1045_v56  ;;  %v4969_v56 = vld [vmem:[%s9460_s8 + $0x2d0] sm:$0xf] }
 0x1d4   :  { %v4970_v32 = vor.u32 %v6210_v30, %v4969_v56  ;;  %v6183_v30 = vld [vmem:[%s9460_s8 + $0x204] sm:$0xf] }
 0x1d5   :  { %1291 = vmatmul.bf16.vlgmr.msra.gmra.mxu2 %v1086_v44  ;;  %1329 = vmatmul.bf16.vlgmr.msrb.gmra.mxu0 %v1086_v44  ;;  %v6204_v44 = vld [vmem:[%s9460_s8 + $0x2a4] sm:$0xf0] }
 0x1d6   :  { %1624 = vmatpush.msra.mxu2 %v7135_v41  ;;  %1867 = vmatpush.bf16.msrb.mxu0 %v4922_v42  ;;  %v4954_v42 = vor.u32 %v6206_v36, %v4953_v35  ;;  %v4946_v47 = vor.u32 %v6204_v44, %v4945_v43  ;;  %v6230_v35 = vld [vmem:[%s9460_s8 + $0x374] sm:$0xf0]  ;;  %v6228_v44 = vld [vmem:[%s9460_s8 + $0x364] sm:$0xf0] }
 0x1d8   :  { %1625 = vmatpush.msra.mxu2 %v7137_v45  ;;  %v937_v16 = vpop.f32.mrf.mxu2 }
 0x1d9   :  { %v975_v27 = vpack.c.bf16 %v937_v16, %v934_v5  ;;  %v4821_v5 = vld [vmem:[%s9459_s7 + $0x50] sm:$0xff]  ;;  %v6191_v16 = vld [vmem:[%s9460_s8 + $0x244] sm:$0xf] }
 0x1da   :  { %1626 = vmatpush.msra.mxu2 %v7141_v46  ;;  %v1051_v54 = vpop.f32.mrf.mxu0  ;;  %1868 = vmatpush.bf16.msrb.mxu0 %v4914_v53  ;;  %v4902_v19 = vor.u32 %v6191_v16, %v4899_v17 }
 0x1dc   :  { %1627 = vmatpush.msra.mxu2 %v7145_v49 }
 0x1de   :  { %1869 = vmatpush.bf16.msrb.mxu0 %v4906_v59 }
 0x1e0   :  { %v940_v60 = vpop.f32.mrf.mxu2 }
 0x1e2   :  { %v1054_v6 = vpop.f32.mrf.mxu0  ;;  %1870 = vmatpush.bf16.msrb.mxu0 %v4898_v63  ;;  %v4820_v63 = vld [vmem:[%s9459_s7 + $0x48] sm:$0xff] }
 0x1e3   :  { %v1088_v58 = vpack.c.bf16 %v1054_v6, %v1051_v54  ;;  %v4930_v54 = vor.u32 %v6200_v12, %v4929_v11  ;;  %v4822_v6 = vld [vmem:[%s9459_s7 + $0x58] sm:$0xff] }
 0x1e4   :  { %v6226_v11 = vld [vmem:[%s9460_s8 + $0x354] sm:$0xf0] }
 0x1e5   :  { %1296 = vmatmul.bf16.gmra.mxu2 %v1088_v58  ;;  %1334 = vmatmul.bf16.gmra.mxu0 %v1088_v58  ;;  %v4923_v58 = vld [vmem:[%s9460_s8 + $0x278] sm:$0xf0] }
 0x1e6   :  { %1871 = vmatpush.bf16.msrb.mxu0 %v4890_v57  ;;  %v6197_v57 = vld [vmem:[%s9460_s8 + $0x274] sm:$0xf] }
 0x1e7   :  { %v4926_v8 = vor.u32 %v6197_v57, %v4923_v58  ;;  %v6205_v57 = vld [vmem:[%s9460_s8 + $0x2b4] sm:$0xf]  ;;  %v4955_v58 = vld [vmem:[%s9460_s8 + $0x2b8] sm:$0xf0] }
 0x1e8   :  { %v943_v34 = vpop.f32.mrf.mxu2 }
 0x1e9   :  { %v977_v40 = vpack.c.bf16 %v943_v34, %v940_v60  ;;  %v6185_v60 = vld [vmem:[%s9460_s8 + $0x214] sm:$0xf]  ;;  %v4990_v34 = vor.u32 %v6213_v0, %v4987_v2 }
 0x1ea   :  { %v1074_v14 = vpop.f32.mrf.mxu1  ;;  %1872 = vmatpush.bf16.msrb.mxu0 %v4882_v4  ;;  %v4915_v4 = vld [vmem:[%s9460_s8 + $0x268] sm:$0xf0] }
 0x1eb   :  { %v4918_v9 = vor.u32 %v6195_v7, %v4915_v4  ;;  %v5061_v7 = vld [vmem:[%s9460_s8 + $0x330] sm:$0xf]  ;;  %v4958_v4 = vor.u32 %v6205_v57, %v4955_v58  ;;  %v5133_v57 = vld [vmem:[%s9460_s8 + $0x3c0] sm:$0xf]  ;;  %v6240_v58 = vld [vmem:[%s9460_s8 + $0x3c4] sm:$0xf0] }
 0x1ee   :  { %1873 = vmatpush.bf16.msrb.mxu0 %v4874_v15 }
 0x1f0   :  { %v963_v38 = vpop.f32.mrf.mxu3 }
 0x1f2   :  { %v1077_v23 = vpop.f32.mrf.mxu1  ;;  %1874 = vmatpush.bf16.msrb.mxu0 %v4866_v22  ;;  %v4891_v22 = vld [vmem:[%s9460_s8 + $0x238] sm:$0xf0] }
 0x1f3   :  { %v1087_v25 = vpack.c.bf16 %v1077_v23, %v1074_v14  ;;  %v4907_v14 = vld [vmem:[%s9460_s8 + $0x258] sm:$0xf0]  ;;  %v4894_v23 = vor.u32 %v6189_v21, %v4891_v22  ;;  %v4947_v21 = vld [vmem:[%s9460_s8 + $0x2a8] sm:$0xf0] }
 0x1f4   :  { %v4910_v15 = vor.u32 %v6193_v13, %v4907_v14 }
 0x1f5   :  { %1310 = vmatmul.bf16.vlgmr.msra.gmra.mxu3 %v1087_v25  ;;  %1348 = vmatmul.bf16.vlgmr.msrb.gmra.mxu1 %v1087_v25  ;;  %v4883_v25 = vld [vmem:[%s9460_s8 + $0x228] sm:$0xf0] }
 0x1f6   :  { %1653 = vmatpush.msra.mxu3 %v7193_v10  ;;  %1886 = vmatpush.bf16.msrb.mxu1 %v4986_v24  ;;  %v6187_v24 = vld [vmem:[%s9460_s8 + $0x224] sm:$0xf] }
 0x1f7   :  { %1527 = vmatmul.bf16.vlgmr.msrb.gmra.mxu2 %v975_v27  ;;  %1565 = vmatmul.bf16.vlgmr.msra.gmra.mxu0 %v975_v27  ;;  %v4886_v27 = vor.u32 %v6187_v24, %v4883_v25 }
 0x1f8   :  { %1654 = vmatpush.msra.mxu3 %v7214_v18  ;;  %1980 = vmatpush.msra.mxu0 %v7135_v41  ;;  %v966_v53 = vpop.f32.mrf.mxu3 }
 0x1f9   :  { %v976_v59 = vpack.c.bf16 %v966_v53, %v963_v38  ;;  %1905 = vmatpush.bf16.msrb.mxu2 %v4926_v8  ;;  %v4974_v53 = vor.u32 %v6209_v48, %v4971_v50  ;;  %v5149_v48 = vld [vmem:[%s9460_s8 + $0x3e0] sm:$0xf]  ;;  %v6244_v50 = vld [vmem:[%s9460_s8 + $0x3e4] sm:$0xf0] }
 0x1fa   :  { %1655 = vmatpush.msra.mxu3 %v7237_v26  ;;  %v1080_v31 = vpop.f32.mrf.mxu1  ;;  %1981 = vmatpush.msra.mxu0 %v7137_v45 }
 0x1fb   :  { %1887 = vmatpush.bf16.msrb.mxu1 %v4978_v29  ;;  %v4875_v29 = vld [vmem:[%s9460_s8 + $0x218] sm:$0xf0] }
 0x1fc   :  { %1656 = vmatpush.msra.mxu3 %v7241_v55  ;;  %1982 = vmatpush.msra.mxu0 %v7141_v46  ;;  %v4878_v56 = vor.u32 %v6185_v60, %v4875_v29  ;;  %v4939_v60 = vld [vmem:[%s9460_s8 + $0x298] sm:$0xf0]  ;;  %v5045_v29 = vld [vmem:[%s9460_s8 + $0x310] sm:$0xf] }
 0x1fd   :  { %1906 = vmatpush.bf16.msrb.mxu2 %v4918_v9  ;;  %v6222_v9 = vld [vmem:[%s9460_s8 + $0x334] sm:$0xf0] }
 0x1fe   :  { %1983 = vmatpush.msra.mxu0 %v7145_v49  ;;  %v5062_v14 = vor.u32 %v6222_v9, %v5061_v7 }
 0x1ff   :  { %1888 = vmatpush.bf16.msrb.mxu1 %v4970_v32 }
 0x200   :  { %v969_v62 = vpop.f32.mrf.mxu3 }
 0x201   :  { %1907 = vmatpush.bf16.msrb.mxu2 %v4910_v15 }
 0x202   :  { %v1083_v37 = vpop.f32.mrf.mxu1 }
 0x203   :  { %1889 = vmatpush.bf16.msrb.mxu1 %v4962_v33  ;;  %v1089_v39 = vpack.c.bf16 %v1083_v37, %v1080_v31  ;;  %v4867_v31 = vld [vmem:[%s9460_s8 + $0x208] sm:$0xf0]  ;;  %v5093_v33 = vld [vmem:[%s9460_s8 + $0x370] sm:$0xf] }
 0x204   :  { %v4870_v32 = vor.u32 %v6183_v30, %v4867_v31  ;;  %v5094_v36 = vor.u32 %v6230_v35, %v5093_v33  ;;  %v6218_v31 = vld [vmem:[%s9460_s8 + $0x314] sm:$0xf0]  ;;  %v6199_v33 = vld [vmem:[%s9460_s8 + $0x284] sm:$0xf]  ;;  %v5037_v35 = vld [vmem:[%s9460_s8 + $0x300] sm:$0xf] }
 0x205   :  { %1315 = vmatmul.bf16.gmra.mxu3 %v1089_v39  ;;  %1353 = vmatmul.bf16.gmra.mxu1 %v1089_v39  ;;  %v6211_v39 = vld [vmem:[%s9460_s8 + $0x2e4] sm:$0xf] }
 0x206   :  { %1908 = vmatpush.bf16.msrb.mxu2 %v4902_v19  ;;  %v6203_v19 = vld [vmem:[%s9460_s8 + $0x2a4] sm:$0xf] }
 0x207   :  { %1532 = vmatmul.bf16.gmra.mxu2 %v977_v40  ;;  %1890 = vmatpush.bf16.msrb.mxu1 %v4954_v42  ;;  %v5085_v42 = vld [vmem:[%s9460_s8 + $0x360] sm:$0xf]  ;;  %v4950_v22 = vor.u32 %v6203_v19, %v4947_v21 }
 0x208   :  { %1570 = vmatmul.bf16.gmra.mxu0 %v977_v40  ;;  %v972_v3 = vpop.f32.mrf.mxu3  ;;  %v4979_v40 = vld [vmem:[%s9460_s8 + $0x2e8] sm:$0xf0]  ;;  %v5117_v21 = vld [vmem:[%s9460_s8 + $0x3a0] sm:$0xf] }
 0x209   :  { %v978_v1 = vpack.c.bf16 %v972_v3, %v969_v62  ;;  %v4982_v43 = vor.u32 %v6211_v39, %v4979_v40  ;;  %v4963_v62 = vld [vmem:[%s9460_s8 + $0x2c8] sm:$0xf0]  ;;  %v6216_v39 = vld [vmem:[%s9460_s8 + $0x304] sm:$0xf0]  ;;  %v5157_v40 = vld [vmem:[%s9460_s8 + $0x3f0] sm:$0xf] }
 0x20a   :  { %1909 = vmatpush.bf16.msrb.mxu2 %v4894_v23  ;;  %v6220_v23 = vld [vmem:[%s9460_s8 + $0x324] sm:$0xf0] }
 0x20b   :  { %1891 = vmatpush.bf16.msrb.mxu1 %v4946_v47  ;;  %v5086_v47 = vor.u32 %v6228_v44, %v5085_v42  ;;  %v6246_v42 = vld [vmem:[%s9460_s8 + $0x3f4] sm:$0xf0] }
 0x20c   :  { %v5158_v44 = vor.u32 %v6246_v42, %v5157_v40 }
 0x20e   :  { %1910 = vmatpush.bf16.msrb.mxu2 %v4886_v27  ;;  %v6201_v27 = vld [vmem:[%s9460_s8 + $0x294] sm:$0xf] }
 0x20f   :  { %1892 = vmatpush.bf16.msrb.mxu1 %v4938_v52  ;;  %v5077_v52 = vld [vmem:[%s9460_s8 + $0x350] sm:$0xf]  ;;  %v4942_v30 = vor.u32 %v6201_v27, %v4939_v60  ;;  %v6234_v27 = vld [vmem:[%s9460_s8 + $0x394] sm:$0xf0] }
 0x210   :  { %v5078_v12 = vor.u32 %v6226_v11, %v5077_v52  ;;  %v5150_v11 = vor.u32 %v6244_v50, %v5149_v48 }
 0x212   :  { %1911 = vmatpush.bf16.msrb.mxu2 %v4878_v56 }
 0x213   :  { %1893 = vmatpush.bf16.msrb.mxu1 %v4930_v54 }
 0x215   :  { %1546 = vmatmul.bf16.vlgmr.msrb.gmra.mxu3 %v976_v59  ;;  %1584 = vmatmul.bf16.vlgmr.msra.gmra.mxu1 %v976_v59 }
 0x216   :  { %1912 = vmatpush.bf16.msrb.mxu2 %v4870_v32  ;;  %1924 = vmatpush.bf16.msrb.mxu3 %v4990_v34  ;;  %v5046_v32 = vor.u32 %v6218_v31, %v5045_v29  ;;  %v4931_v34 = vld [vmem:[%s9460_s8 + $0x288] sm:$0xf0] }
 0x217   :  { %2009 = vmatpush.msra.mxu1 %v7193_v10  ;;  %4823 = vmatmul.msk.f32.vlgmr.msra.gmra.mxu2 %vm904_vm1, %v4819_v61 }
 0x219   :  { %2010 = vmatpush.msra.mxu1 %v7214_v18 }
 0x21a   :  { %2223 = vmatpush.bf16.msra.mxu2 %v5094_v36  ;;  %1925 = vmatpush.bf16.msrb.mxu3 %v4982_v43  ;;  %v4934_v36 = vor.u32 %v6199_v33, %v4931_v34  ;;  %v5038_v43 = vor.u32 %v6216_v39, %v5037_v35  ;;  %v6232_v34 = vld [vmem:[%s9460_s8 + $0x384] sm:$0xf0] }
 0x21b   :  { %2011 = vmatpush.msra.mxu1 %v7237_v26 }
 0x21d   :  { %2012 = vmatpush.msra.mxu1 %v7241_v55 }
 0x21e   :  { %2224 = vmatpush.bf16.msra.mxu2 %v5086_v47  ;;  %1926 = vmatpush.bf16.msrb.mxu3 %v4974_v53 }
 0x21f   :  { %4824 = vmatmul.msk.f32.gmra.mxu2 %vm904_vm1, %v4820_v63 }
 0x222   :  { %2225 = vmatpush.bf16.msra.mxu2 %v5078_v12 }
 0x225   :  { %1551 = vmatmul.bf16.gmra.mxu3 %v978_v1  ;;  %1589 = vmatmul.bf16.gmra.mxu1 %v978_v1  ;;  %v6224_v1 = vld [vmem:[%s9460_s8 + $0x344] sm:$0xf0] }
 0x227   :  { %4825 = vmatmul.msk.f32.gmra.mxu2 %vm904_vm1, %v4821_v5 }
 0x22f   :  { %4826 = vmatmul.msk.f32.gmra.mxu2 %vm904_vm1, %v4822_v6 }
 0x235   :  { %4827 = vmatmul.msk.f32.vlgmr.msra.gmra.mxu3 %vm904_vm1, %v4819_v61  ;;  %v6207_v61 = vld [vmem:[%s9460_s8 + $0x2c4] sm:$0xf] }
 0x236   :  { %v4966_v3 = vor.u32 %v6207_v61, %v4963_v62 }
 0x238   :  { %1927 = vmatpush.bf16.msrb.mxu3 %v4966_v3  ;;  %v6242_v3 = vld [vmem:[%s9460_s8 + $0x3d4] sm:$0xf0] }
 0x23c   :  { %1928 = vmatpush.bf16.msrb.mxu3 %v4958_v4 }
 0x23d   :  { %4828 = vmatmul.msk.f32.gmra.mxu3 %vm904_vm1, %v4820_v63  ;;  %v5069_v63 = vld [vmem:[%s9460_s8 + $0x340] sm:$0xf] }
 0x240   :  { %1929 = vmatpush.bf16.msrb.mxu3 %v4950_v22  ;;  %v5109_v22 = vld [vmem:[%s9460_s8 + $0x390] sm:$0xf] }
 0x244   :  { %1930 = vmatpush.bf16.msrb.mxu3 %v4942_v30  ;;  %v5110_v30 = vor.u32 %v6234_v27, %v5109_v22  ;;  %v5071_v22 = vld [vmem:[%s9460_s8 + $0x348] sm:$0xf0]  ;;  %v6221_v27 = vld [vmem:[%s9460_s8 + $0x334] sm:$0xf] }
 0x245   :  { %4829 = vmatmul.msk.f32.gmra.mxu3 %vm904_vm1, %v4821_v5 }
 0x248   :  { %1931 = vmatpush.bf16.msrb.mxu3 %v4934_v36 }
 0x24c   :  { %2242 = vmatpush.bf16.msra.mxu3 %v5158_v44 }
 0x24d   :  { %4830 = vmatmul.msk.f32.gmra.mxu3 %vm904_vm1, %v4822_v6  ;;  %v5070_v6 = vor.u32 %v6224_v1, %v5069_v63  ;;  %v5141_v63 = vld [vmem:[%s9460_s8 + $0x3d0] sm:$0xf] }
 0x24f   :  { %2226 = vmatpush.bf16.msra.mxu2 %v5070_v6  ;;  %v5142_v6 = vor.u32 %v6242_v3, %v5141_v63  ;;  %v4992_v63 = vld [vmem:[%s9459_s7 + $0x68] sm:$0xff] }
 0x250   :  { %2243 = vmatpush.bf16.msra.mxu3 %v5150_v11 }
 0x252   :  { %v7791_v28 = vpop.f32.mrf.mxu0 }
 0x253   :  { %2227 = vmatpush.bf16.msra.mxu2 %v5062_v14  ;;  %v6238_v14 = vld [vmem:[%s9460_s8 + $0x3b4] sm:$0xf0] }
 0x254   :  { %2244 = vmatpush.bf16.msra.mxu3 %v5142_v6  ;;  %v4993_v6 = vld [vmem:[%s9459_s7 + $0x70] sm:$0xff] }
 0x258   :  { %v1292_v20 = vpop.f32.mrf.mxu2 }
 0x25a   :  { %v7821_v38 = vpop.f32.mrf.mxu0 }
 0x260   :  { %v7793_v51 = vpop.f32.mrf.mxu2 }
 0x262   :  { %v7863_v5 = vpop.f32.mrf.mxu0 }
 0x268   :  { %v7819_v37 = vpop.f32.mrf.mxu2 }
 0x26a   :  { %v7893_v25 = vpop.f32.mrf.mxu0 }
 0x270   :  { %v7849_v59 = vpop.f32.mrf.mxu2 }
 0x272   :  { %v7847_v54 = vpop.f32.mrf.mxu1 }
 0x273   :  { %v1350_v1 = vadd.f32 %v7847_v54, %v7791_v28  ;;  %v5125_v54 = vld [vmem:[%s9460_s8 + $0x3b0] sm:$0xf] }
 0x274   :  { %v1566_v52 = vpop.f32.mrf.mxu0 }
 0x275   :  { %v1567_v7 = vadd.f32 %v1566_v52, %v1350_v1 }
 0x278   :  { %v1311_v8 = vpop.f32.mrf.mxu3 }
 0x279   :  { %v1312_v13 = vadd.f32 %v1311_v8, %v1292_v20  ;;  %v5053_v20 = vld [vmem:[%s9460_s8 + $0x320] sm:$0xf]  ;;  %v5134_v8 = vor.u32 %v6240_v58, %v5133_v57  ;;  %v4994_v57 = vld [vmem:[%s9459_s7 + $0x78] sm:$0xff]  ;;  %v6229_v58 = vld [vmem:[%s9460_s8 + $0x374] sm:$0xf] }
 0x27a   :  { %v7877_v15 = vpop.f32.mrf.mxu1  ;;  %v1528_v16 = vpop.f32.mrf.mxu2  ;;  %v5054_v24 = vor.u32 %v6220_v23, %v5053_v20  ;;  %v6236_v20 = vld [vmem:[%s9460_s8 + $0x3a4] sm:$0xf0] }
 0x27b   :  { %v7879_v17 = vadd.f32 %v1528_v16, %v1312_v13  ;;  %2245 = vmatpush.bf16.msra.mxu3 %v5134_v8  ;;  %v5126_v16 = vor.u32 %v6238_v14, %v5125_v54  ;;  %v6227_v8 = vld [vmem:[%s9460_s8 + $0x364] sm:$0xf]  ;;  %v5087_v54 = vld [vmem:[%s9460_s8 + $0x368] sm:$0xf0] }
 0x27c   :  { %2228 = vmatpush.bf16.msra.mxu2 %v5054_v24  ;;  %v7958_v28 = vpop.f32.mrf.mxu0  ;;  %v5118_v24 = vor.u32 %v6236_v20, %v5117_v21  ;;  %v5090_v14 = vor.u32 %v6227_v8, %v5087_v54  ;;  %v6223_v20 = vld [vmem:[%s9460_s8 + $0x344] sm:$0xf] }
 0x27f   :  { %2246 = vmatpush.bf16.msra.mxu3 %v5126_v16  ;;  %v6225_v16 = vld [vmem:[%s9460_s8 + $0x354] sm:$0xf] }
 0x280   :  { %v7904_v56 = vpop.f32.mrf.mxu3  ;;  %2229 = vmatpush.bf16.msra.mxu2 %v5046_v32 }
 0x282   :  { %v1354_v0 = vpop.f32.mrf.mxu1  ;;  %v7909_v2 = vpop.f32.mrf.mxu2 }
 0x283   :  { %2247 = vmatpush.bf16.msra.mxu3 %v5118_v24  ;;  %v1355_v31 = vadd.f32 %v1354_v0, %v7863_v5  ;;  %v5074_v24 = vor.u32 %v6223_v20, %v5071_v22  ;;  %v6256_v20 = vld [vmem:[%s9460_s8 + $0x444] sm:$0xf0] }
 0x284   :  { %2230 = vmatpush.bf16.msra.mxu2 %v5038_v43 }
 0x285   :  { %v1571_v32 = vpop.f32.mrf.mxu0 }
 0x286   :  { %v1572_v35 = vadd.f32 %v1571_v32, %v1355_v31  ;;  %v5055_v32 = vld [vmem:[%s9460_s8 + $0x328] sm:$0xf0] }
 0x287   :  { %2248 = vmatpush.bf16.msra.mxu3 %v5110_v30  ;;  %v6219_v30 = vld [vmem:[%s9460_s8 + $0x324] sm:$0xf] }
 0x288   :  { %v1316_v47 = vpop.f32.mrf.mxu3 }
 0x289   :  { %v1317_v53 = vadd.f32 %v1316_v47, %v7819_v37 }
 0x28a   :  { %v7936_v12 = vpop.f32.mrf.mxu1  ;;  %v1533_v61 = vpop.f32.mrf.mxu2 }
 0x28b   :  { %v1534_v62 = vadd.f32 %v1533_v61, %v1317_v53  ;;  %v4991_v61 = vld [vmem:[%s9459_s7 + $0x60] sm:$0xff] }
 0x28d   :  { %v8110_v54 = vpop.f32.mrf.mxu0 }
 0x290   :  { %v7946_v37 = vpop.f32.mrf.mxu3 }
 0x292   :  { %v1585_v4 = vpop.f32.mrf.mxu1  ;;  %v7954_v9 = vpop.f32.mrf.mxu2 }
 0x293   :  { %v7956_v13 = vadd.f32 %v1585_v4, %v1567_v7  ;;  %v5095_v7 = vld [vmem:[%s9460_s8 + $0x378] sm:$0xf0] }
 0x294   :  { %v5098_v4 = vor.u32 %v6229_v58, %v5095_v7  ;;  %v5249_v58 = vld [vmem:[%s9460_s8 + $0x450] sm:$0xf]  ;;  %v6258_v7 = vld [vmem:[%s9460_s8 + $0x454] sm:$0xf0] }
 0x298   :  { %v1547_v19 = vpop.f32.mrf.mxu3 }
 0x299   :  { %v7976_v23 = vadd.f32 %v1547_v19, %v7879_v17  ;;  %v5101_v17 = vld [vmem:[%s9460_s8 + $0x380] sm:$0xf]  ;;  %v5079_v19 = vld [vmem:[%s9460_s8 + $0x358] sm:$0xf0] }
 0x29a   :  { %v7981_v60 = vpop.f32.mrf.mxu1  ;;  %v1629_v29 = vpop.f32.mrf.mxu2  ;;  %v5102_v36 = vor.u32 %v6232_v34, %v5101_v17  ;;  %v5082_v21 = vor.u32 %v6225_v16, %v5079_v19  ;;  %v5058_v17 = vor.u32 %v6219_v30, %v5055_v32  ;;  %v6217_v34 = vld [vmem:[%s9460_s8 + $0x314] sm:$0xf]  ;;  %v5135_v16 = vld [vmem:[%s9460_s8 + $0x3c8] sm:$0xf0]  ;;  %v5241_v19 = vld [vmem:[%s9460_s8 + $0x440] sm:$0xf] }
 0x29b   :  { %v5242_v22 = vor.u32 %v6256_v20, %v5241_v19  ;;  %v5313_v19 = vld [vmem:[%s9460_s8 + $0x4d0] sm:$0xf] }
 0x29c   :  { %2249 = vmatpush.bf16.msra.mxu3 %v5102_v36  ;;  %v6215_v36 = vld [vmem:[%s9460_s8 + $0x304] sm:$0xf] }
 0x2a0   :  { %v7984_v33 = vpop.f32.mrf.mxu3 }
 0x2a2   :  { %v1590_v39 = vpop.f32.mrf.mxu1  ;;  %v1632_v40 = vpop.f32.mrf.mxu2 }
 0x2a3   :  { %v7992_v42 = vadd.f32 %v1590_v39, %v1572_v35  ;;  %v1670_v43 = vpack.c.bf16 %v1632_v40, %v1629_v29  ;;  %v5063_v29 = vld [vmem:[%s9460_s8 + $0x338] sm:$0xf0]  ;;  %v5039_v40 = vld [vmem:[%s9460_s8 + $0x308] sm:$0xf0] }
 0x2a4   :  { %v5066_v31 = vor.u32 %v6221_v27, %v5063_v29  ;;  %v5047_v35 = vld [vmem:[%s9460_s8 + $0x318] sm:$0xf0]  ;;  %v5233_v29 = vld [vmem:[%s9460_s8 + $0x430] sm:$0xf] }
 0x2a5   :  { %1875 = vmatmul.bf16.vlgmr.msrb.gmra.mxu0 %v1670_v43  ;;  %1913 = vmatmul.bf16.vlgmr.msrb.gmra.mxu2 %v1670_v43  ;;  %v5050_v39 = vor.u32 %v6217_v34, %v5047_v35  ;;  %v6245_v43 = vld [vmem:[%s9460_s8 + $0x3f4] sm:$0xf]  ;;  %v5127_v27 = vld [vmem:[%s9460_s8 + $0x3b8] sm:$0xf0]  ;;  %v6235_v34 = vld [vmem:[%s9460_s8 + $0x3a4] sm:$0xf] }
 0x2a6   :  { %2336 = vmatpush.msrb.mxu2 %v7135_v41  ;;  %2261 = vmatpush.bf16.msrb.mxu0 %v5098_v4  ;;  %v5250_v4 = vor.u32 %v6258_v7, %v5249_v58  ;;  %v5119_v35 = vld [vmem:[%s9460_s8 + $0x3a8] sm:$0xf0] }
 0x2a8   :  { %v1552_v5 = vpop.f32.mrf.mxu3  ;;  %2337 = vmatpush.msrb.mxu2 %v7137_v45 }
 0x2a9   :  { %v7996_v0 = vadd.f32 %v1552_v5, %v1534_v62  ;;  %v5159_v5 = vld [vmem:[%s9460_s8 + $0x3f8] sm:$0xf0] }
 0x2aa   :  { %2338 = vmatpush.msrb.mxu2 %v7141_v46  ;;  %v1635_v44 = vpop.f32.mrf.mxu2  ;;  %2262 = vmatpush.bf16.msrb.mxu0 %v5090_v14  ;;  %v6239_v14 = vld [vmem:[%s9460_s8 + $0x3c4] sm:$0xf] }
 0x2ac   :  { %2339 = vmatpush.msrb.mxu2 %v7145_v49 }
 0x2ae   :  { %2263 = vmatpush.bf16.msrb.mxu0 %v5082_v21  ;;  %v5138_v21 = vor.u32 %v6239_v14, %v5135_v16 }
 0x2b0   :  { %v8000_v47 = vpop.f32.mrf.mxu3 }
 0x2b2   :  { %v1638_v48 = vpop.f32.mrf.mxu2  ;;  %2264 = vmatpush.bf16.msrb.mxu0 %v5074_v24  ;;  %v6237_v24 = vld [vmem:[%s9460_s8 + $0x3b4] sm:$0xf] }
 0x2b3   :  { %v1672_v50 = vpack.c.bf16 %v1638_v48, %v1635_v44  ;;  %v5162_v44 = vor.u32 %v6245_v43, %v5159_v5  ;;  %v5265_v48 = vld [vmem:[%s9460_s8 + $0x470] sm:$0xf]  ;;  %v5130_v30 = vor.u32 %v6237_v24, %v5127_v27  ;;  %v6233_v5 = vld [vmem:[%s9460_s8 + $0x394] sm:$0xf]  ;;  %v5305_v24 = vld [vmem:[%s9460_s8 + $0x4c0] sm:$0xf] }
 0x2b4   :  { %v6272_v27 = vld [vmem:[%s9460_s8 + $0x4c4] sm:$0xf0] }
 0x2b5   :  { %1880 = vmatmul.bf16.gmra.mxu0 %v1672_v50  ;;  %1918 = vmatmul.bf16.gmra.mxu2 %v1672_v50  ;;  %v6262_v50 = vld [vmem:[%s9460_s8 + $0x474] sm:$0xf0] }
 0x2b6   :  { %2265 = vmatpush.bf16.msrb.mxu0 %v5066_v31  ;;  %v6254_v31 = vld [vmem:[%s9460_s8 + $0x434] sm:$0xf0] }
 0x2b7   :  { %v5234_v32 = vor.u32 %v6254_v31, %v5233_v29  ;;  %v5306_v29 = vor.u32 %v6272_v27, %v5305_v24  ;;  %v5297_v31 = vld [vmem:[%s9460_s8 + $0x4b0] sm:$0xf] }
 0x2b8   :  { %v1658_v52 = vpop.f32.mrf.mxu3 }
 0x2ba   :  { %2266 = vmatpush.bf16.msrb.mxu0 %v5058_v17 }
 0x2be   :  { %2267 = vmatpush.bf16.msrb.mxu0 %v5050_v39  ;;  %v5122_v39 = vor.u32 %v6235_v34, %v5119_v35 }
 0x2c0   :  { %v1661_v53 = vpop.f32.mrf.mxu3 }
 0x2c1   :  { %v1671_v11 = vpack.c.bf16 %v1661_v53, %v1658_v52  ;;  %v5042_v52 = vor.u32 %v6215_v36, %v5039_v40  ;;  %v5266_v53 = vor.u32 %v6262_v50, %v5265_v48  ;;  %v5225_v36 = vld [vmem:[%s9460_s8 + $0x420] sm:$0xf]  ;;  %v6252_v40 = vld [vmem:[%s9460_s8 + $0x424] sm:$0xf0]  ;;  %v5217_v48 = vld [vmem:[%s9460_s8 + $0x410] sm:$0xf] }
 0x2c2   :  { %v5226_v43 = vor.u32 %v6252_v40, %v5225_v36  ;;  %v5289_v36 = vld [vmem:[%s9460_s8 + $0x4a0] sm:$0xf] }
 0x2c3   :  { %1894 = vmatmul.bf16.vlgmr.msrb.gmra.mxu1 %v1671_v11  ;;  %1932 = vmatmul.bf16.vlgmr.msrb.gmra.mxu3 %v1671_v11  ;;  %v6243_v11 = vld [vmem:[%s9460_s8 + $0x3e4] sm:$0xf] }
 0x2c4   :  { %2365 = vmatpush.msrb.mxu3 %v7193_v10  ;;  %2280 = vmatpush.bf16.msrb.mxu1 %v5162_v44  ;;  %v5111_v44 = vld [vmem:[%s9460_s8 + $0x398] sm:$0xf0] }
 0x2c5   :  { %4995 = vmatmul.msk.f32.vlgmr.msra.gmra.mxu0 %vm904_vm1, %v4991_v61  ;;  %v5114_v50 = vor.u32 %v6233_v5, %v5111_v44  ;;  %v5281_v5 = vld [vmem:[%s9460_s8 + $0x490] sm:$0xf]  ;;  %v6266_v44 = vld [vmem:[%s9460_s8 + $0x494] sm:$0xf0] }
 0x2c6   :  { %2366 = vmatpush.msrb.mxu3 %v7214_v18  ;;  %2268 = vmatpush.bf16.msrb.mxu0 %v5042_v52  ;;  %v6250_v52 = vld [vmem:[%s9460_s8 + $0x414] sm:$0xf0] }
 0x2c8   :  { %2367 = vmatpush.msrb.mxu3 %v7237_v26  ;;  %v1664_v62 = vpop.f32.mrf.mxu3 }
 0x2ca   :  { %2368 = vmatpush.msrb.mxu3 %v7241_v55  ;;  %2579 = vmatpush.bf16.msra.mxu0 %v5266_v53  ;;  %v5218_v53 = vor.u32 %v6250_v52, %v5217_v48 }
 0x2cd   :  { %4996 = vmatmul.msk.f32.gmra.mxu0 %vm904_vm1, %v4992_v63 }
 0x2d0   :  { %v1667_v3 = vpop.f32.mrf.mxu3 }
 0x2d1   :  { %v1673_v1 = vpack.c.bf16 %v1667_v3, %v1664_v62  ;;  %v5257_v62 = vld [vmem:[%s9460_s8 + $0x460] sm:$0xf]  ;;  %v6260_v3 = vld [vmem:[%s9460_s8 + $0x464] sm:$0xf0] }
 0x2d3   :  { %1899 = vmatmul.bf16.gmra.mxu1 %v1673_v1  ;;  %1937 = vmatmul.bf16.gmra.mxu3 %v1673_v1  ;;  %v6241_v1 = vld [vmem:[%s9460_s8 + $0x3d4] sm:$0xf] }
 0x2d5   :  { %4997 = vmatmul.msk.f32.gmra.mxu0 %vm904_vm1, %v4993_v6 }
 0x2dd   :  { %4998 = vmatmul.msk.f32.gmra.mxu0 %vm904_vm1, %v4994_v57 }
 0x2e3   :  { %4999 = vmatmul.msk.f32.vlgmr.msra.gmra.mxu1 %vm904_vm1, %v4991_v61  ;;  %v5151_v61 = vld [vmem:[%s9460_s8 + $0x3e8] sm:$0xf0] }
 0x2eb   :  { %5000 = vmatmul.msk.f32.gmra.mxu1 %vm904_vm1, %v4992_v63  ;;  %v5154_v63 = vor.u32 %v6243_v11, %v5151_v61  ;;  %v6231_v61 = vld [vmem:[%s9460_s8 + $0x384] sm:$0xf] }
 0x2ed   :  { %2281 = vmatpush.bf16.msrb.mxu1 %v5154_v63  ;;  %v5209_v63 = vld [vmem:[%s9460_s8 + $0x400] sm:$0xf] }
 0x2f3   :  { %5001 = vmatmul.msk.f32.gmra.mxu1 %vm904_vm1, %v4993_v6  ;;  %v5143_v6 = vld [vmem:[%s9460_s8 + $0x3d8] sm:$0xf0] }
 0x2f4   :  { %v5146_v8 = vor.u32 %v6241_v1, %v5143_v6  ;;  %v6248_v1 = vld [vmem:[%s9460_s8 + $0x404] sm:$0xf0]  ;;  %v5329_v6 = vld [vmem:[%s9460_s8 + $0x4f0] sm:$0xf] }
 0x2f5   :  { %v5210_v58 = vor.u32 %v6248_v1, %v5209_v63  ;;  %v5273_v63 = vld [vmem:[%s9460_s8 + $0x480] sm:$0xf] }
 0x2f6   :  { %2282 = vmatpush.bf16.msrb.mxu1 %v5146_v8  ;;  %v5321_v8 = vld [vmem:[%s9460_s8 + $0x4e0] sm:$0xf] }
 0x2fa   :  { %2283 = vmatpush.bf16.msrb.mxu1 %v5138_v21  ;;  %v6274_v21 = vld [vmem:[%s9460_s8 + $0x4d4] sm:$0xf0] }
 0x2fb   :  { %5002 = vmatmul.msk.f32.gmra.mxu1 %vm904_vm1, %v4994_v57  ;;  %v5258_v57 = vor.u32 %v6260_v3, %v5257_v62  ;;  %v5103_v62 = vld [vmem:[%s9460_s8 + $0x388] sm:$0xf0]  ;;  %v5314_v20 = vor.u32 %v6274_v21, %v5313_v19 }
 0x2fc   :  { %v5106_v3 = vor.u32 %v6231_v61, %v5103_v62 }
 0x2fd   :  { %2580 = vmatpush.bf16.msra.mxu0 %v5258_v57  ;;  %v6278_v57 = vld [vmem:[%s9460_s8 + $0x4f4] sm:$0xf0] }
 0x2fe   :  { %2284 = vmatpush.bf16.msrb.mxu1 %v5130_v30  ;;  %v5330_v7 = vor.u32 %v6278_v57, %v5329_v6 }
 0x301   :  { %2581 = vmatpush.bf16.msra.mxu0 %v5250_v4  ;;  %v6276_v4 = vld [vmem:[%s9460_s8 + $0x4e4] sm:$0xf0] }
 0x302   :  { %2285 = vmatpush.bf16.msrb.mxu1 %v5122_v39  ;;  %v5322_v14 = vor.u32 %v6276_v4, %v5321_v8  ;;  %v6268_v39 = vld [vmem:[%s9460_s8 + $0x4a4] sm:$0xf0] }
 0x305   :  { %2582 = vmatpush.bf16.msra.mxu0 %v5242_v22  ;;  %v8192_v22 = vpop.f32.mrf.mxu1 }
 0x306   :  { %2286 = vmatpush.bf16.msrb.mxu1 %v5114_v50  ;;  %9463 = vst [vmem:[#allocation2_spill] sm:$0xff] %v8192_v22 }
 0x309   :  { %2583 = vmatpush.bf16.msra.mxu0 %v5234_v32  ;;  %v6270_v32 = vld [vmem:[%s9460_s8 + $0x4b4] sm:$0xf0] }
 0x30a   :  { %2287 = vmatpush.bf16.msrb.mxu1 %v5106_v3  ;;  %v5298_v34 = vor.u32 %v6270_v32, %v5297_v31  ;;  %v6264_v3 = vld [vmem:[%s9460_s8 + $0x484] sm:$0xf0] }
 0x30d   :  { %2584 = vmatpush.bf16.msra.mxu0 %v5226_v43  ;;  %v5290_v43 = vor.u32 %v6268_v39, %v5289_v36 }
 0x30e   :  { %2598 = vmatpush.bf16.msra.mxu1 %v5330_v7 }
 0x311   :  { %2585 = vmatpush.bf16.msra.mxu0 %v5218_v53  ;;  %v5282_v53 = vor.u32 %v6266_v44, %v5281_v5  ;;  %v6261_v5 = vld [vmem:[%s9460_s8 + $0x474] sm:$0xf]  ;;  %v5267_v44 = vld [vmem:[%s9460_s8 + $0x478] sm:$0xf0] }
 0x312   :  { %2599 = vmatpush.bf16.msra.mxu1 %v5322_v14 }
 0x315   :  { %2586 = vmatpush.bf16.msra.mxu0 %v5210_v58 }
 0x316   :  { %2600 = vmatpush.bf16.msra.mxu1 %v5314_v20 }
 0x31a   :  { %2601 = vmatpush.bf16.msra.mxu1 %v5306_v29 }
 0x31e   :  { %2602 = vmatpush.bf16.msra.mxu1 %v5298_v34 }
 0x322   :  { %v1876_v17 = vpop.f32.mrf.mxu0  ;;  %2603 = vmatpush.bf16.msra.mxu1 %v5290_v43  ;;  %v5166_v43 = vld [vmem:[%s9459_s7 + $0x98] sm:$0xff] }
 0x326   :  { %2604 = vmatpush.bf16.msra.mxu1 %v5282_v53  ;;  %v5259_v53 = vld [vmem:[%s9460_s8 + $0x468] sm:$0xf0] }
 0x328   :  { %v1914_v50 = vpop.f32.mrf.mxu2 }
 0x32a   :  { %v8160_v11 = vpop.f32.mrf.mxu0 }
 0x330   :  { %v8234_v58 = vpop.f32.mrf.mxu2 }
 0x332   :  { %v1881_v16 = vpop.f32.mrf.mxu0 }
 0x338   :  { %v1919_v19 = vpop.f32.mrf.mxu2 }
 0x33a   :  { %v8200_v30 = vpop.f32.mrf.mxu0 }
 0x340   :  { %v1895_v35 = vpop.f32.mrf.mxu1 }
 0x341   :  { %v1896_v40 = vadd.f32 %v1895_v35, %v1876_v17  ;;  %v5164_v35 = vld [vmem:[%s9459_s7 + $0x88] sm:$0xff] }
 0x342   :  { %v1985_v48 = vpop.f32.mrf.mxu0 }
 0x343   :  { %v8221_v52 = vadd.f32 %v1896_v40, %v7976_v23  ;;  %v5274_v23 = vor.u32 %v6264_v3, %v5273_v63  ;;  %v5165_v40 = vld [vmem:[%s9459_s7 + $0x90] sm:$0xff]  ;;  %v5251_v63 = vld [vmem:[%s9460_s8 + $0x458] sm:$0xf0] }
 0x345   :  { %2605 = vmatpush.bf16.msra.mxu1 %v5274_v23  ;;  %v6255_v23 = vld [vmem:[%s9460_s8 + $0x444] sm:$0xf] }
 0x346   :  { %v1933_v61 = vpop.f32.mrf.mxu3 }
 0x347   :  { %v1934_v62 = vadd.f32 %v1933_v61, %v1914_v50  ;;  %v5270_v50 = vor.u32 %v6261_v5, %v5267_v44  ;;  %v6275_v5 = vld [vmem:[%s9460_s8 + $0x4e4] sm:$0xf]  ;;  %v5323_v44 = vld [vmem:[%s9460_s8 + $0x4e8] sm:$0xf0] }
 0x348   :  { %v8223_v17 = vpop.f32.mrf.mxu1 }
 0x349   :  { %v8232_v1 = vadd.f32 %v1934_v62, %v7956_v13  ;;  %v6257_v62 = vld [vmem:[%s9460_s8 + $0x454] sm:$0xf] }
 0x34a   :  { %v1988_v6 = vpop.f32.mrf.mxu0  ;;  %v5254_v3 = vor.u32 %v6257_v62, %v5251_v63  ;;  %v5315_v62 = vld [vmem:[%s9460_s8 + $0x4d8] sm:$0xf0] }
 0x34b   :  { %v2026_v57 = vpack.c.bf16 %v1988_v6, %v1985_v48  ;;  %v6259_v48 = vld [vmem:[%s9460_s8 + $0x464] sm:$0xf]  ;;  %v5243_v6 = vld [vmem:[%s9460_s8 + $0x448] sm:$0xf0] }
 0x34c   :  { %v5262_v61 = vor.u32 %v6259_v48, %v5259_v53  ;;  %v5429_v48 = vld [vmem:[%s9460_s8 + $0x560] sm:$0xf]  ;;  %v6292_v53 = vld [vmem:[%s9460_s8 + $0x564] sm:$0xf0] }
 0x34d   :  { %2231 = vmatmul.bf16.vlgmr.msra.gmra.mxu2 %v2026_v57  ;;  %2269 = vmatmul.bf16.vlgmr.msrb.gmra.mxu0 %v2026_v57  ;;  %v5246_v57 = vor.u32 %v6255_v23, %v5243_v6  ;;  %v5430_v63 = vor.u32 %v6292_v53, %v5429_v48  ;;  %v6290_v23 = vld [vmem:[%s9460_s8 + $0x554] sm:$0xf0]  ;;  %v6265_v48 = vld [vmem:[%s9460_s8 + $0x494] sm:$0xf]  ;;  %v5389_v53 = vld [vmem:[%s9460_s8 + $0x510] sm:$0xf] }
 0x34e   :  { %v8236_v7 = vpop.f32.mrf.mxu3  ;;  %2692 = vmatpush.msrb.mxu0 %v7135_v41  ;;  %2617 = vmatpush.bf16.msra.mxu2 %v5270_v50  ;;  %v5326_v50 = vor.u32 %v6275_v5, %v5323_v44  ;;  %v6284_v5 = vld [vmem:[%s9460_s8 + $0x524] sm:$0xf0] }
 0x350   :  { %v1900_v8 = vpop.f32.mrf.mxu1  ;;  %2693 = vmatpush.msrb.mxu0 %v7137_v45 }
 0x351   :  { %v1901_v4 = vadd.f32 %v1900_v8, %v1881_v16  ;;  %v6253_v8 = vld [vmem:[%s9460_s8 + $0x434] sm:$0xf] }
 0x352   :  { %2694 = vmatpush.msrb.mxu0 %v7141_v46  ;;  %v1991_v13 = vpop.f32.mrf.mxu0  ;;  %2618 = vmatpush.bf16.msra.mxu2 %v5262_v61  ;;  %v6273_v61 = vld [vmem:[%s9460_s8 + $0x4d4] sm:$0xf] }
 0x353   :  { %v8242_v14 = vadd.f32 %v1901_v4, %v7996_v0  ;;  %v5163_v0 = vld [vmem:[%s9459_s7 + $0x80] sm:$0xff]  ;;  %v5235_v4 = vld [vmem:[%s9460_s8 + $0x438] sm:$0xf0]  ;;  %v5318_v6 = vor.u32 %v6273_v61, %v5315_v62  ;;  %v6282_v62 = vld [vmem:[%s9460_s8 + $0x514] sm:$0xf0] }
 0x354   :  { %2695 = vmatpush.msrb.mxu0 %v7145_v49 }
 0x356   :  { %v1938_v21 = vpop.f32.mrf.mxu3  ;;  %2619 = vmatpush.bf16.msra.mxu2 %v5254_v3  ;;  %v5421_v3 = vld [vmem:[%s9460_s8 + $0x550] sm:$0xf] }
 0x357   :  { %v1939_v20 = vadd.f32 %v1938_v21, %v1919_v19  ;;  %v5238_v19 = vor.u32 %v6253_v8, %v5235_v4  ;;  %v5227_v21 = vld [vmem:[%s9460_s8 + $0x428] sm:$0xf0]  ;;  %v8358_v8 = vpop.f32.mrf.mxu2  ;;  %v6271_v4 = vld [vmem:[%s9460_s8 + $0x4c4] sm:$0xf] }
 0x358   :  { %v8245_v24 = vpop.f32.mrf.mxu1  ;;  %9464 = vst [vmem:[#allocation3_spill] sm:$0xff] %v8358_v8 }
 0x359   :  { %v8248_v27 = vadd.f32 %v1939_v20, %v7992_v42 }
 0x35a   :  { %v1994_v29 = vpop.f32.mrf.mxu0  ;;  %2620 = vmatpush.bf16.msra.mxu2 %v5246_v57  ;;  %v5422_v57 = vor.u32 %v6290_v23, %v5421_v3  ;;  %v6263_v23 = vld [vmem:[%s9460_s8 + $0x484] sm:$0xf] }
 0x35b   :  { %v2028_v31 = vpack.c.bf16 %v1994_v29, %v1991_v13  ;;  %v6251_v13 = vld [vmem:[%s9460_s8 + $0x424] sm:$0xf]  ;;  %v6249_v29 = vld [vmem:[%s9460_s8 + $0x414] sm:$0xf] }
 0x35c   :  { %v5230_v20 = vor.u32 %v6251_v13, %v5227_v21  ;;  %v5307_v13 = vld [vmem:[%s9460_s8 + $0x4c8] sm:$0xf0] }
 0x35d   :  { %2236 = vmatmul.bf16.gmra.mxu2 %v2028_v31  ;;  %2274 = vmatmul.bf16.gmra.mxu0 %v2028_v31  ;;  %v5219_v31 = vld [vmem:[%s9460_s8 + $0x418] sm:$0xf0]  ;;  %v5310_v21 = vor.u32 %v6271_v4, %v5307_v13  ;;  %v6280_v13 = vld [vmem:[%s9460_s8 + $0x504] sm:$0xf0] }
 0x35e   :  { %2621 = vmatpush.bf16.msra.mxu2 %v5238_v19  ;;  %v5413_v19 = vld [vmem:[%s9460_s8 + $0x540] sm:$0xf] }
 0x360   :  { %v2014_v16 = vpop.f32.mrf.mxu1 }
 0x362   :  { %2622 = vmatpush.bf16.msra.mxu2 %v5230_v20  ;;  %v6288_v20 = vld [vmem:[%s9460_s8 + $0x544] sm:$0xf0] }
 0x368   :  { %v2017_v32 = vpop.f32.mrf.mxu1 }
 0x369   :  { %v2027_v34 = vpack.c.bf16 %v2017_v32, %v2014_v16  ;;  %v6247_v16 = vld [vmem:[%s9460_s8 + $0x404] sm:$0xf]  ;;  %v5222_v32 = vor.u32 %v6249_v29, %v5219_v31  ;;  %v5414_v29 = vor.u32 %v6288_v20, %v5413_v19  ;;  %v6269_v31 = vld [vmem:[%s9460_s8 + $0x4b4] sm:$0xf]  ;;  %v5501_v19 = vld [vmem:[%s9460_s8 + $0x5f0] sm:$0xf] }
 0x36b   :  { %2250 = vmatmul.bf16.vlgmr.msra.gmra.mxu3 %v2027_v34  ;;  %2288 = vmatmul.bf16.vlgmr.msrb.gmra.mxu1 %v2027_v34  ;;  %v5211_v34 = vld [vmem:[%s9460_s8 + $0x408] sm:$0xf0] }
 0x36c   :  { %2721 = vmatpush.msrb.mxu1 %v7193_v10  ;;  %2623 = vmatpush.bf16.msra.mxu2 %v5222_v32  ;;  %v5405_v32 = vld [vmem:[%s9460_s8 + $0x530] sm:$0xf] }
 0x36d   :  { %5167 = vmatmul.msk.f32.vlgmr.msrb.gmra.mxu2 %vm904_vm1, %v5163_v0 }
 0x36e   :  { %2722 = vmatpush.msrb.mxu1 %v7214_v18 }
 0x370   :  { %2723 = vmatpush.msrb.mxu1 %v7237_v26  ;;  %v2020_v42 = vpop.f32.mrf.mxu1 }
 0x372   :  { %2724 = vmatpush.msrb.mxu1 %v7241_v55 }
 0x375   :  { %5168 = vmatmul.msk.f32.gmra.mxu2 %vm904_vm1, %v5164_v35 }
 0x378   :  { %v2023_v36 = vpop.f32.mrf.mxu1 }
 0x379   :  { %v2029_v39 = vpack.c.bf16 %v2023_v36, %v2020_v42  ;;  %v5331_v42 = vld [vmem:[%s9460_s8 + $0x4f8] sm:$0xf0]  ;;  %v5437_v36 = vld [vmem:[%s9460_s8 + $0x570] sm:$0xf] }
 0x37b   :  { %2255 = vmatmul.bf16.gmra.mxu3 %v2029_v39  ;;  %2293 = vmatmul.bf16.gmra.mxu1 %v2029_v39  ;;  %v6294_v39 = vld [vmem:[%s9460_s8 + $0x574] sm:$0xf0] }
 0x37d   :  { %5169 = vmatmul.msk.f32.gmra.mxu2 %vm904_vm1, %v5165_v40 }
 0x385   :  { %5170 = vmatmul.msk.f32.gmra.mxu2 %vm904_vm1, %v5166_v43 }
 0x38b   :  { %5171 = vmatmul.msk.f32.vlgmr.msrb.gmra.mxu3 %vm904_vm1, %v5163_v0  ;;  %v6277_v0 = vld [vmem:[%s9460_s8 + $0x4f4] sm:$0xf] }
 0x393   :  { %5172 = vmatmul.msk.f32.gmra.mxu3 %vm904_vm1, %v5164_v35  ;;  %v5334_v35 = vor.u32 %v6277_v0, %v5331_v42  ;;  %v6286_v0 = vld [vmem:[%s9460_s8 + $0x534] sm:$0xf0] }
 0x394   :  { %v5406_v42 = vor.u32 %v6286_v0, %v5405_v32  ;;  %v5485_v0 = vld [vmem:[%s9460_s8 + $0x5d0] sm:$0xf] }
 0x395   :  { %2636 = vmatpush.bf16.msra.mxu3 %v5334_v35 }
 0x399   :  { %2637 = vmatpush.bf16.msra.mxu3 %v5326_v50  ;;  %v5283_v50 = vld [vmem:[%s9460_s8 + $0x498] sm:$0xf0] }
 0x39a   :  { %v5286_v61 = vor.u32 %v6265_v48, %v5283_v50 }
 0x39b   :  { %5173 = vmatmul.msk.f32.gmra.mxu3 %vm904_vm1, %v5165_v40  ;;  %v5214_v40 = vor.u32 %v6247_v16, %v5211_v34  ;;  %v5299_v16 = vld [vmem:[%s9460_s8 + $0x4b8] sm:$0xf0] }
 0x39c   :  { %v5302_v34 = vor.u32 %v6269_v31, %v5299_v16  ;;  %v5493_v31 = vld [vmem:[%s9460_s8 + $0x5e0] sm:$0xf]  ;;  %v6308_v16 = vld [vmem:[%s9460_s8 + $0x5e4] sm:$0xf0] }
 0x39d   :  { %2624 = vmatpush.bf16.msra.mxu2 %v5214_v40  ;;  %2638 = vmatpush.bf16.msra.mxu3 %v5318_v6  ;;  %v5397_v40 = vld [vmem:[%s9460_s8 + $0x520] sm:$0xf]  ;;  %v5275_v6 = vld [vmem:[%s9460_s8 + $0x488] sm:$0xf0]  ;;  %v5494_v32 = vor.u32 %v6308_v16, %v5493_v31 }
 0x39e   :  { %v5398_v44 = vor.u32 %v6284_v5, %v5397_v40  ;;  %v5278_v4 = vor.u32 %v6263_v23, %v5275_v6  ;;  %v8440_v40 = vpop.f32.mrf.mxu3  ;;  %v6304_v5 = vld [vmem:[%s9460_s8 + $0x5c4] sm:$0xf0] }
 0x39f   :  { %9465 = vst [vmem:[#allocation4_spill] sm:$0xff] %v8440_v40 }
 0x3a1   :  { %2639 = vmatpush.bf16.msra.mxu3 %v5310_v21  ;;  %v6310_v21 = vld [vmem:[%s9460_s8 + $0x5f4] sm:$0xf0] }
 0x3a3   :  { %5174 = vmatmul.msk.f32.gmra.mxu3 %vm904_vm1, %v5166_v43  ;;  %v5438_v43 = vor.u32 %v6294_v39, %v5437_v36  ;;  %v6267_v36 = vld [vmem:[%s9460_s8 + $0x4a4] sm:$0xf]  ;;  %v5291_v39 = vld [vmem:[%s9460_s8 + $0x4a8] sm:$0xf0] }
 0x3a5   :  { %2935 = vmatpush.bf16.msrb.mxu2 %v5438_v43  ;;  %2640 = vmatpush.bf16.msra.mxu3 %v5302_v34  ;;  %v5294_v43 = vor.u32 %v6267_v36, %v5291_v39 }
 0x3a9   :  { %2936 = vmatpush.bf16.msrb.mxu2 %v5430_v63  ;;  %2641 = vmatpush.bf16.msra.mxu3 %v5294_v43  ;;  %v5390_v63 = vor.u32 %v6282_v62, %v5389_v53  ;;  %v5477_v43 = vld [vmem:[%s9460_s8 + $0x5c0] sm:$0xf]  ;;  %v6302_v62 = vld [vmem:[%s9460_s8 + $0x5b4] sm:$0xf0] }
 0x3ad   :  { %2937 = vmatpush.bf16.msrb.mxu2 %v5422_v57  ;;  %2642 = vmatpush.bf16.msra.mxu3 %v5286_v61  ;;  %v5381_v57 = vld [vmem:[%s9460_s8 + $0x500] sm:$0xf]  ;;  %v5469_v61 = vld [vmem:[%s9460_s8 + $0x5b0] sm:$0xf] }
 0x3ae   :  { %v5382_v20 = vor.u32 %v6280_v13, %v5381_v57  ;;  %v5470_v23 = vor.u32 %v6302_v62, %v5469_v61  ;;  %v6300_v13 = vld [vmem:[%s9460_s8 + $0x5a4] sm:$0xf0] }
 0x3b1   :  { %2938 = vmatpush.bf16.msrb.mxu2 %v5414_v29  ;;  %v5502_v29 = vor.u32 %v6310_v21, %v5501_v19  ;;  %2643 = vmatpush.bf16.msra.mxu3 %v5278_v4  ;;  %v5461_v4 = vld [vmem:[%s9460_s8 + $0x5a0] sm:$0xf]  ;;  %v5453_v19 = vld [vmem:[%s9460_s8 + $0x590] sm:$0xf] }
 0x3b5   :  { %2939 = vmatpush.bf16.msrb.mxu2 %v5406_v42  ;;  %2954 = vmatpush.bf16.msrb.mxu3 %v5502_v29  ;;  %v6306_v42 = vld [vmem:[%s9460_s8 + $0x5d4] sm:$0xf0] }
 0x3b6   :  { %v5486_v39 = vor.u32 %v6306_v42, %v5485_v0  ;;  %v6296_v42 = vld [vmem:[%s9460_s8 + $0x584] sm:$0xf0] }
 0x3b9   :  { %2940 = vmatpush.bf16.msrb.mxu2 %v5398_v44  ;;  %2955 = vmatpush.bf16.msrb.mxu3 %v5494_v32  ;;  %v5478_v44 = vor.u32 %v6304_v5, %v5477_v43 }
 0x3bd   :  { %2941 = vmatpush.bf16.msrb.mxu2 %v5390_v63  ;;  %2956 = vmatpush.bf16.msrb.mxu3 %v5486_v39 }
 0x3c1   :  { %2942 = vmatpush.bf16.msrb.mxu2 %v5382_v20  ;;  %2957 = vmatpush.bf16.msrb.mxu3 %v5478_v44  ;;  %v6298_v20 = vld [vmem:[%s9460_s8 + $0x594] sm:$0xf0] }
 0x3c2   :  { %v5454_v32 = vor.u32 %v6298_v20, %v5453_v19 }
 0x3c5   :  { %2958 = vmatpush.bf16.msrb.mxu3 %v5470_v23 }
 0x3ca   :  { %v2270_v36 = vpop.f32.mrf.mxu0 }
 0x3d0   :  { %v2232_v35 = vpop.f32.mrf.mxu2 }
 0x3d2   :  { %v8459_v6 = vpop.f32.mrf.mxu0 }
 0x3d8   :  { %v8408_v3 = vpop.f32.mrf.mxu2 }
 0x3e0   :  { %v2237_v34 = vpop.f32.mrf.mxu2 }
 0x3e8   :  { %v2289_v48 = vpop.f32.mrf.mxu1  ;;  %v8448_v50 = vpop.f32.mrf.mxu2 }
 0x3e9   :  { %v2290_v53 = vadd.f32 %v2289_v48, %v2270_v36  ;;  %v2275_v36 = vpop.f32.mrf.mxu0 }
 0x3eb   :  { %v8457_v63 = vadd.f32 %v2290_v53, %v8232_v1  ;;  %v5462_v1 = vor.u32 %v6300_v13, %v5461_v4 }
 0x3ed   :  { %2959 = vmatpush.bf16.msrb.mxu3 %v5462_v1  ;;  %v5336_v1 = vld [vmem:[%s9459_s7 + $0xa8] sm:$0xff] }
 0x3ee   :  { %v2251_v57 = vpop.f32.mrf.mxu3 }
 0x3ef   :  { %v2252_v21 = vadd.f32 %v2251_v57, %v2232_v35  ;;  %v5445_v35 = vld [vmem:[%s9460_s8 + $0x580] sm:$0xf] }
 0x3f0   :  { %v8473_v29 = vpop.f32.mrf.mxu1  ;;  %v2341_v31 = vpop.f32.mrf.mxu2  ;;  %v5446_v39 = vor.u32 %v6296_v42, %v5445_v35  ;;  %v5338_v35 = vld [vmem:[%s9459_s7 + $0xb8] sm:$0xff]  ;;  %v6293_v42 = vld [vmem:[%s9460_s8 + $0x574] sm:$0xf] }
 0x3f1   :  { %v8476_v16 = vadd.f32 %v2252_v21, %v8221_v52  ;;  %2960 = vmatpush.bf16.msrb.mxu3 %v5454_v32  ;;  %v5337_v32 = vld [vmem:[%s9459_s7 + $0xb0] sm:$0xff] }
 0x3f5   :  { %2961 = vmatpush.bf16.msrb.mxu3 %v5446_v39  ;;  %v6291_v39 = vld [vmem:[%s9460_s8 + $0x564] sm:$0xf] }
 0x3f6   :  { %v8478_v0 = vpop.f32.mrf.mxu3 }
 0x3f8   :  { %v2294_v43 = vpop.f32.mrf.mxu1  ;;  %v2344_v5 = vpop.f32.mrf.mxu2 }
 0x3f9   :  { %v2295_v44 = vadd.f32 %v2294_v43, %v2275_v36  ;;  %v2382_v52 = vpack.c.bf16 %v2344_v5, %v2341_v31  ;;  %v5439_v36 = vld [vmem:[%s9460_s8 + $0x578] sm:$0xf0]  ;;  %v5431_v5 = vld [vmem:[%s9460_s8 + $0x568] sm:$0xf0] }
 0x3fa   :  { %v5442_v43 = vor.u32 %v6293_v42, %v5439_v36  ;;  %v5383_v42 = vld [vmem:[%s9460_s8 + $0x508] sm:$0xf0]  ;;  %v6309_v36 = vld [vmem:[%s9460_s8 + $0x5f4] sm:$0xf] }
 0x3fb   :  { %v8487_v48 = vadd.f32 %v2295_v44, %v8248_v27  ;;  %2587 = vmatmul.bf16.vlgmr.msra.gmra.mxu0 %v2382_v52  ;;  %2625 = vmatmul.bf16.vlgmr.msra.gmra.mxu2 %v2382_v52  ;;  %v5434_v44 = vor.u32 %v6291_v39, %v5431_v5  ;;  %v6289_v52 = vld [vmem:[%s9460_s8 + $0x554] sm:$0xf]  ;;  %v5503_v39 = vld [vmem:[%s9460_s8 + $0x5f8] sm:$0xf0]  ;;  %v5609_v5 = vld [vmem:[%s9460_s8 + $0x670] sm:$0xf] }
 0x3fc   :  { %3048 = vmatpush.msra.mxu2 %v7135_v41  ;;  %2973 = vmatpush.bf16.msra.mxu0 %v5442_v43  ;;  %v5506_v43 = vor.u32 %v6309_v36, %v5503_v39  ;;  %v5585_v36 = vld [vmem:[%s9460_s8 + $0x640] sm:$0xf] }
 0x3fe   :  { %v2256_v53 = vpop.f32.mrf.mxu3  ;;  %3049 = vmatpush.msra.mxu2 %v7137_v45 }
 0x3ff   :  { %v2257_v61 = vadd.f32 %v2256_v53, %v2237_v34  ;;  %v5335_v34 = vld [vmem:[%s9459_s7 + $0xa0] sm:$0xff]  ;;  %v5423_v53 = vld [vmem:[%s9460_s8 + $0x558] sm:$0xf0] }
 0x400   :  { %3050 = vmatpush.msra.mxu2 %v7141_v46  ;;  %v2347_v62 = vpop.f32.mrf.mxu2  ;;  %2974 = vmatpush.bf16.msra.mxu0 %v5434_v44  ;;  %v6326_v44 = vld [vmem:[%s9460_s8 + $0x674] sm:$0xf0] }
 0x401   :  { %v8493_v23 = vadd.f32 %v2257_v61, %v8242_v14  ;;  %v5426_v61 = vor.u32 %v6289_v52, %v5423_v53  ;;  %v5610_v53 = vor.u32 %v6326_v44, %v5609_v5  ;;  %v6301_v44 = vld [vmem:[%s9460_s8 + $0x5b4] sm:$0xf] }
 0x402   :  { %3051 = vmatpush.msra.mxu2 %v7145_v49 }
 0x404   :  { %2975 = vmatpush.bf16.msra.mxu0 %v5426_v61  ;;  %v6307_v61 = vld [vmem:[%s9460_s8 + $0x5e4] sm:$0xf] }
 0x406   :  { %v8496_v57 = vpop.f32.mrf.mxu3 }
 0x408   :  { %v2350_v27 = vpop.f32.mrf.mxu2 }
 0x409   :  { %v2384_v4 = vpack.c.bf16 %v2350_v27, %v2347_v62  ;;  %v6287_v62 = vld [vmem:[%s9460_s8 + $0x544] sm:$0xf]  ;;  %v5415_v27 = vld [vmem:[%s9460_s8 + $0x548] sm:$0xf0] }
 0x40b   :  { %2592 = vmatmul.bf16.gmra.mxu0 %v2384_v4  ;;  %2630 = vmatmul.bf16.gmra.mxu2 %v2384_v4  ;;  %v5418_v4 = vor.u32 %v6287_v62, %v5415_v27  ;;  %v5495_v62 = vld [vmem:[%s9460_s8 + $0x5e8] sm:$0xf0]  ;;  %v5601_v27 = vld [vmem:[%s9460_s8 + $0x660] sm:$0xf] }
 0x40d   :  { %2976 = vmatpush.bf16.msra.mxu0 %v5418_v4  ;;  %v5498_v4 = vor.u32 %v6307_v61, %v5495_v62  ;;  %v6318_v62 = vld [vmem:[%s9460_s8 + $0x634] sm:$0xf0] }
 0x40e   :  { %v2370_v13 = vpop.f32.mrf.mxu3 }
 0x416   :  { %v2373_v19 = vpop.f32.mrf.mxu3 }
 0x417   :  { %v2383_v21 = vpack.c.bf16 %v2373_v19, %v2370_v13  ;;  %v6285_v13 = vld [vmem:[%s9460_s8 + $0x534] sm:$0xf]  ;;  %v5407_v19 = vld [vmem:[%s9460_s8 + $0x538] sm:$0xf0] }
 0x419   :  { %2606 = vmatmul.bf16.vlgmr.msra.gmra.mxu1 %v2383_v21  ;;  %2644 = vmatmul.bf16.vlgmr.msra.gmra.mxu3 %v2383_v21  ;;  %v6283_v21 = vld [vmem:[%s9460_s8 + $0x524] sm:$0xf] }
 0x41a   :  { %3077 = vmatpush.msra.mxu3 %v7193_v10  ;;  %2992 = vmatpush.bf16.msra.mxu1 %v5506_v43  ;;  %v6320_v43 = vld [vmem:[%s9460_s8 + $0x644] sm:$0xf0] }
 0x41b   :  { %5339 = vmatmul.msk.f32.vlgmr.msrb.gmra.mxu0 %vm904_vm1, %v5335_v34  ;;  %v5586_v5 = vor.u32 %v6320_v43, %v5585_v36  ;;  %v6314_v36 = vld [vmem:[%s9460_s8 + $0x614] sm:$0xf0] }
 0x41c   :  { %3078 = vmatpush.msra.mxu3 %v7214_v18 }
 0x41e   :  { %3079 = vmatpush.msra.mxu3 %v7237_v26  ;;  %v2376_v14 = vpop.f32.mrf.mxu3  ;;  %2993 = vmatpush.bf16.msra.mxu1 %v5498_v4 }
 0x420   :  { %3080 = vmatpush.msra.mxu3 %v7241_v55 }
 0x423   :  { %5340 = vmatmul.msk.f32.gmra.mxu0 %vm904_vm1, %v5336_v1 }
 0x426   :  { %v2379_v20 = vpop.f32.mrf.mxu3 }
 0x427   :  { %v2385_v31 = vpack.c.bf16 %v2379_v20, %v2376_v14  ;;  %v5399_v14 = vld [vmem:[%s9460_s8 + $0x528] sm:$0xf0]  ;;  %v6281_v20 = vld [vmem:[%s9460_s8 + $0x514] sm:$0xf] }
 0x429   :  { %2611 = vmatmul.bf16.gmra.mxu1 %v2385_v31  ;;  %2649 = vmatmul.bf16.gmra.mxu3 %v2385_v31  ;;  %v5391_v31 = vld [vmem:[%s9460_s8 + $0x518] sm:$0xf0] }
 0x42b   :  { %5341 = vmatmul.msk.f32.gmra.mxu0 %vm904_vm1, %v5337_v32 }
 0x433   :  { %5342 = vmatmul.msk.f32.gmra.mxu0 %vm904_vm1, %v5338_v35 }
 0x439   :  { %5343 = vmatmul.msk.f32.vlgmr.msrb.gmra.mxu1 %vm904_vm1, %v5335_v34  ;;  %v5410_v34 = vor.u32 %v6285_v13, %v5407_v19  ;;  %v6324_v13 = vld [vmem:[%s9460_s8 + $0x664] sm:$0xf0]  ;;  %v6305_v19 = vld [vmem:[%s9460_s8 + $0x5d4] sm:$0xf] }
 0x43b   :  { %2977 = vmatpush.bf16.msra.mxu0 %v5410_v34  ;;  %v5602_v34 = vor.u32 %v6324_v13, %v5601_v27  ;;  %v6299_v13 = vld [vmem:[%s9460_s8 + $0x5a4] sm:$0xf] }
 0x441   :  { %5344 = vmatmul.msk.f32.gmra.mxu1 %vm904_vm1, %v5336_v1  ;;  %v5402_v1 = vor.u32 %v6283_v21, %v5399_v14  ;;  %v5487_v21 = vld [vmem:[%s9460_s8 + $0x5d8] sm:$0xf0]  ;;  %v5593_v14 = vld [vmem:[%s9460_s8 + $0x650] sm:$0xf] }
 0x443   :  { %2978 = vmatpush.bf16.msra.mxu0 %v5402_v1  ;;  %v6322_v1 = vld [vmem:[%s9460_s8 + $0x654] sm:$0xf0] }
 0x449   :  { %5345 = vmatmul.msk.f32.gmra.mxu1 %vm904_vm1, %v5337_v32  ;;  %v6279_v32 = vld [vmem:[%s9460_s8 + $0x504] sm:$0xf] }
 0x44a   :  { %v5386_v52 = vor.u32 %v6279_v32, %v5383_v42  ;;  %v8606_v32 = vpop.f32.mrf.mxu0  ;;  %v5479_v42 = vld [vmem:[%s9460_s8 + $0x5c8] sm:$0xf0] }
 0x44b   :  { %9466 = vst [vmem:[#allocation5_spill] sm:$0xff] %v8606_v32 }
 0x451   :  { %5346 = vmatmul.msk.f32.gmra.mxu1 %vm904_vm1, %v5338_v35  ;;  %v5394_v35 = vor.u32 %v6281_v20, %v5391_v31  ;;  %v5490_v20 = vor.u32 %v6305_v19, %v5487_v21  ;;  %v5594_v31 = vor.u32 %v6322_v1, %v5593_v14  ;;  %v5463_v19 = vld [vmem:[%s9460_s8 + $0x5a8] sm:$0xf0]  ;;  %v5569_v21 = vld [vmem:[%s9460_s8 + $0x620] sm:$0xf]  ;;  %v6316_v14 = vld [vmem:[%s9460_s8 + $0x624] sm:$0xf0] }
 0x452   :  { %v5570_v1 = vor.u32 %v6316_v14, %v5569_v21  ;;  %v5665_v21 = vld [vmem:[%s9460_s8 + $0x6e0] sm:$0xf] }
 0x453   :  { %2979 = vmatpush.bf16.msra.mxu0 %v5394_v35  ;;  %2994 = vmatpush.bf16.msra.mxu1 %v5490_v20  ;;  %v6303_v35 = vld [vmem:[%s9460_s8 + $0x5c4] sm:$0xf]  ;;  %v6297_v20 = vld [vmem:[%s9460_s8 + $0x594] sm:$0xf] }
 0x454   :  { %v5482_v39 = vor.u32 %v6303_v35, %v5479_v42  ;;  %v5561_v35 = vld [vmem:[%s9460_s8 + $0x610] sm:$0xf] }
 0x457   :  { %2980 = vmatpush.bf16.msra.mxu0 %v5386_v52  ;;  %2995 = vmatpush.bf16.msra.mxu1 %v5482_v39  ;;  %v5471_v52 = vld [vmem:[%s9460_s8 + $0x5b8] sm:$0xf0]  ;;  %v5562_v39 = vor.u32 %v6314_v36, %v5561_v35  ;;  %v5649_v36 = vld [vmem:[%s9460_s8 + $0x6c0] sm:$0xf] }
 0x458   :  { %v5474_v61 = vor.u32 %v6301_v44, %v5471_v52  ;;  %v5447_v44 = vld [vmem:[%s9460_s8 + $0x588] sm:$0xf0]  ;;  %v5553_v52 = vld [vmem:[%s9460_s8 + $0x600] sm:$0xf] }
 0x45b   :  { %3291 = vmatpush.bf16.msrb.mxu0 %v5610_v53  ;;  %v5577_v53 = vld [vmem:[%s9460_s8 + $0x630] sm:$0xf]  ;;  %2996 = vmatpush.bf16.msra.mxu1 %v5474_v61  ;;  %v6312_v61 = vld [vmem:[%s9460_s8 + $0x604] sm:$0xf0] }
 0x45c   :  { %v5578_v27 = vor.u32 %v6318_v62, %v5577_v53  ;;  %v5673_v62 = vld [vmem:[%s9460_s8 + $0x6f0] sm:$0xf] }
 0x45f   :  { %3292 = vmatpush.bf16.msrb.mxu0 %v5602_v34  ;;  %v5466_v34 = vor.u32 %v6299_v13, %v5463_v19  ;;  %v5554_v13 = vor.u32 %v6312_v61, %v5553_v52  ;;  %v5641_v52 = vld [vmem:[%s9460_s8 + $0x6b0] sm:$0xf] }
 0x461   :  { %2997 = vmatpush.bf16.msra.mxu1 %v5466_v34  ;;  %v6340_v34 = vld [vmem:[%s9460_s8 + $0x6e4] sm:$0xf0] }
 0x462   :  { %v5666_v14 = vor.u32 %v6340_v34, %v5665_v21  ;;  %v5625_v34 = vld [vmem:[%s9460_s8 + $0x690] sm:$0xf] }
 0x463   :  { %3293 = vmatpush.bf16.msrb.mxu0 %v5594_v31  ;;  %v5455_v31 = vld [vmem:[%s9460_s8 + $0x598] sm:$0xf0] }
 0x464   :  { %v5458_v42 = vor.u32 %v6297_v20, %v5455_v31  ;;  %v5657_v20 = vld [vmem:[%s9460_s8 + $0x6d0] sm:$0xf]  ;;  %v6338_v31 = vld [vmem:[%s9460_s8 + $0x6d4] sm:$0xf0] }
 0x465   :  { %v5658_v35 = vor.u32 %v6338_v31, %v5657_v20 }
 0x466   :  { %2998 = vmatpush.bf16.msra.mxu1 %v5458_v42  ;;  %v8688_v42 = vpop.f32.mrf.mxu1 }
 0x467   :  { %3294 = vmatpush.bf16.msrb.mxu0 %v5586_v5  ;;  %v6295_v5 = vld [vmem:[%s9460_s8 + $0x584] sm:$0xf]  ;;  %9467 = vst [vmem:[#allocation6_spill] sm:$0xff] %v8688_v42 }
 0x468   :  { %v5450_v53 = vor.u32 %v6295_v5, %v5447_v44 }
 0x46a   :  { %2999 = vmatpush.bf16.msra.mxu1 %v5450_v53  ;;  %v6334_v53 = vld [vmem:[%s9460_s8 + $0x6b4] sm:$0xf0] }
 0x46b   :  { %3295 = vmatpush.bf16.msrb.mxu0 %v5578_v27  ;;  %v6342_v27 = vld [vmem:[%s9460_s8 + $0x6f4] sm:$0xf0]  ;;  %v5642_v61 = vor.u32 %v6334_v53, %v5641_v52  ;;  %v5617_v52 = vld [vmem:[%s9460_s8 + $0x680] sm:$0xf]  ;;  %v6328_v53 = vld [vmem:[%s9460_s8 + $0x684] sm:$0xf0] }
 0x46c   :  { %v5674_v19 = vor.u32 %v6342_v27, %v5673_v62  ;;  %v5633_v27 = vld [vmem:[%s9460_s8 + $0x6a0] sm:$0xf] }
 0x46e   :  { %3310 = vmatpush.bf16.msrb.mxu1 %v5674_v19 }
 0x46f   :  { %3296 = vmatpush.bf16.msrb.mxu0 %v5570_v1 }
 0x472   :  { %3311 = vmatpush.bf16.msrb.mxu1 %v5666_v14  ;;  %v6330_v14 = vld [vmem:[%s9460_s8 + $0x694] sm:$0xf0] }
 0x473   :  { %3297 = vmatpush.bf16.msrb.mxu0 %v5562_v39  ;;  %v6336_v39 = vld [vmem:[%s9460_s8 + $0x6c4] sm:$0xf0] }
 0x474   :  { %v5650_v5 = vor.u32 %v6336_v39, %v5649_v36  ;;  %v5626_v36 = vor.u32 %v6330_v14, %v5625_v34 }
 0x476   :  { %3312 = vmatpush.bf16.msrb.mxu1 %v5658_v35 }
 0x477   :  { %3298 = vmatpush.bf16.msrb.mxu0 %v5554_v13  ;;  %v6332_v13 = vld [vmem:[%s9460_s8 + $0x6a4] sm:$0xf0] }
 0x478   :  { %v2588_v4 = vpop.f32.mrf.mxu0  ;;  %v5634_v21 = vor.u32 %v6332_v13, %v5633_v27 }
 0x47a   :  { %3313 = vmatpush.bf16.msrb.mxu1 %v5650_v5 }
 0x47e   :  { %3314 = vmatpush.bf16.msrb.mxu1 %v5642_v61  ;;  %v2626_v31 = vpop.f32.mrf.mxu2 }
 0x480   :  { %v8656_v43 = vpop.f32.mrf.mxu0 }
 0x482   :  { %3315 = vmatpush.bf16.msrb.mxu1 %v5634_v21 }
 0x486   :  { %3316 = vmatpush.bf16.msrb.mxu1 %v5626_v36  ;;  %v8730_v13 = vpop.f32.mrf.mxu2 }
 0x488   :  { %v2593_v1 = vpop.f32.mrf.mxu0 }
 0x490   :  { %v8696_v44 = vpop.f32.mrf.mxu0 }
 0x496   :  { %v2607_v62 = vpop.f32.mrf.mxu1 }
 0x497   :  { %v2608_v19 = vadd.f32 %v2607_v62, %v2588_v4 }
 0x498   :  { %v2697_v20 = vpop.f32.mrf.mxu0 }
 0x499   :  { %v8717_v35 = vadd.f32 %v2608_v19, %v8476_v16  ;;  %v5618_v16 = vor.u32 %v6328_v53, %v5617_v52 }
 0x49b   :  { %3317 = vmatpush.bf16.msrb.mxu1 %v5618_v16 }
 0x49c   :  { %v2645_v39 = vpop.f32.mrf.mxu3 }
 0x49d   :  { %v2646_v5 = vadd.f32 %v2645_v39, %v2626_v31 }
 0x49e   :  { %v8719_v4 = vpop.f32.mrf.mxu1 }
 0x49f   :  { %v8728_v61 = vadd.f32 %v2646_v5, %v8457_v63 }
 0x4a0   :  { %v2700_v62 = vpop.f32.mrf.mxu0 }
 0x4a1   :  { %v2738_v27 = vpack.c.bf16 %v2700_v62, %v2697_v20  ;;  %v2631_v20 = vpop.f32.mrf.mxu2 }
 0x4a3   :  { %2943 = vmatmul.bf16.vlgmr.msrb.gmra.mxu2 %v2738_v27  ;;  %2981 = vmatmul.bf16.vlgmr.msra.gmra.mxu0 %v2738_v27  ;;  %v5508_v27 = vld [vmem:[%s9459_s7 + $0xc8] sm:$0xff] }
 0x4a4   :  { %v8732_v19 = vpop.f32.mrf.mxu3  ;;  %3404 = vmatpush.msra.mxu0 %v7135_v41 }
 0x4a6   :  { %v2612_v21 = vpop.f32.mrf.mxu1  ;;  %3405 = vmatpush.msra.mxu0 %v7137_v45 }
 0x4a7   :  { %v2613_v34 = vadd.f32 %v2612_v21, %v2593_v1 }
 0x4a8   :  { %3406 = vmatpush.msra.mxu0 %v7141_v46  ;;  %v2703_v63 = vpop.f32.mrf.mxu0 }
 0x4a9   :  { %v8738_v14 = vadd.f32 %v2613_v34, %v8493_v23  ;;  %v5507_v23 = vld [vmem:[%s9459_s7 + $0xc0] sm:$0xff] }
 0x4aa   :  { %3407 = vmatpush.msra.mxu0 %v7145_v49 }
 0x4ac   :  { %v2650_v31 = vpop.f32.mrf.mxu3 }
 0x4ad   :  { %v2651_v36 = vadd.f32 %v2650_v31, %v2631_v20  ;;  %v5510_v20 = vld [vmem:[%s9459_s7 + $0xd8] sm:$0xff]  ;;  %v6325_v31 = vld [vmem:[%s9460_s8 + $0x674] sm:$0xf] }
 0x4ae   :  { %v8741_v39 = vpop.f32.mrf.mxu1 }
 0x4af   :  { %v8744_v5 = vadd.f32 %v2651_v36, %v8487_v48  ;;  %v5611_v36 = vld [vmem:[%s9460_s8 + $0x678] sm:$0xf0] }
 0x4b0   :  { %v2706_v52 = vpop.f32.mrf.mxu0 }
 0x4b1   :  { %v2740_v53 = vpack.c.bf16 %v2706_v52, %v2703_v63  ;;  %v5509_v63 = vld [vmem:[%s9459_s7 + $0xd0] sm:$0xff]  ;;  %v6323_v52 = vld [vmem:[%s9460_s8 + $0x664] sm:$0xf] }
 0x4b3   :  { %2948 = vmatmul.bf16.gmra.mxu2 %v2740_v53  ;;  %2986 = vmatmul.bf16.gmra.mxu0 %v2740_v53  ;;  %v5614_v53 = vor.u32 %v6325_v31, %v5611_v36  ;;  %v5587_v31 = vld [vmem:[%s9460_s8 + $0x648] sm:$0xf0] }
 0x4b5   :  { %3329 = vmatpush.bf16.msrb.mxu2 %v5614_v53  ;;  %v6315_v53 = vld [vmem:[%s9460_s8 + $0x624] sm:$0xf] }
 0x4b6   :  { %v2726_v1 = vpop.f32.mrf.mxu1 }
 0x4be   :  { %v2729_v16 = vpop.f32.mrf.mxu1 }
 0x4bf   :  { %v2739_v62 = vpack.c.bf16 %v2729_v16, %v2726_v1  ;;  %v5603_v1 = vld [vmem:[%s9460_s8 + $0x668] sm:$0xf0] }
 0x4c0   :  { %v5606_v16 = vor.u32 %v6323_v52, %v5603_v1  ;;  %v5579_v52 = vld [vmem:[%s9460_s8 + $0x638] sm:$0xf0] }
 0x4c1   :  { %2962 = vmatmul.bf16.vlgmr.msrb.gmra.mxu3 %v2739_v62  ;;  %3000 = vmatmul.bf16.vlgmr.msra.gmra.mxu1 %v2739_v62  ;;  %v6321_v62 = vld [vmem:[%s9460_s8 + $0x654] sm:$0xf] }
 0x4c2   :  { %3433 = vmatpush.msra.mxu1 %v7193_v10  ;;  %3330 = vmatpush.bf16.msrb.mxu2 %v5606_v16  ;;  %v5563_v16 = vld [vmem:[%s9460_s8 + $0x618] sm:$0xf0] }
 0x4c3   :  { %5511 = vmatmul.msk.f32.vlgmr.msra.gmra.mxu2 %vm904_vm1, %v5507_v23 }
 0x4c4   :  { %3434 = vmatpush.msra.mxu1 %v7214_v18 }
 0x4c6   :  { %3435 = vmatpush.msra.mxu1 %v7237_v26  ;;  %v2732_v48 = vpop.f32.mrf.mxu1 }
 0x4c8   :  { %3436 = vmatpush.msra.mxu1 %v7241_v55 }
 0x4cb   :  { %5512 = vmatmul.msk.f32.gmra.mxu2 %vm904_vm1, %v5508_v27 }
 0x4ce   :  { %v2735_v21 = vpop.f32.mrf.mxu1 }
 0x4cf   :  { %v2741_v34 = vpack.c.bf16 %v2735_v21, %v2732_v48  ;;  %v5595_v48 = vld [vmem:[%s9460_s8 + $0x658] sm:$0xf0] }
 0x4d0   :  { %v5598_v21 = vor.u32 %v6321_v62, %v5595_v48  ;;  %v6311_v62 = vld [vmem:[%s9460_s8 + $0x604] sm:$0xf] }
 0x4d1   :  { %2967 = vmatmul.bf16.gmra.mxu3 %v2741_v34  ;;  %3005 = vmatmul.bf16.gmra.mxu1 %v2741_v34  ;;  %v6319_v34 = vld [vmem:[%s9460_s8 + $0x644] sm:$0xf] }
 0x4d2   :  { %3331 = vmatpush.bf16.msrb.mxu2 %v5598_v21  ;;  %v5590_v36 = vor.u32 %v6319_v34, %v5587_v31  ;;  %v5555_v21 = vld [vmem:[%s9460_s8 + $0x608] sm:$0xf0]  ;;  %v6341_v34 = vld [vmem:[%s9460_s8 + $0x6f4] sm:$0xf]  ;;  %v5675_v31 = vld [vmem:[%s9460_s8 + $0x6f8] sm:$0xf0] }
 0x4d3   :  { %5513 = vmatmul.msk.f32.gmra.mxu2 %vm904_vm1, %v5509_v63 }
 0x4d6   :  { %3332 = vmatpush.bf16.msrb.mxu2 %v5590_v36  ;;  %v5678_v36 = vor.u32 %v6341_v34, %v5675_v31  ;;  %v5765_v31 = vld [vmem:[%s9460_s8 + $0x750] sm:$0xf] }
 0x4d8   :  { %3348 = vmatpush.bf16.msrb.mxu3 %v5678_v36  ;;  %v6354_v36 = vld [vmem:[%s9460_s8 + $0x754] sm:$0xf0] }
 0x4db   :  { %5514 = vmatmul.msk.f32.gmra.mxu2 %vm904_vm1, %v5510_v20 }
 0x4e1   :  { %5515 = vmatmul.msk.f32.vlgmr.msra.gmra.mxu3 %vm904_vm1, %v5507_v23  ;;  %v6317_v23 = vld [vmem:[%s9460_s8 + $0x634] sm:$0xf] }
 0x4e2   :  { %v5582_v1 = vor.u32 %v6317_v23, %v5579_v52  ;;  %v5781_v23 = vld [vmem:[%s9460_s8 + $0x770] sm:$0xf]  ;;  %v6358_v52 = vld [vmem:[%s9460_s8 + $0x774] sm:$0xf0] }
 0x4e4   :  { %3333 = vmatpush.bf16.msrb.mxu2 %v5582_v1  ;;  %v5782_v1 = vor.u32 %v6358_v52, %v5781_v23  ;;  %v5766_v52 = vor.u32 %v6354_v36, %v5765_v31  ;;  %v6350_v36 = vld [vmem:[%s9460_s8 + $0x734] sm:$0xf0] }
 0x4e9   :  { %5516 = vmatmul.msk.f32.gmra.mxu3 %vm904_vm1, %v5508_v27  ;;  %v5571_v27 = vld [vmem:[%s9460_s8 + $0x628] sm:$0xf0] }
 0x4f1   :  { %5517 = vmatmul.msk.f32.gmra.mxu3 %vm904_vm1, %v5509_v63  ;;  %v5574_v63 = vor.u32 %v6315_v53, %v5571_v27  ;;  %v5558_v53 = vor.u32 %v6311_v62, %v5555_v21  ;;  %v6339_v27 = vld [vmem:[%s9460_s8 + $0x6e4] sm:$0xf]  ;;  %v6356_v62 = vld [vmem:[%s9460_s8 + $0x764] sm:$0xf0]  ;;  %v5659_v21 = vld [vmem:[%s9460_s8 + $0x6d8] sm:$0xf0] }
 0x4f3   :  { %3334 = vmatpush.bf16.msrb.mxu2 %v5574_v63  ;;  %v5667_v63 = vld [vmem:[%s9460_s8 + $0x6e8] sm:$0xf0] }
 0x4f9   :  { %5518 = vmatmul.msk.f32.gmra.mxu3 %vm904_vm1, %v5510_v20  ;;  %v6313_v20 = vld [vmem:[%s9460_s8 + $0x614] sm:$0xf] }
 0x4fa   :  { %v5566_v48 = vor.u32 %v6313_v20, %v5563_v16  ;;  %v5773_v20 = vld [vmem:[%s9460_s8 + $0x760] sm:$0xf]  ;;  %v5670_v16 = vor.u32 %v6339_v27, %v5667_v63  ;;  %v5651_v27 = vld [vmem:[%s9460_s8 + $0x6c8] sm:$0xf0] }
 0x4fb   :  { %v5774_v34 = vor.u32 %v6356_v62, %v5773_v20  ;;  %v5757_v63 = vld [vmem:[%s9460_s8 + $0x740] sm:$0xf] }
 0x4fc   :  { %3335 = vmatpush.bf16.msrb.mxu2 %v5566_v48  ;;  %v6337_v48 = vld [vmem:[%s9460_s8 + $0x6d4] sm:$0xf]  ;;  %3349 = vmatpush.bf16.msrb.mxu3 %v5670_v16  ;;  %v6352_v16 = vld [vmem:[%s9460_s8 + $0x744] sm:$0xf0] }
 0x4fd   :  { %v5662_v23 = vor.u32 %v6337_v48, %v5659_v21  ;;  %v5758_v62 = vor.u32 %v6352_v16, %v5757_v63  ;;  %v6333_v48 = vld [vmem:[%s9460_s8 + $0x6b4] sm:$0xf]  ;;  %v5643_v21 = vld [vmem:[%s9460_s8 + $0x6b8] sm:$0xf0]  ;;  %v5741_v63 = vld [vmem:[%s9460_s8 + $0x720] sm:$0xf] }
 0x4fe   :  { %v5646_v31 = vor.u32 %v6333_v48, %v5643_v21  ;;  %v6348_v16 = vld [vmem:[%s9460_s8 + $0x724] sm:$0xf0]  ;;  %v6329_v48 = vld [vmem:[%s9460_s8 + $0x694] sm:$0xf]  ;;  %v5627_v21 = vld [vmem:[%s9460_s8 + $0x698] sm:$0xf0] }
 0x500   :  { %3336 = vmatpush.bf16.msrb.mxu2 %v5558_v53  ;;  %3350 = vmatpush.bf16.msrb.mxu3 %v5662_v23  ;;  %v8854_v53 = vpop.f32.mrf.mxu2 }
 0x501   :  { %9468 = vst [vmem:[#allocation7_spill] sm:$0xff] %v8854_v53  ;;  %v5829_v53 = vld [vmem:[%s9460_s8 + $0x7d0] sm:$0xf] }
 0x504   :  { %3647 = vmatpush.bf16.msra.mxu2 %v5782_v1  ;;  %v6335_v1 = vld [vmem:[%s9460_s8 + $0x6c4] sm:$0xf] }
 0x505   :  { %v5654_v20 = vor.u32 %v6335_v1, %v5651_v27  ;;  %v6331_v1 = vld [vmem:[%s9460_s8 + $0x6a4] sm:$0xf]  ;;  %v5635_v27 = vld [vmem:[%s9460_s8 + $0x6a8] sm:$0xf0] }
 0x507   :  { %3351 = vmatpush.bf16.msrb.mxu3 %v5654_v20  ;;  %v5638_v20 = vor.u32 %v6331_v1, %v5635_v27  ;;  %v6327_v27 = vld [vmem:[%s9460_s8 + $0x684] sm:$0xf] }
 0x508   :  { %3648 = vmatpush.bf16.msra.mxu2 %v5774_v34  ;;  %v5749_v34 = vld [vmem:[%s9460_s8 + $0x730] sm:$0xf] }
 0x509   :  { %v5750_v23 = vor.u32 %v6350_v36, %v5749_v34  ;;  %v5733_v34 = vld [vmem:[%s9460_s8 + $0x710] sm:$0xf]  ;;  %v6346_v36 = vld [vmem:[%s9460_s8 + $0x714] sm:$0xf0] }
 0x50b   :  { %3352 = vmatpush.bf16.msrb.mxu3 %v5646_v31  ;;  %v5630_v31 = vor.u32 %v6329_v48, %v5627_v21  ;;  %v5845_v48 = vld [vmem:[%s9460_s8 + $0x7f0] sm:$0xf]  ;;  %v6374_v21 = vld [vmem:[%s9460_s8 + $0x7f4] sm:$0xf0] }
 0x50c   :  { %3649 = vmatpush.bf16.msra.mxu2 %v5766_v52 }
 0x50f   :  { %3353 = vmatpush.bf16.msrb.mxu3 %v5638_v20  ;;  %v5725_v20 = vld [vmem:[%s9460_s8 + $0x700] sm:$0xf] }
 0x510   :  { %3650 = vmatpush.bf16.msra.mxu2 %v5758_v62  ;;  %v5742_v62 = vor.u32 %v6348_v16, %v5741_v63  ;;  %v5619_v63 = vld [vmem:[%s9460_s8 + $0x688] sm:$0xf0] }
 0x511   :  { %v5622_v16 = vor.u32 %v6327_v27, %v5619_v63 }
 0x513   :  { %3354 = vmatpush.bf16.msrb.mxu3 %v5630_v31  ;;  %v5846_v31 = vor.u32 %v6374_v21, %v5845_v48  ;;  %v8934_v48 = vpop.f32.mrf.mxu3  ;;  %v5821_v21 = vld [vmem:[%s9460_s8 + $0x7c0] sm:$0xf] }
 0x514   :  { %3651 = vmatpush.bf16.msra.mxu2 %v5750_v23  ;;  %v5734_v23 = vor.u32 %v6346_v36, %v5733_v34  ;;  %v5837_v36 = vld [vmem:[%s9460_s8 + $0x7e0] sm:$0xf]  ;;  %9469 = vst [vmem:[#allocation8_spill] sm:$0xff] %v8934_v48 }
 0x517   :  { %3355 = vmatpush.bf16.msrb.mxu3 %v5622_v16 }
 0x518   :  { %3652 = vmatpush.bf16.msra.mxu2 %v5742_v62  ;;  %v6344_v62 = vld [vmem:[%s9460_s8 + $0x704] sm:$0xf0] }
 0x519   :  { %v5726_v34 = vor.u32 %v6344_v62, %v5725_v20  ;;  %v6370_v20 = vld [vmem:[%s9460_s8 + $0x7d4] sm:$0xf0] }
 0x51a   :  { %v5830_v62 = vor.u32 %v6370_v20, %v5829_v53  ;;  %v5813_v53 = vld [vmem:[%s9460_s8 + $0x7b0] sm:$0xf]  ;;  %v6366_v20 = vld [vmem:[%s9460_s8 + $0x7b4] sm:$0xf0] }
 0x51b   :  { %3666 = vmatpush.bf16.msra.mxu3 %v5846_v31 }
 0x51c   :  { %3653 = vmatpush.bf16.msra.mxu2 %v5734_v23  ;;  %v6372_v23 = vld [vmem:[%s9460_s8 + $0x7e4] sm:$0xf0] }
 0x51d   :  { %v5838_v27 = vor.u32 %v6372_v23, %v5837_v36 }
 0x51f   :  { %3667 = vmatpush.bf16.msra.mxu3 %v5838_v27 }
 0x520   :  { %3654 = vmatpush.bf16.msra.mxu2 %v5726_v34  ;;  %v2982_v16 = vpop.f32.mrf.mxu0  ;;  %v6368_v34 = vld [vmem:[%s9460_s8 + $0x7c4] sm:$0xf0] }
 0x521   :  { %v5822_v31 = vor.u32 %v6368_v34, %v5821_v21  ;;  %v6364_v21 = vld [vmem:[%s9460_s8 + $0x7a4] sm:$0xf0]  ;;  %v5797_v34 = vld [vmem:[%s9460_s8 + $0x790] sm:$0xf] }
 0x523   :  { %3668 = vmatpush.bf16.msra.mxu3 %v5830_v62  ;;  %v5814_v62 = vor.u32 %v6366_v20, %v5813_v53 }
 0x526   :  { %v2944_v52 = vpop.f32.mrf.mxu2 }
 0x527   :  { %3669 = vmatpush.bf16.msra.mxu3 %v5822_v31 }
 0x528   :  { %v2984_v42 = vpop.f32.mrf.mxu0 }
 0x52b   :  { %3670 = vmatpush.bf16.msra.mxu3 %v5814_v62 }
 0x52e   :  { %v2946_v1 = vpop.f32.mrf.mxu2 }
 0x536   :  { %v2949_v63 = vpop.f32.mrf.mxu2 }
 0x53e   :  { %v3001_v36 = vpop.f32.mrf.mxu1  ;;  %v2951_v23 = vpop.f32.mrf.mxu2 }
 0x53f   :  { %v3002_v27 = vadd.f32 %v3001_v36, %v2982_v16  ;;  %v5805_v16 = vld [vmem:[%s9460_s8 + $0x7a0] sm:$0xf] }
 0x540   :  { %v5806_v36 = vor.u32 %v6364_v21, %v5805_v16  ;;  %v2987_v21 = vpop.f32.mrf.mxu0 }
 0x541   :  { %v8949_v48 = vadd.f32 %v3002_v27, %v8728_v61  ;;  %v6362_v61 = vld [vmem:[%s9460_s8 + $0x794] sm:$0xf0] }
 0x542   :  { %3671 = vmatpush.bf16.msra.mxu3 %v5806_v36  ;;  %v5798_v22 = vor.u32 %v6362_v61, %v5797_v34 }
 0x544   :  { %v2963_v32 = vpop.f32.mrf.mxu3 }
 0x545   :  { %v2964_v31 = vadd.f32 %v2963_v32, %v2944_v52  ;;  %v5789_v32 = vld [vmem:[%s9460_s8 + $0x780] sm:$0xf]  ;;  %v6360_v52 = vld [vmem:[%s9460_s8 + $0x784] sm:$0xf0] }
 0x546   :  { %v3003_v27 = vpop.f32.mrf.mxu1  ;;  %v3053_v53 = vpop.f32.mrf.mxu2  ;;  %3672 = vmatpush.bf16.msra.mxu3 %v5798_v22  ;;  %v5790_v8 = vor.u32 %v6360_v52, %v5789_v32 }
 0x547   :  { %v8964_v20 = vadd.f32 %v2964_v31, %v8717_v35  ;;  %v8966_v62 = vadd.f32 %v3003_v27, %v2984_v42 }
 0x54a   :  { %3673 = vmatpush.bf16.msra.mxu3 %v5790_v8 }
 0x54c   :  { %v2965_v40 = vpop.f32.mrf.mxu3 }
 0x54d   :  { %v8974_v16 = vadd.f32 %v2965_v40, %v2946_v1 }
 0x54e   :  { %v3006_v35 = vpop.f32.mrf.mxu1  ;;  %v3056_v31 = vpop.f32.mrf.mxu2 }
 0x54f   :  { %v3007_v42 = vadd.f32 %v3006_v35, %v2987_v21  ;;  %v3094_v27 = vpack.c.bf16 %v3056_v31, %v3053_v53  ;;  %v6355_v35 = vld [vmem:[%s9460_s8 + $0x764] sm:$0xf]  ;;  %v5775_v31 = vld [vmem:[%s9460_s8 + $0x768] sm:$0xf0] }
 0x551   :  { %v8977_v22 = vadd.f32 %v3007_v42, %v8744_v5  ;;  %3337 = vmatmul.bf16.vlgmr.msrb.gmra.mxu2 %v3094_v27  ;;  %3299 = vmatmul.bf16.vlgmr.msrb.gmra.mxu0 %v3094_v27  ;;  %v5778_v42 = vor.u32 %v6355_v35, %v5775_v31  ;;  %v6369_v31 = vld [vmem:[%s9460_s8 + $0x7d4] sm:$0xf] }
 0x552   :  { %3760 = vmatpush.msrb.mxu2 %v7135_v41 }
 0x554   :  { %v2968_v34 = vpop.f32.mrf.mxu3  ;;  %3761 = vmatpush.msrb.mxu2 %v7137_v45  ;;  %v5679_v45 = vld [vmem:[%s9459_s7 + $0xe0] sm:$0xff] }
 0x555   :  { %v2969_v36 = vadd.f32 %v2968_v34, %v2949_v63  ;;  %v6353_v34 = vld [vmem:[%s9460_s8 + $0x754] sm:$0xf] }
 0x556   :  { %3762 = vmatpush.msrb.mxu2 %v7141_v46  ;;  %v3059_v40 = vpop.f32.mrf.mxu2 }
 0x557   :  { %v8983_v1 = vadd.f32 %v2969_v36, %v8738_v14  ;;  %v5767_v36 = vld [vmem:[%s9460_s8 + $0x758] sm:$0xf0] }
 0x558   :  { %3763 = vmatpush.msrb.mxu2 %v7145_v49  ;;  %v5680_v49 = vld [vmem:[%s9459_s7 + $0xe8] sm:$0xff] }
 0x55c   :  { %v2970_v8 = vpop.f32.mrf.mxu3 }
 0x55d   :  { %v8986_v61 = vadd.f32 %v2970_v8, %v2951_v23  ;;  %v5783_v23 = vld [vmem:[%s9460_s8 + $0x778] sm:$0xf0]  ;;  %v6351_v8 = vld [vmem:[%s9460_s8 + $0x744] sm:$0xf] }
 0x55e   :  { %v3062_v5 = vpop.f32.mrf.mxu2 }
 0x55f   :  { %v3096_v53 = vpack.c.bf16 %v3062_v5, %v3059_v40  ;;  %v5770_v40 = vor.u32 %v6353_v34, %v5767_v36  ;;  %v5759_v5 = vld [vmem:[%s9460_s8 + $0x748] sm:$0xf0]  ;;  %v6345_v34 = vld [vmem:[%s9460_s8 + $0x714] sm:$0xf] }
 0x561   :  { %3304 = vmatmul.bf16.gmra.mxu0 %v3096_v53  ;;  %3342 = vmatmul.bf16.gmra.mxu2 %v3096_v53  ;;  %v5762_v53 = vor.u32 %v6351_v8, %v5759_v5  ;;  %v6367_v5 = vld [vmem:[%s9460_s8 + $0x7c4] sm:$0xf] }
 0x564   :  { %v3082_v41 = vpop.f32.mrf.mxu3 }
 0x56c   :  { %v3085_v32 = vpop.f32.mrf.mxu3 }
 0x56d   :  { %v3095_v52 = vpack.c.bf16 %v3085_v32, %v3082_v41  ;;  %v6373_v32 = vld [vmem:[%s9460_s8 + $0x7f4] sm:$0xf] }
 0x56f   :  { %3318 = vmatmul.bf16.vlgmr.msrb.gmra.mxu1 %v3095_v52  ;;  %3356 = vmatmul.bf16.vlgmr.msrb.gmra.mxu3 %v3095_v52  ;;  %v5847_v52 = vld [vmem:[%s9460_s8 + $0x7f8] sm:$0xf0] }
 0x570   :  { %3789 = vmatpush.msrb.mxu3 %v7193_v10  ;;  %v5681_v10 = vld [vmem:[%s9459_s7 + $0xf0] sm:$0xff] }
 0x571   :  { %5683 = vmatmul.msk.f32.vlgmr.msra.gmra.mxu0 %vm904_vm1, %v5679_v45 }
 0x572   :  { %3790 = vmatpush.msrb.mxu3 %v7214_v18  ;;  %v5682_v18 = vld [vmem:[%s9459_s7 + $0xf8] sm:$0xff] }
 0x574   :  { %3791 = vmatpush.msrb.mxu3 %v7237_v26  ;;  %v3088_v46 = vpop.f32.mrf.mxu3  ;;  %v9012_v26 = vpop.f32.mrf.mxu0 }
 0x576   :  { %3792 = vmatpush.msrb.mxu3 %v7241_v55  ;;  %v6357_v55 = vld [vmem:[%s9460_s8 + $0x774] sm:$0xf] }
 0x577   :  { %v5786_v21 = vor.u32 %v6357_v55, %v5783_v23  ;;  %v5743_v23 = vld [vmem:[%s9460_s8 + $0x728] sm:$0xf0] }
 0x579   :  { %5684 = vmatmul.msk.f32.gmra.mxu0 %vm904_vm1, %v5680_v49 }
 0x57a   :  { %3685 = vmatpush.bf16.msrb.mxu0 %v5786_v21 }
 0x57c   :  { %v3091_v14 = vpop.f32.mrf.mxu3 }
 0x57d   :  { %v3097_v63 = vpack.c.bf16 %v3091_v14, %v3088_v46  ;;  %v5850_v46 = vor.u32 %v6373_v32, %v5847_v52  ;;  %v6343_v32 = vld [vmem:[%s9460_s8 + $0x704] sm:$0xf] }
 0x57e   :  { %3686 = vmatpush.bf16.msrb.mxu0 %v5778_v42  ;;  %v5831_v42 = vld [vmem:[%s9460_s8 + $0x7d8] sm:$0xf0] }
 0x57f   :  { %3323 = vmatmul.bf16.gmra.mxu1 %v3097_v63  ;;  %3361 = vmatmul.bf16.gmra.mxu3 %v3097_v63  ;;  %v6371_v63 = vld [vmem:[%s9460_s8 + $0x7e4] sm:$0xf]  ;;  %v5834_v36 = vor.u32 %v6369_v31, %v5831_v42  ;;  %v1898_v42 = vadd.f32 %v8223_v17, %v8160_v11 }
 0x580   :  { %3704 = vmatpush.bf16.msrb.mxu1 %v5850_v46  ;;  %v9090_v46 = vpop.f32.mrf.mxu1 }
 0x581   :  { %5685 = vmatmul.msk.f32.gmra.mxu0 %vm904_vm1, %v5681_v10 }
 0x582   :  { %3687 = vmatpush.bf16.msrb.mxu0 %v5770_v40  ;;  %v5735_v40 = vld [vmem:[%s9460_s8 + $0x718] sm:$0xf0] }
 0x583   :  { %v5738_v8 = vor.u32 %v6345_v34, %v5735_v40  ;;  %v2254_v40 = vadd.f32 %v8478_v0, %v8408_v3  ;;  %v1936_v0 = vadd.f32 %v8236_v7, %v8234_v58 }
 0x586   :  { %3688 = vmatpush.bf16.msrb.mxu0 %v5762_v53  ;;  %v5823_v53 = vld [vmem:[%s9460_s8 + $0x7c8] sm:$0xf0] }
 0x587   :  { %v5826_v52 = vor.u32 %v6367_v5, %v5823_v53  ;;  %v6361_v5 = vld [vmem:[%s9460_s8 + $0x794] sm:$0xf] }
 0x589   :  { %5686 = vmatmul.msk.f32.gmra.mxu0 %vm904_vm1, %v5682_v18 }
 0x58f   :  { %5687 = vmatmul.msk.f32.vlgmr.msra.gmra.mxu1 %vm904_vm1, %v5679_v45  ;;  %v6349_v45 = vld [vmem:[%s9460_s8 + $0x734] sm:$0xf] }
 0x597   :  { %5688 = vmatmul.msk.f32.gmra.mxu1 %vm904_vm1, %v5680_v49  ;;  %v5751_v49 = vld [vmem:[%s9460_s8 + $0x738] sm:$0xf0] }
 0x598   :  { %v5754_v14 = vor.u32 %v6349_v45, %v5751_v49  ;;  %v5727_v45 = vld [vmem:[%s9460_s8 + $0x708] sm:$0xf0] }
 0x599   :  { %v5730_v49 = vor.u32 %v6343_v32, %v5727_v45  ;;  %v6359_v45 = vld [vmem:[%s9460_s8 + $0x784] sm:$0xf] }
 0x59a   :  { %3689 = vmatpush.bf16.msrb.mxu0 %v5754_v14 }
 0x59f   :  { %5689 = vmatmul.msk.f32.gmra.mxu1 %vm904_vm1, %v5681_v10  ;;  %v5839_v10 = vld [vmem:[%s9460_s8 + $0x7e8] sm:$0xf0] }
 0x5a0   :  { %v5842_v55 = vor.u32 %v6371_v63, %v5839_v10  ;;  %v6365_v63 = vld [vmem:[%s9460_s8 + $0x7b4] sm:$0xf]  ;;  %v5815_v10 = vld [vmem:[%s9460_s8 + $0x7b8] sm:$0xf0] }
 0x5a2   :  { %3705 = vmatpush.bf16.msrb.mxu1 %v5842_v55  ;;  %v5818_v55 = vor.u32 %v6365_v63, %v5815_v10 }
 0x5a6   :  { %3706 = vmatpush.bf16.msrb.mxu1 %v5834_v36  ;;  %v1352_v36 = vadd.f32 %v7877_v15, %v7821_v38  ;;  %v2610_v15 = vadd.f32 %v8719_v4, %v8656_v43  ;;  %v5791_v43 = vld [vmem:[%s9460_s8 + $0x788] sm:$0xf0]  ;;  %v2292_v4 = vadd.f32 %v8473_v29, %v8459_v6  ;;  %v1319_v6 = vadd.f32 %v7946_v37, %v7849_v59 }
 0x5a7   :  { %5690 = vmatmul.msk.f32.gmra.mxu1 %vm904_vm1, %v5682_v18  ;;  %v6347_v18 = vld [vmem:[%s9460_s8 + $0x724] sm:$0xf]  ;;  %v2259_v37 = vadd.f32 %v8496_v57, %v8448_v50 }
 0x5a8   :  { %v5746_v21 = vor.u32 %v6347_v18, %v5743_v23  ;;  %v1314_v18 = vadd.f32 %v7904_v56, %v7793_v51  ;;  %v6363_v23 = vld [vmem:[%s9460_s8 + $0x7a4] sm:$0xf]  ;;  %v1569_v3 = vadd.f32 %v7958_v28, %v1352_v36 }
 0x5aa   :  { %3690 = vmatpush.bf16.msrb.mxu0 %v5746_v21  ;;  %3707 = vmatpush.bf16.msrb.mxu1 %v5826_v52  ;;  %v5807_v21 = vld [vmem:[%s9460_s8 + $0x7a8] sm:$0xf0]  ;;  %v1531_v31 = vadd.f32 %v7909_v2, %v1314_v18  ;;  %v5799_v2 = vld [vmem:[%s9460_s8 + $0x798] sm:$0xf0]  ;;  %v1588_v32 = vadd.f32 %v7981_v60, %v1569_v3  ;;  %v2648_v60 = vadd.f32 %v8732_v19, %v8730_v13  ;;  %v5853_v3 = vld [vmem:[%s9459_s7 + $0x110] sm:$0xff] }
 0x5ab   :  { %v5810_v34 = vor.u32 %v6363_v23, %v5807_v21  ;;  %v5802_v53 = vor.u32 %v6361_v5, %v5799_v2  ;;  %v1536_v19 = vadd.f32 %v7954_v9, %v1319_v6  ;;  %v2615_v9 = vadd.f32 %v8741_v39, %v8696_v44  ;;  %v6386_v6 = vld [vmem:[%s9460_s8 + $0x854] sm:$0xf0] }
 0x5ac   :  { %v1550_v56 = vadd.f32 %v7984_v33, %v1531_v31  ;;  %v1946_v58 = vadd.f32 %v1936_v0, %v1588_v32  ;;  %v5854_v0 = vld [vmem:[%s9459_s7 + $0x118] sm:$0xff]  ;;  %v5953_v32 = vld [vmem:[%s9460_s8 + $0x870] sm:$0xf] }
 0x5ad   :  { %v1555_v59 = vadd.f32 %v8000_v47, %v1536_v19  ;;  %v6384_v19 = vld [vmem:[%s9460_s8 + $0x844] sm:$0xf0] }
 0x5ae   :  { %3691 = vmatpush.bf16.msrb.mxu0 %v5738_v8  ;;  %3708 = vmatpush.bf16.msrb.mxu1 %v5818_v55  ;;  %v1945_v38 = vadd.f32 %v1898_v42, %v1550_v56  ;;  %v2302_v29 = vadd.f32 %v2292_v4, %v1946_v58  ;;  %v5955_v4 = vld [vmem:[%s9460_s8 + $0x878] sm:$0xf0]  ;;  %v6387_v58 = vld [vmem:[%s9460_s8 + $0x864] sm:$0xf] }
 0x5b0   :  { %v2658_v42 = vadd.f32 %v2648_v60, %v2302_v29  ;;  %v5947_v60 = vld [vmem:[%s9460_s8 + $0x868] sm:$0xf0]  ;;  %v6385_v29 = vld [vmem:[%s9460_s8 + $0x854] sm:$0xf] }
 0x5b2   :  { %3692 = vmatpush.bf16.msrb.mxu0 %v5730_v49  ;;  %3709 = vmatpush.bf16.msrb.mxu1 %v5810_v34  ;;  %v5794_v49 = vor.u32 %v6359_v45, %v5791_v43  ;;  %v6389_v45 = vld [vmem:[%s9460_s8 + $0x874] sm:$0xf] }
 0x5b6   :  { %3710 = vmatpush.bf16.msrb.mxu1 %v5802_v53 }
 0x5ba   :  { %3711 = vmatpush.bf16.msrb.mxu1 %v5794_v49  ;;  %v6388_v49 = vld [vmem:[%s9460_s8 + $0x864] sm:$0xf0] }
 0x5ce   :  { %v3300_v27 = vpop.f32.mrf.mxu0 }
 0x5d4   :  { %v3338_v11 = vpop.f32.mrf.mxu2 }
 0x5d6   :  { %v9038_v41 = vpop.f32.mrf.mxu0 }
 0x5dc   :  { %v3340_v31 = vpop.f32.mrf.mxu2 }
 0x5de   :  { %v9064_v35 = vpop.f32.mrf.mxu0 }
 0x5e6   :  { %v9092_v14 = vpop.f32.mrf.mxu0 }
 0x5ec   :  { %v3319_v51 = vpop.f32.mrf.mxu1 }
 0x5ed   :  { %v3320_v8 = vadd.f32 %v3319_v51, %v3300_v27  ;;  %v2301_v27 = vadd.f32 %v2254_v40, %v1945_v38  ;;  %v5851_v38 = vld [vmem:[%s9459_s7 + $0x100] sm:$0xff] }
 0x5ee   :  { %v3409_v17 = vpop.f32.mrf.mxu0 }
 0x5ef   :  { %v9125_v33 = vadd.f32 %v3320_v8, %v8964_v20  ;;  %v2657_v28 = vadd.f32 %v2610_v15, %v2301_v27 }
 0x5f1   :  { %v3013_v63 = vadd.f32 %v8974_v16, %v2657_v28  ;;  %v3014_v16 = vadd.f32 %v8966_v62, %v2658_v42  ;;  %v3343_v62 = vpop.f32.mrf.mxu2  ;;  %v5958_v28 = vor.u32 %v6389_v45, %v5955_v4  ;;  %v6401_v45 = vld [vmem:[%s9460_s8 + $0x8d4] sm:$0xf]  ;;  %v6003_v4 = vld [vmem:[%s9460_s8 + $0x8d8] sm:$0xf0] }
 0x5f2   :  { %v3357_v52 = vpop.f32.mrf.mxu3 }
 0x5f3   :  { %v3358_v20 = vadd.f32 %v3357_v52, %v3338_v11  ;;  %v6390_v52 = vld [vmem:[%s9460_s8 + $0x874] sm:$0xf0] }
 0x5f4   :  { %v3321_v7 = vpop.f32.mrf.mxu1  ;;  %v5954_v43 = vor.u32 %v6390_v52, %v5953_v32  ;;  %v6001_v32 = vld [vmem:[%s9460_s8 + $0x8d0] sm:$0xf]  ;;  %v6402_v52 = vld [vmem:[%s9460_s8 + $0x8d4] sm:$0xf0] }
 0x5f5   :  { %v9143_v10 = vadd.f32 %v3358_v20, %v8949_v48  ;;  %v3322_v18 = vadd.f32 %v3321_v7, %v9038_v41  ;;  %v1903_v48 = vadd.f32 %v8245_v24, %v8200_v30  ;;  %v5945_v20 = vld [vmem:[%s9460_s8 + $0x860] sm:$0xf] }
 0x5f6   :  { %v3412_v55 = vpop.f32.mrf.mxu0  ;;  %4003 = vmatpush.bf16.msra.mxu0 %v5954_v43  ;;  %v5946_v7 = vor.u32 %v6388_v49, %v5945_v20  ;;  %v6002_v43 = vor.u32 %v6402_v52, %v6001_v32  ;;  %v6378_v20 = vld [vmem:[%s9460_s8 + $0x814] sm:$0xf0]  ;;  %v6006_v49 = vor.u32 %v6401_v45, %v6003_v4  ;;  %v5961_v32 = vld [vmem:[%s9460_s8 + $0x880] sm:$0xf]  ;;  %v6391_v52 = vld [vmem:[%s9460_s8 + $0x884] sm:$0xf] }
 0x5f7   :  { %v9148_v23 = vadd.f32 %v3322_v18, %v3013_v63  ;;  %v3450_v21 = vpack.c.bf16 %v3412_v55, %v3409_v17  ;;  %v1949_v40 = vadd.f32 %v1903_v48, %v1555_v59  ;;  %v5950_v63 = vor.u32 %v6387_v58, %v5947_v60  ;;  %v5937_v55 = vld [vmem:[%s9460_s8 + $0x850] sm:$0xf]  ;;  %v6383_v48 = vld [vmem:[%s9460_s8 + $0x844] sm:$0xf]  ;;  %v5907_v60 = vld [vmem:[%s9460_s8 + $0x818] sm:$0xf0] }
 0x5f9   :  { %3655 = vmatmul.bf16.vlgmr.msra.gmra.mxu2 %v3450_v21  ;;  %3693 = vmatmul.bf16.vlgmr.msrb.gmra.mxu0 %v3450_v21  ;;  %v2305_v24 = vadd.f32 %v2259_v37, %v1949_v40  ;;  %v9192_v27 = vpop.f32.mrf.mxu2  ;;  %v5938_v21 = vor.u32 %v6386_v6, %v5937_v55  ;;  %v6017_v37 = vld [vmem:[%s9460_s8 + $0x8f0] sm:$0xf]  ;;  %v5993_v55 = vld [vmem:[%s9460_s8 + $0x8c0] sm:$0xf]  ;;  %v6400_v6 = vld [vmem:[%s9460_s8 + $0x8c4] sm:$0xf0] }
 0x5fa   :  { %v3359_v13 = vpop.f32.mrf.mxu3  ;;  %4041 = vmatpush.bf16.msra.mxu2 %v5958_v28  ;;  %4004 = vmatpush.bf16.msra.mxu0 %v5946_v7  ;;  %v5905_v28 = vld [vmem:[%s9460_s8 + $0x810] sm:$0xf]  ;;  %v6377_v7 = vld [vmem:[%s9460_s8 + $0x814] sm:$0xf] }
 0x5fb   :  { %v3360_v41 = vadd.f32 %v3359_v13, %v3340_v31  ;;  %v2661_v5 = vadd.f32 %v2615_v9, %v2305_v24  ;;  %v5939_v31 = vld [vmem:[%s9460_s8 + $0x858] sm:$0xf0]  ;;  %v5929_v13 = vld [vmem:[%s9460_s8 + $0x840] sm:$0xf]  ;;  %v5921_v24 = vld [vmem:[%s9460_s8 + $0x830] sm:$0xf]  ;;  %v5906_v58 = vor.u32 %v6378_v20, %v5905_v28 }
 0x5fc   :  { %v3324_v34 = vpop.f32.mrf.mxu1  ;;  %v5942_v42 = vor.u32 %v6385_v29, %v5939_v31  ;;  %v6019_v9 = vld [vmem:[%s9460_s8 + $0x8f8] sm:$0xf0]  ;;  %v6399_v29 = vld [vmem:[%s9460_s8 + $0x8c4] sm:$0xf]  ;;  %v5995_v31 = vld [vmem:[%s9460_s8 + $0x8c8] sm:$0xf0] }
 0x5fd   :  { %v9157_v36 = vadd.f32 %v3360_v41, %v3014_v16  ;;  %v3325_v51 = vadd.f32 %v3324_v34, %v9064_v35  ;;  %v3017_v50 = vadd.f32 %v8986_v61, %v2661_v5  ;;  %v5852_v61 = vld [vmem:[%s9459_s7 + $0x108] sm:$0xff]  ;;  %v5930_v16 = vor.u32 %v6384_v19, %v5929_v13 }
 0x5fe   :  { %v3415_v56 = vpop.f32.mrf.mxu0  ;;  %4042 = vmatpush.bf16.msra.mxu2 %v5950_v63  ;;  %4005 = vmatpush.bf16.msra.mxu0 %v5938_v21  ;;  %v5931_v41 = vld [vmem:[%s9460_s8 + $0x848] sm:$0xf0]  ;;  %v5910_v63 = vor.u32 %v6377_v7, %v5907_v60  ;;  %v5994_v21 = vor.u32 %v6400_v6, %v5993_v55  ;;  %v6376_v13 = vld [vmem:[%s9460_s8 + $0x804] sm:$0xf0] }
 0x5ff   :  { %v9163_v30 = vadd.f32 %v3325_v51, %v8983_v1  ;;  %v5934_v34 = vor.u32 %v6383_v48, %v5931_v41  ;;  %v6406_v51 = vld [vmem:[%s9460_s8 + $0x8f4] sm:$0xf0]  ;;  %v5998_v48 = vor.u32 %v6399_v29, %v5995_v31  ;;  %v6375_v41 = vld [vmem:[%s9460_s8 + $0x804] sm:$0xf] }
 0x600   :  { %v6018_v40 = vor.u32 %v6406_v51, %v6017_v37 }
 0x602   :  { %v3362_v8 = vpop.f32.mrf.mxu3  ;;  %4043 = vmatpush.bf16.msra.mxu2 %v5942_v42  ;;  %4006 = vmatpush.bf16.msra.mxu0 %v5930_v16  ;;  %v5897_v42 = vld [vmem:[%s9460_s8 + $0x800] sm:$0xf] }
 0x603   :  { %v3363_v47 = vadd.f32 %v3362_v8, %v3343_v62  ;;  %v6382_v62 = vld [vmem:[%s9460_s8 + $0x834] sm:$0xf0]  ;;  %4022 = vmatpush.bf16.msra.mxu1 %v6018_v40  ;;  %v5898_v16 = vor.u32 %v6376_v13, %v5897_v42 }
 0x604   :  { %v3326_v2 = vpop.f32.mrf.mxu1  ;;  %v5922_v5 = vor.u32 %v6382_v62, %v5921_v24  ;;  %v6398_v40 = vld [vmem:[%s9460_s8 + $0x8b4] sm:$0xf0]  ;;  %v5987_v62 = vld [vmem:[%s9460_s8 + $0x8b8] sm:$0xf0] }
 0x605   :  { %v9167_v57 = vadd.f32 %v3363_v47, %v8977_v22  ;;  %v3327_v35 = vadd.f32 %v3326_v2, %v9092_v14  ;;  %v6381_v47 = vld [vmem:[%s9460_s8 + $0x834] sm:$0xf]  ;;  %v5923_v2 = vld [vmem:[%s9460_s8 + $0x838] sm:$0xf0] }
 0x606   :  { %v3418_v11 = vpop.f32.mrf.mxu0  ;;  %4044 = vmatpush.bf16.msra.mxu2 %v5934_v34  ;;  %4007 = vmatpush.bf16.msra.mxu0 %v5922_v5  ;;  %v5899_v34 = vld [vmem:[%s9460_s8 + $0x808] sm:$0xf0]  ;;  %v5977_v5 = vld [vmem:[%s9460_s8 + $0x8a0] sm:$0xf] }
 0x607   :  { %v9170_v17 = vadd.f32 %v3327_v35, %v3017_v50  ;;  %v3452_v44 = vpack.c.bf16 %v3418_v11, %v3415_v56  ;;  %v6405_v56 = vld [vmem:[%s9460_s8 + $0x8f4] sm:$0xf]  ;;  %v5926_v50 = vor.u32 %v6381_v47, %v5923_v2  ;;  %v6009_v35 = vld [vmem:[%s9460_s8 + $0x8e0] sm:$0xf]  ;;  %v6404_v11 = vld [vmem:[%s9460_s8 + $0x8e4] sm:$0xf0]  ;;  %v5902_v37 = vor.u32 %v6375_v41, %v5899_v34 }
 0x608   :  { %v6022_v8 = vor.u32 %v6405_v56, %v6019_v9  ;;  %v5985_v56 = vld [vmem:[%s9460_s8 + $0x8b0] sm:$0xf]  ;;  %v6397_v9 = vld [vmem:[%s9460_s8 + $0x8b4] sm:$0xf]  ;;  %v6396_v47 = vld [vmem:[%s9460_s8 + $0x8a4] sm:$0xf0] }
 0x609   :  { %3660 = vmatmul.bf16.gmra.mxu2 %v3452_v44  ;;  %3698 = vmatmul.bf16.gmra.mxu0 %v3452_v44  ;;  %v6403_v44 = vld [vmem:[%s9460_s8 + $0x8e4] sm:$0xf]  ;;  %v5986_v24 = vor.u32 %v6398_v40, %v5985_v56 }
 0x60a   :  { %4045 = vmatpush.bf16.msra.mxu2 %v5926_v50  ;;  %v9338_v19 = vpop.f32.mrf.mxu3  ;;  %v6395_v2 = vld [vmem:[%s9460_s8 + $0x8a4] sm:$0xf]  ;;  %v5978_v50 = vor.u32 %v6396_v47, %v5977_v5 }
 0x60c   :  { %v3438_v39 = vpop.f32.mrf.mxu1 }
 0x614   :  { %v3441_v1 = vpop.f32.mrf.mxu1 }
 0x615   :  { %v3451_v53 = vpack.c.bf16 %v3441_v1, %v3438_v39  ;;  %v6010_v39 = vor.u32 %v6404_v11, %v6009_v35  ;;  %v6011_v1 = vld [vmem:[%s9460_s8 + $0x8e8] sm:$0xf0] }
 0x616   :  { %v5979_v35 = vld [vmem:[%s9460_s8 + $0x8a8] sm:$0xf0] }
 0x617   :  { %3674 = vmatmul.bf16.vlgmr.msra.gmra.mxu3 %v3451_v53  ;;  %3712 = vmatmul.bf16.vlgmr.msrb.gmra.mxu1 %v3451_v53  ;;  %v5913_v53 = vld [vmem:[%s9460_s8 + $0x820] sm:$0xf] }
 0x618   :  { %4060 = vmatpush.bf16.msra.mxu3 %v6022_v8  ;;  %4023 = vmatpush.bf16.msra.mxu1 %v6010_v39  ;;  %v5990_v8 = vor.u32 %v6397_v9, %v5987_v62  ;;  %v5969_v39 = vld [vmem:[%s9460_s8 + $0x890] sm:$0xf] }
 0x619   :  { %5855 = vmatmul.msk.f32.vlgmr.msrb.gmra.mxu2 %vm904_vm1, %v5851_v38 }
 0x61c   :  { %v3444_v22 = vpop.f32.mrf.mxu1  ;;  %4024 = vmatpush.bf16.msra.mxu1 %v6002_v43  ;;  %v5963_v43 = vld [vmem:[%s9460_s8 + $0x888] sm:$0xf0] }
 0x61d   :  { %v5966_v4 = vor.u32 %v6391_v52, %v5963_v43 }
 0x620   :  { %4025 = vmatpush.bf16.msra.mxu1 %v5994_v21 }
 0x621   :  { %5856 = vmatmul.msk.f32.gmra.mxu2 %vm904_vm1, %v5852_v61 }
 0x624   :  { %v3447_v14 = vpop.f32.mrf.mxu1  ;;  %4026 = vmatpush.bf16.msra.mxu1 %v5986_v24  ;;  %v4087_v24 = vld [vmem:[%s9461_s9] sm:$0x3] }
 0x625   :  { %v3453_v15 = vpack.c.bf16 %v3447_v14, %v3444_v22  ;;  %v6014_v22 = vor.u32 %v6403_v44, %v6011_v1  ;;  %v6379_v14 = vld [vmem:[%s9460_s8 + $0x824] sm:$0xf]  ;;  %v5982_v44 = vor.u32 %v6395_v2, %v5979_v35  ;;  %v6394_v1 = vld [vmem:[%s9460_s8 + $0x894] sm:$0xf0]  ;;  %v4089_v47 = vperm.slane %v4087_v24, 0 }
 0x627   :  { %3679 = vmatmul.bf16.gmra.mxu3 %v3453_v15  ;;  %3717 = vmatmul.bf16.gmra.mxu1 %v3453_v15  ;;  %v5915_v15 = vld [vmem:[%s9460_s8 + $0x828] sm:$0xf0] }
 0x628   :  { %4061 = vmatpush.bf16.msra.mxu3 %v6014_v22  ;;  %4027 = vmatpush.bf16.msra.mxu1 %v5978_v50  ;;  %v5970_v22 = vor.u32 %v6394_v1, %v5969_v39 }
 0x629   :  { %5857 = vmatmul.msk.f32.gmra.mxu2 %vm904_vm1, %v5853_v3 }
 0x62c   :  { %4062 = vmatpush.bf16.msra.mxu3 %v6006_v49  ;;  %4028 = vmatpush.bf16.msra.mxu1 %v5970_v22 }
 0x630   :  { %4063 = vmatpush.bf16.msra.mxu3 %v5998_v48 }
 0x631   :  { %5858 = vmatmul.msk.f32.gmra.mxu2 %vm904_vm1, %v5854_v0 }
 0x634   :  { %4064 = vmatpush.bf16.msra.mxu3 %v5990_v8 }
 0x637   :  { %5859 = vmatmul.msk.f32.vlgmr.msrb.gmra.mxu3 %vm904_vm1, %v5851_v38  ;;  %v6380_v38 = vld [vmem:[%s9460_s8 + $0x824] sm:$0xf0] }
 0x638   :  { %4065 = vmatpush.bf16.msra.mxu3 %v5982_v44 }
 0x63f   :  { %5860 = vmatmul.msk.f32.gmra.mxu3 %vm904_vm1, %v5852_v61  ;;  %v5914_v61 = vor.u32 %v6380_v38, %v5913_v53  ;;  %v6393_v53 = vld [vmem:[%s9460_s8 + $0x894] sm:$0xf] }
 0x641   :  { %4008 = vmatpush.bf16.msra.mxu0 %v5914_v61  ;;  %v5971_v61 = vld [vmem:[%s9460_s8 + $0x898] sm:$0xf0] }
 0x645   :  { %4009 = vmatpush.bf16.msra.mxu0 %v5906_v58 }
 0x647   :  { %5861 = vmatmul.msk.f32.gmra.mxu3 %vm904_vm1, %v5853_v3  ;;  %v5918_v3 = vor.u32 %v6379_v14, %v5915_v15  ;;  %v5974_v15 = vor.u32 %v6393_v53, %v5971_v61  ;;  %v4090_v53 = vperm.slane %v4087_v24, 1 }
 0x649   :  { %4046 = vmatpush.bf16.msra.mxu2 %v5918_v3  ;;  %4010 = vmatpush.bf16.msra.mxu0 %v5898_v16 }
 0x64a   :  { %4066 = vmatpush.bf16.msra.mxu3 %v5974_v15 }
 0x64d   :  { %4047 = vmatpush.bf16.msra.mxu2 %v5910_v63 }
 0x64e   :  { %4067 = vmatpush.bf16.msra.mxu3 %v5966_v4 }
 0x64f   :  { %5862 = vmatmul.msk.f32.gmra.mxu3 %vm904_vm1, %v5854_v0 }
 0x651   :  { %4048 = vmatpush.bf16.msra.mxu2 %v5902_v37 }
 0x67c   :  { %v9218_v18 = vpop.f32.mrf.mxu2 }
 0x684   :  { %v9244_v59 = vpop.f32.mrf.mxu2 }
 0x68c   :  { %v9294_v0 = vpop.f32.mrf.mxu2 }
 0x694   :  { %v3663_v51 = vpop.f32.mrf.mxu2  ;;  %v3713_v41 = vpop.f32.mrf.mxu1 }
 0x69a   :  { %v3675_v11 = vpop.f32.mrf.mxu3 }
 0x69b   :  { %v3676_v38 = vadd.f32 %v3675_v11, %v9218_v18  ;;  %v6392_v18 = vld [vmem:[%s9460_s8 + $0x884] sm:$0xf0] }
 0x69c   :  { %v3765_v14 = vpop.f32.mrf.mxu2  ;;  %v5962_v45 = vor.u32 %v6392_v18, %v5961_v32  ;;  %v3715_v37 = vpop.f32.mrf.mxu1 }
 0x69d   :  { %v3723_v3 = vadd.f32 %v3676_v38, %v9125_v33 }
 0x69e   :  { %4029 = vmatpush.bf16.msra.mxu1 %v5962_v45 }
 0x6a2   :  { %v3677_v33 = vpop.f32.mrf.mxu3 }
 0x6a3   :  { %v3678_v28 = vadd.f32 %v3677_v33, %v9244_v59 }
 0x6a4   :  { %v3768_v20 = vpop.f32.mrf.mxu2 }
 0x6a5   :  { %v3725_v49 = vadd.f32 %v3678_v28, %v9148_v23  ;;  %v3806_v58 = vpack.c.bf16 %v3768_v20, %v3765_v14  ;;  %v9470_v20 = vld [vmem:[#allocation3_spill] sm:$0xff] }
 0x6a7   :  { %4011 = vmatmul.bf16.vlgmr.msra.gmra.mxu0 %v3806_v58  ;;  %4049 = vmatmul.bf16.vlgmr.msra.gmra.mxu2 %v3806_v58 }
 0x6aa   :  { %v3680_v7 = vpop.f32.mrf.mxu3 }
 0x6ab   :  { %v3681_v60 = vadd.f32 %v3680_v7, %v9294_v0  ;;  %v9472_v7 = vld [vmem:[#allocation2_spill] sm:$0xff] }
 0x6ac   :  { %v3771_v63 = vpop.f32.mrf.mxu2 }
 0x6ad   :  { %v9400_v55 = vadd.f32 %v3681_v60, %v9163_v30  ;;  %v3694_v30 = vpop.f32.mrf.mxu0 }
 0x6ae   :  { %v3714_v2 = vadd.f32 %v3713_v41, %v3694_v30  ;;  %v3009_v41 = vadd.f32 %v9090_v46, %v9012_v26 }
 0x6b0   :  { %v3724_v39 = vadd.f32 %v3714_v2, %v9143_v10 }
 0x6b2   :  { %v3682_v6 = vpop.f32.mrf.mxu3 }
 0x6b3   :  { %v3683_v29 = vadd.f32 %v3682_v6, %v3663_v51  ;;  %v9474_v6 = vld [vmem:[#allocation6_spill] sm:$0xff] }
 0x6b4   :  { %v3774_v21 = vpop.f32.mrf.mxu2 }
 0x6b5   :  { %v9403_v59 = vadd.f32 %v3683_v29, %v9170_v17  ;;  %v3808_v31 = vpack.c.bf16 %v3774_v21, %v3771_v63  ;;  %v3696_v34 = vpop.f32.mrf.mxu0  ;;  %v3718_v17 = vpop.f32.mrf.mxu1  ;;  %v9473_v63 = vld [vmem:[#allocation5_spill] sm:$0xff] }
 0x6b6   :  { %v3716_v15 = vadd.f32 %v3715_v37, %v3696_v34  ;;  %v2297_v29 = vadd.f32 %v9474_v6, %v9473_v63 }
 0x6b7   :  { %4016 = vmatmul.bf16.gmra.mxu0 %v3808_v31  ;;  %4054 = vmatmul.bf16.gmra.mxu2 %v3808_v31 }
 0x6b8   :  { %v3726_v43 = vadd.f32 %v3716_v15, %v9157_v36 }
 0x6ba   :  { %v3794_v23 = vpop.f32.mrf.mxu3 }
 0x6bd   :  { %v3699_v51 = vpop.f32.mrf.mxu0  ;;  %v3720_v40 = vpop.f32.mrf.mxu1 }
 0x6be   :  { %v3719_v21 = vadd.f32 %v3718_v17, %v3699_v51 }
 0x6c0   :  { %v3728_v34 = vadd.f32 %v3719_v21, %v9167_v57 }
 0x6c2   :  { %v3797_v42 = vpop.f32.mrf.mxu3 }
 0x6c3   :  { %v3807_v13 = vpack.c.bf16 %v3797_v42, %v3794_v23 }
 0x6c5   :  { %4030 = vmatmul.bf16.vlgmr.msra.gmra.mxu1 %v3807_v13  ;;  %4068 = vmatmul.bf16.vlgmr.msra.gmra.mxu3 %v3807_v13  ;;  %v3701_v56 = vpop.f32.mrf.mxu0  ;;  %v9475_v13 = vld [vmem:[#allocation7_spill] sm:$0xff] }
 0x6ca   :  { %v3800_v48 = vpop.f32.mrf.mxu3 }
 0x6d2   :  { %v3803_v0 = vpop.f32.mrf.mxu3 }
 0x6d3   :  { %v3809_v16 = vpack.c.bf16 %v3803_v0, %v3800_v48  ;;  %v9476_v48 = vld [vmem:[#allocation8_spill] sm:$0xff] }
 0x6d5   :  { %4035 = vmatmul.bf16.gmra.mxu1 %v3809_v16  ;;  %4073 = vmatmul.bf16.gmra.mxu3 %v3809_v16 }
 0x724   :  { %v4012_v9 = vpop.f32.mrf.mxu0 }
 0x72a   :  { %v4050_v8 = vpop.f32.mrf.mxu2 }
 0x72c   :  { %v4014_v35 = vpop.f32.mrf.mxu0 }
 0x732   :  { %v4052_v14 = vpop.f32.mrf.mxu2 }
 0x734   :  { %v4017_v45 = vpop.f32.mrf.mxu0 }
 0x73a   :  { %v4055_v23 = vpop.f32.mrf.mxu2 }
 0x73c   :  { %v4019_v37 = vpop.f32.mrf.mxu0 }
 0x742   :  { %v4031_v62 = vpop.f32.mrf.mxu1 }
 0x743   :  { %v4032_v5 = vadd.f32 %v4031_v62, %v4012_v9  ;;  %v3365_v9 = vadd.f32 %v9338_v19, %v9192_v27 }
 0x745   :  { %v4079_v50 = vadd.f32 %v4032_v5, %v3723_v3  ;;  %v1357_v3 = vadd.f32 %v7936_v12, %v7893_v25  ;;  %v3721_v5 = vadd.f32 %v3720_v40, %v3701_v56 }
 0x747   :  { %v4093_v11 = vadd.f32 %v4089_v47, %v4079_v50  ;;  %v1574_v4 = vadd.f32 %v8110_v54, %v1357_v3  ;;  %v2653_v54 = vadd.f32 %v9476_v48, %v9475_v13  ;;  %v4057_v50 = vpop.f32.mrf.mxu2 }
 0x748   :  { %v4069_v44 = vpop.f32.mrf.mxu3 }
 0x749   :  { %4101 = vst [vmem:[%s9462_s10] sm:$0xff] %v4093_v11  ;;  %v4070_v1 = vadd.f32 %v4069_v44, %v4050_v8  ;;  %v1593_v60 = vadd.f32 %v9472_v7, %v1574_v4 }
 0x74a   :  { %v4033_v38 = vpop.f32.mrf.mxu1 }
 0x74b   :  { %v4080_v22 = vadd.f32 %v4070_v1, %v3724_v39  ;;  %v4034_v61 = vadd.f32 %v4033_v38, %v4014_v35 }
 0x74d   :  { %v4094_v32 = vadd.f32 %v4090_v53, %v4080_v22  ;;  %v4081_v18 = vadd.f32 %v4034_v61, %v3725_v49  ;;  %v9471_v49 = vld [vmem:[#allocation4_spill] sm:$0xff] }
 0x74e   :  { %v1941_v25 = vadd.f32 %v9471_v49, %v9470_v20 }
 0x74f   :  { %4102 = vst [vmem:[%s9462_s10 + $0x8] sm:$0xff] %v4094_v32  ;;  %v4095_v10 = vadd.f32 %v4089_v47, %v4081_v18 }
 0x750   :  { %v4071_v52 = vpop.f32.mrf.mxu3  ;;  %v1950_v42 = vadd.f32 %v1941_v25, %v1593_v60 }
 0x751   :  { %4103 = vst [vmem:[%s9462_s10 + $0x10] sm:$0xff] %v4095_v10  ;;  %v4072_v33 = vadd.f32 %v4071_v52, %v4052_v14 }
 0x752   :  { %v4036_v28 = vpop.f32.mrf.mxu1  ;;  %v2306_v30 = vadd.f32 %v2297_v29, %v1950_v42 }
 0x753   :  { %v4082_v12 = vadd.f32 %v4072_v33, %v3726_v43  ;;  %v4037_v58 = vadd.f32 %v4036_v28, %v4017_v45 }
 0x754   :  { %v2662_v17 = vadd.f32 %v2653_v54, %v2306_v30 }
 0x755   :  { %v4096_v36 = vadd.f32 %v4090_v53, %v4082_v12  ;;  %v4083_v31 = vadd.f32 %v4037_v58, %v9400_v55 }
 0x756   :  { %v3018_v8 = vadd.f32 %v3009_v41, %v2662_v17 }
 0x757   :  { %4104 = vst [vmem:[%s9462_s10 + $0x18] sm:$0xff] %v4096_v36  ;;  %v4097_v0 = vadd.f32 %v4089_v47, %v4083_v31 }
 0x758   :  { %v4074_v16 = vpop.f32.mrf.mxu3  ;;  %v3374_v46 = vadd.f32 %v3365_v9, %v3018_v8 }
 0x759   :  { %4105 = vst [vmem:[%s9462_s10 + $0x20] sm:$0xff] %v4097_v0  ;;  %v4075_v55 = vadd.f32 %v4074_v16, %v4055_v23 }
 0x75a   :  { %v4038_v51 = vpop.f32.mrf.mxu1  ;;  %v3730_v11 = vadd.f32 %v3721_v5, %v3374_v46 }
 0x75b   :  { %v4084_v24 = vadd.f32 %v4075_v55, %v3728_v34  ;;  %v4039_v62 = vadd.f32 %v4038_v51, %v4019_v37 }
 0x75d   :  { %v4098_v2 = vadd.f32 %v4090_v53, %v4084_v24  ;;  %v4085_v26 = vadd.f32 %v4039_v62, %v9403_v59 }
 0x75f   :  { %4106 = vst [vmem:[%s9462_s10 + $0x28] sm:$0xff] %v4098_v2  ;;  %v4099_v57 = vadd.f32 %v4089_v47, %v4085_v26 }
 0x760   :  { %v4076_v35 = vpop.f32.mrf.mxu3 }
 0x761   :  { %4107 = vst [vmem:[%s9462_s10 + $0x30] sm:$0xff] %v4099_v57  ;;  %v4077_v27 = vadd.f32 %v4076_v35, %v4057_v50 }
 0x763   :  { %v4086_v19 = vadd.f32 %v4077_v27, %v3730_v11 }
 0x765   :  { %v4100_v44 = vadd.f32 %v4090_v53, %v4086_v19 }
 0x767   :  { %4108 = vst [vmem:[%s9462_s10 + $0x38] sm:$0xff] %v4100_v44 }

</bundles_post_ra>
